<compile_context>
chip_gen: v7x
topology: tpu7x:2x2x1
jax: 0.10.0
libtpu: 0.0.40
codegen_flags: <defaults>
</compile_context>

<pallas_src>
import functools

import jax
import jax.numpy as jnp
from jax.experimental import pallas as pl
from jax.experimental.pallas import tpu as pltpu


def _rdb_fused_kernel(x_ref, mask_ref,
                      w1_ref, b1_ref, w2_ref, b2_ref, w3_ref, b3_ref,
                      w4_ref, b4_ref, w5_ref, b5_ref,
                      o_ref, feat_ref, *, H, W, nf, gc):
    """Fused ResidualDenseBlock forward for one batch element.

    Geometry: the zero-padded (H+2, W+2, Ctot) feature map is kept flattened
    row-major as a (P, Ctot) VMEM scratch, P = (H+2)*(W+2) + 2 (2 slack rows
    so the last tap's shifted window stays in bounds).  A 3x3 "same" conv is
    9 accumulating MXU matmuls, one per tap (dy, dx):
        acc[M, Cout] += feat[off : off + M, :Cin] @ w_tap[Cin, Cout]
    with M = H*(W+2), off = dy*(W+2) + dx.  Flat row i = h*(W+2) + w; columns
    w >= W are garbage and are zero-masked before being written back into the
    scratch (those rows land exactly on padding positions, which must stay 0).
    """
    Wp = W + 2
    M = H * Wp
    f32 = jnp.float32

    # Zero the padded feature scratch (padding rows/cols must be 0), then drop
    # the width-padded, flattened input into rows [Wp, Wp+M), channels [0, nf).
    feat_ref[...] = jnp.zeros_like(feat_ref)
    feat_ref[pl.ds(Wp, M), pl.ds(0, nf)] = x_ref[...].astype(f32)

    mask = mask_ref[...]                       # (M, 1): 1.0 on valid columns

    def conv3x3(cin, cout, w_ref, b_ref):
        acc = jnp.zeros((M, cout), f32)
        for dy in range(3):
            for dx in range(3):
                t = dy * 3 + dx
                patch = feat_ref[pl.ds(dy * Wp + dx, M), pl.ds(0, cin)]
                w_tap = w_ref[pl.ds(t * cin, cin), :]
                acc = acc + jnp.dot(patch, w_tap,
                                    preferred_element_type=f32)
        return acc + b_ref[...]

    # conv1..conv4: LeakyReLU(0.2), then write the result into its channel
    # slice of the shared scratch (this *is* torch.cat — no HBM concat).
    convs = ((w1_ref, b1_ref), (w2_ref, b2_ref),
             (w3_ref, b3_ref), (w4_ref, b4_ref))
    cin = nf
    for w_ref, b_ref in convs:
        a = conv3x3(cin, gc, w_ref, b_ref)
        a = jnp.where(a >= 0, a, 0.2 * a)      # LeakyReLU(0.2)
        a = a * mask                           # keep padding exactly zero
        feat_ref[pl.ds(Wp + 1, M), pl.ds(cin, gc)] = a
        cin = cin + gc

    # conv5: no activation; fuse `* 0.2 + x`.  x is channels [0, nf) of the
    # scratch at the same data rows (never overwritten).
    a5 = conv3x3(nf + 4 * gc, nf, w5_ref, b5_ref)
    resid = feat_ref[pl.ds(Wp + 1, M), pl.ds(0, nf)]
    o_ref[...] = (a5 * 0.2 + resid).astype(o_ref.dtype)


def residual_dense_block_nhwc(x, params):
    """x: (N, H, W, nf) NHWC; params: w{i} in HWIO (3,3,Cin,Cout), b{i} (Cout,)."""
    N, H, W, nf = x.shape
    gc = params["w1"].shape[-1]
    Wp = W + 2
    M = H * Wp
    ctot = nf + 4 * gc
    P = (H + 2) * Wp + 2          # +2 slack rows for the last tap's shift

    # Width-pad ONCE and flatten (h, w) row-major, so every in-kernel tap
    # window is a plain contiguous sublane slice.
    x_flat = jnp.pad(x, ((0, 0), (0, 0), (1, 1), (0, 0))).reshape(N, M, nf)

    # Valid-column mask: flat row i is pixel (i // Wp, i % Wp); cols >= W are
    # garbage produced by the shifted-slice formulation.
    mask = (jnp.arange(M, dtype=jnp.int32) % Wp < W)
    mask = mask.astype(x.dtype).reshape(M, 1)

    cins = [nf, nf + gc, nf + 2 * gc, nf + 3 * gc, nf + 4 * gc]
    couts = [gc, gc, gc, gc, nf]

    args = [x_flat, mask]
    in_specs = [
        pl.BlockSpec((None, M, nf), lambda n: (n, 0, 0)),
        pl.BlockSpec((M, 1), lambda n: (0, 0)),
    ]
    for i, (ci, co) in enumerate(zip(cins, couts), start=1):
        # Fold (dy, dx, cin) onto rows: tap t occupies rows [t*ci, (t+1)*ci).
        w = params[f"w{i}"].reshape(9 * ci, co)
        b = params[f"b{i}"].reshape(1, co)
        args += [w, b]
        in_specs += [
            pl.BlockSpec((9 * ci, co), lambda n: (0, 0)),
            pl.BlockSpec((1, co), lambda n: (0, 0)),
        ]

    kern = functools.partial(_rdb_fused_kernel, H=H, W=W, nf=nf, gc=gc)

    out_flat = pl.pallas_call(
        kern,
        out_shape=jax.ShapeDtypeStruct((N, M, nf), x.dtype),
        grid=(N,),
        in_specs=in_specs,
        out_specs=pl.BlockSpec((None, M, nf), lambda n: (n, 0, 0)),
        scratch_shapes=[pltpu.VMEM((P, ctot), jnp.float32)],
        compiler_params=pltpu.CompilerParams(
            dimension_semantics=("parallel",)),   # batch is independent (v7x 2 TCs)
    )(*args)

    # Drop the two garbage columns per row and restore (H, W) geometry.
    return out_flat.reshape(N, H, Wp, nf)[:, :, :W, :]


@jax.jit
def residual_dense_block(x_nchw, params):
    """Matches PyTorch ResidualDenseBlock.forward: NCHW in, NCHW out."""
    x = jnp.transpose(x_nchw, (0, 2, 3, 1))          # NCHW -> NHWC
    y = residual_dense_block_nhwc(x, params)
    return jnp.transpose(y, (0, 3, 1, 2))            # NHWC -> NCHW


def init_params(key, nf=8, gc=4):
    """Deterministic synthetic parameters (HWIO weight layout)."""
    keys = jax.random.split(key, 10)
    cins = [nf, nf + gc, nf + 2 * gc, nf + 3 * gc, nf + 4 * gc]
    couts = [gc, gc, gc, gc, nf]
    params = {}
    for i, (ci, co) in enumerate(zip(cins, couts), start=1):
        params[f"w{i}"] = 0.1 * jax.random.normal(
            keys[2 * (i - 1)], (3, 3, ci, co), jnp.float32)
        params[f"b{i}"] = 0.01 * jax.random.normal(
            keys[2 * (i - 1) + 1], (co,), jnp.float32)
    return params


# ---------------- pure-JAX reference (for correctness check) ----------------
def _ref_conv(x, w, b):
    y = jax.lax.conv_general_dilated(
        x, w, window_strides=(1, 1), padding="SAME",
        dimension_numbers=("NHWC", "HWIO", "NHWC"))
    return y + b


def _ref_block_nhwc(x, p):
    lrelu = lambda v: jnp.where(v >= 0, v, 0.2 * v)
    x1 = lrelu(_ref_conv(x, p["w1"], p["b1"]))
    x2 = lrelu(_ref_conv(jnp.concatenate([x, x1], -1), p["w2"], p["b2"]))
    x3 = lrelu(_ref_conv(jnp.concatenate([x, x1, x2], -1), p["w3"], p["b3"]))
    x4 = lrelu(_ref_conv(jnp.concatenate([x, x1, x2, x3], -1), p["w4"], p["b4"]))
    x5 = _ref_conv(jnp.concatenate([x, x1, x2, x3, x4], -1), p["w5"], p["b5"])
    return x5 * 0.2 + x


if __name__ == "__main__":
    N, nf, gc, Hs, Ws = 2, 8, 4, 16, 16

    key = jax.random.PRNGKey(0)
    k_x, k_p = jax.random.split(key)
    x_nchw = jax.random.normal(k_x, (N, nf, Hs, Ws), jnp.float32)
    params = init_params(k_p, nf=nf, gc=gc)

    out = residual_dense_block(x_nchw, params)
    out = jax.block_until_ready(out)

    # Verify against plain-JAX reference.
    ref = _ref_block_nhwc(jnp.transpose(x_nchw, (0, 2, 3, 1)), params)
    ref = jnp.transpose(ref, (0, 3, 1, 2))
    assert out.shape == x_nchw.shape
    err = float(jnp.max(jnp.abs(out - ref)))
    assert jnp.allclose(out, ref, atol=1e-3, rtol=1e-3), err

    print("KERNEL_OK")
</pallas_src>

<mosaic_0001>
module attributes {stable_mosaic.version = 11 : i64} {
  func.func @_rdb_fused_kernel(%arg0: i32, %arg1: memref<1x288x8xf32, #tpu.memory_space<vmem>>, %arg2: memref<288x1xf32, #tpu.memory_space<vmem>>, %arg3: memref<72x4xf32, #tpu.memory_space<vmem>>, %arg4: memref<1x4xf32, #tpu.memory_space<vmem>>, %arg5: memref<108x4xf32, #tpu.memory_space<vmem>>, %arg6: memref<1x4xf32, #tpu.memory_space<vmem>>, %arg7: memref<144x4xf32, #tpu.memory_space<vmem>>, %arg8: memref<1x4xf32, #tpu.memory_space<vmem>>, %arg9: memref<180x4xf32, #tpu.memory_space<vmem>>, %arg10: memref<1x4xf32, #tpu.memory_space<vmem>>, %arg11: memref<216x8xf32, #tpu.memory_space<vmem>>, %arg12: memref<1x8xf32, #tpu.memory_space<vmem>>, %arg13: memref<1x288x8xf32, #tpu.memory_space<vmem>>, %arg14: memref<326x24xf32, #tpu.memory_space<vmem>>) attributes {dimension_semantics = [#tpu.dimension_semantics<parallel>], iteration_bounds = array<i64: 2>, scalar_prefetch = 0 : i64, scratch_operands = 1 : i64, tpu.core_type = #tpu.core_type<tc>, window_params = [{transform_indices = @transform_0, window_bounds = array<i64: 1, 288, 8>}, {pipeline_mode = #tpu.pipeline_mode<synchronous>, transform_indices = @transform_1, window_bounds = array<i64: 288, 1>}, {pipeline_mode = #tpu.pipeline_mode<synchronous>, transform_indices = @transform_2, window_bounds = array<i64: 72, 4>}, {pipeline_mode = #tpu.pipeline_mode<synchronous>, transform_indices = @transform_3, window_bounds = array<i64: 1, 4>}, {pipeline_mode = #tpu.pipeline_mode<synchronous>, transform_indices = @transform_4, window_bounds = array<i64: 108, 4>}, {pipeline_mode = #tpu.pipeline_mode<synchronous>, transform_indices = @transform_5, window_bounds = array<i64: 1, 4>}, {pipeline_mode = #tpu.pipeline_mode<synchronous>, transform_indices = @transform_6, window_bounds = array<i64: 144, 4>}, {pipeline_mode = #tpu.pipeline_mode<synchronous>, transform_indices = @transform_7, window_bounds = array<i64: 1, 4>}, {pipeline_mode = #tpu.pipeline_mode<synchronous>, transform_indices = @transform_8, window_bounds = array<i64: 180, 4>}, {pipeline_mode = #tpu.pipeline_mode<synchronous>, transform_indices = @transform_9, window_bounds = array<i64: 1, 4>}, {pipeline_mode = #tpu.pipeline_mode<synchronous>, transform_indices = @transform_10, window_bounds = array<i64: 216, 8>}, {pipeline_mode = #tpu.pipeline_mode<synchronous>, transform_indices = @transform_11, window_bounds = array<i64: 1, 8>}, {transform_indices = @transform_12, window_bounds = array<i64: 1, 288, 8>}]} {
    %cst = arith.constant 0.000000e+00 : f32
    %0 = vector.broadcast %cst : f32 to vector<326x24xf32>
    %c0 = arith.constant 0 : index
    %c0_0 = arith.constant 0 : index
    %1 = vector.load %arg14[%c0, %c0_0] : memref<326x24xf32, #tpu.memory_space<vmem>>, vector<326x24xf32>
    tpu.vector_store %arg14[%c0, %c0_0], %0 {strides = array<i32>} : memref<326x24xf32, #tpu.memory_space<vmem>>, vector<326x24xf32>,
    %c0_1 = arith.constant 0 : index
    %c0_2 = arith.constant 0 : index
    %c0_3 = arith.constant 0 : index
    %2 = vector.load %arg1[%c0_1, %c0_2, %c0_3] : memref<1x288x8xf32, #tpu.memory_space<vmem>>, vector<1x288x8xf32>
    %3 = vector.shape_cast %2 : vector<1x288x8xf32> to vector<288x8xf32>
    %c18 = arith.constant 18 : index
    %c0_4 = arith.constant 0 : index
    %4 = vector.load %arg14[%c18, %c0_4] : memref<326x24xf32, #tpu.memory_space<vmem>>, vector<288x8xf32>
    tpu.vector_store %arg14[%c18, %c0_4], %3 {strides = array<i32>} : memref<326x24xf32, #tpu.memory_space<vmem>>, vector<288x8xf32>,
    %c0_5 = arith.constant 0 : index
    %c0_6 = arith.constant 0 : index
    %5 = vector.load %arg2[%c0_5, %c0_6] : memref<288x1xf32, #tpu.memory_space<vmem>>, vector<288x1xf32>
    %cst_7 = arith.constant 0.000000e+00 : f32
    %6 = vector.broadcast %cst_7 : f32 to vector<288x4xf32>
    %c0_8 = arith.constant 0 : index
    %c0_9 = arith.constant 0 : index
    %7 = vector.load %arg14[%c0_8, %c0_9] : memref<326x24xf32, #tpu.memory_space<vmem>>, vector<288x8xf32>
    %c0_10 = arith.constant 0 : index
    %c0_11 = arith.constant 0 : index
    %8 = vector.load %arg3[%c0_10, %c0_11] : memref<72x4xf32, #tpu.memory_space<vmem>>, vector<8x4xf32>
    %cst_12 = arith.constant dense<0.000000e+00> : vector<288x4xf32>
    %9 = tpu.matmul %7, %8, %cst_12 {dimension_numbers = #tpu.dot_dimension_numbers<[1], [0], [0], [1], [0, 0, 1, 1], [], []>} : vector<288x8xf32>, vector<8x4xf32>, vector<288x4xf32> -> vector<288x4xf32>
    %10 = arith.addf %6, %9 : vector<288x4xf32>
    %c1 = arith.constant 1 : index
    %c0_13 = arith.constant 0 : index
    %11 = vector.load %arg14[%c1, %c0_13] : memref<326x24xf32, #tpu.memory_space<vmem>>, vector<288x8xf32>
    %c8 = arith.constant 8 : index
    %c0_14 = arith.constant 0 : index
    %12 = vector.load %arg3[%c8, %c0_14] : memref<72x4xf32, #tpu.memory_space<vmem>>, vector<8x4xf32>
    %cst_15 = arith.constant dense<0.000000e+00> : vector<288x4xf32>
    %13 = tpu.matmul %11, %12, %cst_15 {dimension_numbers = #tpu.dot_dimension_numbers<[1], [0], [0], [1], [0, 0, 1, 1], [], []>} : vector<288x8xf32>, vector<8x4xf32>, vector<288x4xf32> -> vector<288x4xf32>
    %14 = arith.addf %10, %13 : vector<288x4xf32>
    %c2 = arith.constant 2 : index
    %c0_16 = arith.constant 0 : index
    %15 = vector.load %arg14[%c2, %c0_16] : memref<326x24xf32, #tpu.memory_space<vmem>>, vector<288x8xf32>
    %c16 = arith.constant 16 : index
    %c0_17 = arith.constant 0 : index
    %16 = vector.load %arg3[%c16, %c0_17] : memref<72x4xf32, #tpu.memory_space<vmem>>, vector<8x4xf32>
    %cst_18 = arith.constant dense<0.000000e+00> : vector<288x4xf32>
    %17 = tpu.matmul %15, %16, %cst_18 {dimension_numbers = #tpu.dot_dimension_numbers<[1], [0], [0], [1], [0, 0, 1, 1], [], []>} : vector<288x8xf32>, vector<8x4xf32>, vector<288x4xf32> -> vector<288x4xf32>
    %18 = arith.addf %14, %17 : vector<288x4xf32>
    %c18_19 = arith.constant 18 : index
    %c0_20 = arith.constant 0 : index
    %19 = vector.load %arg14[%c18_19, %c0_20] : memref<326x24xf32, #tpu.memory_space<vmem>>, vector<288x8xf32>
    %c24 = arith.constant 24 : index
    %c0_21 = arith.constant 0 : index
    %20 = vector.load %arg3[%c24, %c0_21] : memref<72x4xf32, #tpu.memory_space<vmem>>, vector<8x4xf32>
    %cst_22 = arith.constant dense<0.000000e+00> : vector<288x4xf32>
    %21 = tpu.matmul %19, %20, %cst_22 {dimension_numbers = #tpu.dot_dimension_numbers<[1], [0], [0], [1], [0, 0, 1, 1], [], []>} : vector<288x8xf32>, vector<8x4xf32>, vector<288x4xf32> -> vector<288x4xf32>
    %22 = arith.addf %18, %21 : vector<288x4xf32>
    %c19 = arith.constant 19 : index
    %c0_23 = arith.constant 0 : index
    %23 = vector.load %arg14[%c19, %c0_23] : memref<326x24xf32, #tpu.memory_space<vmem>>, vector<288x8xf32>
    %c32 = arith.constant 32 : index
    %c0_24 = arith.constant 0 : index
    %24 = vector.load %arg3[%c32, %c0_24] : memref<72x4xf32, #tpu.memory_space<vmem>>, vector<8x4xf32>
    %cst_25 = arith.constant dense<0.000000e+00> : vector<288x4xf32>
    %25 = tpu.matmul %23, %24, %cst_25 {dimension_numbers = #tpu.dot_dimension_numbers<[1], [0], [0], [1], [0, 0, 1, 1], [], []>} : vector<288x8xf32>, vector<8x4xf32>, vector<288x4xf32> -> vector<288x4xf32>
    %26 = arith.addf %22, %25 : vector<288x4xf32>
    %c20 = arith.constant 20 : index
    %c0_26 = arith.constant 0 : index
    %27 = vector.load %arg14[%c20, %c0_26] : memref<326x24xf32, #tpu.memory_space<vmem>>, vector<288x8xf32>
    %c40 = arith.constant 40 : index
    %c0_27 = arith.constant 0 : index
    %28 = vector.load %arg3[%c40, %c0_27] : memref<72x4xf32, #tpu.memory_space<vmem>>, vector<8x4xf32>
    %cst_28 = arith.constant dense<0.000000e+00> : vector<288x4xf32>
    %29 = tpu.matmul %27, %28, %cst_28 {dimension_numbers = #tpu.dot_dimension_numbers<[1], [0], [0], [1], [0, 0, 1, 1], [], []>} : vector<288x8xf32>, vector<8x4xf32>, vector<288x4xf32> -> vector<288x4xf32>
    %30 = arith.addf %26, %29 : vector<288x4xf32>
    %c36 = arith.constant 36 : index
    %c0_29 = arith.constant 0 : index
    %31 = vector.load %arg14[%c36, %c0_29] : memref<326x24xf32, #tpu.memory_space<vmem>>, vector<288x8xf32>
    %c48 = arith.constant 48 : index
    %c0_30 = arith.constant 0 : index
    %32 = vector.load %arg3[%c48, %c0_30] : memref<72x4xf32, #tpu.memory_space<vmem>>, vector<8x4xf32>
    %cst_31 = arith.constant dense<0.000000e+00> : vector<288x4xf32>
    %33 = tpu.matmul %31, %32, %cst_31 {dimension_numbers = #tpu.dot_dimension_numbers<[1], [0], [0], [1], [0, 0, 1, 1], [], []>} : vector<288x8xf32>, vector<8x4xf32>, vector<288x4xf32> -> vector<288x4xf32>
    %34 = arith.addf %30, %33 : vector<288x4xf32>
    %c37 = arith.constant 37 : index
    %c0_32 = arith.constant 0 : index
    %35 = vector.load %arg14[%c37, %c0_32] : memref<326x24xf32, #tpu.memory_space<vmem>>, vector<288x8xf32>
    %c56 = arith.constant 56 : index
    %c0_33 = arith.constant 0 : index
    %36 = vector.load %arg3[%c56, %c0_33] : memref<72x4xf32, #tpu.memory_space<vmem>>, vector<8x4xf32>
    %cst_34 = arith.constant dense<0.000000e+00> : vector<288x4xf32>
    %37 = tpu.matmul %35, %36, %cst_34 {dimension_numbers = #tpu.dot_dimension_numbers<[1], [0], [0], [1], [0, 0, 1, 1], [], []>} : vector<288x8xf32>, vector<8x4xf32>, vector<288x4xf32> -> vector<288x4xf32>
    %38 = arith.addf %34, %37 : vector<288x4xf32>
    %c38 = arith.constant 38 : index
    %c0_35 = arith.constant 0 : index
    %39 = vector.load %arg14[%c38, %c0_35] : memref<326x24xf32, #tpu.memory_space<vmem>>, vector<288x8xf32>
    %c64 = arith.constant 64 : index
    %c0_36 = arith.constant 0 : index
    %40 = vector.load %arg3[%c64, %c0_36] : memref<72x4xf32, #tpu.memory_space<vmem>>, vector<8x4xf32>
    %cst_37 = arith.constant dense<0.000000e+00> : vector<288x4xf32>
    %41 = tpu.matmul %39, %40, %cst_37 {dimension_numbers = #tpu.dot_dimension_numbers<[1], [0], [0], [1], [0, 0, 1, 1], [], []>} : vector<288x8xf32>, vector<8x4xf32>, vector<288x4xf32> -> vector<288x4xf32>
    %42 = arith.addf %38, %41 : vector<288x4xf32>
    %c0_38 = arith.constant 0 : index
    %c0_39 = arith.constant 0 : index
    %43 = vector.load %arg4[%c0_38, %c0_39] : memref<1x4xf32, #tpu.memory_space<vmem>>, vector<1x4xf32>
    %44 = vector.broadcast %43 : vector<1x4xf32> to vector<288x4xf32>
    %45 = arith.addf %42, %44 : vector<288x4xf32>
    %cst_40 = arith.constant 0.000000e+00 : f32
    %46 = vector.broadcast %cst_40 : f32 to vector<288x4xf32>
    %47 = arith.cmpf oge, %45, %46 : vector<288x4xf32>
    %cst_41 = arith.constant 2.000000e-01 : f32
    %48 = vector.broadcast %cst_41 : f32 to vector<288x4xf32>
    %49 = arith.mulf %48, %45 : vector<288x4xf32>
    %50 = arith.select %47, %45, %49 : vector<288x4xi1>, vector<288x4xf32>
    %51 = vector.broadcast %5 : vector<288x1xf32> to vector<288x4xf32>
    %52 = arith.mulf %50, %51 : vector<288x4xf32>
    %c19_42 = arith.constant 19 : index
    %c8_43 = arith.constant 8 : index
    %53 = vector.load %arg14[%c19_42, %c8_43] : memref<326x24xf32, #tpu.memory_space<vmem>>, vector<288x4xf32>
    tpu.vector_store %arg14[%c19_42, %c8_43], %52 {strides = array<i32>} : memref<326x24xf32, #tpu.memory_space<vmem>>, vector<288x4xf32>,
    %cst_44 = arith.constant 0.000000e+00 : f32
    %54 = vector.broadcast %cst_44 : f32 to vector<288x4xf32>
    %c0_45 = arith.constant 0 : index
    %c0_46 = arith.constant 0 : index
    %55 = vector.load %arg14[%c0_45, %c0_46] : memref<326x24xf32, #tpu.memory_space<vmem>>, vector<288x12xf32>
    %c0_47 = arith.constant 0 : index
    %c0_48 = arith.constant 0 : index
    %56 = vector.load %arg5[%c0_47, %c0_48] : memref<108x4xf32, #tpu.memory_space<vmem>>, vector<12x4xf32>
    %cst_49 = arith.constant dense<0.000000e+00> : vector<288x4xf32>
    %57 = tpu.matmul %55, %56, %cst_49 {dimension_numbers = #tpu.dot_dimension_numbers<[1], [0], [0], [1], [0, 0, 1, 1], [], []>} : vector<288x12xf32>, vector<12x4xf32>, vector<288x4xf32> -> vector<288x4xf32>
    %58 = arith.addf %54, %57 : vector<288x4xf32>
    %c1_50 = arith.constant 1 : index
    %c0_51 = arith.constant 0 : index
    %59 = vector.load %arg14[%c1_50, %c0_51] : memref<326x24xf32, #tpu.memory_space<vmem>>, vector<288x12xf32>
    %c12 = arith.constant 12 : index
    %c0_52 = arith.constant 0 : index
    %60 = vector.load %arg5[%c12, %c0_52] : memref<108x4xf32, #tpu.memory_space<vmem>>, vector<12x4xf32>
    %cst_53 = arith.constant dense<0.000000e+00> : vector<288x4xf32>
    %61 = tpu.matmul %59, %60, %cst_53 {dimension_numbers = #tpu.dot_dimension_numbers<[1], [0], [0], [1], [0, 0, 1, 1], [], []>} : vector<288x12xf32>, vector<12x4xf32>, vector<288x4xf32> -> vector<288x4xf32>
    %62 = arith.addf %58, %61 : vector<288x4xf32>
    %c2_54 = arith.constant 2 : index
    %c0_55 = arith.constant 0 : index
    %63 = vector.load %arg14[%c2_54, %c0_55] : memref<326x24xf32, #tpu.memory_space<vmem>>, vector<288x12xf32>
    %c24_56 = arith.constant 24 : index
    %c0_57 = arith.constant 0 : index
    %64 = vector.load %arg5[%c24_56, %c0_57] : memref<108x4xf32, #tpu.memory_space<vmem>>, vector<12x4xf32>
    %cst_58 = arith.constant dense<0.000000e+00> : vector<288x4xf32>
    %65 = tpu.matmul %63, %64, %cst_58 {dimension_numbers = #tpu.dot_dimension_numbers<[1], [0], [0], [1], [0, 0, 1, 1], [], []>} : vector<288x12xf32>, vector<12x4xf32>, vector<288x4xf32> -> vector<288x4xf32>
    %66 = arith.addf %62, %65 : vector<288x4xf32>
    %c18_59 = arith.constant 18 : index
    %c0_60 = arith.constant 0 : index
    %67 = vector.load %arg14[%c18_59, %c0_60] : memref<326x24xf32, #tpu.memory_space<vmem>>, vector<288x12xf32>
    %c36_61 = arith.constant 36 : index
    %c0_62 = arith.constant 0 : index
    %68 = vector.load %arg5[%c36_61, %c0_62] : memref<108x4xf32, #tpu.memory_space<vmem>>, vector<12x4xf32>
    %cst_63 = arith.constant dense<0.000000e+00> : vector<288x4xf32>
    %69 = tpu.matmul %67, %68, %cst_63 {dimension_numbers = #tpu.dot_dimension_numbers<[1], [0], [0], [1], [0, 0, 1, 1], [], []>} : vector<288x12xf32>, vector<12x4xf32>, vector<288x4xf32> -> vector<288x4xf32>
    %70 = arith.addf %66, %69 : vector<288x4xf32>
    %c19_64 = arith.constant 19 : index
    %c0_65 = arith.constant 0 : index
    %71 = vector.load %arg14[%c19_64, %c0_65] : memref<326x24xf32, #tpu.memory_space<vmem>>, vector<288x12xf32>
    %c48_66 = arith.constant 48 : index
    %c0_67 = arith.constant 0 : index
    %72 = vector.load %arg5[%c48_66, %c0_67] : memref<108x4xf32, #tpu.memory_space<vmem>>, vector<12x4xf32>
    %cst_68 = arith.constant dense<0.000000e+00> : vector<288x4xf32>
    %73 = tpu.matmul %71, %72, %cst_68 {dimension_numbers = #tpu.dot_dimension_numbers<[1], [0], [0], [1], [0, 0, 1, 1], [], []>} : vector<288x12xf32>, vector<12x4xf32>, vector<288x4xf32> -> vector<288x4xf32>
    %74 = arith.addf %70, %73 : vector<288x4xf32>
    %c20_69 = arith.constant 20 : index
    %c0_70 = arith.constant 0 : index
    %75 = vector.load %arg14[%c20_69, %c0_70] : memref<326x24xf32, #tpu.memory_space<vmem>>, vector<288x12xf32>
    %c60 = arith.constant 60 : index
    %c0_71 = arith.constant 0 : index
    %76 = vector.load %arg5[%c60, %c0_71] : memref<108x4xf32, #tpu.memory_space<vmem>>, vector<12x4xf32>
    %cst_72 = arith.constant dense<0.000000e+00> : vector<288x4xf32>
    %77 = tpu.matmul %75, %76, %cst_72 {dimension_numbers = #tpu.dot_dimension_numbers<[1], [0], [0], [1], [0, 0, 1, 1], [], []>} : vector<288x12xf32>, vector<12x4xf32>, vector<288x4xf32> -> vector<288x4xf32>
    %78 = arith.addf %74, %77 : vector<288x4xf32>
    %c36_73 = arith.constant 36 : index
    %c0_74 = arith.constant 0 : index
    %79 = vector.load %arg14[%c36_73, %c0_74] : memref<326x24xf32, #tpu.memory_space<vmem>>, vector<288x12xf32>
    %c72 = arith.constant 72 : index
    %c0_75 = arith.constant 0 : index
    %80 = vector.load %arg5[%c72, %c0_75] : memref<108x4xf32, #tpu.memory_space<vmem>>, vector<12x4xf32>
    %cst_76 = arith.constant dense<0.000000e+00> : vector<288x4xf32>
    %81 = tpu.matmul %79, %80, %cst_76 {dimension_numbers = #tpu.dot_dimension_numbers<[1], [0], [0], [1], [0, 0, 1, 1], [], []>} : vector<288x12xf32>, vector<12x4xf32>, vector<288x4xf32> -> vector<288x4xf32>
    %82 = arith.addf %78, %81 : vector<288x4xf32>
    %c37_77 = arith.constant 37 : index
    %c0_78 = arith.constant 0 : index
    %83 = vector.load %arg14[%c37_77, %c0_78] : memref<326x24xf32, #tpu.memory_space<vmem>>, vector<288x12xf32>
    %c84 = arith.constant 84 : index
    %c0_79 = arith.constant 0 : index
    %84 = vector.load %arg5[%c84, %c0_79] : memref<108x4xf32, #tpu.memory_space<vmem>>, vector<12x4xf32>
    %cst_80 = arith.constant dense<0.000000e+00> : vector<288x4xf32>
    %85 = tpu.matmul %83, %84, %cst_80 {dimension_numbers = #tpu.dot_dimension_numbers<[1], [0], [0], [1], [0, 0, 1, 1], [], []>} : vector<288x12xf32>, vector<12x4xf32>, vector<288x4xf32> -> vector<288x4xf32>
    %86 = arith.addf %82, %85 : vector<288x4xf32>
    %c38_81 = arith.constant 38 : index
    %c0_82 = arith.constant 0 : index
    %87 = vector.load %arg14[%c38_81, %c0_82] : memref<326x24xf32, #tpu.memory_space<vmem>>, vector<288x12xf32>
    %c96 = arith.constant 96 : index
    %c0_83 = arith.constant 0 : index
    %88 = vector.load %arg5[%c96, %c0_83] : memref<108x4xf32, #tpu.memory_space<vmem>>, vector<12x4xf32>
    %cst_84 = arith.constant dense<0.000000e+00> : vector<288x4xf32>
    %89 = tpu.matmul %87, %88, %cst_84 {dimension_numbers = #tpu.dot_dimension_numbers<[1], [0], [0], [1], [0, 0, 1, 1], [], []>} : vector<288x12xf32>, vector<12x4xf32>, vector<288x4xf32> -> vector<288x4xf32>
    %90 = arith.addf %86, %89 : vector<288x4xf32>
    %c0_85 = arith.constant 0 : index
    %c0_86 = arith.constant 0 : index
    %91 = vector.load %arg6[%c0_85, %c0_86] : memref<1x4xf32, #tpu.memory_space<vmem>>, vector<1x4xf32>
    %92 = vector.broadcast %91 : vector<1x4xf32> to vector<288x4xf32>
    %93 = arith.addf %90, %92 : vector<288x4xf32>
    %cst_87 = arith.constant 0.000000e+00 : f32
    %94 = vector.broadcast %cst_87 : f32 to vector<288x4xf32>
    %95 = arith.cmpf oge, %93, %94 : vector<288x4xf32>
    %cst_88 = arith.constant 2.000000e-01 : f32
    %96 = vector.broadcast %cst_88 : f32 to vector<288x4xf32>
    %97 = arith.mulf %96, %93 : vector<288x4xf32>
    %98 = arith.select %95, %93, %97 : vector<288x4xi1>, vector<288x4xf32>
    %99 = vector.broadcast %5 : vector<288x1xf32> to vector<288x4xf32>
    %100 = arith.mulf %98, %99 : vector<288x4xf32>
    %c19_89 = arith.constant 19 : index
    %c12_90 = arith.constant 12 : index
    %101 = vector.load %arg14[%c19_89, %c12_90] : memref<326x24xf32, #tpu.memory_space<vmem>>, vector<288x4xf32>
    tpu.vector_store %arg14[%c19_89, %c12_90], %100 {strides = array<i32>} : memref<326x24xf32, #tpu.memory_space<vmem>>, vector<288x4xf32>,
    %cst_91 = arith.constant 0.000000e+00 : f32
    %102 = vector.broadcast %cst_91 : f32 to vector<288x4xf32>
    %c0_92 = arith.constant 0 : index
    %c0_93 = arith.constant 0 : index
    %103 = vector.load %arg14[%c0_92, %c0_93] : memref<326x24xf32, #tpu.memory_space<vmem>>, vector<288x16xf32>
    %c0_94 = arith.constant 0 : index
    %c0_95 = arith.constant 0 : index
    %104 = vector.load %arg7[%c0_94, %c0_95] : memref<144x4xf32, #tpu.memory_space<vmem>>, vector<16x4xf32>
    %cst_96 = arith.constant dense<0.000000e+00> : vector<288x4xf32>
    %105 = tpu.matmul %103, %104, %cst_96 {dimension_numbers = #tpu.dot_dimension_numbers<[1], [0], [0], [1], [0, 0, 1, 1], [], []>} : vector<288x16xf32>, vector<16x4xf32>, vector<288x4xf32> -> vector<288x4xf32>
    %106 = arith.addf %102, %105 : vector<288x4xf32>
    %c1_97 = arith.constant 1 : index
    %c0_98 = arith.constant 0 : index
    %107 = vector.load %arg14[%c1_97, %c0_98] : memref<326x24xf32, #tpu.memory_space<vmem>>, vector<288x16xf32>
    %c16_99 = arith.constant 16 : index
    %c0_100 = arith.constant 0 : index
    %108 = vector.load %arg7[%c16_99, %c0_100] : memref<144x4xf32, #tpu.memory_space<vmem>>, vector<16x4xf32>
    %cst_101 = arith.constant dense<0.000000e+00> : vector<288x4xf32>
    %109 = tpu.matmul %107, %108, %cst_101 {dimension_numbers = #tpu.dot_dimension_numbers<[1], [0], [0], [1], [0, 0, 1, 1], [], []>} : vector<288x16xf32>, vector<16x4xf32>, vector<288x4xf32> -> vector<288x4xf32>
    %110 = arith.addf %106, %109 : vector<288x4xf32>
    %c2_102 = arith.constant 2 : index
    %c0_103 = arith.constant 0 : index
    %111 = vector.load %arg14[%c2_102, %c0_103] : memref<326x24xf32, #tpu.memory_space<vmem>>, vector<288x16xf32>
    %c32_104 = arith.constant 32 : index
    %c0_105 = arith.constant 0 : index
    %112 = vector.load %arg7[%c32_104, %c0_105] : memref<144x4xf32, #tpu.memory_space<vmem>>, vector<16x4xf32>
    %cst_106 = arith.constant dense<0.000000e+00> : vector<288x4xf32>
    %113 = tpu.matmul %111, %112, %cst_106 {dimension_numbers = #tpu.dot_dimension_numbers<[1], [0], [0], [1], [0, 0, 1, 1], [], []>} : vector<288x16xf32>, vector<16x4xf32>, vector<288x4xf32> -> vector<288x4xf32>
    %114 = arith.addf %110, %113 : vector<288x4xf32>
    %c18_107 = arith.constant 18 : index
    %c0_108 = arith.constant 0 : index
    %115 = vector.load %arg14[%c18_107, %c0_108] : memref<326x24xf32, #tpu.memory_space<vmem>>, vector<288x16xf32>
    %c48_109 = arith.constant 48 : index
    %c0_110 = arith.constant 0 : index
    %116 = vector.load %arg7[%c48_109, %c0_110] : memref<144x4xf32, #tpu.memory_space<vmem>>, vector<16x4xf32>
    %cst_111 = arith.constant dense<0.000000e+00> : vector<288x4xf32>
    %117 = tpu.matmul %115, %116, %cst_111 {dimension_numbers = #tpu.dot_dimension_numbers<[1], [0], [0], [1], [0, 0, 1, 1], [], []>} : vector<288x16xf32>, vector<16x4xf32>, vector<288x4xf32> -> vector<288x4xf32>
    %118 = arith.addf %114, %117 : vector<288x4xf32>
    %c19_112 = arith.constant 19 : index
    %c0_113 = arith.constant 0 : index
    %119 = vector.load %arg14[%c19_112, %c0_113] : memref<326x24xf32, #tpu.memory_space<vmem>>, vector<288x16xf32>
    %c64_114 = arith.constant 64 : index
    %c0_115 = arith.constant 0 : index
    %120 = vector.load %arg7[%c64_114, %c0_115] : memref<144x4xf32, #tpu.memory_space<vmem>>, vector<16x4xf32>
    %cst_116 = arith.constant dense<0.000000e+00> : vector<288x4xf32>
    %121 = tpu.matmul %119, %120, %cst_116 {dimension_numbers = #tpu.dot_dimension_numbers<[1], [0], [0], [1], [0, 0, 1, 1], [], []>} : vector<288x16xf32>, vector<16x4xf32>, vector<288x4xf32> -> vector<288x4xf32>
    %122 = arith.addf %118, %121 : vector<288x4xf32>
    %c20_117 = arith.constant 20 : index
    %c0_118 = arith.constant 0 : index
    %123 = vector.load %arg14[%c20_117, %c0_118] : memref<326x24xf32, #tpu.memory_space<vmem>>, vector<288x16xf32>
    %c80 = arith.constant 80 : index
    %c0_119 = arith.constant 0 : index
    %124 = vector.load %arg7[%c80, %c0_119] : memref<144x4xf32, #tpu.memory_space<vmem>>, vector<16x4xf32>
    %cst_120 = arith.constant dense<0.000000e+00> : vector<288x4xf32>
    %125 = tpu.matmul %123, %124, %cst_120 {dimension_numbers = #tpu.dot_dimension_numbers<[1], [0], [0], [1], [0, 0, 1, 1], [], []>} : vector<288x16xf32>, vector<16x4xf32>, vector<288x4xf32> -> vector<288x4xf32>
    %126 = arith.addf %122, %125 : vector<288x4xf32>
    %c36_121 = arith.constant 36 : index
    %c0_122 = arith.constant 0 : index
    %127 = vector.load %arg14[%c36_121, %c0_122] : memref<326x24xf32, #tpu.memory_space<vmem>>, vector<288x16xf32>
    %c96_123 = arith.constant 96 : index
    %c0_124 = arith.constant 0 : index
    %128 = vector.load %arg7[%c96_123, %c0_124] : memref<144x4xf32, #tpu.memory_space<vmem>>, vector<16x4xf32>
    %cst_125 = arith.constant dense<0.000000e+00> : vector<288x4xf32>
    %129 = tpu.matmul %127, %128, %cst_125 {dimension_numbers = #tpu.dot_dimension_numbers<[1], [0], [0], [1], [0, 0, 1, 1], [], []>} : vector<288x16xf32>, vector<16x4xf32>, vector<288x4xf32> -> vector<288x4xf32>
    %130 = arith.addf %126, %129 : vector<288x4xf32>
    %c37_126 = arith.constant 37 : index
    %c0_127 = arith.constant 0 : index
    %131 = vector.load %arg14[%c37_126, %c0_127] : memref<326x24xf32, #tpu.memory_space<vmem>>, vector<288x16xf32>
    %c112 = arith.constant 112 : index
    %c0_128 = arith.constant 0 : index
    %132 = vector.load %arg7[%c112, %c0_128] : memref<144x4xf32, #tpu.memory_space<vmem>>, vector<16x4xf32>
    %cst_129 = arith.constant dense<0.000000e+00> : vector<288x4xf32>
    %133 = tpu.matmul %131, %132, %cst_129 {dimension_numbers = #tpu.dot_dimension_numbers<[1], [0], [0], [1], [0, 0, 1, 1], [], []>} : vector<288x16xf32>, vector<16x4xf32>, vector<288x4xf32> -> vector<288x4xf32>
    %134 = arith.addf %130, %133 : vector<288x4xf32>
    %c38_130 = arith.constant 38 : index
    %c0_131 = arith.constant 0 : index
    %135 = vector.load %arg14[%c38_130, %c0_131] : memref<326x24xf32, #tpu.memory_space<vmem>>, vector<288x16xf32>
    %c128 = arith.constant 128 : index
    %c0_132 = arith.constant 0 : index
    %136 = vector.load %arg7[%c128, %c0_132] : memref<144x4xf32, #tpu.memory_space<vmem>>, vector<16x4xf32>
    %cst_133 = arith.constant dense<0.000000e+00> : vector<288x4xf32>
    %137 = tpu.matmul %135, %136, %cst_133 {dimension_numbers = #tpu.dot_dimension_numbers<[1], [0], [0], [1], [0, 0, 1, 1], [], []>} : vector<288x16xf32>, vector<16x4xf32>, vector<288x4xf32> -> vector<288x4xf32>
    %138 = arith.addf %134, %137 : vector<288x4xf32>
    %c0_134 = arith.constant 0 : index
    %c0_135 = arith.constant 0 : index
    %139 = vector.load %arg8[%c0_134, %c0_135] : memref<1x4xf32, #tpu.memory_space<vmem>>, vector<1x4xf32>
    %140 = vector.broadcast %139 : vector<1x4xf32> to vector<288x4xf32>
    %141 = arith.addf %138, %140 : vector<288x4xf32>
    %cst_136 = arith.constant 0.000000e+00 : f32
    %142 = vector.broadcast %cst_136 : f32 to vector<288x4xf32>
    %143 = arith.cmpf oge, %141, %142 : vector<288x4xf32>
    %cst_137 = arith.constant 2.000000e-01 : f32
    %144 = vector.broadcast %cst_137 : f32 to vector<288x4xf32>
    %145 = arith.mulf %144, %141 : vector<288x4xf32>
    %146 = arith.select %143, %141, %145 : vector<288x4xi1>, vector<288x4xf32>
    %147 = vector.broadcast %5 : vector<288x1xf32> to vector<288x4xf32>
    %148 = arith.mulf %146, %147 : vector<288x4xf32>
    %c19_138 = arith.constant 19 : index
    %c16_139 = arith.constant 16 : index
    %149 = vector.load %arg14[%c19_138, %c16_139] : memref<326x24xf32, #tpu.memory_space<vmem>>, vector<288x4xf32>
    tpu.vector_store %arg14[%c19_138, %c16_139], %148 {strides = array<i32>} : memref<326x24xf32, #tpu.memory_space<vmem>>, vector<288x4xf32>,
    %cst_140 = arith.constant 0.000000e+00 : f32
    %150 = vector.broadcast %cst_140 : f32 to vector<288x4xf32>
    %c0_141 = arith.constant 0 : index
    %c0_142 = arith.constant 0 : index
    %151 = vector.load %arg14[%c0_141, %c0_142] : memref<326x24xf32, #tpu.memory_space<vmem>>, vector<288x20xf32>
    %c0_143 = arith.constant 0 : index
    %c0_144 = arith.constant 0 : index
    %152 = vector.load %arg9[%c0_143, %c0_144] : memref<180x4xf32, #tpu.memory_space<vmem>>, vector<20x4xf32>
    %cst_145 = arith.constant dense<0.000000e+00> : vector<288x4xf32>
    %153 = tpu.matmul %151, %152, %cst_145 {dimension_numbers = #tpu.dot_dimension_numbers<[1], [0], [0], [1], [0, 0, 1, 1], [], []>} : vector<288x20xf32>, vector<20x4xf32>, vector<288x4xf32> -> vector<288x4xf32>
    %154 = arith.addf %150, %153 : vector<288x4xf32>
    %c1_146 = arith.constant 1 : index
    %c0_147 = arith.constant 0 : index
    %155 = vector.load %arg14[%c1_146, %c0_147] : memref<326x24xf32, #tpu.memory_space<vmem>>, vector<288x20xf32>
    %c20_148 = arith.constant 20 : index
    %c0_149 = arith.constant 0 : index
    %156 = vector.load %arg9[%c20_148, %c0_149] : memref<180x4xf32, #tpu.memory_space<vmem>>, vector<20x4xf32>
    %cst_150 = arith.constant dense<0.000000e+00> : vector<288x4xf32>
    %157 = tpu.matmul %155, %156, %cst_150 {dimension_numbers = #tpu.dot_dimension_numbers<[1], [0], [0], [1], [0, 0, 1, 1], [], []>} : vector<288x20xf32>, vector<20x4xf32>, vector<288x4xf32> -> vector<288x4xf32>
    %158 = arith.addf %154, %157 : vector<288x4xf32>
    %c2_151 = arith.constant 2 : index
    %c0_152 = arith.constant 0 : index
    %159 = vector.load %arg14[%c2_151, %c0_152] : memref<326x24xf32, #tpu.memory_space<vmem>>, vector<288x20xf32>
    %c40_153 = arith.constant 40 : index
    %c0_154 = arith.constant 0 : index
    %160 = vector.load %arg9[%c40_153, %c0_154] : memref<180x4xf32, #tpu.memory_space<vmem>>, vector<20x4xf32>
    %cst_155 = arith.constant dense<0.000000e+00> : vector<288x4xf32>
    %161 = tpu.matmul %159, %160, %cst_155 {dimension_numbers = #tpu.dot_dimension_numbers<[1], [0], [0], [1], [0, 0, 1, 1], [], []>} : vector<288x20xf32>, vector<20x4xf32>, vector<288x4xf32> -> vector<288x4xf32>
    %162 = arith.addf %158, %161 : vector<288x4xf32>
    %c18_156 = arith.constant 18 : index
    %c0_157 = arith.constant 0 : index
    %163 = vector.load %arg14[%c18_156, %c0_157] : memref<326x24xf32, #tpu.memory_space<vmem>>, vector<288x20xf32>
    %c60_158 = arith.constant 60 : index
    %c0_159 = arith.constant 0 : index
    %164 = vector.load %arg9[%c60_158, %c0_159] : memref<180x4xf32, #tpu.memory_space<vmem>>, vector<20x4xf32>
    %cst_160 = arith.constant dense<0.000000e+00> : vector<288x4xf32>
    %165 = tpu.matmul %163, %164, %cst_160 {dimension_numbers = #tpu.dot_dimension_numbers<[1], [0], [0], [1], [0, 0, 1, 1], [], []>} : vector<288x20xf32>, vector<20x4xf32>, vector<288x4xf32> -> vector<288x4xf32>
    %166 = arith.addf %162, %165 : vector<288x4xf32>
    %c19_161 = arith.constant 19 : index
    %c0_162 = arith.constant 0 : index
    %167 = vector.load %arg14[%c19_161, %c0_162] : memref<326x24xf32, #tpu.memory_space<vmem>>, vector<288x20xf32>
    %c80_163 = arith.constant 80 : index
    %c0_164 = arith.constant 0 : index
    %168 = vector.load %arg9[%c80_163, %c0_164] : memref<180x4xf32, #tpu.memory_space<vmem>>, vector<20x4xf32>
    %cst_165 = arith.constant dense<0.000000e+00> : vector<288x4xf32>
    %169 = tpu.matmul %167, %168, %cst_165 {dimension_numbers = #tpu.dot_dimension_numbers<[1], [0], [0], [1], [0, 0, 1, 1], [], []>} : vector<288x20xf32>, vector<20x4xf32>, vector<288x4xf32> -> vector<288x4xf32>
    %170 = arith.addf %166, %169 : vector<288x4xf32>
    %c20_166 = arith.constant 20 : index
    %c0_167 = arith.constant 0 : index
    %171 = vector.load %arg14[%c20_166, %c0_167] : memref<326x24xf32, #tpu.memory_space<vmem>>, vector<288x20xf32>
    %c100 = arith.constant 100 : index
    %c0_168 = arith.constant 0 : index
    %172 = vector.load %arg9[%c100, %c0_168] : memref<180x4xf32, #tpu.memory_space<vmem>>, vector<20x4xf32>
    %cst_169 = arith.constant dense<0.000000e+00> : vector<288x4xf32>
    %173 = tpu.matmul %171, %172, %cst_169 {dimension_numbers = #tpu.dot_dimension_numbers<[1], [0], [0], [1], [0, 0, 1, 1], [], []>} : vector<288x20xf32>, vector<20x4xf32>, vector<288x4xf32> -> vector<288x4xf32>
    %174 = arith.addf %170, %173 : vector<288x4xf32>
    %c36_170 = arith.constant 36 : index
    %c0_171 = arith.constant 0 : index
    %175 = vector.load %arg14[%c36_170, %c0_171] : memref<326x24xf32, #tpu.memory_space<vmem>>, vector<288x20xf32>
    %c120 = arith.constant 120 : index
    %c0_172 = arith.constant 0 : index
    %176 = vector.load %arg9[%c120, %c0_172] : memref<180x4xf32, #tpu.memory_space<vmem>>, vector<20x4xf32>
    %cst_173 = arith.constant dense<0.000000e+00> : vector<288x4xf32>
    %177 = tpu.matmul %175, %176, %cst_173 {dimension_numbers = #tpu.dot_dimension_numbers<[1], [0], [0], [1], [0, 0, 1, 1], [], []>} : vector<288x20xf32>, vector<20x4xf32>, vector<288x4xf32> -> vector<288x4xf32>
    %178 = arith.addf %174, %177 : vector<288x4xf32>
    %c37_174 = arith.constant 37 : index
    %c0_175 = arith.constant 0 : index
    %179 = vector.load %arg14[%c37_174, %c0_175] : memref<326x24xf32, #tpu.memory_space<vmem>>, vector<288x20xf32>
    %c140 = arith.constant 140 : index
    %c0_176 = arith.constant 0 : index
    %180 = vector.load %arg9[%c140, %c0_176] : memref<180x4xf32, #tpu.memory_space<vmem>>, vector<20x4xf32>
    %cst_177 = arith.constant dense<0.000000e+00> : vector<288x4xf32>
    %181 = tpu.matmul %179, %180, %cst_177 {dimension_numbers = #tpu.dot_dimension_numbers<[1], [0], [0], [1], [0, 0, 1, 1], [], []>} : vector<288x20xf32>, vector<20x4xf32>, vector<288x4xf32> -> vector<288x4xf32>
    %182 = arith.addf %178, %181 : vector<288x4xf32>
    %c38_178 = arith.constant 38 : index
    %c0_179 = arith.constant 0 : index
    %183 = vector.load %arg14[%c38_178, %c0_179] : memref<326x24xf32, #tpu.memory_space<vmem>>, vector<288x20xf32>
    %c160 = arith.constant 160 : index
    %c0_180 = arith.constant 0 : index
    %184 = vector.load %arg9[%c160, %c0_180] : memref<180x4xf32, #tpu.memory_space<vmem>>, vector<20x4xf32>
    %cst_181 = arith.constant dense<0.000000e+00> : vector<288x4xf32>
    %185 = tpu.matmul %183, %184, %cst_181 {dimension_numbers = #tpu.dot_dimension_numbers<[1], [0], [0], [1], [0, 0, 1, 1], [], []>} : vector<288x20xf32>, vector<20x4xf32>, vector<288x4xf32> -> vector<288x4xf32>
    %186 = arith.addf %182, %185 : vector<288x4xf32>
    %c0_182 = arith.constant 0 : index
    %c0_183 = arith.constant 0 : index
    %187 = vector.load %arg10[%c0_182, %c0_183] : memref<1x4xf32, #tpu.memory_space<vmem>>, vector<1x4xf32>
    %188 = vector.broadcast %187 : vector<1x4xf32> to vector<288x4xf32>
    %189 = arith.addf %186, %188 : vector<288x4xf32>
    %cst_184 = arith.constant 0.000000e+00 : f32
    %190 = vector.broadcast %cst_184 : f32 to vector<288x4xf32>
    %191 = arith.cmpf oge, %189, %190 : vector<288x4xf32>
    %cst_185 = arith.constant 2.000000e-01 : f32
    %192 = vector.broadcast %cst_185 : f32 to vector<288x4xf32>
    %193 = arith.mulf %192, %189 : vector<288x4xf32>
    %194 = arith.select %191, %189, %193 : vector<288x4xi1>, vector<288x4xf32>
    %195 = vector.broadcast %5 : vector<288x1xf32> to vector<288x4xf32>
    %196 = arith.mulf %194, %195 : vector<288x4xf32>
    %c19_186 = arith.constant 19 : index
    %c20_187 = arith.constant 20 : index
    %197 = vector.load %arg14[%c19_186, %c20_187] : memref<326x24xf32, #tpu.memory_space<vmem>>, vector<288x4xf32>
    tpu.vector_store %arg14[%c19_186, %c20_187], %196 {strides = array<i32>} : memref<326x24xf32, #tpu.memory_space<vmem>>, vector<288x4xf32>,
    %cst_188 = arith.constant 0.000000e+00 : f32
    %198 = vector.broadcast %cst_188 : f32 to vector<288x8xf32>
    %c0_189 = arith.constant 0 : index
    %c0_190 = arith.constant 0 : index
    %199 = vector.load %arg14[%c0_189, %c0_190] : memref<326x24xf32, #tpu.memory_space<vmem>>, vector<288x24xf32>
    %c0_191 = arith.constant 0 : index
    %c0_192 = arith.constant 0 : index
    %200 = vector.load %arg11[%c0_191, %c0_192] : memref<216x8xf32, #tpu.memory_space<vmem>>, vector<24x8xf32>
    %cst_193 = arith.constant dense<0.000000e+00> : vector<288x8xf32>
    %201 = tpu.matmul %199, %200, %cst_193 {dimension_numbers = #tpu.dot_dimension_numbers<[1], [0], [0], [1], [0, 0, 1, 1], [], []>} : vector<288x24xf32>, vector<24x8xf32>, vector<288x8xf32> -> vector<288x8xf32>
    %202 = arith.addf %198, %201 : vector<288x8xf32>
    %c1_194 = arith.constant 1 : index
    %c0_195 = arith.constant 0 : index
    %203 = vector.load %arg14[%c1_194, %c0_195] : memref<326x24xf32, #tpu.memory_space<vmem>>, vector<288x24xf32>
    %c24_196 = arith.constant 24 : index
    %c0_197 = arith.constant 0 : index
    %204 = vector.load %arg11[%c24_196, %c0_197] : memref<216x8xf32, #tpu.memory_space<vmem>>, vector<24x8xf32>
    %cst_198 = arith.constant dense<0.000000e+00> : vector<288x8xf32>
    %205 = tpu.matmul %203, %204, %cst_198 {dimension_numbers = #tpu.dot_dimension_numbers<[1], [0], [0], [1], [0, 0, 1, 1], [], []>} : vector<288x24xf32>, vector<24x8xf32>, vector<288x8xf32> -> vector<288x8xf32>
    %206 = arith.addf %202, %205 : vector<288x8xf32>
    %c2_199 = arith.constant 2 : index
    %c0_200 = arith.constant 0 : index
    %207 = vector.load %arg14[%c2_199, %c0_200] : memref<326x24xf32, #tpu.memory_space<vmem>>, vector<288x24xf32>
    %c48_201 = arith.constant 48 : index
    %c0_202 = arith.constant 0 : index
    %208 = vector.load %arg11[%c48_201, %c0_202] : memref<216x8xf32, #tpu.memory_space<vmem>>, vector<24x8xf32>
    %cst_203 = arith.constant dense<0.000000e+00> : vector<288x8xf32>
    %209 = tpu.matmul %207, %208, %cst_203 {dimension_numbers = #tpu.dot_dimension_numbers<[1], [0], [0], [1], [0, 0, 1, 1], [], []>} : vector<288x24xf32>, vector<24x8xf32>, vector<288x8xf32> -> vector<288x8xf32>
    %210 = arith.addf %206, %209 : vector<288x8xf32>
    %c18_204 = arith.constant 18 : index
    %c0_205 = arith.constant 0 : index
    %211 = vector.load %arg14[%c18_204, %c0_205] : memref<326x24xf32, #tpu.memory_space<vmem>>, vector<288x24xf32>
    %c72_206 = arith.constant 72 : index
    %c0_207 = arith.constant 0 : index
    %212 = vector.load %arg11[%c72_206, %c0_207] : memref<216x8xf32, #tpu.memory_space<vmem>>, vector<24x8xf32>
    %cst_208 = arith.constant dense<0.000000e+00> : vector<288x8xf32>
    %213 = tpu.matmul %211, %212, %cst_208 {dimension_numbers = #tpu.dot_dimension_numbers<[1], [0], [0], [1], [0, 0, 1, 1], [], []>} : vector<288x24xf32>, vector<24x8xf32>, vector<288x8xf32> -> vector<288x8xf32>
    %214 = arith.addf %210, %213 : vector<288x8xf32>
    %c19_209 = arith.constant 19 : index
    %c0_210 = arith.constant 0 : index
    %215 = vector.load %arg14[%c19_209, %c0_210] : memref<326x24xf32, #tpu.memory_space<vmem>>, vector<288x24xf32>
    %c96_211 = arith.constant 96 : index
    %c0_212 = arith.constant 0 : index
    %216 = vector.load %arg11[%c96_211, %c0_212] : memref<216x8xf32, #tpu.memory_space<vmem>>, vector<24x8xf32>
    %cst_213 = arith.constant dense<0.000000e+00> : vector<288x8xf32>
    %217 = tpu.matmul %215, %216, %cst_213 {dimension_numbers = #tpu.dot_dimension_numbers<[1], [0], [0], [1], [0, 0, 1, 1], [], []>} : vector<288x24xf32>, vector<24x8xf32>, vector<288x8xf32> -> vector<288x8xf32>
    %218 = arith.addf %214, %217 : vector<288x8xf32>
    %c20_214 = arith.constant 20 : index
    %c0_215 = arith.constant 0 : index
    %219 = vector.load %arg14[%c20_214, %c0_215] : memref<326x24xf32, #tpu.memory_space<vmem>>, vector<288x24xf32>
    %c120_216 = arith.constant 120 : index
    %c0_217 = arith.constant 0 : index
    %220 = vector.load %arg11[%c120_216, %c0_217] : memref<216x8xf32, #tpu.memory_space<vmem>>, vector<24x8xf32>
    %cst_218 = arith.constant dense<0.000000e+00> : vector<288x8xf32>
    %221 = tpu.matmul %219, %220, %cst_218 {dimension_numbers = #tpu.dot_dimension_numbers<[1], [0], [0], [1], [0, 0, 1, 1], [], []>} : vector<288x24xf32>, vector<24x8xf32>, vector<288x8xf32> -> vector<288x8xf32>
    %222 = arith.addf %218, %221 : vector<288x8xf32>
    %c36_219 = arith.constant 36 : index
    %c0_220 = arith.constant 0 : index
    %223 = vector.load %arg14[%c36_219, %c0_220] : memref<326x24xf32, #tpu.memory_space<vmem>>, vector<288x24xf32>
    %c144 = arith.constant 144 : index
    %c0_221 = arith.constant 0 : index
    %224 = vector.load %arg11[%c144, %c0_221] : memref<216x8xf32, #tpu.memory_space<vmem>>, vector<24x8xf32>
    %cst_222 = arith.constant dense<0.000000e+00> : vector<288x8xf32>
    %225 = tpu.matmul %223, %224, %cst_222 {dimension_numbers = #tpu.dot_dimension_numbers<[1], [0], [0], [1], [0, 0, 1, 1], [], []>} : vector<288x24xf32>, vector<24x8xf32>, vector<288x8xf32> -> vector<288x8xf32>
    %226 = arith.addf %222, %225 : vector<288x8xf32>
    %c37_223 = arith.constant 37 : index
    %c0_224 = arith.constant 0 : index
    %227 = vector.load %arg14[%c37_223, %c0_224] : memref<326x24xf32, #tpu.memory_space<vmem>>, vector<288x24xf32>
    %c168 = arith.constant 168 : index
    %c0_225 = arith.constant 0 : index
    %228 = vector.load %arg11[%c168, %c0_225] : memref<216x8xf32, #tpu.memory_space<vmem>>, vector<24x8xf32>
    %cst_226 = arith.constant dense<0.000000e+00> : vector<288x8xf32>
    %229 = tpu.matmul %227, %228, %cst_226 {dimension_numbers = #tpu.dot_dimension_numbers<[1], [0], [0], [1], [0, 0, 1, 1], [], []>} : vector<288x24xf32>, vector<24x8xf32>, vector<288x8xf32> -> vector<288x8xf32>
    %230 = arith.addf %226, %229 : vector<288x8xf32>
    %c38_227 = arith.constant 38 : index
    %c0_228 = arith.constant 0 : index
    %231 = vector.load %arg14[%c38_227, %c0_228] : memref<326x24xf32, #tpu.memory_space<vmem>>, vector<288x24xf32>
    %c192 = arith.constant 192 : index
    %c0_229 = arith.constant 0 : index
    %232 = vector.load %arg11[%c192, %c0_229] : memref<216x8xf32, #tpu.memory_space<vmem>>, vector<24x8xf32>
    %cst_230 = arith.constant dense<0.000000e+00> : vector<288x8xf32>
    %233 = tpu.matmul %231, %232, %cst_230 {dimension_numbers = #tpu.dot_dimension_numbers<[1], [0], [0], [1], [0, 0, 1, 1], [], []>} : vector<288x24xf32>, vector<24x8xf32>, vector<288x8xf32> -> vector<288x8xf32>
    %234 = arith.addf %230, %233 : vector<288x8xf32>
    %c0_231 = arith.constant 0 : index
    %c0_232 = arith.constant 0 : index
    %235 = vector.load %arg12[%c0_231, %c0_232] : memref<1x8xf32, #tpu.memory_space<vmem>>, vector<1x8xf32>
    %236 = vector.broadcast %235 : vector<1x8xf32> to vector<288x8xf32>
    %237 = arith.addf %234, %236 : vector<288x8xf32>
    %c19_233 = arith.constant 19 : index
    %c0_234 = arith.constant 0 : index
    %238 = vector.load %arg14[%c19_233, %c0_234] : memref<326x24xf32, #tpu.memory_space<vmem>>, vector<288x8xf32>
    %cst_235 = arith.constant 2.000000e-01 : f32
    %239 = vector.broadcast %cst_235 : f32 to vector<288x8xf32>
    %240 = arith.mulf %237, %239 : vector<288x8xf32>
    %241 = arith.addf %240, %238 : vector<288x8xf32>
    %c0_236 = arith.constant 0 : index
    %c0_237 = arith.constant 0 : index
    %c0_238 = arith.constant 0 : index
    %242 = vector.load %arg13[%c0_236, %c0_237, %c0_238] : memref<1x288x8xf32, #tpu.memory_space<vmem>>, vector<1x288x8xf32>
    %243 = vector.shape_cast %242 : vector<1x288x8xf32> to vector<288x8xf32>
    %244 = vector.shape_cast %241 : vector<288x8xf32> to vector<1x288x8xf32>
    tpu.vector_store %arg13[%c0_236, %c0_237, %c0_238], %244 {strides = array<i32>} : memref<1x288x8xf32, #tpu.memory_space<vmem>>, vector<1x288x8xf32>,
    return
  }
  func.func @transform_0(%arg0: i32) -> (i32, i32, i32) {
    %c0_i32 = arith.constant 0 : i32
    %c0_i32_0 = arith.constant 0 : i32
    %c0_i32_1 = arith.constant 0 : i32
    return %arg0, %c0_i32, %c0_i32_0 : i32, i32, i32
  }
  func.func @transform_1(%arg0: i32) -> (i32, i32) {
    %c0_i32 = arith.constant 0 : i32
    %c0_i32_0 = arith.constant 0 : i32
    %c0_i32_1 = arith.constant 0 : i32
    return %c0_i32, %c0_i32_0 : i32, i32
  }
  func.func @transform_2(%arg0: i32) -> (i32, i32) {
    %c0_i32 = arith.constant 0 : i32
    %c0_i32_0 = arith.constant 0 : i32
    %c0_i32_1 = arith.constant 0 : i32
    return %c0_i32, %c0_i32_0 : i32, i32
  }
  func.func @transform_3(%arg0: i32) -> (i32, i32) {
    %c0_i32 = arith.constant 0 : i32
    %c0_i32_0 = arith.constant 0 : i32
    %c0_i32_1 = arith.constant 0 : i32
    return %c0_i32, %c0_i32_0 : i32, i32
  }
  func.func @transform_4(%arg0: i32) -> (i32, i32) {
    %c0_i32 = arith.constant 0 : i32
    %c0_i32_0 = arith.constant 0 : i32
    %c0_i32_1 = arith.constant 0 : i32
    return %c0_i32, %c0_i32_0 : i32, i32
  }
  func.func @transform_5(%arg0: i32) -> (i32, i32) {
    %c0_i32 = arith.constant 0 : i32
    %c0_i32_0 = arith.constant 0 : i32
    %c0_i32_1 = arith.constant 0 : i32
    return %c0_i32, %c0_i32_0 : i32, i32
  }
  func.func @transform_6(%arg0: i32) -> (i32, i32) {
    %c0_i32 = arith.constant 0 : i32
    %c0_i32_0 = arith.constant 0 : i32
    %c0_i32_1 = arith.constant 0 : i32
    return %c0_i32, %c0_i32_0 : i32, i32
  }
  func.func @transform_7(%arg0: i32) -> (i32, i32) {
    %c0_i32 = arith.constant 0 : i32
    %c0_i32_0 = arith.constant 0 : i32
    %c0_i32_1 = arith.constant 0 : i32
    return %c0_i32, %c0_i32_0 : i32, i32
  }
  func.func @transform_8(%arg0: i32) -> (i32, i32) {
    %c0_i32 = arith.constant 0 : i32
    %c0_i32_0 = arith.constant 0 : i32
    %c0_i32_1 = arith.constant 0 : i32
    return %c0_i32, %c0_i32_0 : i32, i32
  }
  func.func @transform_9(%arg0: i32) -> (i32, i32) {
    %c0_i32 = arith.constant 0 : i32
    %c0_i32_0 = arith.constant 0 : i32
    %c0_i32_1 = arith.constant 0 : i32
    return %c0_i32, %c0_i32_0 : i32, i32
  }
  func.func @transform_10(%arg0: i32) -> (i32, i32) {
    %c0_i32 = arith.constant 0 : i32
    %c0_i32_0 = arith.constant 0 : i32
    %c0_i32_1 = arith.constant 0 : i32
    return %c0_i32, %c0_i32_0 : i32, i32
  }
  func.func @transform_11(%arg0: i32) -> (i32, i32) {
    %c0_i32 = arith.constant 0 : i32
    %c0_i32_0 = arith.constant 0 : i32
    %c0_i32_1 = arith.constant 0 : i32
    return %c0_i32, %c0_i32_0 : i32, i32
  }
  func.func @transform_12(%arg0: i32) -> (i32, i32, i32) {
    %c0_i32 = arith.constant 0 : i32
    %c0_i32_0 = arith.constant 0 : i32
    %c0_i32_1 = arith.constant 0 : i32
    return %arg0, %c0_i32, %c0_i32_0 : i32, i32, i32
  }
}

</mosaic_0001>

<bundles_post_ra>
// kernel: residual_dense_block.1
= control target key start
LH: loop header
LB: loop body
LE: loop exit
PB: predicated region body
PF: predicated region fallthrough
CT: control target
= control target key end

     0   :  { %s29048_s21 = smov 0   ;;  %s33093_s0 = inlined_call_operand.vmem [shape: f32[2,288,8], index: 0, kind: input, shape index: {}]   ;;  %s33094_s1 = inlined_call_operand.vmem [shape: f32[288,1], index: 1, kind: input, shape index: {}]   ;;  %s33095_s2 = inlined_call_operand.vmem [shape: f32[72,4], index: 2, kind: input, shape index: {}]   ;;  %s33096_s3 = inlined_call_operand.vmem [shape: f32[1,4], index: 3, kind: input, shape index: {}]   ;;  %s33097_s4 = inlined_call_operand.vmem [shape: f32[108,4], index: 4, kind: input, shape index: {}]   ;;  %s33098_s5 = inlined_call_operand.vmem [shape: f32[1,4], index: 5, kind: input, shape index: {}]   ;;  %s33099_s6 = inlined_call_operand.vmem [shape: f32[144,4], index: 6, kind: input, shape index: {}]   ;;  %s33100_s7 = inlined_call_operand.vmem [shape: f32[1,4], index: 7, kind: input, shape index: {}]   ;;  %s33101_s8 = inlined_call_operand.vmem [shape: f32[180,4], index: 8, kind: input, shape index: {}]   ;;  %s33102_s9 = inlined_call_operand.vmem [shape: f32[1,4], index: 9, kind: input, shape index: {}]   ;;  %s33103_s10 = inlined_call_operand.vmem [shape: f32[216,8], index: 10, kind: input, shape index: {}]   ;;  %s33104_s11 = inlined_call_operand.vmem [shape: f32[1,8], index: 11, kind: input, shape index: {}]   ;;  %s33105_s12 = inlined_call_operand.vmem [shape: f32[2,288,8], index: 12, kind: output, shape index: {}]  }
   0x1 LB: > { %s21346_s22 = sadd.s32 4294967295, %s28974_s21   ;;  %p21350_p0 = scmp.ge.s32.totalorder %s28974_s21, 1  ;;  %s28974_s21 = sphi %s29048_s21, %s22_s21  }
   0x2   : > { %p362_p1 = scmp.lt.s32.totalorder %s28974_s21, 3 }
   0x4   : > { %p363_p2 = pnand %p21350_p0, %p362_p1 }
   0x6   : > { %366 = sbr.rel (%p363_p2) target bundleno = 4250 (0x109a), region = 68 }
   0xd   : > { %v639_v0 = vld [vmem:[%s33095_s2 + $0x8] sm:$0xff]  ;;  %vm414_vm0 = vcmask 195584   ;;  %v29062_v1 = vld [vmem:[%s33095_s2 + $0x20] sm:$0xff]  ;;  %p29066_p3 = scmp.lt.s32.totalorder %s21346_s22, 1  ;;  %v28976_v2 = vmov 0.0   ;;  %vm493_vm1 = vcmask 64512  }
   0xe   : > { %24717 = vmatprep.subr.mxu1 %v639_v0  ;;  %415 = vst.msk [vmem:[#allocation2] sm:$0xff] %vm414_vm0, %v28976_v2  ;;  %416 = vst.msk [vmem:[#allocation2 + $0x8] sm:$0xff] %vm414_vm0, %v28976_v2  ;;  %24941 = vmatprep.subr.mxu0 %v29062_v1  ;;  %v602_v3 = vld [vmem:[%s33095_s2] sm:$0xff]  ;;  %v29157_v4 = vld [vmem:[%s33095_s2 + $0x28] sm:$0xff]  ;;  %vm455_vm2 = vcmask 193536   ;;  %vm5061_vm3 = vcmask 1043456  }
   0xf   : > { %417 = vst.msk [vmem:[#allocation2 + $0x10] sm:$0xff] %vm414_vm0, %v28976_v2  ;;  %418 = vst.msk [vmem:[#allocation2 + $0x18] sm:$0xff] %vm414_vm0, %v28976_v2  ;;  %24718 = vmatpush3.msra.mxu1 %v639_v0  ;;  %24942 = vmatpush3.msra.mxu0 %v29062_v1  ;;  %s33204_s22 = smov (!%p29066_p3, %s21346_s22), 1  ;;  %v29181_v8 = vld [vmem:[%s33095_s2 + $0x10] sm:$0xff]  ;;  %vm28978_vm4 = vmmov 1   ;;  %vm4952_vm6 = vcmask 97280  }
  0x10   : > { %419 = vst.msk [vmem:[#allocation2 + $0x20] sm:$0xff] %vm414_vm0, %v28976_v2  ;;  %420 = vst.msk [vmem:[#allocation2 + $0x28] sm:$0xff] %vm414_vm0, %v28976_v2  ;;  %24773 = vmatprep.subr.mxu1 %v602_v3  ;;  %24997 = vmatprep.subr.mxu0 %v29157_v4  ;;  %s28949_s14 = smul.u32 288, %s33204_s22  ;;  %v29226_v29 = vld [vmem:[%s33095_s2 + $0x30] sm:$0xff]  ;;  %s28979_s18 = smov 8  }
  0x11   : > { %421 = vst.msk [vmem:[#allocation2 + $0x30] sm:$0xff] %vm414_vm0, %v28976_v2  ;;  %422 = vst.msk [vmem:[#allocation2 + $0x38] sm:$0xff] %vm414_vm0, %v28976_v2  ;;  %s28980_s16 = smov 12   ;;  %s28981_s29 = smov 16  }
  0x12   : > { %423 = vst.msk [vmem:[#allocation2 + $0x40] sm:$0xff] %vm414_vm0, %v28976_v2  ;;  %424 = vst.msk [vmem:[#allocation2 + $0x48] sm:$0xff] %vm414_vm0, %v28976_v2  ;;  %s29173_s17 = scalar_lea.vmem %s33093_s0, %s28949_s14  ;;  %s28982_s26 = smov 20  }
  0x13   : > { %425 = vst.msk [vmem:[#allocation2 + $0x50] sm:$0xff] %vm414_vm0, %v28976_v2  ;;  %426 = vst.msk [vmem:[#allocation2 + $0x58] sm:$0xff] %vm414_vm0, %v28976_v2  ;;  %v457_v5 = vld [vmem:[%s29173_s17] sm:$0xff]  ;;  %v458_v6 = vld [vmem:[%s29173_s17 + $0x8] sm:$0xff]  ;;  %s32946_s30 = scalar_lea.vmem %s33105_s12, %s28949_s14 }
  0x14   : > { %427 = vst.msk [vmem:[#allocation2 + $0x60] sm:$0xff] %vm414_vm0, %v28976_v2  ;;  %428 = vst.msk [vmem:[#allocation2 + $0x68] sm:$0xff] %vm414_vm0, %v28976_v2  ;;  %v459_v7 = vld [vmem:[%s29173_s17 + $0x10] sm:$0xff]  ;;  %v460_v11 = vld [vmem:[%s29173_s17 + $0x18] sm:$0xff] }
  0x15   : > { %429 = vst.msk [vmem:[#allocation2 + $0x70] sm:$0xff] %vm414_vm0, %v28976_v2  ;;  %430 = vst.msk [vmem:[#allocation2 + $0x78] sm:$0xff] %vm414_vm0, %v28976_v2  ;;  %v603_v9 = vld [vmem:[#allocation2 + $0x1] sm:$0xff]  ;;  %v463_v14 = vld [vmem:[%s29173_s17 + $0x30] sm:$0xff] }
  0x16   : > { %431 = vst.msk [vmem:[#allocation2 + $0x80] sm:$0xff] %vm414_vm0, %v28976_v2  ;;  %432 = vst.msk [vmem:[#allocation2 + $0x88] sm:$0xff] %vm414_vm0, %v28976_v2  ;;  %v604_v10 = vld [vmem:[#allocation2 + $0x9] sm:$0xff]  ;;  %24719 = vmatprep.mubr.msk.f32.mxu1 %vm493_vm1, %v603_v9  ;;  %v461_v12 = vld [vmem:[%s29173_s17 + $0x20] sm:$0xff] }
  0x17   : > { %433 = vst.msk [vmem:[#allocation2 + $0x90] sm:$0xff] %vm414_vm0, %v28976_v2  ;;  %434 = vst.msk [vmem:[#allocation2 + $0x98] sm:$0xff] %vm414_vm0, %v28976_v2  ;;  %v462_v13 = vld [vmem:[%s29173_s17 + $0x28] sm:$0xff]  ;;  %24720 = vmatmul.mubr.msk.f32.vlgmr.msra.gmra.mrb[0].mxu1 %vm493_vm1, %v604_v10  ;;  %v464_v15 = vld [vmem:[%s29173_s17 + $0x38] sm:$0xff] }
  0x18   : > { %435 = vst.msk [vmem:[#allocation2 + $0xa0] sm:$0xff] %vm414_vm0, %v28976_v2  ;;  %436 = vst.msk [vmem:[#allocation2 + $0xa8] sm:$0xff] %vm414_vm0, %v28976_v2  ;;  %v465_v16 = vld [vmem:[%s29173_s17 + $0x40] sm:$0xff]  ;;  %v466_v17 = vld [vmem:[%s29173_s17 + $0x48] sm:$0xff]  ;;  %24774 = vmatpush3.msra.mxu1 %v602_v3 }
  0x19   : > { %437 = vst.msk [vmem:[#allocation2 + $0xb0] sm:$0xff] %vm414_vm0, %v28976_v2  ;;  %438 = vst.msk [vmem:[#allocation2 + $0xb8] sm:$0xff] %vm414_vm0, %v28976_v2  ;;  %v467_v18 = vld [vmem:[%s29173_s17 + $0x50] sm:$0xff]  ;;  %v468_v19 = vld [vmem:[%s29173_s17 + $0x58] sm:$0xff]  ;;  %24829 = vmatprep.subr.mxu1 %v29181_v8 }
  0x1a   : > { %439 = vst.msk [vmem:[#allocation2 + $0xc0] sm:$0xff] %vm414_vm0, %v28976_v2  ;;  %440 = vst.msk [vmem:[#allocation2 + $0xc8] sm:$0xff] %vm414_vm0, %v28976_v2  ;;  %v469_v20 = vld [vmem:[%s29173_s17 + $0x60] sm:$0xff]  ;;  %v470_v21 = vld [vmem:[%s29173_s17 + $0x68] sm:$0xff] }
  0x1b   : > { %441 = vst.msk [vmem:[#allocation2 + $0xd0] sm:$0xff] %vm414_vm0, %v28976_v2  ;;  %442 = vst.msk [vmem:[#allocation2 + $0xd8] sm:$0xff] %vm414_vm0, %v28976_v2  ;;  %v471_v22 = vld [vmem:[%s29173_s17 + $0x70] sm:$0xff]  ;;  %v472_v23 = vld [vmem:[%s29173_s17 + $0x78] sm:$0xff] }
  0x1c   : > { %443 = vst.msk [vmem:[#allocation2 + $0xe0] sm:$0xff] %vm414_vm0, %v28976_v2  ;;  %444 = vst.msk [vmem:[#allocation2 + $0xe8] sm:$0xff] %vm414_vm0, %v28976_v2  ;;  %v473_v24 = vld [vmem:[%s29173_s17 + $0x80] sm:$0xff]  ;;  %v474_v25 = vld [vmem:[%s29173_s17 + $0x88] sm:$0xff] }
  0x1d   : > { %445 = vst.msk [vmem:[#allocation2 + $0xf0] sm:$0xff] %vm414_vm0, %v28976_v2  ;;  %446 = vst.msk [vmem:[#allocation2 + $0xf8] sm:$0xff] %vm414_vm0, %v28976_v2  ;;  %v475_v26 = vld [vmem:[%s29173_s17 + $0x90] sm:$0xff]  ;;  %v476_v27 = vld [vmem:[%s29173_s17 + $0x98] sm:$0xff] }
  0x1e   : > { %447 = vst.msk [vmem:[#allocation2 + $0x100] sm:$0xff] %vm414_vm0, %v28976_v2  ;;  %448 = vst.msk [vmem:[#allocation2 + $0x108] sm:$0xff] %vm414_vm0, %v28976_v2  ;;  %v477_v28 = vld [vmem:[%s29173_s17 + $0xa0] sm:$0xff]  ;;  %v478_v30 = vld [vmem:[%s29173_s17 + $0xa8] sm:$0xff] }
  0x1f   : > { %449 = vst.msk [vmem:[#allocation2 + $0x110] sm:$0xff] %vm414_vm0, %v28976_v2  ;;  %450 = vst.msk [vmem:[#allocation2 + $0x118] sm:$0xff] %vm414_vm0, %v28976_v2  ;;  %v479_v50 = vld [vmem:[%s29173_s17 + $0xb0] sm:$0xff]  ;;  %v480_v53 = vld [vmem:[%s29173_s17 + $0xb8] sm:$0xff] }
  0x20   : > { %451 = vst.msk [vmem:[#allocation2 + $0x120] sm:$0xff] %vm414_vm0, %v28976_v2  ;;  %452 = vst.msk [vmem:[#allocation2 + $0x128] sm:$0xff] %vm414_vm0, %v28976_v2  ;;  %v481_v55 = vld [vmem:[%s29173_s17 + $0xc0] sm:$0xff]  ;;  %v482_v56 = vld [vmem:[%s29173_s17 + $0xc8] sm:$0xff] }
  0x21   : > { %453 = vst.msk [vmem:[#allocation2 + $0x130] sm:$0xff] %vm414_vm0, %v28976_v2  ;;  %454 = vst.msk [vmem:[#allocation2 + $0x138] sm:$0xff] %vm414_vm0, %v28976_v2  ;;  %v483_v57 = vld [vmem:[%s29173_s17 + $0xd0] sm:$0xff]  ;;  %v484_v59 = vld [vmem:[%s29173_s17 + $0xd8] sm:$0xff] }
  0x22   : > { %494 = vst.msk [vmem:[#allocation2 + $0x12] sm:$0xff] %vm493_vm1, %v457_v5  ;;  %495 = vst.msk [vmem:[#allocation2 + $0x1a] sm:$0xff] %vm493_vm1, %v458_v6  ;;  %v485_v60 = vld [vmem:[%s29173_s17 + $0xe0] sm:$0xff]  ;;  %v486_v63 = vld [vmem:[%s29173_s17 + $0xe8] sm:$0xff] }
  0x23   : > { %496 = vst.msk [vmem:[#allocation2 + $0x22] sm:$0xff] %vm493_vm1, %v459_v7  ;;  %497 = vst.msk [vmem:[#allocation2 + $0x2a] sm:$0xff] %vm493_vm1, %v460_v11  ;;  %v487_v3 = vld [vmem:[%s29173_s17 + $0xf0] sm:$0xff]  ;;  %v489_v5 = vld [vmem:[%s29173_s17 + $0x100] sm:$0xff] }
  0x24   : > { %498 = vst.msk [vmem:[#allocation2 + $0x32] sm:$0xff] %vm493_vm1, %v461_v12  ;;  %499 = vst.msk [vmem:[#allocation2 + $0x3a] sm:$0xff] %vm493_vm1, %v462_v13  ;;  %v490_v6 = vld [vmem:[%s29173_s17 + $0x108] sm:$0xff] }
  0x25   : > { %500 = vst.msk [vmem:[#allocation2 + $0x42] sm:$0xff] %vm493_vm1, %v463_v14  ;;  %501 = vst.msk [vmem:[#allocation2 + $0x4a] sm:$0xff] %vm493_vm1, %v464_v15 }
  0x26   : > { %502 = vst.msk [vmem:[#allocation2 + $0x52] sm:$0xff] %vm493_vm1, %v465_v16  ;;  %503 = vst.msk [vmem:[#allocation2 + $0x5a] sm:$0xff] %vm493_vm1, %v466_v17 }
  0x27   : > { %504 = vst.msk [vmem:[#allocation2 + $0x62] sm:$0xff] %vm493_vm1, %v467_v18  ;;  %505 = vst.msk [vmem:[#allocation2 + $0x6a] sm:$0xff] %vm493_vm1, %v468_v19 }
  0x28   : > { %506 = vst.msk [vmem:[#allocation2 + $0x72] sm:$0xff] %vm493_vm1, %v469_v20  ;;  %507 = vst.msk [vmem:[#allocation2 + $0x7a] sm:$0xff] %vm493_vm1, %v470_v21 }
  0x29   : > { %508 = vst.msk [vmem:[#allocation2 + $0x82] sm:$0xff] %vm493_vm1, %v471_v22  ;;  %509 = vst.msk [vmem:[#allocation2 + $0x8a] sm:$0xff] %vm493_vm1, %v472_v23  ;;  %v605_v31 = vld [vmem:[#allocation2 + $0x11] sm:$0xff]  ;;  %v606_v33 = vld [vmem:[#allocation2 + $0x19] sm:$0xff] }
  0x2a   : > { %510 = vst.msk [vmem:[#allocation2 + $0x92] sm:$0xff] %vm493_vm1, %v473_v24  ;;  %511 = vst.msk [vmem:[#allocation2 + $0x9a] sm:$0xff] %vm493_vm1, %v474_v25  ;;  %v2198_v32 = vld [vmem:[#allocation2 + $0x13] sm:$0xff]  ;;  %24722 = vmatprep.mubr.msk.f32.mxu1 %vm493_vm1, %v605_v31  ;;  %v2199_v34 = vld [vmem:[#allocation2 + $0x1b] sm:$0xff] }
  0x2b   : > { %512 = vst.msk [vmem:[#allocation2 + $0xa2] sm:$0xff] %vm493_vm1, %v475_v26  ;;  %513 = vst.msk [vmem:[#allocation2 + $0xaa] sm:$0xff] %vm493_vm1, %v476_v27  ;;  %24943 = vmatprep.mubr.msk.f32.mxu0 %vm493_vm1, %v2198_v32  ;;  %v607_v35 = vld [vmem:[#allocation2 + $0x21] sm:$0xff]  ;;  %24723 = vmatmul.mubr.msk.f32.gmra.mrb[2].mxu1 %vm493_vm1, %v606_v33  ;;  %v608_v37 = vld [vmem:[#allocation2 + $0x29] sm:$0xff] }
  0x2c   : > { %514 = vst.msk [vmem:[#allocation2 + $0xb2] sm:$0xff] %vm493_vm1, %v477_v28  ;;  %515 = vst.msk [vmem:[#allocation2 + $0xba] sm:$0xff] %vm493_vm1, %v478_v30  ;;  %v2200_v36 = vld [vmem:[#allocation2 + $0x23] sm:$0xff]  ;;  %24944 = vmatmul.mubr.msk.f32.vlgmr.msra.gmra.mrb[0].mxu0 %vm493_vm1, %v2199_v34  ;;  %24725 = vmatprep.mubr.msk.f32.mxu1 %vm493_vm1, %v607_v35  ;;  %v2201_v38 = vld [vmem:[#allocation2 + $0x2b] sm:$0xff] }
  0x2d   : > { %24998 = vmatpush3.msra.mxu0 %v29157_v4  ;;  %24946 = vmatprep.mubr.msk.f32.mxu0 %vm493_vm1, %v2200_v36  ;;  %v609_v39 = vld [vmem:[#allocation2 + $0x31] sm:$0xff]  ;;  %v610_v41 = vld [vmem:[#allocation2 + $0x39] sm:$0xff]  ;;  %v611_v43 = vld [vmem:[#allocation2 + $0x41] sm:$0xff]  ;;  %516 = vst.msk [vmem:[#allocation2 + $0xc2] sm:$0xff] %vm493_vm1, %v479_v50 }
  0x2e   : > { %v2202_v40 = vld [vmem:[#allocation2 + $0x33] sm:$0xff]  ;;  %25053 = vmatprep.subr.mxu0 %v29226_v29  ;;  %v2203_v42 = vld [vmem:[#allocation2 + $0x3b] sm:$0xff]  ;;  %v2204_v44 = vld [vmem:[#allocation2 + $0x43] sm:$0xff]  ;;  %517 = vst.msk [vmem:[#allocation2 + $0xca] sm:$0xff] %vm493_vm1, %v480_v53 }
  0x2f   : > { %24726 = vmatmul.mubr.msk.f32.gmra.mrb[4].mxu1 %vm493_vm1, %v608_v37  ;;  %v612_v45 = vld [vmem:[#allocation2 + $0x49] sm:$0xff]  ;;  %v613_v47 = vld [vmem:[#allocation2 + $0x51] sm:$0xff]  ;;  %v614_v49 = vld [vmem:[#allocation2 + $0x59] sm:$0xff]  ;;  %518 = vst.msk [vmem:[#allocation2 + $0xd2] sm:$0xff] %vm493_vm1, %v481_v55 }
  0x30   : > { %24947 = vmatmul.mubr.msk.f32.gmra.mrb[2].mxu0 %vm493_vm1, %v2201_v38  ;;  %24728 = vmatprep.mubr.msk.f32.mxu1 %vm493_vm1, %v609_v39  ;;  %v2205_v46 = vld [vmem:[#allocation2 + $0x4b] sm:$0xff]  ;;  %v2206_v48 = vld [vmem:[#allocation2 + $0x53] sm:$0xff]  ;;  %v2207_v51 = vld [vmem:[#allocation2 + $0x5b] sm:$0xff]  ;;  %519 = vst.msk [vmem:[#allocation2 + $0xda] sm:$0xff] %vm493_vm1, %v482_v56 }
  0x31   : > { %24949 = vmatprep.mubr.msk.f32.mxu0 %vm493_vm1, %v2202_v40  ;;  %v615_v52 = vld [vmem:[#allocation2 + $0x61] sm:$0xff]  ;;  %v616_v58 = vld [vmem:[#allocation2 + $0x69] sm:$0xff]  ;;  %520 = vst.msk [vmem:[#allocation2 + $0xe2] sm:$0xff] %vm493_vm1, %v483_v57  ;;  %v617_v62 = vld [vmem:[#allocation2 + $0x71] sm:$0xff] }
  0x32   : > { %v2208_v54 = vld [vmem:[#allocation2 + $0x63] sm:$0xff]  ;;  %v2209_v61 = vld [vmem:[#allocation2 + $0x6b] sm:$0xff]  ;;  %521 = vst.msk [vmem:[#allocation2 + $0xea] sm:$0xff] %vm493_vm1, %v484_v59  ;;  %522 = vst.msk [vmem:[#allocation2 + $0xf2] sm:$0xff] %vm493_vm1, %v485_v60 }
  0x33   : > { %24729 = vmatmul.mubr.msk.f32.gmra.mrb[6].mxu1 %vm493_vm1, %v610_v41  ;;  %v2210_v0 = vld [vmem:[#allocation2 + $0x73] sm:$0xff]  ;;  %523 = vst.msk [vmem:[#allocation2 + $0xfa] sm:$0xff] %vm493_vm1, %v486_v63  ;;  %524 = vst.msk [vmem:[#allocation2 + $0x102] sm:$0xff] %vm493_vm1, %v487_v3  ;;  %v2211_v9 = vld [vmem:[#allocation2 + $0x7b] sm:$0xff] }
  0x34   : > { %24950 = vmatmul.mubr.msk.f32.gmra.mrb[4].mxu0 %vm493_vm1, %v2203_v42  ;;  %24731 = vmatprep.mubr.msk.f32.mxu1 %vm493_vm1, %v611_v43  ;;  %v488_v4 = vld [vmem:[%s29173_s17 + $0xf8] sm:$0xff]  ;;  %526 = vst.msk [vmem:[#allocation2 + $0x112] sm:$0xff] %vm493_vm1, %v489_v5  ;;  %527 = vst.msk [vmem:[#allocation2 + $0x11a] sm:$0xff] %vm493_vm1, %v490_v6  ;;  %v619_v10 = vld [vmem:[#allocation2 + $0x81] sm:$0xff] }
  0x35   : > { %24952 = vmatprep.mubr.msk.f32.mxu0 %vm493_vm1, %v2204_v44  ;;  %525 = vst.msk [vmem:[#allocation2 + $0x10a] sm:$0xff] %vm493_vm1, %v488_v4  ;;  %v618_v7 = vld [vmem:[#allocation2 + $0x79] sm:$0xff]  ;;  %v2212_v11 = vld [vmem:[#allocation2 + $0x83] sm:$0xff]  ;;  %v2213_v13 = vld [vmem:[#allocation2 + $0x8b] sm:$0xff] }
  0x36   : > { %v620_v12 = vld [vmem:[#allocation2 + $0x89] sm:$0xff]  ;;  %v621_v14 = vld [vmem:[#allocation2 + $0x91] sm:$0xff]  ;;  %v622_v16 = vld [vmem:[#allocation2 + $0x99] sm:$0xff]  ;;  %456 = vst.msk [vmem:[#allocation2 + $0x140] sm:$0x3f] %vm455_vm2, %v28976_v2 }
  0x37   : > { %24732 = vmatmul.mubr.msk.f32.gmra.mrb[8].mxu1 %vm493_vm1, %v612_v45  ;;  %v2214_v15 = vld [vmem:[#allocation2 + $0x93] sm:$0xff]  ;;  %v2215_v17 = vld [vmem:[#allocation2 + $0x9b] sm:$0xff]  ;;  %v624_v20 = vld [vmem:[#allocation2 + $0xa9] sm:$0xff] }
  0x38   : > { %24953 = vmatmul.mubr.msk.f32.gmra.mrb[6].mxu0 %vm493_vm1, %v2205_v46  ;;  %24734 = vmatprep.mubr.msk.f32.mxu1 %vm493_vm1, %v613_v47  ;;  %v623_v18 = vld [vmem:[#allocation2 + $0xa1] sm:$0xff]  ;;  %v2624_v19 = vld [vmem:[#allocation2 + $0x14] sm:$0xff]  ;;  %v29308_v27 = vld [vmem:[#allocation2 + $0x2c] sm:$0xff] }
  0x39   : > { %24955 = vmatprep.mubr.msk.f32.mxu0 %vm493_vm1, %v2206_v48  ;;  %v2625_v21 = vld [vmem:[#allocation2 + $0x1c] sm:$0xff]  ;;  %v625_v22 = vld [vmem:[#allocation2 + $0xb1] sm:$0xff]  ;;  %v29296_v23 = vld [vmem:[#allocation2 + $0x24] sm:$0xff] }
  0x3a   : > { %v29301_v24 = vld [vmem:[%s33095_s2 + $0x38] sm:$0xff]  ;;  %v491_v25 = vld [vmem:[%s29173_s17 + $0x110] sm:$0xff]  ;;  %v627_v30 = vld [vmem:[#allocation2 + $0xc1] sm:$0xff] }
  0x3b   : > { %24735 = vmatmul.mubr.msk.f32.gmra.mrb[10].mxu1 %vm493_vm1, %v614_v49  ;;  %v626_v26 = vld [vmem:[#allocation2 + $0xb9] sm:$0xff]  ;;  %528 = vst.msk [vmem:[#allocation2 + $0x122] sm:$0xff] %vm493_vm1, %v491_v25  ;;  %v629_v33 = vld [vmem:[#allocation2 + $0xd1] sm:$0xff]  ;;  %v29327_v34 = vld [vmem:[#allocation2 + $0x44] sm:$0xff] }
  0x3c   : > { %24956 = vmatmul.mubr.msk.f32.gmra.mrb[8].mxu0 %vm493_vm1, %v2207_v51  ;;  %24737 = vmatprep.mubr.msk.f32.mxu1 %vm493_vm1, %v615_v52  ;;  %v492_v28 = vld [vmem:[%s29173_s17 + $0x118] sm:$0xff]  ;;  %v29335_v35 = vld [vmem:[#allocation2 + $0x4c] sm:$0xff]  ;;  %v631_v36 = vld [vmem:[#allocation2 + $0xe1] sm:$0xff] }
  0x3d   : > { %24958 = vmatprep.mubr.msk.f32.mxu0 %vm493_vm1, %v2208_v54  ;;  %v29314_v31 = vld [vmem:[#allocation2 + $0x34] sm:$0xff]  ;;  %529 = vst.msk [vmem:[#allocation2 + $0x12a] sm:$0xff] %vm493_vm1, %v492_v28  ;;  %v29325_v32 = vld [vmem:[#allocation2 + $0x3c] sm:$0xff]  ;;  %v632_v38 = vld [vmem:[#allocation2 + $0xe9] sm:$0xff] }
  0x3e   : > { %v630_v2 = vld [vmem:[#allocation2 + $0xd9] sm:$0xff]  ;;  %v633_v40 = vld [vmem:[#allocation2 + $0xf1] sm:$0xff]  ;;  %v29347_v41 = vld [vmem:[#allocation2 + $0x64] sm:$0xff] }
  0x3f   : > { %24738 = vmatmul.mubr.msk.f32.gmra.mrb[12].mxu1 %vm493_vm1, %v616_v58  ;;  %v29337_v37 = vld [vmem:[#allocation2 + $0x54] sm:$0xff]  ;;  %v29345_v39 = vld [vmem:[#allocation2 + $0x5c] sm:$0xff]  ;;  %v29355_v43 = vld [vmem:[#allocation2 + $0x6c] sm:$0xff] }
  0x40   : > { %24959 = vmatmul.mubr.msk.f32.gmra.mrb[10].mxu0 %vm493_vm1, %v2209_v61  ;;  %24740 = vmatprep.mubr.msk.f32.mxu1 %vm493_vm1, %v617_v62  ;;  %v634_v42 = vld [vmem:[#allocation2 + $0xf9] sm:$0xff]  ;;  %v635_v44 = vld [vmem:[#allocation2 + $0x101] sm:$0xff]  ;;  %v636_v46 = vld [vmem:[#allocation2 + $0x109] sm:$0xff] }
  0x41   : > { %24961 = vmatprep.mubr.msk.f32.mxu0 %vm493_vm1, %v2210_v0  ;;  %v29357_v45 = vld [vmem:[#allocation2 + $0x74] sm:$0xff]  ;;  %v29365_v47 = vld [vmem:[#allocation2 + $0x7c] sm:$0xff]  ;;  %v29367_v49 = vld [vmem:[#allocation2 + $0x84] sm:$0xff] }
  0x42   : > { %v637_v48 = vld [vmem:[#allocation2 + $0x111] sm:$0xff]  ;;  %v638_v50 = vld [vmem:[#allocation2 + $0x119] sm:$0xff]  ;;  %v567_v54 = vld [vmem:[#allocation2 + $0x8] sm:$0xff] }
  0x43   : > { %24741 = vmatmul.mubr.msk.f32.gmra.mrb[14].mxu1 %vm493_vm1, %v618_v7  ;;  %v29375_v51 = vld [vmem:[#allocation2 + $0x8c] sm:$0xff]  ;;  %v566_v52 = vld [vmem:[#allocation2] sm:$0xff]  ;;  %v29377_v53 = vld [vmem:[#allocation2 + $0x94] sm:$0xff] }
  0x44   : > { %24962 = vmatmul.mubr.msk.f32.gmra.mrb[12].mxu0 %vm493_vm1, %v2211_v9  ;;  %24743 = vmatprep.mubr.msk.f32.mxu1 %vm493_vm1, %v619_v10  ;;  %v29385_v55 = vld [vmem:[#allocation2 + $0x9c] sm:$0xff]  ;;  %v568_v56 = vld [vmem:[#allocation2 + $0x10] sm:$0xff]  ;;  %v29387_v57 = vld [vmem:[#allocation2 + $0xa4] sm:$0xff] }
  0x45   : > { %24964 = vmatprep.mubr.msk.f32.mxu0 %vm493_vm1, %v2212_v11  ;;  %v29395_v58 = vld [vmem:[%s33095_s2 + $0x18] sm:$0xff]  ;;  %v29400_v60 = vld [vmem:[#allocation2 + $0xac] sm:$0xff]  ;;  %v570_v61 = vld [vmem:[#allocation2 + $0x20] sm:$0xff] }
  0x46   : > { %v569_v59 = vld [vmem:[#allocation2 + $0x18] sm:$0xff]  ;;  %v571_v63 = vld [vmem:[#allocation2 + $0x28] sm:$0xff]  ;;  %v572_v3 = vld [vmem:[#allocation2 + $0x30] sm:$0xff] }
  0x47   : > { %24744 = vmatmul.mubr.msk.f32.gmra.mrb[16].mxu1 %vm493_vm1, %v620_v12  ;;  %v29403_v62 = vld [vmem:[#allocation2 + $0xb4] sm:$0xff]  ;;  %v29412_v0 = vld [vmem:[#allocation2 + $0xbc] sm:$0xff]  ;;  %v29422_v5 = vld [vmem:[#allocation2 + $0xcc] sm:$0xff] }
  0x48   : > { %24965 = vmatmul.mubr.msk.f32.gmra.mrb[14].mxu0 %vm493_vm1, %v2213_v13  ;;  %24746 = vmatprep.mubr.msk.f32.mxu1 %vm493_vm1, %v621_v14  ;;  %v573_v4 = vld [vmem:[#allocation2 + $0x38] sm:$0xff]  ;;  %v574_v6 = vld [vmem:[#allocation2 + $0x40] sm:$0xff]  ;;  %v575_v9 = vld [vmem:[#allocation2 + $0x48] sm:$0xff] }
  0x49   : > { %24967 = vmatprep.mubr.msk.f32.mxu0 %vm493_vm1, %v2214_v15  ;;  %v29424_v7 = vld [vmem:[#allocation2 + $0xd4] sm:$0xff]  ;;  %v29432_v10 = vld [vmem:[#allocation2 + $0xdc] sm:$0xff]  ;;  %v29434_v12 = vld [vmem:[#allocation2 + $0xe4] sm:$0xff] }
  0x4a   : > { %v576_v11 = vld [vmem:[#allocation2 + $0x50] sm:$0xff]  ;;  %v577_v13 = vld [vmem:[#allocation2 + $0x58] sm:$0xff]  ;;  %v578_v15 = vld [vmem:[#allocation2 + $0x60] sm:$0xff] }
  0x4b   : > { %24747 = vmatmul.mubr.msk.f32.gmra.mrb[18].mxu1 %vm493_vm1, %v622_v16  ;;  %v29442_v14 = vld [vmem:[#allocation2 + $0xec] sm:$0xff]  ;;  %v29444_v16 = vld [vmem:[#allocation2 + $0xf4] sm:$0xff]  ;;  %v582_v25 = vld [vmem:[#allocation2 + $0x80] sm:$0xff] }
  0x4c   : > { %24968 = vmatmul.mubr.msk.f32.gmra.mrb[16].mxu0 %vm493_vm1, %v2215_v17  ;;  %24749 = vmatprep.mubr.msk.f32.mxu1 %vm493_vm1, %v623_v18  ;;  %v579_v17 = vld [vmem:[#allocation2 + $0x68] sm:$0xff]  ;;  %v29452_v18 = vld [vmem:[#allocation2 + $0xfc] sm:$0xff]  ;;  %vm29993_vm5 = vmpackc.low %vm5061_vm3, %vm28978_vm4 }
  0x4d   : > { %24999 = vmatprep.mubr.msk.f32.mxu0 %vm493_vm1, %v2624_v19  ;;  %v580_v19 = vld [vmem:[#allocation2 + $0x70] sm:$0xff]  ;;  %v583_v28 = vld [vmem:[#allocation2 + $0x88] sm:$0xff] }
  0x4f   : > { %24750 = vmatmul.mubr.msk.f32.gmra.mrb[20].mxu1 %vm493_vm1, %v624_v20  ;;  %v29454_v20 = vld [vmem:[#allocation2 + $0x104] sm:$0xff] }
  0x50   : > { %25000 = vmatmul.mubr.msk.f32.vlgmr.msra.gmra.mrb[0].mxu0 %vm493_vm1, %v2625_v21  ;;  %24752 = vmatprep.mubr.msk.f32.mxu1 %vm493_vm1, %v625_v22  ;;  %v581_v21 = vld [vmem:[#allocation2 + $0x78] sm:$0xff]  ;;  %v29462_v22 = vld [vmem:[#allocation2 + $0x10c] sm:$0xff] }
  0x51   : > { %25054 = vmatpush3.msra.mxu0 %v29226_v29  ;;  %25002 = vmatprep.mubr.msk.f32.mxu0 %vm493_vm1, %v29296_v23  ;;  %v628_v29 = vld [vmem:[#allocation2 + $0xc9] sm:$0xff] }
  0x52   : > { %25109 = vmatprep.subr.mxu0 %v29301_v24 }
  0x53   : > { %24753 = vmatmul.mubr.msk.f32.gmra.mrb[22].mxu1 %vm493_vm1, %v626_v26  ;;  %v29464_v26 = vld [vmem:[#allocation2 + $0x114] sm:$0xff] }
  0x54   : > { %25003 = vmatmul.mubr.msk.f32.gmra.mrb[2].mxu0 %vm493_vm1, %v29308_v27  ;;  %24755 = vmatprep.mubr.msk.f32.mxu1 %vm493_vm1, %v627_v30  ;;  %v29472_v30 = vld [vmem:[#allocation2 + $0x11c] sm:$0xff] }
  0x55   : > { %25005 = vmatprep.mubr.msk.f32.mxu0 %vm493_vm1, %v29314_v31 }
  0x57   : > { %24756 = vmatmul.mubr.msk.f32.gmra.mrb[24].mxu1 %vm493_vm1, %v628_v29  ;;  %v584_v29 = vld [vmem:[#allocation2 + $0x90] sm:$0xff] }
  0x58   : > { %25006 = vmatmul.mubr.msk.f32.gmra.mrb[4].mxu0 %vm493_vm1, %v29325_v32  ;;  %24758 = vmatprep.mubr.msk.f32.mxu1 %vm493_vm1, %v629_v33  ;;  %v29474_v33 = vld [vmem:[#allocation2 + $0x124] sm:$0xff] }
  0x59   : > { %25008 = vmatprep.mubr.msk.f32.mxu0 %vm493_vm1, %v29327_v34 }
  0x5b   : > { %24759 = vmatmul.mubr.msk.f32.gmra.mrb[26].mxu1 %vm493_vm1, %v630_v2  ;;  %v585_v2 = vld [vmem:[#allocation2 + $0x98] sm:$0xff] }
  0x5c   : > { %25009 = vmatmul.mubr.msk.f32.gmra.mrb[6].mxu0 %vm493_vm1, %v29335_v35  ;;  %24761 = vmatprep.mubr.msk.f32.mxu1 %vm493_vm1, %v631_v36  ;;  %v29482_v36 = vld [vmem:[#allocation2 + $0x12c] sm:$0xff] }
  0x5d   : > { %25011 = vmatprep.mubr.msk.f32.mxu0 %vm493_vm1, %v29337_v37 }
  0x5f   : > { %24762 = vmatmul.mubr.msk.f32.gmra.mrb[28].mxu1 %vm493_vm1, %v632_v38  ;;  %v586_v38 = vld [vmem:[#allocation2 + $0xa0] sm:$0xff] }
  0x60   : > { %25012 = vmatmul.mubr.msk.f32.gmra.mrb[8].mxu0 %vm493_vm1, %v29345_v39  ;;  %24764 = vmatprep.mubr.msk.f32.mxu1 %vm493_vm1, %v633_v40  ;;  %v587_v40 = vld [vmem:[#allocation2 + $0xa8] sm:$0xff] }
  0x61   : > { %25014 = vmatprep.mubr.msk.f32.mxu0 %vm493_vm1, %v29347_v41 }
  0x63   : > { %24765 = vmatmul.mubr.msk.f32.gmra.mrb[30].mxu1 %vm493_vm1, %v634_v42  ;;  %v588_v42 = vld [vmem:[#allocation2 + $0xb0] sm:$0xff] }
  0x64   : > { %25015 = vmatmul.mubr.msk.f32.gmra.mrb[10].mxu0 %vm493_vm1, %v29355_v43  ;;  %24767 = vmatprep.mubr.msk.f32.mxu1 %vm493_vm1, %v635_v44  ;;  %v29493_v44 = vld [vmem:[%s33095_s2 + $0x40] sm:$0xff] }
  0x65   : > { %25017 = vmatprep.mubr.msk.f32.mxu0 %vm493_vm1, %v29357_v45 }
  0x67   : > { %24768 = vmatmul.mubr.msk.f32.gmra.mrb[32].mxu1 %vm493_vm1, %v636_v46  ;;  %v589_v46 = vld [vmem:[#allocation2 + $0xb8] sm:$0xff] }
  0x68   : > { %25018 = vmatmul.mubr.msk.f32.gmra.mrb[12].mxu0 %vm493_vm1, %v29365_v47  ;;  %24770 = vmatprep.mubr.msk.f32.mxu1 %vm493_vm1, %v637_v48  ;;  %v594_v48 = vld [vmem:[#allocation2 + $0xe0] sm:$0xff] }
  0x69   : > { %25020 = vmatprep.mubr.msk.f32.mxu0 %vm493_vm1, %v29367_v49 }
  0x6b   : > { %24771 = vmatmul.mubr.msk.f32.gmra.mrb[34].mxu1 %vm493_vm1, %v638_v50  ;;  %v29554_v50 = vld [vmem:[#allocation2 + $0x1a] sm:$0xff] }
  0x6c   : > { %25021 = vmatmul.mubr.msk.f32.gmra.mrb[14].mxu0 %vm493_vm1, %v29375_v51  ;;  %24775 = vmatprep.mubr.msk.f32.mxu1 %vm493_vm1, %v566_v52  ;;  %v29568_v52 = vld [vmem:[#allocation2 + $0x2a] sm:$0xff] }
  0x6d   : > { %25023 = vmatprep.mubr.msk.f32.mxu0 %vm493_vm1, %v29377_v53 }
  0x6f   : > { %24776 = vmatmul.mubr.msk.f32.vlgmr.msra.gmra.mrb[0].mxu1 %vm493_vm1, %v567_v54  ;;  %v28977_v54 = vmov 0  }
  0x70   : > { %25024 = vmatmul.mubr.msk.f32.gmra.mrb[16].mxu0 %vm493_vm1, %v29385_v55  ;;  %24778 = vmatprep.mubr.msk.f32.mxu1 %vm493_vm1, %v568_v56  ;;  %v29585_v56 = vld [vmem:[#allocation2 + $0x42] sm:$0xff] }
  0x71   : > { %25026 = vmatprep.mubr.msk.f32.mxu0 %vm493_vm1, %v29387_v57  ;;  %24830 = vmatpush3.msra.mxu1 %v29181_v8  ;;  %v29414_v8 = vld [vmem:[#allocation2 + $0xc4] sm:$0xff] }
  0x72   : > { %24885 = vmatprep.subr.mxu1 %v29395_v58  ;;  %28965 = vset.pattern.permute.xlu0 %v28977_v54 }
  0x73   : > { %24779 = vmatmul.mubr.msk.f32.gmra.mrb[2].mxu1 %vm493_vm1, %v569_v59  ;;  %28966 = vset.pattern.permute.xlu1 %v28977_v54  ;;  %v29601_v59 = vld [vmem:[#allocation2 + $0x4a] sm:$0xff]  ;;  %v29773_v54 = vld [vmem:[#allocation2 + $0xf2] sm:$0xff] }
  0x74   : > { %25027 = vmatmul.mubr.msk.f32.gmra.mrb[18].mxu0 %vm493_vm1, %v29400_v60  ;;  %24781 = vmatprep.mubr.msk.f32.mxu1 %vm493_vm1, %v570_v61  ;;  %v533_v61 = vld [vmem:[%s33094_s1 + $0x18] sm:$0xff] }
  0x75   : > { %25029 = vmatprep.mubr.msk.f32.mxu0 %vm493_vm1, %v29403_v62 }
  0x77   : > { %24782 = vmatmul.mubr.msk.f32.gmra.mrb[4].mxu1 %vm493_vm1, %v571_v63  ;;  %v29619_v63 = vld [vmem:[#allocation2 + $0x5a] sm:$0xff] }
  0x78   : > { %25030 = vmatmul.mubr.msk.f32.gmra.mrb[20].mxu0 %vm493_vm1, %v29412_v0  ;;  %24784 = vmatprep.mubr.msk.f32.mxu1 %vm493_vm1, %v572_v3  ;;  %v535_v3 = vld [vmem:[%s33094_s1 + $0x28] sm:$0xff] }
  0x79   : > { %25032 = vmatprep.mubr.msk.f32.mxu0 %vm493_vm1, %v29414_v8 }
  0x7b   : > { %24785 = vmatmul.mubr.msk.f32.gmra.mrb[6].mxu1 %vm493_vm1, %v573_v4  ;;  %v29637_v4 = vld [vmem:[#allocation2 + $0x6a] sm:$0xff] }
  0x7c   : > { %25033 = vmatmul.mubr.msk.f32.gmra.mrb[22].mxu0 %vm493_vm1, %v29422_v5  ;;  %24787 = vmatprep.mubr.msk.f32.mxu1 %vm493_vm1, %v574_v6  ;;  %v537_v6 = vld [vmem:[%s33094_s1 + $0x38] sm:$0xff] }
  0x7d   : > { %25035 = vmatprep.mubr.msk.f32.mxu0 %vm493_vm1, %v29424_v7 }
  0x7f   : > { %24788 = vmatmul.mubr.msk.f32.gmra.mrb[8].mxu1 %vm493_vm1, %v575_v9  ;;  %v29655_v9 = vld [vmem:[#allocation2 + $0x7a] sm:$0xff] }
  0x80   : > { %25036 = vmatmul.mubr.msk.f32.gmra.mrb[24].mxu0 %vm493_vm1, %v29432_v10  ;;  %24790 = vmatprep.mubr.msk.f32.mxu1 %vm493_vm1, %v576_v11  ;;  %v539_v11 = vld [vmem:[%s33094_s1 + $0x48] sm:$0xff] }
  0x81   : > { %25038 = vmatprep.mubr.msk.f32.mxu0 %vm493_vm1, %v29434_v12 }
  0x83   : > { %24791 = vmatmul.mubr.msk.f32.gmra.mrb[10].mxu1 %vm493_vm1, %v577_v13  ;;  %v29673_v13 = vld [vmem:[#allocation2 + $0x8a] sm:$0xff] }
  0x84   : > { %25039 = vmatmul.mubr.msk.f32.gmra.mrb[26].mxu0 %vm493_vm1, %v29442_v14  ;;  %24793 = vmatprep.mubr.msk.f32.mxu1 %vm493_vm1, %v578_v15  ;;  %v3084_v15 = vld [vmem:[#allocation2 + $0x134] sm:$0xff] }
  0x85   : > { %25041 = vmatprep.mubr.msk.f32.mxu0 %vm493_vm1, %v29444_v16 }
  0x87   : > { %24794 = vmatmul.mubr.msk.f32.gmra.mrb[12].mxu1 %vm493_vm1, %v579_v17  ;;  %v542_v17 = vld [vmem:[%s33094_s1 + $0x60] sm:$0xff] }
  0x88   : > { %25042 = vmatmul.mubr.msk.f32.gmra.mrb[28].mxu0 %vm493_vm1, %v29452_v18  ;;  %24796 = vmatprep.mubr.msk.f32.mxu1 %vm493_vm1, %v580_v19  ;;  %v3085_v19 = vld [vmem:[#allocation2 + $0x13c] sm:$0xff] }
  0x89   : > { %25044 = vmatprep.mubr.msk.f32.mxu0 %vm493_vm1, %v29454_v20 }
  0x8b   : > { %24797 = vmatmul.mubr.msk.f32.gmra.mrb[14].mxu1 %vm493_vm1, %v581_v21  ;;  %v3476_v21 = vld [vmem:[#allocation2 + $0x25] sm:$0xff] }
  0x8c   : > { %25045 = vmatmul.mubr.msk.f32.gmra.mrb[30].mxu0 %vm493_vm1, %v29462_v22  ;;  %24799 = vmatprep.mubr.msk.f32.mxu1 %vm493_vm1, %v582_v25  ;;  %v544_v25 = vld [vmem:[%s33094_s1 + $0x70] sm:$0xff] }
  0x8d   : > { %25047 = vmatprep.mubr.msk.f32.mxu0 %vm493_vm1, %v29464_v26 }
  0x8f   : > { %24800 = vmatmul.mubr.msk.f32.gmra.mrb[16].mxu1 %vm493_vm1, %v583_v28  ;;  %v3477_v28 = vld [vmem:[#allocation2 + $0x2d] sm:$0xff] }
  0x90   : > { %25048 = vmatmul.mubr.msk.f32.gmra.mrb[32].mxu0 %vm493_vm1, %v29472_v30  ;;  %24802 = vmatprep.mubr.msk.f32.mxu1 %vm493_vm1, %v584_v29  ;;  %v3478_v29 = vld [vmem:[#allocation2 + $0x35] sm:$0xff] }
  0x91   : > { %25050 = vmatprep.mubr.msk.f32.mxu0 %vm493_vm1, %v29474_v33 }
  0x93   : > { %24803 = vmatmul.mubr.msk.f32.gmra.mrb[18].mxu1 %vm493_vm1, %v585_v2  ;;  %v546_v2 = vld [vmem:[%s33094_s1 + $0x80] sm:$0xff] }
  0x94   : > { %25051 = vmatmul.mubr.msk.f32.gmra.mrb[34].mxu0 %vm493_vm1, %v29482_v36  ;;  %24805 = vmatprep.mubr.msk.f32.mxu1 %vm493_vm1, %v586_v38  ;;  %v3479_v38 = vld [vmem:[#allocation2 + $0x3d] sm:$0xff] }
  0x95   : > { %25055 = vmatprep.mubr.msk.f32.mxu0 %vm493_vm1, %v29296_v23  ;;  %v590_v23 = vld [vmem:[#allocation2 + $0xc0] sm:$0xff] }
  0x97   : > { %24806 = vmatmul.mubr.msk.f32.gmra.mrb[20].mxu1 %vm493_vm1, %v587_v40  ;;  %v29725_v40 = vld [vmem:[#allocation2 + $0xc2] sm:$0xff] }
  0x98   : > { %25056 = vmatmul.mubr.msk.f32.vlgmr.msra.gmra.mrb[0].mxu0 %vm493_vm1, %v29308_v27  ;;  %24808 = vmatprep.mubr.msk.f32.mxu1 %vm493_vm1, %v588_v42  ;;  %v592_v27 = vld [vmem:[#allocation2 + $0xd0] sm:$0xff]  ;;  %v3480_v42 = vld [vmem:[#allocation2 + $0x45] sm:$0xff] }
  0x99   : > { %25110 = vmatpush3.msra.mxu0 %v29301_v24  ;;  %25058 = vmatprep.mubr.msk.f32.mxu0 %vm493_vm1, %v29314_v31  ;;  %v591_v24 = vld [vmem:[#allocation2 + $0xc8] sm:$0xff]  ;;  %v593_v31 = vld [vmem:[#allocation2 + $0xd8] sm:$0xff] }
  0x9a   : > { %25165 = vmatprep.subr.mxu0 %v29493_v44 }
  0x9b   : > { %24809 = vmatmul.mubr.msk.f32.gmra.mrb[22].mxu1 %vm493_vm1, %v589_v46  ;;  %v548_v46 = vld [vmem:[%s33094_s1 + $0x90] sm:$0xff] }
  0x9c   : > { %25059 = vmatmul.mubr.msk.f32.gmra.mrb[2].mxu0 %vm493_vm1, %v29325_v32  ;;  %24811 = vmatprep.mubr.msk.f32.mxu1 %vm493_vm1, %v590_v23  ;;  %v595_v32 = vld [vmem:[#allocation2 + $0xe8] sm:$0xff] }
  0x9d   : > { %25061 = vmatprep.mubr.msk.f32.mxu0 %vm493_vm1, %v29327_v34  ;;  %v596_v34 = vld [vmem:[#allocation2 + $0xf0] sm:$0xff] }
  0x9e   : > { %v29739_v23 = vld [vmem:[#allocation2 + $0xca] sm:$0xff] }
  0x9f   : > { %24812 = vmatmul.mubr.msk.f32.gmra.mrb[24].mxu1 %vm493_vm1, %v591_v24  ;;  %v3481_v24 = vld [vmem:[#allocation2 + $0x4d] sm:$0xff] }
  0xa0   : > { %25062 = vmatmul.mubr.msk.f32.gmra.mrb[4].mxu0 %vm493_vm1, %v29335_v35  ;;  %24814 = vmatprep.mubr.msk.f32.mxu1 %vm493_vm1, %v592_v27  ;;  %v597_v35 = vld [vmem:[#allocation2 + $0xf8] sm:$0xff] }
  0xa1   : > { %25064 = vmatprep.mubr.msk.f32.mxu0 %vm493_vm1, %v29337_v37  ;;  %v598_v37 = vld [vmem:[#allocation2 + $0x100] sm:$0xff]  ;;  %v29741_v27 = vld [vmem:[#allocation2 + $0xd2] sm:$0xff] }
  0xa3   : > { %24815 = vmatmul.mubr.msk.f32.gmra.mrb[26].mxu1 %vm493_vm1, %v593_v31  ;;  %v3482_v31 = vld [vmem:[#allocation2 + $0x55] sm:$0xff] }
  0xa4   : > { %25065 = vmatmul.mubr.msk.f32.gmra.mrb[6].mxu0 %vm493_vm1, %v29345_v39  ;;  %24817 = vmatprep.mubr.msk.f32.mxu1 %vm493_vm1, %v594_v48  ;;  %v599_v39 = vld [vmem:[#allocation2 + $0x108] sm:$0xff]  ;;  %v549_v48 = vld [vmem:[%s33094_s1 + $0x98] sm:$0xff] }
  0xa5   : > { %25067 = vmatprep.mubr.msk.f32.mxu0 %vm493_vm1, %v29347_v41  ;;  %v600_v41 = vld [vmem:[#allocation2 + $0x110] sm:$0xff] }
  0xa7   : > { %24818 = vmatmul.mubr.msk.f32.gmra.mrb[28].mxu1 %vm493_vm1, %v595_v32  ;;  %v550_v32 = vld [vmem:[%s33094_s1 + $0xa0] sm:$0xff] }
  0xa8   : > { %25068 = vmatmul.mubr.msk.f32.gmra.mrb[8].mxu0 %vm493_vm1, %v29355_v43  ;;  %24820 = vmatprep.mubr.msk.f32.mxu1 %vm493_vm1, %v596_v34  ;;  %v601_v43 = vld [vmem:[#allocation2 + $0x118] sm:$0xff] }
  0xa9   : > { %25070 = vmatprep.mubr.msk.f32.mxu0 %vm493_vm1, %v29357_v45  ;;  %v1346_v45 = vld [vmem:[#allocation2 + $0x2] sm:$0xff]  ;;  %v29755_v34 = vld [vmem:[#allocation2 + $0xda] sm:$0xff] }
  0xab   : > { %24821 = vmatmul.mubr.msk.f32.gmra.mrb[30].mxu1 %vm493_vm1, %v597_v35  ;;  %v3483_v35 = vld [vmem:[#allocation2 + $0x5d] sm:$0xff] }
  0xac   : > { %25071 = vmatmul.mubr.msk.f32.gmra.mrb[10].mxu0 %vm493_vm1, %v29365_v47  ;;  %24823 = vmatprep.mubr.msk.f32.mxu1 %vm493_vm1, %v598_v37  ;;  %v1347_v47 = vld [vmem:[#allocation2 + $0xa] sm:$0xff]  ;;  %v29757_v37 = vld [vmem:[#allocation2 + $0xe2] sm:$0xff] }
  0xad   : > { %25073 = vmatprep.mubr.msk.f32.mxu0 %vm493_vm1, %v29367_v49  ;;  %v29545_v49 = vld [vmem:[#allocation2 + $0x12] sm:$0xff] }
  0xaf   : > { %24824 = vmatmul.mubr.msk.f32.gmra.mrb[32].mxu1 %vm493_vm1, %v599_v39  ;;  %v3484_v39 = vld [vmem:[#allocation2 + $0x65] sm:$0xff] }
  0xb0   : > { %25074 = vmatmul.mubr.msk.f32.gmra.mrb[12].mxu0 %vm493_vm1, %v29375_v51  ;;  %24826 = vmatprep.mubr.msk.f32.mxu1 %vm493_vm1, %v600_v41  ;;  %v29557_v51 = vld [vmem:[#allocation2 + $0x22] sm:$0xff] }
  0xb1   : > { %25076 = vmatprep.mubr.msk.f32.mxu0 %vm493_vm1, %v29377_v53  ;;  %v29570_v53 = vld [vmem:[#allocation2 + $0x32] sm:$0xff]  ;;  %v551_v41 = vld [vmem:[%s33094_s1 + $0xa8] sm:$0xff] }
  0xb3   : > { %24827 = vmatmul.mubr.msk.f32.gmra.mrb[34].mxu1 %vm493_vm1, %v601_v43  ;;  %v552_v43 = vld [vmem:[%s33094_s1 + $0xb0] sm:$0xff] }
  0xb4   : > { %25077 = vmatmul.mubr.msk.f32.gmra.mrb[14].mxu0 %vm493_vm1, %v29385_v55  ;;  %24831 = vmatprep.mubr.msk.f32.mxu1 %vm493_vm1, %v1346_v45  ;;  %v29583_v55 = vld [vmem:[#allocation2 + $0x3a] sm:$0xff]  ;;  %v29771_v45 = vld [vmem:[#allocation2 + $0xea] sm:$0xff] }
  0xb5   : > { %25079 = vmatprep.mubr.msk.f32.mxu0 %vm493_vm1, %v29387_v57  ;;  %v532_v57 = vld [vmem:[%s33094_s1 + $0x10] sm:$0xff] }
  0xb6   : > { %4491 = vperm.xlu1 %28966, %v532_v57   ;;  %v553_v57 = vld [vmem:[%s33094_s1 + $0xb8] sm:$0xff] }
  0xb7   : > { %24832 = vmatmul.mubr.msk.f32.vlgmr.msra.gmra.mrb[0].mxu1 %vm493_vm1, %v1347_v47  ;;  %v3485_v47 = vld [vmem:[#allocation2 + $0x6d] sm:$0xff] }
  0xb8   : > { %25080 = vmatmul.mubr.msk.f32.gmra.mrb[16].mxu0 %vm493_vm1, %v29400_v60  ;;  %24834 = vmatprep.mubr.msk.f32.mxu1 %vm493_vm1, %v29545_v49  ;;  %v29603_v60 = vld [vmem:[#allocation2 + $0x52] sm:$0xff] }
  0xb9   : > { %25082 = vmatprep.mubr.msk.f32.mxu0 %vm493_vm1, %v29403_v62  ;;  %24886 = vmatpush3.msra.mxu1 %v29395_v58  ;;  %v531_v58 = vld [vmem:[%s33094_s1 + $0x8] sm:$0xff]  ;;  %v534_v62 = vld [vmem:[%s33094_s1 + $0x20] sm:$0xff] }
  0xba   : > { %27507 = vmatprep.subr.mxu1 %v29062_v1  ;;  %v530_v1 = vld [vmem:[%s33094_s1] sm:$0xff]  ;;  %4496 = vperm.xlu1 %28966, %v533_v61  }
  0xbb   : > { %24835 = vmatmul.mubr.msk.f32.gmra.mrb[2].mxu1 %vm493_vm1, %v29554_v50  ;;  %4481 = vperm.xlu0 %28965, %v530_v1   ;;  %v3486_v1 = vld [vmem:[#allocation2 + $0x75] sm:$0xff] }
  0xbc   : > { %25083 = vmatmul.mubr.msk.f32.gmra.mrb[18].mxu0 %vm493_vm1, %v29412_v0  ;;  %24837 = vmatprep.mubr.msk.f32.mxu1 %vm493_vm1, %v29557_v51  ;;  %v29621_v0 = vld [vmem:[#allocation2 + $0x62] sm:$0xff]  ;;  %v29787_v61 = vld [vmem:[#allocation2 + $0xfa] sm:$0xff] }
  0xbd   : > { %25085 = vmatprep.mubr.msk.f32.mxu0 %vm493_vm1, %v29414_v8  ;;  %v536_v8 = vld [vmem:[%s33094_s1 + $0x30] sm:$0xff] }
  0xbe   : > { %4506 = vperm.xlu1 %28966, %v535_v3   ;;  %v29789_v3 = vld [vmem:[#allocation2 + $0x102] sm:$0xff] }
  0xbf   : > { %24838 = vmatmul.mubr.msk.f32.gmra.mrb[4].mxu1 %vm493_vm1, %v29568_v52  ;;  %4486 = vperm.xlu0 %28965, %v531_v58   ;;  %v554_v58 = vld [vmem:[%s33094_s1 + $0xc0] sm:$0xff] }
  0xc0   : > { %25086 = vmatmul.mubr.msk.f32.gmra.mrb[20].mxu0 %vm493_vm1, %v29422_v5  ;;  %24840 = vmatprep.mubr.msk.f32.mxu1 %vm493_vm1, %v29570_v53  ;;  %v29639_v5 = vld [vmem:[#allocation2 + $0x72] sm:$0xff] }
  0xc1   : > { %25088 = vmatprep.mubr.msk.f32.mxu0 %vm493_vm1, %v29424_v7  ;;  %v538_v7 = vld [vmem:[%s33094_s1 + $0x40] sm:$0xff] }
  0xc2   : > { %4516 = vperm.xlu1 %28966, %v537_v6   ;;  %v555_v6 = vld [vmem:[%s33094_s1 + $0xc8] sm:$0xff] }
  0xc3   : > { %24841 = vmatmul.mubr.msk.f32.gmra.mrb[6].mxu1 %vm493_vm1, %v29583_v55  ;;  %4501 = vperm.xlu0 %28965, %v534_v62   ;;  %v3487_v62 = vld [vmem:[#allocation2 + $0x7d] sm:$0xff] }
  0xc4   : > { %25089 = vmatmul.mubr.msk.f32.gmra.mrb[22].mxu0 %vm493_vm1, %v29432_v10  ;;  %24843 = vmatprep.mubr.msk.f32.mxu1 %vm493_vm1, %v29585_v56  ;;  %v29657_v10 = vld [vmem:[#allocation2 + $0x82] sm:$0xff] }
  0xc5   : > { %25091 = vmatprep.mubr.msk.f32.mxu0 %vm493_vm1, %v29434_v12  ;;  %v540_v12 = vld [vmem:[%s33094_s1 + $0x50] sm:$0xff] }
  0xc6   : > { %4526 = vperm.xlu1 %28966, %v539_v11   ;;  %v29803_v11 = vld [vmem:[#allocation2 + $0x10a] sm:$0xff] }
  0xc7   : > { %24844 = vmatmul.mubr.msk.f32.gmra.mrb[8].mxu1 %vm493_vm1, %v29601_v59  ;;  %4511 = vperm.xlu0 %28965, %v536_v8   ;;  %v3488_v8 = vld [vmem:[#allocation2 + $0x85] sm:$0xff] }
  0xc8   : > { %25092 = vmatmul.mubr.msk.f32.gmra.mrb[24].mxu0 %vm493_vm1, %v29442_v14  ;;  %24846 = vmatprep.mubr.msk.f32.mxu1 %vm493_vm1, %v29603_v60  ;;  %v29675_v14 = vld [vmem:[#allocation2 + $0x92] sm:$0xff] }
  0xc9   : > { %25094 = vmatprep.mubr.msk.f32.mxu0 %vm493_vm1, %v29444_v16  ;;  %v541_v16 = vld [vmem:[%s33094_s1 + $0x58] sm:$0xff] }
  0xca   : > { %4536 = vperm.xlu1 %28966, %v541_v16   ;;  %v3490_v16 = vld [vmem:[#allocation2 + $0x95] sm:$0xff] }
  0xcb   : > { %24847 = vmatmul.mubr.msk.f32.gmra.mrb[10].mxu1 %vm493_vm1, %v29619_v63  ;;  %4521 = vperm.xlu0 %28965, %v538_v7   ;;  %v556_v7 = vld [vmem:[%s33094_s1 + $0xd0] sm:$0xff] }
  0xcc   : > { %25095 = vmatmul.mubr.msk.f32.gmra.mrb[26].mxu0 %vm493_vm1, %v29452_v18  ;;  %24849 = vmatprep.mubr.msk.f32.mxu1 %vm493_vm1, %v29621_v0  ;;  %v29690_v18 = vld [vmem:[#allocation2 + $0x9a] sm:$0xff] }
  0xcd   : > { %25097 = vmatprep.mubr.msk.f32.mxu0 %vm493_vm1, %v29454_v20  ;;  %v29692_v20 = vld [vmem:[#allocation2 + $0xa2] sm:$0xff] }
  0xcf   : > { %24850 = vmatmul.mubr.msk.f32.gmra.mrb[12].mxu1 %vm493_vm1, %v29637_v4  ;;  %4531 = vperm.xlu0 %28965, %v540_v12   ;;  %v3489_v12 = vld [vmem:[#allocation2 + $0x8d] sm:$0xff] }
  0xd0   : > { %25098 = vmatmul.mubr.msk.f32.gmra.mrb[28].mxu0 %vm493_vm1, %v29462_v22  ;;  %24852 = vmatprep.mubr.msk.f32.mxu1 %vm493_vm1, %v29639_v5  ;;  %v543_v22 = vld [vmem:[%s33094_s1 + $0x68] sm:$0xff] }
  0xd1   : > { %25100 = vmatprep.mubr.msk.f32.mxu0 %vm493_vm1, %v29464_v26  ;;  %v29706_v26 = vld [vmem:[#allocation2 + $0xaa] sm:$0xff]  ;;  %4546 = vperm.xlu1 %28966, %v543_v22   ;;  %v3491_v22 = vld [vmem:[#allocation2 + $0x9d] sm:$0xff] }
  0xd3   : > { %24853 = vmatmul.mubr.msk.f32.gmra.mrb[14].mxu1 %vm493_vm1, %v29655_v9  ;;  %4541 = vperm.xlu0 %28965, %v542_v17   ;;  %v557_v17 = vld [vmem:[%s33094_s1 + $0xd8] sm:$0xff] }
  0xd4   : > { %25101 = vmatmul.mubr.msk.f32.gmra.mrb[30].mxu0 %vm493_vm1, %v29472_v30  ;;  %24855 = vmatprep.mubr.msk.f32.mxu1 %vm493_vm1, %v29657_v10  ;;  %v29708_v30 = vld [vmem:[#allocation2 + $0xb2] sm:$0xff] }
  0xd5   : > { %25103 = vmatprep.mubr.msk.f32.mxu0 %vm493_vm1, %v29474_v33  ;;  %v545_v33 = vld [vmem:[%s33094_s1 + $0x78] sm:$0xff] }
  0xd6   : > { %4556 = vperm.xlu1 %28966, %v545_v33   ;;  %v3493_v33 = vld [vmem:[#allocation2 + $0xad] sm:$0xff] }
  0xd7   : > { %24856 = vmatmul.mubr.msk.f32.gmra.mrb[16].mxu1 %vm493_vm1, %v29673_v13  ;;  %4551 = vperm.xlu0 %28965, %v544_v25   ;;  %v3492_v25 = vld [vmem:[#allocation2 + $0xa5] sm:$0xff] }
  0xd8   : > { %25104 = vmatmul.mubr.msk.f32.gmra.mrb[32].mxu0 %vm493_vm1, %v29482_v36  ;;  %24858 = vmatprep.mubr.msk.f32.mxu1 %vm493_vm1, %v29675_v14  ;;  %v29722_v36 = vld [vmem:[#allocation2 + $0xba] sm:$0xff] }
  0xd9   : > { %25106 = vmatprep.mubr.msk.f32.mxu0 %vm493_vm1, %v3084_v15  ;;  %v29805_v15 = vld [vmem:[#allocation2 + $0x112] sm:$0xff] }
  0xdb   : > { %24859 = vmatmul.mubr.msk.f32.gmra.mrb[18].mxu1 %vm493_vm1, %v29690_v18  ;;  %4561 = vperm.xlu0 %28965, %v546_v2   ;;  %v3494_v2 = vld [vmem:[#allocation2 + $0xb5] sm:$0xff] }
  0xdc   : > { %25107 = vmatmul.mubr.msk.f32.gmra.mrb[34].mxu0 %vm493_vm1, %v3085_v19  ;;  %24861 = vmatprep.mubr.msk.f32.mxu1 %vm493_vm1, %v29692_v20  ;;  %v558_v19 = vld [vmem:[%s33094_s1 + $0xe0] sm:$0xff] }
  0xdd   : > { %25111 = vmatprep.mubr.msk.f32.mxu0 %vm493_vm1, %v3476_v21  ;;  %v29819_v21 = vld [vmem:[#allocation2 + $0x11a] sm:$0xff] }
  0xdf   : > { %24862 = vmatmul.mubr.msk.f32.gmra.mrb[20].mxu1 %vm493_vm1, %v29706_v26  ;;  %4571 = vperm.xlu0 %28965, %v548_v46   ;;  %v3496_v46 = vld [vmem:[#allocation2 + $0xc5] sm:$0xff] }
  0xe0   : > { %25112 = vmatmul.mubr.msk.f32.vlgmr.msra.gmra.mrb[0].mxu0 %vm493_vm1, %v3477_v28  ;;  %24864 = vmatprep.mubr.msk.f32.mxu1 %vm493_vm1, %v29708_v30  ;;  %v559_v28 = vld [vmem:[%s33094_s1 + $0xe8] sm:$0xff] }
  0xe1   : > { %25166 = vmatpush3.msra.mxu0 %v29493_v44  ;;  %25114 = vmatprep.mubr.msk.f32.mxu0 %vm493_vm1, %v3478_v29  ;;  %v547_v44 = vld [vmem:[%s33094_s1 + $0x88] sm:$0xff]  ;;  %v560_v29 = vld [vmem:[%s33094_s1 + $0xf0] sm:$0xff] }
  0xe2   : > { %4566 = vperm.xlu1 %28966, %v547_v44   ;;  %v28967_v44 = vld [vmem:[%s33095_s2 + $0x20] sm:$0xff] }
  0xe3   : > { %24865 = vmatmul.mubr.msk.f32.gmra.mrb[22].mxu1 %vm493_vm1, %v29722_v36  ;;  %4581 = vperm.xlu0 %28965, %v550_v32   ;;  %v3913_v32 = vld [vmem:[#allocation2 + $0x7e] sm:$0xff] }
  0xe4   : > { %25115 = vmatmul.mubr.msk.f32.gmra.mrb[2].mxu0 %vm493_vm1, %v3479_v38  ;;  %24867 = vmatprep.mubr.msk.f32.mxu1 %vm493_vm1, %v29725_v40  ;;  %v561_v38 = vld [vmem:[%s33094_s1 + $0xf8] sm:$0xff] }
  0xe5   : > { %25117 = vmatprep.mubr.msk.f32.mxu0 %vm493_vm1, %v3480_v42  ;;  %v562_v42 = vld [vmem:[%s33094_s1 + $0x100] sm:$0xff] }
  0xe6   : > { %4576 = vperm.xlu1 %28966, %v549_v48   ;;  %v3912_v48 = vld [vmem:[#allocation2 + $0x76] sm:$0xff] }
  0xe7   : > { %24868 = vmatmul.mubr.msk.f32.gmra.mrb[24].mxu1 %vm493_vm1, %v29739_v23  ;;  %4591 = vperm.xlu0 %28965, %v552_v43   ;;  %v3917_v43 = vld [vmem:[#allocation2 + $0x9e] sm:$0xff] }
  0xe8   : > { %25118 = vmatmul.mubr.msk.f32.gmra.mrb[4].mxu0 %vm493_vm1, %v3481_v24  ;;  %24870 = vmatprep.mubr.msk.f32.mxu1 %vm493_vm1, %v29741_v27  ;;  %v3498_v24 = vld [vmem:[#allocation2 + $0xd5] sm:$0xff] }
  0xe9   : > { %25120 = vmatprep.mubr.msk.f32.mxu0 %vm493_vm1, %v3482_v31  ;;  %v3500_v31 = vld [vmem:[#allocation2 + $0xe5] sm:$0xff] }
  0xea   : > { %4586 = vperm.xlu1 %28966, %v551_v41   ;;  %v1807_v41 = vld [vmem:[#allocation2 + $0x12a] sm:$0xff] }
  0xeb   : > { %24871 = vmatmul.mubr.msk.f32.gmra.mrb[26].mxu1 %vm493_vm1, %v29755_v34  ;;  %4601 = vperm.xlu0 %28965, %v554_v58   ;;  %v3920_v58 = vld [vmem:[#allocation2 + $0xb6] sm:$0xff] }
  0xec   : > { %25121 = vmatmul.mubr.msk.f32.gmra.mrb[6].mxu0 %vm493_vm1, %v3483_v35  ;;  %24873 = vmatprep.mubr.msk.f32.mxu1 %vm493_vm1, %v29757_v37  ;;  %v3915_v35 = vld [vmem:[#allocation2 + $0x8e] sm:$0xff] }
  0xed   : > { %25123 = vmatprep.mubr.msk.f32.mxu0 %vm493_vm1, %v3484_v39  ;;  %v3916_v39 = vld [vmem:[#allocation2 + $0x96] sm:$0xff] }
  0xee   : > { %4596 = vperm.xlu1 %28966, %v553_v57   ;;  %v2218_v57 = vld [vmem:[#allocation2 + $0xb3] sm:$0xff] }
  0xef   : > { %24874 = vmatmul.mubr.msk.f32.gmra.mrb[28].mxu1 %vm493_vm1, %v29771_v45  ;;  %4611 = vperm.xlu0 %28965, %v556_v7   ;;  %v3923_v7 = vld [vmem:[#allocation2 + $0xce] sm:$0xff] }
  0xf0   : > { %25124 = vmatmul.mubr.msk.f32.gmra.mrb[8].mxu0 %vm493_vm1, %v3485_v47  ;;  %24876 = vmatprep.mubr.msk.f32.mxu1 %vm493_vm1, %v29773_v54  ;;  %v3918_v47 = vld [vmem:[#allocation2 + $0xa6] sm:$0xff] }
  0xf1   : > { %25126 = vmatprep.mubr.msk.f32.mxu0 %vm493_vm1, %v3486_v1  ;;  %v3919_v1 = vld [vmem:[#allocation2 + $0xae] sm:$0xff] }
  0xf2   : > { %4606 = vperm.xlu1 %28966, %v555_v6   ;;  %v2221_v6 = vld [vmem:[#allocation2 + $0xcb] sm:$0xff] }
  0xf3   : > { %24877 = vmatmul.mubr.msk.f32.gmra.mrb[30].mxu1 %vm493_vm1, %v29787_v61  ;;  %4621 = vperm.xlu0 %28965, %v558_v19   ;;  %v3926_v19 = vld [vmem:[#allocation2 + $0xe6] sm:$0xff] }
  0xf4   : > { %25127 = vmatmul.mubr.msk.f32.gmra.mrb[10].mxu0 %vm493_vm1, %v3487_v62  ;;  %24879 = vmatprep.mubr.msk.f32.mxu1 %vm493_vm1, %v29789_v3  ;;  %v3921_v62 = vld [vmem:[#allocation2 + $0xbe] sm:$0xff] }
  0xf5   : > { %25129 = vmatprep.mubr.msk.f32.mxu0 %vm493_vm1, %v3488_v8  ;;  %v3922_v8 = vld [vmem:[#allocation2 + $0xc6] sm:$0xff] }
  0xf6   : > { %4616 = vperm.xlu1 %28966, %v557_v17   ;;  %v2224_v17 = vld [vmem:[#allocation2 + $0xe3] sm:$0xff] }
  0xf7   : > { %24880 = vmatmul.mubr.msk.f32.gmra.mrb[32].mxu1 %vm493_vm1, %v29803_v11  ;;  %4631 = vperm.xlu0 %28965, %v560_v29   ;;  %v2227_v29 = vld [vmem:[#allocation2 + $0xfb] sm:$0xff] }
  0xf8   : > { %25130 = vmatmul.mubr.msk.f32.gmra.mrb[12].mxu0 %vm493_vm1, %v3489_v12  ;;  %24882 = vmatprep.mubr.msk.f32.mxu1 %vm493_vm1, %v29805_v15  ;;  %v3924_v12 = vld [vmem:[#allocation2 + $0xd6] sm:$0xff] }
  0xf9   : > { %25132 = vmatprep.mubr.msk.f32.mxu0 %vm493_vm1, %v3490_v16  ;;  %v3925_v16 = vld [vmem:[#allocation2 + $0xde] sm:$0xff] }
  0xfa   : > { %4626 = vperm.xlu1 %28966, %v559_v28   ;;  %v3928_v28 = vld [vmem:[#allocation2 + $0xf6] sm:$0xff] }
  0xfb   : > { %24883 = vmatmul.mubr.msk.f32.gmra.mrb[34].mxu1 %vm493_vm1, %v29819_v21  ;;  %4641 = vperm.xlu0 %28965, %v562_v42   ;;  %v2229_v42 = vld [vmem:[#allocation2 + $0x10b] sm:$0xff] }
  0xfc   : > { %25133 = vmatmul.mubr.msk.f32.gmra.mrb[14].mxu0 %vm493_vm1, %v3491_v22  ;;  %24887 = vmatprep.mubr.msk.f32.mxu1 %vm493_vm1, %v29545_v49  ;;  %v3495_v49 = vld [vmem:[#allocation2 + $0xbd] sm:$0xff]  ;;  %v3927_v22 = vld [vmem:[#allocation2 + $0xee] sm:$0xff] }
  0xfd   : > { %25135 = vmatprep.mubr.msk.f32.mxu0 %vm493_vm1, %v3492_v25  ;;  %v2226_v25 = vld [vmem:[#allocation2 + $0xf3] sm:$0xff] }
  0xfe   : > { %4636 = vperm.xlu1 %28966, %v561_v38   ;;  %v3930_v38 = vld [vmem:[#allocation2 + $0x106] sm:$0xff] }
  0xff   : > { %24888 = vmatmul.mubr.msk.f32.vlgmr.msra.gmra.mrb[0].mxu1 %vm493_vm1, %v29554_v50  ;;  %v563_v50 = vld [vmem:[%s33094_s1 + $0x108] sm:$0xff] }
 0x100   : > { %25136 = vmatmul.mubr.msk.f32.gmra.mrb[16].mxu0 %vm493_vm1, %v3493_v33  ;;  %24890 = vmatprep.mubr.msk.f32.mxu1 %vm493_vm1, %v29557_v51  ;;  %v3497_v51 = vld [vmem:[#allocation2 + $0xcd] sm:$0xff]  ;;  %v3929_v33 = vld [vmem:[#allocation2 + $0xfe] sm:$0xff] }
 0x101   : > { %25138 = vmatprep.mubr.msk.f32.mxu0 %vm493_vm1, %v3494_v2  ;;  %27508 = vmatpush3.msra.mxu1 %v28967_v44  ;;  %v2228_v2 = vld [vmem:[#allocation2 + $0x103] sm:$0xff]  ;;  %v2230_v44 = vld [vmem:[#allocation2 + $0x113] sm:$0xff] }
 0x102   : > { %4646 = vperm.xlu1 %28966, %v563_v50   ;;  %v2231_v50 = vld [vmem:[#allocation2 + $0x11b] sm:$0xff] }
 0x103   : > { %24891 = vmatmul.mubr.msk.f32.gmra.mrb[2].mxu1 %vm493_vm1, %v29568_v52  ;;  %v3499_v52 = vld [vmem:[#allocation2 + $0xdd] sm:$0xff] }
 0x104   : > { %25139 = vmatmul.mubr.msk.f32.gmra.mrb[18].mxu0 %vm493_vm1, %v3495_v49  ;;  %24893 = vmatprep.mubr.msk.f32.mxu1 %vm493_vm1, %v29570_v53  ;;  %v3501_v53 = vld [vmem:[#allocation2 + $0xed] sm:$0xff] }
 0x105   : > { %25141 = vmatprep.mubr.msk.f32.mxu0 %vm493_vm1, %v3496_v46  ;;  %v3931_v49 = vld [vmem:[#allocation2 + $0x10e] sm:$0xff]  ;;  %v3932_v46 = vld [vmem:[#allocation2 + $0x116] sm:$0xff] }
 0x107   : > { %24894 = vmatmul.mubr.msk.f32.gmra.mrb[4].mxu1 %vm493_vm1, %v29583_v55  ;;  %v3502_v55 = vld [vmem:[#allocation2 + $0xf5] sm:$0xff] }
 0x108   : > { %25142 = vmatmul.mubr.msk.f32.gmra.mrb[20].mxu0 %vm493_vm1, %v3497_v51  ;;  %24896 = vmatprep.mubr.msk.f32.mxu1 %vm493_vm1, %v29585_v56  ;;  %v3503_v56 = vld [vmem:[#allocation2 + $0xfd] sm:$0xff] }
 0x109   : > { %25144 = vmatprep.mubr.msk.f32.mxu0 %vm493_vm1, %v3498_v24  ;;  %v3933_v51 = vld [vmem:[#allocation2 + $0x11e] sm:$0xff] }
 0x10a   : > { %v2232_v24 = vld [vmem:[#allocation2 + $0x123] sm:$0xff] }
 0x10b   : > { %24897 = vmatmul.mubr.msk.f32.gmra.mrb[6].mxu1 %vm493_vm1, %v29601_v59  ;;  %v3504_v59 = vld [vmem:[#allocation2 + $0x105] sm:$0xff] }
 0x10c   : > { %25145 = vmatmul.mubr.msk.f32.gmra.mrb[22].mxu0 %vm493_vm1, %v3499_v52  ;;  %24899 = vmatprep.mubr.msk.f32.mxu1 %vm493_vm1, %v29603_v60  ;;  %v3505_v60 = vld [vmem:[#allocation2 + $0x10d] sm:$0xff] }
 0x10d   : > { %25147 = vmatprep.mubr.msk.f32.mxu0 %vm493_vm1, %v3500_v31  ;;  %v3934_v52 = vld [vmem:[#allocation2 + $0x126] sm:$0xff] }
 0x10e   : > { %v2233_v31 = vld [vmem:[#allocation2 + $0x12b] sm:$0xff] }
 0x10f   : > { %24900 = vmatmul.mubr.msk.f32.gmra.mrb[8].mxu1 %vm493_vm1, %v29619_v63  ;;  %v3506_v63 = vld [vmem:[#allocation2 + $0x115] sm:$0xff] }
 0x110   : > { %25148 = vmatmul.mubr.msk.f32.gmra.mrb[24].mxu0 %vm493_vm1, %v3501_v53  ;;  %24902 = vmatprep.mubr.msk.f32.mxu1 %vm493_vm1, %v29621_v0  ;;  %v3507_v0 = vld [vmem:[#allocation2 + $0x11d] sm:$0xff]  ;;  %v3935_v53 = vld [vmem:[#allocation2 + $0x12e] sm:$0xff] }
 0x111   : > { %25150 = vmatprep.mubr.msk.f32.mxu0 %vm493_vm1, %v3502_v55  ;;  %v3936_v55 = vld [vmem:[#allocation2 + $0x136] sm:$0xff] }
 0x113   : > { %24903 = vmatmul.mubr.msk.f32.gmra.mrb[10].mxu1 %vm493_vm1, %v29637_v4  ;;  %v3508_v4 = vld [vmem:[#allocation2 + $0x125] sm:$0xff] }
 0x114   : > { %25151 = vmatmul.mubr.msk.f32.gmra.mrb[26].mxu0 %vm493_vm1, %v3503_v56  ;;  %24905 = vmatprep.mubr.msk.f32.mxu1 %vm493_vm1, %v29639_v5  ;;  %v3509_v5 = vld [vmem:[#allocation2 + $0x12d] sm:$0xff]  ;;  %v3937_v56 = vld [vmem:[#allocation2 + $0x13e] sm:$0xff] }
 0x115   : > { %25153 = vmatprep.mubr.msk.f32.mxu0 %vm493_vm1, %v3504_v59  ;;  %v4950_v59 = vld [vmem:[%s33097_s4 + $0xc] sm:$0xff] }
 0x117   : > { %24906 = vmatmul.mubr.msk.f32.gmra.mrb[12].mxu1 %vm493_vm1, %v29655_v9  ;;  %v3510_v9 = vld [vmem:[#allocation2 + $0x135] sm:$0xff] }
 0x118   : > { %25154 = vmatmul.mubr.msk.f32.gmra.mrb[28].mxu0 %vm493_vm1, %v3505_v60  ;;  %24908 = vmatprep.mubr.msk.f32.mxu1 %vm493_vm1, %v29657_v10  ;;  %v3511_v10 = vld [vmem:[#allocation2 + $0x13d] sm:$0xff]  ;;  %v4951_v60 = vld [vmem:[%s33097_s4 + $0x14] sm:$0xf] }
 0x119   : > { %25156 = vmatprep.mubr.msk.f32.mxu0 %vm493_vm1, %v3506_v63  ;;  %v27345_v63 = vpack.c.bf16 %v4951_v60, %v4950_v59 }
 0x11b   : > { %24909 = vmatmul.mubr.msk.f32.gmra.mrb[14].mxu1 %vm493_vm1, %v29673_v13  ;;  %v3902_v13 = vld [vmem:[#allocation2 + $0x26] sm:$0xff]  ;;  %27347 = vmatprep.subr.msk.bf16.mxu1 %vm29993_vm5, %v27345_v63 }
 0x11c   : > { %25157 = vmatmul.mubr.msk.f32.gmra.mrb[30].mxu0 %vm493_vm1, %v3507_v0  ;;  %24911 = vmatprep.mubr.msk.f32.mxu1 %vm493_vm1, %v29675_v14  ;;  %v3903_v14 = vld [vmem:[#allocation2 + $0x2e] sm:$0xff] }
 0x11d   : > { %25159 = vmatprep.mubr.msk.f32.mxu0 %vm493_vm1, %v3508_v4 }
 0x11f   : > { %24912 = vmatmul.mubr.msk.f32.gmra.mrb[16].mxu1 %vm493_vm1, %v29690_v18  ;;  %v3904_v18 = vld [vmem:[#allocation2 + $0x36] sm:$0xff] }
 0x120   : > { %25160 = vmatmul.mubr.msk.f32.gmra.mrb[32].mxu0 %vm493_vm1, %v3509_v5  ;;  %24914 = vmatprep.mubr.msk.f32.mxu1 %vm493_vm1, %v29692_v20  ;;  %v3905_v20 = vld [vmem:[#allocation2 + $0x3e] sm:$0xff] }
 0x121   : > { %25162 = vmatprep.mubr.msk.f32.mxu0 %vm493_vm1, %v3510_v9 }
 0x123   : > { %24915 = vmatmul.mubr.msk.f32.gmra.mrb[18].mxu1 %vm493_vm1, %v29706_v26  ;;  %v3906_v26 = vld [vmem:[#allocation2 + $0x46] sm:$0xff] }
 0x124   : > { %25163 = vmatmul.mubr.msk.f32.gmra.mrb[34].mxu0 %vm493_vm1, %v3511_v10  ;;  %24917 = vmatprep.mubr.msk.f32.mxu1 %vm493_vm1, %v29708_v30  ;;  %v3907_v30 = vld [vmem:[#allocation2 + $0x4e] sm:$0xff] }
 0x125   : > { %25167 = vmatprep.mubr.msk.f32.mxu0 %vm493_vm1, %v3902_v13 }
 0x127   : > { %24918 = vmatmul.mubr.msk.f32.gmra.mrb[20].mxu1 %vm493_vm1, %v29722_v36  ;;  %v3908_v36 = vld [vmem:[#allocation2 + $0x56] sm:$0xff] }
 0x128   : > { %25168 = vmatmul.mubr.msk.f32.vlgmr.msra.gmra.mrb[0].mxu0 %vm493_vm1, %v3903_v14  ;;  %24920 = vmatprep.mubr.msk.f32.mxu1 %vm493_vm1, %v29725_v40  ;;  %v3909_v40 = vld [vmem:[#allocation2 + $0x5e] sm:$0xff] }
 0x129   : > { %25170 = vmatprep.mubr.msk.f32.mxu0 %vm493_vm1, %v3904_v18 }
 0x12b   : > { %24921 = vmatmul.mubr.msk.f32.gmra.mrb[22].mxu1 %vm493_vm1, %v29739_v23  ;;  %v3910_v23 = vld [vmem:[#allocation2 + $0x66] sm:$0xff] }
 0x12c   : > { %25171 = vmatmul.mubr.msk.f32.gmra.mrb[2].mxu0 %vm493_vm1, %v3905_v20  ;;  %24923 = vmatprep.mubr.msk.f32.mxu1 %vm493_vm1, %v29741_v27  ;;  %v3911_v27 = vld [vmem:[#allocation2 + $0x6e] sm:$0xff] }
 0x12d   : > { %25173 = vmatprep.mubr.msk.f32.mxu0 %vm493_vm1, %v3906_v26 }
 0x12f   : > { %24924 = vmatmul.mubr.msk.f32.gmra.mrb[24].mxu1 %vm493_vm1, %v29755_v34  ;;  %v3914_v34 = vld [vmem:[#allocation2 + $0x86] sm:$0xff] }
 0x130   : > { %25174 = vmatmul.mubr.msk.f32.gmra.mrb[4].mxu0 %vm493_vm1, %v3907_v30  ;;  %24926 = vmatprep.mubr.msk.f32.mxu1 %vm493_vm1, %v29757_v37  ;;  %v1806_v37 = vld [vmem:[#allocation2 + $0x122] sm:$0xff] }
 0x131   : > { %25176 = vmatprep.mubr.msk.f32.mxu0 %vm493_vm1, %v3908_v36 }
 0x133   : > { %24927 = vmatmul.mubr.msk.f32.gmra.mrb[26].mxu1 %vm493_vm1, %v29771_v45  ;;  %v2216_v45 = vld [vmem:[#allocation2 + $0xa3] sm:$0xff] }
 0x134   : > { %25177 = vmatmul.mubr.msk.f32.gmra.mrb[6].mxu0 %vm493_vm1, %v3909_v40  ;;  %24929 = vmatprep.mubr.msk.f32.mxu1 %vm493_vm1, %v29773_v54  ;;  %v2217_v54 = vld [vmem:[#allocation2 + $0xab] sm:$0xff] }
 0x135   : > { %25179 = vmatprep.mubr.msk.f32.mxu0 %vm493_vm1, %v3910_v23  ;;  %v30001_v10 = vpop.permute.xlu1 %4491 }
 0x137   : > { %24930 = vmatmul.mubr.msk.f32.gmra.mrb[28].mxu1 %vm493_vm1, %v29787_v61  ;;  %v2219_v61 = vld [vmem:[#allocation2 + $0xbb] sm:$0xff] }
 0x138   : > { %25180 = vmatmul.mubr.msk.f32.gmra.mrb[8].mxu0 %vm493_vm1, %v3911_v27  ;;  %24932 = vmatprep.mubr.msk.f32.mxu1 %vm493_vm1, %v29789_v3  ;;  %v2220_v3 = vld [vmem:[#allocation2 + $0xc3] sm:$0xff] }
 0x139   : > { %25182 = vmatprep.mubr.msk.f32.mxu0 %vm493_vm1, %v3912_v48  ;;  %v30007_v26 = vpop.permute.xlu1 %4496 }
 0x13a   : > { %v30003_v18 = vpop.permute.xlu0 %4481 }
 0x13b   : > { %24933 = vmatmul.mubr.msk.f32.gmra.mrb[30].mxu1 %vm493_vm1, %v29803_v11  ;;  %v2222_v11 = vld [vmem:[#allocation2 + $0xd3] sm:$0xff] }
 0x13c   : > { %25183 = vmatmul.mubr.msk.f32.gmra.mrb[10].mxu0 %vm493_vm1, %v3913_v32  ;;  %24935 = vmatprep.mubr.msk.f32.mxu1 %vm493_vm1, %v29805_v15  ;;  %v2223_v15 = vld [vmem:[#allocation2 + $0xdb] sm:$0xff] }
 0x13d   : > { %25185 = vmatprep.mubr.msk.f32.mxu0 %vm493_vm1, %v3914_v34  ;;  %v30017_v27 = vpop.permute.xlu1 %4506 }
 0x13e   : > { %v30013_v40 = vpop.permute.xlu0 %4486 }
 0x13f   : > { %24936 = vmatmul.mubr.msk.f32.gmra.mrb[32].mxu1 %vm493_vm1, %v29819_v21  ;;  %v2225_v21 = vld [vmem:[#allocation2 + $0xeb] sm:$0xff] }
 0x140   : > { %25186 = vmatmul.mubr.msk.f32.gmra.mrb[12].mxu0 %vm493_vm1, %v3915_v35  ;;  %24938 = vmatprep.mubr.msk.f32.mxu1 %vm493_vm1, %v1806_v37 }
 0x141   : > { %25188 = vmatprep.mubr.msk.f32.mxu0 %vm493_vm1, %v3916_v39  ;;  %v30027_v37 = vpop.permute.xlu1 %4516 }
 0x142   : > { %v30023_v34 = vpop.permute.xlu0 %4501 }
 0x143   : > { %24939 = vmatmul.mubr.msk.f32.gmra.mrb[34].mxu1 %vm493_vm1, %v1807_v41 }
 0x144   : > { %25189 = vmatmul.mubr.msk.f32.gmra.mrb[14].mxu0 %vm493_vm1, %v3917_v43  ;;  %24970 = vmatprep.mubr.msk.f32.mxu1 %vm493_vm1, %v2216_v45 }
 0x145   : > { %25191 = vmatprep.mubr.msk.f32.mxu0 %vm493_vm1, %v3918_v47  ;;  %v30037_v47 = vpop.permute.xlu1 %4526 }
 0x146   : > { %v30033_v43 = vpop.permute.xlu0 %4511 }
 0x147   : > { %24971 = vmatmul.mubr.msk.f32.vlgmr.msra.gmra.mrb[18].mxu1 %vm493_vm1, %v2217_v54 }
 0x148   : > { %25192 = vmatmul.mubr.msk.f32.gmra.mrb[16].mxu0 %vm493_vm1, %v3919_v1  ;;  %24973 = vmatprep.mubr.msk.f32.mxu1 %vm493_vm1, %v2218_v57 }
 0x149   : > { %25194 = vmatprep.mubr.msk.f32.mxu0 %vm493_vm1, %v3920_v58  ;;  %27350 = vmatpush3.bf16.msk.msra.mxu1 %vm29993_vm5, %v27345_v63 }
 0x14a   : > { %v30043_v57 = vpop.permute.xlu0 %4521 }
 0x14b   : > { %24974 = vmatmul.mubr.msk.f32.gmra.mrb[20].mxu1 %vm493_vm1, %v2219_v61  ;;  %v30047_v61 = vpop.permute.xlu1 %4536 }
 0x14c   : > { %25195 = vmatmul.mubr.msk.f32.gmra.mrb[18].mxu0 %vm493_vm1, %v3921_v62  ;;  %24976 = vmatprep.mubr.msk.f32.mxu1 %vm493_vm1, %v2220_v3 }
 0x14d   : > { %25197 = vmatprep.mubr.msk.f32.mxu0 %vm493_vm1, %v3922_v8  ;;  %v30054_v8 = vld [vmem:[%s33096_s3] ss:$0 sm:$0xff] }
 0x14e   : > { %v30049_v62 = vpop.permute.xlu0 %4531 }
 0x14f   : > { %24977 = vmatmul.mubr.msk.f32.gmra.mrb[22].mxu1 %vm493_vm1, %v2221_v6 }
 0x150   : > { %25198 = vmatmul.mubr.msk.f32.gmra.mrb[20].mxu0 %vm493_vm1, %v3923_v7  ;;  %24979 = vmatprep.mubr.msk.f32.mxu1 %vm493_vm1, %v2222_v11  ;;  %v30056_v6 = vpop.permute.xlu1 %4546 }
 0x151   : > { %25200 = vmatprep.mubr.msk.f32.mxu0 %vm493_vm1, %v3924_v12  ;;  %v4914_v12 = vld [vmem:[#allocation2 + $0x1] sm:$0xff] }
 0x153   : > { %24980 = vmatmul.mubr.msk.f32.gmra.mrb[24].mxu1 %vm493_vm1, %v2223_v15  ;;  %v4912_v15 = vld [vmem:[%s33097_s4] sm:$0xff] }
 0x154   : > { %25201 = vmatmul.mubr.msk.f32.gmra.mrb[22].mxu0 %vm493_vm1, %v3925_v16  ;;  %24982 = vmatprep.mubr.msk.f32.mxu1 %vm493_vm1, %v2224_v17  ;;  %v4913_v16 = vld [vmem:[%s33097_s4 + $0x8] sm:$0xf] }
 0x155   : > { %25203 = vmatprep.mubr.msk.f32.mxu0 %vm493_vm1, %v3926_v19  ;;  %v27351_v19 = vpack.c.bf16 %v4913_v16, %v4912_v15 }
 0x157   : > { %24983 = vmatmul.mubr.msk.f32.gmra.mrb[26].mxu1 %vm493_vm1, %v2225_v21  ;;  %v4915_v21 = vld [vmem:[#allocation2 + $0x9] sm:$0xff]  ;;  %27353 = vmatprep.subr.msk.bf16.mxu1 %vm29993_vm5, %v27351_v19 }
 0x158   : > { %25204 = vmatmul.mubr.msk.f32.gmra.mrb[24].mxu0 %vm493_vm1, %v3927_v22  ;;  %24985 = vmatprep.mubr.msk.f32.mxu1 %vm493_vm1, %v2226_v25 }
 0x159   : > { %25206 = vmatprep.mubr.msk.f32.mxu0 %vm493_vm1, %v3928_v28 }
 0x15b   : > { %24986 = vmatmul.mubr.msk.f32.gmra.mrb[28].mxu1 %vm493_vm1, %v2227_v29  ;;  %v30070_v29 = vpop.permute.xlu0 %4541 }
 0x15c   : > { %25207 = vmatmul.mubr.msk.f32.gmra.mrb[26].mxu0 %vm493_vm1, %v3929_v33  ;;  %24988 = vmatprep.mubr.msk.f32.mxu1 %vm493_vm1, %v2228_v2 }
 0x15d   : > { %25209 = vmatprep.mubr.msk.f32.mxu0 %vm493_vm1, %v3930_v38 }
 0x15f   : > { %24989 = vmatmul.mubr.msk.f32.gmra.mrb[30].mxu1 %vm493_vm1, %v2229_v42 }
 0x160   : > { %25210 = vmatmul.mubr.msk.f32.gmra.mrb[28].mxu0 %vm493_vm1, %v3931_v49  ;;  %24991 = vmatprep.mubr.msk.f32.mxu1 %vm493_vm1, %v2230_v44  ;;  %v30074_v44 = vpop.permute.xlu1 %4556 }
 0x161   : > { %25212 = vmatprep.mubr.msk.f32.mxu0 %vm493_vm1, %v3932_v46 }
 0x163   : > { %24992 = vmatmul.mubr.msk.f32.gmra.mrb[32].mxu1 %vm493_vm1, %v2231_v50 }
 0x164   : > { %25213 = vmatmul.mubr.msk.f32.gmra.mrb[30].mxu0 %vm493_vm1, %v3933_v51  ;;  %24994 = vmatprep.mubr.msk.f32.mxu1 %vm493_vm1, %v2232_v24 }
 0x165   : > { %25215 = vmatprep.mubr.msk.f32.mxu0 %vm493_vm1, %v3934_v52 }
 0x167   : > { %24995 = vmatmul.mubr.msk.f32.gmra.mrb[34].mxu1 %vm493_vm1, %v2233_v31 }
 0x168   : > { %25216 = vmatmul.mubr.msk.f32.gmra.mrb[32].mxu0 %vm493_vm1, %v3935_v53  ;;  %25225 = vmatprep.mubr.msk.f32.mxu1 %vm4952_vm6, %v4914_v12 }
 0x169   : > { %25218 = vmatprep.mubr.msk.f32.mxu0 %vm493_vm1, %v3936_v55 }
 0x16b   : > { %25226 = vmatmul.mubr.msk.f32.vlgmr.msra.gmra.mrb[36].mxu1 %vm4952_vm6, %v4915_v21 }
 0x16c   : > { %25219 = vmatmul.mubr.msk.f32.gmra.mrb[34].mxu0 %vm493_vm1, %v3937_v56  ;;  %27356 = vmatpush3.bf16.msk.msra.mxu1 %vm29993_vm5, %v27351_v19 }
 0x1d2   : > { %v24889_v4 = vpop.f32.mrb[0].mxu1 }
 0x1d3   : > { %v1983_v5 = vpop.f32.mrb[1].mxu1 }
 0x1d6   : > { %v24892_v9 = vpop.f32.mrb[2].mxu1 }
 0x1d7   : > { %v1993_v13 = vpop.f32.mrb[3].mxu1 }
 0x1da   : > { %v24895_v14 = vpop.f32.mrb[4].mxu1 }
 0x1db   : > { %v30005_v20 = vpop.f32.mrb[5].mxu1 }
 0x1de   : > { %v30009_v30 = vpop.f32.mrb[6].mxu1 }
 0x1df   : > { %v30011_v36 = vpop.f32.mrb[7].mxu1 }
 0x1e2   : > { %v30015_v23 = vpop.f32.mrb[8].mxu1 }
 0x1e3   : > { %v30019_v48 = vpop.f32.mrb[9].mxu1 }
 0x1e6   : > { %v30021_v32 = vpop.f32.mrb[10].mxu1 }
 0x1e7   : > { %v30025_v35 = vpop.f32.mrb[11].mxu1 }
 0x1ea   : > { %v30029_v39 = vpop.f32.mrb[12].mxu1 }
 0x1eb   : > { %v30031_v41 = vpop.f32.mrb[13].mxu1 }
 0x1ee   : > { %v30035_v45 = vpop.f32.mrb[14].mxu1 }
 0x1ef   : > { %v30039_v54 = vpop.f32.mrb[15].mxu1 }
 0x1f2   : > { %v30041_v1 = vpop.f32.mrb[16].mxu1 }
 0x1f3   : > { %v30045_v58 = vpop.f32.mrb[17].mxu1 }
 0x1fb   : > { %v25169_v3 = vpop.f32.mrb[0].mxu0 }
 0x1fc   : > { %v27509_v7 = vadd.f32 %v25169_v3, %v24889_v4  ;;  %v4113_v11 = vpop.f32.mrb[1].mxu0  ;;  %v30082_v4 = vpop.permute.xlu0 %4551 }
 0x1fd   : > { %v27510_v17 = vadd.f32 %v4113_v11, %v1983_v5  ;;  %v30088_v11 = vpop.permute.xlu1 %4566 }
 0x1fe   : > { %v4336_v22 = vadd.f32 %v27509_v7, %v30054_v8 }
 0x1ff   : > { %v4335_v25 = vadd.f32 %v27510_v17, %v30054_v8  ;;  %v25172_v28 = vpop.f32.mrb[2].mxu0 }
 0x200   : > { %vm4372_vm7 = vcmp.ge.f32.partialorder %v4336_v22, 0.0  ;;  %v4408_v33 = vmul.f32 0.2, %v4336_v22  ;;  %v27511_v2 = vadd.f32 %v25172_v28, %v24892_v9  ;;  %v4123_v38 = vpop.f32.mrb[3].mxu0 }
 0x201   : > { %vm4371_vm8 = vcmp.ge.f32.partialorder %v4335_v25, 0.0  ;;  %v4407_v42 = vmul.f32 0.2, %v4335_v25  ;;  %v27512_v49 = vadd.f32 %v4123_v38, %v1993_v13 }
 0x202   : > { %v4338_v46 = vadd.f32 %v27511_v2, %v30054_v8  ;;  %v4444_v50 = vsel %vm4372_vm7, %v4336_v22, %v4408_v33  ;;  %v30098_v2 = vpop.permute.xlu0 %4561 }
 0x203   : > { %v4337_v51 = vadd.f32 %v27512_v49, %v30054_v8  ;;  %v25175_v24 = vpop.f32.mrb[4].mxu0  ;;  %v4660_v52 = vmul.f32 %v30013_v40, %v4444_v50  ;;  %v4443_v31 = vsel %vm4371_vm8, %v4335_v25, %v4407_v42 }
 0x204   : > { %vm4374_vm9 = vcmp.ge.f32.partialorder %v4338_v46, 0.0  ;;  %v4410_v53 = vmul.f32 0.2, %v4338_v46  ;;  %v27513_v55 = vadd.f32 %v25175_v24, %v24895_v14  ;;  %v4133_v56 = vpop.f32.mrb[5].mxu0  ;;  %v4659_v59 = vmul.f32 %v30003_v18, %v4443_v31 }
 0x205   : > { %vm4373_vm10 = vcmp.ge.f32.partialorder %v4337_v51, 0.0  ;;  %v4409_v60 = vmul.f32 0.2, %v4337_v51  ;;  %v27514_v63 = vadd.f32 %v4133_v56, %v30005_v20  ;;  %4733 = vrot.lane.b32.xlu1 %v4660_v52, %s28979_s18 }
 0x206   : > { %v4340_v5 = vadd.f32 %v27513_v55, %v30054_v8  ;;  %4731 = vrot.lane.b32.xlu0 %v4659_v59, %s28979_s18  ;;  %v4446_v9 = vsel %vm4374_vm9, %v4338_v46, %v4410_v53 }
 0x207   : > { %v4339_v13 = vadd.f32 %v27514_v63, %v30054_v8  ;;  %v25178_v14 = vpop.f32.mrb[6].mxu0  ;;  %v4662_v3 = vmul.f32 %v30007_v26, %v4446_v9  ;;  %v4445_v7 = vsel %vm4373_vm10, %v4337_v51, %v4409_v60  ;;  %v30104_v51 = vpop.permute.xlu1 %4576 }
 0x208   : > { %vm4376_vm11 = vcmp.ge.f32.partialorder %v4340_v5, 0.0  ;;  %v4412_v20 = vmul.f32 0.2, %v4340_v5  ;;  %v27515_v12 = vadd.f32 %v25178_v14, %v30009_v30  ;;  %v4143_v15 = vpop.f32.mrb[7].mxu0  ;;  %v4661_v16 = vmul.f32 %v30001_v10, %v4445_v7  ;;  %v30114_v9 = vpop.permute.xlu0 %4571 }
 0x209   : > { %vm4375_vm12 = vcmp.ge.f32.partialorder %v4339_v13, 0.0  ;;  %v4411_v17 = vmul.f32 0.2, %v4339_v13  ;;  %v27516_v19 = vadd.f32 %v4143_v15, %v30011_v36  ;;  %4737 = vrot.lane.b32.xlu1 %v4662_v3, %s28979_s18 }
 0x20a   : > { %v4342_v21 = vadd.f32 %v27515_v12, %v30054_v8  ;;  %4735 = vrot.lane.b32.xlu0 %v4661_v16, %s28979_s18  ;;  %v4448_v22 = vsel %vm4376_vm11, %v4340_v5, %v4412_v20 }
 0x20b   : > { %v4341_v25 = vadd.f32 %v27516_v19, %v30054_v8  ;;  %v25181_v28 = vpop.f32.mrb[8].mxu0  ;;  %v4664_v33 = vmul.f32 %v30017_v27, %v4448_v22  ;;  %v4447_v30 = vsel %vm4375_vm12, %v4339_v13, %v4411_v17  ;;  %v30120_v12 = vpop.permute.xlu1 %4586 }
 0x20c   : > { %vm4378_vm13 = vcmp.ge.f32.partialorder %v4342_v21, 0.0  ;;  %v4414_v38 = vmul.f32 0.2, %v4342_v21  ;;  %v27517_v42 = vadd.f32 %v25181_v28, %v30015_v23  ;;  %v4153_v36 = vpop.f32.mrb[9].mxu0  ;;  %v4663_v49 = vmul.f32 %v30023_v34, %v4447_v30 }
 0x20d   : > { %vm4377_vm14 = vcmp.ge.f32.partialorder %v4341_v25, 0.0  ;;  %v4413_v46 = vmul.f32 0.2, %v4341_v25  ;;  %v27518_v50 = vadd.f32 %v4153_v36, %v30019_v48  ;;  %4741 = vrot.lane.b32.xlu1 %v4664_v33, %s28979_s18 }
 0x20e   : > { %v4344_v24 = vadd.f32 %v27517_v42, %v30054_v8  ;;  %4739 = vrot.lane.b32.xlu0 %v4663_v49, %s28979_s18  ;;  %v4450_v52 = vsel %vm4378_vm13, %v4342_v21, %v4414_v38  ;;  %v30130_v38 = vpop.permute.xlu0 %4581 }
 0x20f   : > { %v4343_v31 = vadd.f32 %v27518_v50, %v30054_v8  ;;  %v25184_v53 = vpop.f32.mrb[10].mxu0  ;;  %v4666_v23 = vmul.f32 %v30027_v37, %v4450_v52  ;;  %v4449_v55 = vsel %vm4377_vm14, %v4341_v25, %v4413_v46 }
 0x210   : > { %vm4380_vm15 = vcmp.ge.f32.partialorder %v4344_v24, 0.0  ;;  %v4416_v56 = vmul.f32 0.2, %v4344_v24  ;;  %v27519_v59 = vadd.f32 %v25184_v53, %v30021_v32  ;;  %v4163_v48 = vpop.f32.mrb[11].mxu0  ;;  %v4665_v60 = vmul.f32 %v30033_v43, %v4449_v55 }
 0x211   : > { %vm4379_vm2 = vcmp.ge.f32.partialorder %v4343_v31, 0.0  ;;  %v4415_v63 = vmul.f32 0.2, %v4343_v31  ;;  %v27520_v5 = vadd.f32 %v4163_v48, %v30025_v35  ;;  %4745 = vrot.lane.b32.xlu1 %v4666_v23, %s28979_s18 }
 0x212   : > { %v4346_v13 = vadd.f32 %v27519_v59, %v30054_v8  ;;  %4743 = vrot.lane.b32.xlu0 %v4665_v60, %s28979_s18  ;;  %v4452_v14 = vsel %vm4380_vm15, %v4344_v24, %v4416_v56  ;;  %v30136_v24 = vpop.permute.xlu1 %4596 }
 0x213   : > { %v4345_v3 = vadd.f32 %v27520_v5, %v30054_v8  ;;  %v25187_v7 = vpop.f32.mrb[12].mxu0  ;;  %v4668_v32 = vmul.f32 %v30037_v47, %v4452_v14  ;;  %v4451_v20 = vsel %vm4379_vm2, %v4343_v31, %v4415_v63  ;;  %v30146_v14 = vpop.permute.xlu0 %4591 }
 0x214   : > { %vm4382_vm4 = vcmp.ge.f32.partialorder %v4346_v13, 0.0  ;;  %v4418_v15 = vmul.f32 0.2, %v4346_v13  ;;  %v27521_v35 = vadd.f32 %v25187_v7, %v30029_v39  ;;  %v4173_v16 = vpop.f32.mrb[13].mxu0  ;;  %v4667_v17 = vmul.f32 %v30043_v57, %v4451_v20 }
 0x215   : > { %vm4381_vm7 = vcmp.ge.f32.partialorder %v4345_v3, 0.0  ;;  %v4417_v19 = vmul.f32 0.2, %v4345_v3  ;;  %v27522_v21 = vadd.f32 %v4173_v16, %v30031_v41  ;;  %4749 = vrot.lane.b32.xlu1 %v4668_v32, %s28979_s18 }
 0x216   : > { %v4348_v22 = vadd.f32 %v27521_v35, %v30054_v8  ;;  %4747 = vrot.lane.b32.xlu0 %v4667_v17, %s28979_s18  ;;  %v4454_v25 = vsel %vm4382_vm4, %v4346_v13, %v4418_v15 }
 0x217   : > { %v4347_v28 = vadd.f32 %v27522_v21, %v30054_v8  ;;  %v25190_v33 = vpop.f32.mrb[14].mxu0  ;;  %v4670_v30 = vmul.f32 %v30047_v61, %v4454_v25  ;;  %v4453_v39 = vsel %vm4381_vm7, %v4345_v3, %v4417_v19 }
 0x218   : > { %vm4384_vm8 = vcmp.ge.f32.partialorder %v4348_v22, 0.0  ;;  %v4420_v42 = vmul.f32 0.2, %v4348_v22  ;;  %v27523_v36 = vadd.f32 %v25190_v33, %v30035_v45  ;;  %v4183_v41 = vpop.f32.mrb[15].mxu0  ;;  %v4669_v49 = vmul.f32 %v30049_v62, %v4453_v39 }
 0x219   : > { %vm4383_vm9 = vcmp.ge.f32.partialorder %v4347_v28, 0.0  ;;  %v4419_v46 = vmul.f32 0.2, %v4347_v28  ;;  %v27524_v50 = vadd.f32 %v4183_v41, %v30039_v54  ;;  %4753 = vrot.lane.b32.xlu1 %v4670_v30, %s28979_s18 }
 0x21a   : > { %v4350_v52 = vadd.f32 %v27523_v36, %v30054_v8  ;;  %4751 = vrot.lane.b32.xlu0 %v4669_v49, %s28979_s18  ;;  %v4456_v31 = vsel %vm4384_vm8, %v4348_v22, %v4420_v42  ;;  %v24972_v23 = vpop.f32.mrb[18].mxu1 }
 0x21b   : > { %v4349_v53 = vadd.f32 %v27524_v50, %v30054_v8  ;;  %v25193_v45 = vpop.f32.mrb[16].mxu0  ;;  %v4672_v55 = vmul.f32 %v30056_v6, %v4456_v31  ;;  %v4455_v56 = vsel %vm4383_vm9, %v4347_v28, %v4419_v46  ;;  %v2499_v48 = vpop.f32.mrb[19].mxu1 }
 0x21c   : > { %vm4386_vm10 = vcmp.ge.f32.partialorder %v4350_v52, 0.0  ;;  %v4422_v59 = vmul.f32 0.2, %v4350_v52  ;;  %v27525_v54 = vadd.f32 %v25193_v45, %v30041_v1  ;;  %v4193_v60 = vpop.f32.mrb[17].mxu0  ;;  %v4671_v63 = vmul.f32 %v30070_v29, %v4455_v56  ;;  %v30154_v28 = vpop.permute.xlu1 %4606 }
 0x21d   : > { %vm4385_vm11 = vcmp.ge.f32.partialorder %v4349_v53, 0.0  ;;  %v4421_v5 = vmul.f32 0.2, %v4349_v53  ;;  %v27526_v13 = vadd.f32 %v4193_v60, %v30045_v58  ;;  %4757 = vrot.lane.b32.xlu1 %v4672_v55, %s28979_s18  ;;  %v30162_v55 = vpop.permute.xlu0 %4601 }
 0x21e   : > { %v4352_v3 = vadd.f32 %v27525_v54, %v30054_v8  ;;  %4755 = vrot.lane.b32.xlu0 %v4671_v63, %s28979_s18  ;;  %v4458_v7 = vsel %vm4386_vm10, %v4350_v52, %v4422_v59  ;;  %v24975_v1 = vpop.f32.mrb[20].mxu1  ;;  %33141 = vst [vmem:[#allocation3_spill] sm:$0xff] %v30162_v55 }
 0x21f   : > { %v4351_v32 = vadd.f32 %v27526_v13, %v30054_v8  ;;  %v25196_v20 = vpop.f32.mrb[18].mxu0  ;;  %v4674_v15 = vmul.f32 %v30074_v44, %v4458_v7  ;;  %v4457_v35 = vsel %vm4385_vm11, %v4349_v53, %v4421_v5  ;;  %v2509_v58 = vpop.f32.mrb[21].mxu1 }
 0x220   : > { %vm4388_vm12 = vcmp.ge.f32.partialorder %v4352_v3, 0.0  ;;  %v4424_v16 = vmul.f32 0.2, %v4352_v3  ;;  %v27527_v17 = vadd.f32 %v25196_v20, %v24972_v23  ;;  %v4203_v19 = vpop.f32.mrb[19].mxu0  ;;  %v4673_v21 = vmul.f32 %v30082_v4, %v4457_v35  ;;  %v30170_v35 = vpop.permute.xlu1 %4616 }
 0x221   : > { %vm4387_vm13 = vcmp.ge.f32.partialorder %v4351_v32, 0.0  ;;  %v4423_v22 = vmul.f32 0.2, %v4351_v32  ;;  %v27528_v25 = vadd.f32 %v4203_v19, %v2499_v48  ;;  %4761 = vrot.lane.b32.xlu1 %v4674_v15, %s28979_s18  ;;  %33142 = vst [vmem:[#allocation4_spill] sm:$0xff] %v30170_v35 }
 0x222   : > { %v4354_v33 = vadd.f32 %v27527_v17, %v30054_v8  ;;  %4759 = vrot.lane.b32.xlu0 %v4673_v21, %s28979_s18  ;;  %v4460_v30 = vsel %vm4388_vm12, %v4352_v3, %v4424_v16  ;;  %v24978_v42 = vpop.f32.mrb[22].mxu1 }
 0x223   : > { %v4353_v39 = vadd.f32 %v27528_v25, %v30054_v8  ;;  %v25199_v36 = vpop.f32.mrb[20].mxu0  ;;  %v4676_v41 = vmul.f32 %v30088_v11, %v4460_v30  ;;  %v4459_v49 = vsel %vm4387_vm13, %v4351_v32, %v4423_v22  ;;  %v2519_v52 = vpop.f32.mrb[23].mxu1 }
 0x224   : > { %vm4390_vm14 = vcmp.ge.f32.partialorder %v4354_v33, 0.0  ;;  %v4426_v46 = vmul.f32 0.2, %v4354_v33  ;;  %v27529_v50 = vadd.f32 %v25199_v36, %v24975_v1  ;;  %v4213_v31 = vpop.f32.mrb[21].mxu0  ;;  %v4675_v53 = vmul.f32 %v30098_v2, %v4459_v49 }
 0x225   : > { %vm4389_vm15 = vcmp.ge.f32.partialorder %v4353_v39, 0.0  ;;  %v4425_v23 = vmul.f32 0.2, %v4353_v39  ;;  %v27530_v45 = vadd.f32 %v4213_v31, %v2509_v58  ;;  %4765 = vrot.lane.b32.xlu1 %v4676_v41, %s28979_s18 }
 0x226   : > { %v4356_v56 = vadd.f32 %v27529_v50, %v30054_v8  ;;  %4763 = vrot.lane.b32.xlu0 %v4675_v53, %s28979_s18  ;;  %v4462_v59 = vsel %vm4390_vm14, %v4354_v33, %v4426_v46  ;;  %v24981_v48 = vpop.f32.mrb[24].mxu1  ;;  %v30178_v46 = vpop.permute.xlu0 %4611 }
 0x227   : > { %v4355_v54 = vadd.f32 %v27530_v45, %v30054_v8  ;;  %v25202_v60 = vpop.f32.mrb[22].mxu0  ;;  %v4678_v63 = vmul.f32 %v30104_v51, %v4462_v59  ;;  %v4461_v5 = vsel %vm4389_vm15, %v4353_v39, %v4425_v23  ;;  %v2529_v7 = vpop.f32.mrb[25].mxu1  ;;  %33143 = vst [vmem:[#allocation5_spill] sm:$0xff] %v30178_v46 }
 0x228   : > { %vm4392_vm2 = vcmp.ge.f32.partialorder %v4356_v56, 0.0  ;;  %v4428_v13 = vmul.f32 0.2, %v4356_v56  ;;  %v27531_v3 = vadd.f32 %v25202_v60, %v24978_v42  ;;  %v4223_v32 = vpop.f32.mrb[23].mxu0  ;;  %v4677_v1 = vmul.f32 %v30114_v9, %v4461_v5 }
 0x229   : > { %vm4391_vm4 = vcmp.ge.f32.partialorder %v4355_v54, 0.0  ;;  %v4427_v20 = vmul.f32 0.2, %v4355_v54  ;;  %v27532_v15 = vadd.f32 %v4223_v32, %v2519_v52  ;;  %4769 = vrot.lane.b32.xlu1 %v4678_v63, %s28979_s18 }
 0x22a   : > { %v4358_v16 = vadd.f32 %v27531_v3, %v30054_v8  ;;  %4767 = vrot.lane.b32.xlu0 %v4677_v1, %s28979_s18  ;;  %v4464_v17 = vsel %vm4392_vm2, %v4356_v56, %v4428_v13  ;;  %v24984_v19 = vpop.f32.mrb[26].mxu1  ;;  %v30186_v3 = vpop.permute.xlu1 %4626 }
 0x22b   : > { %v4357_v58 = vadd.f32 %v27532_v15, %v30054_v8  ;;  %v25205_v21 = vpop.f32.mrb[24].mxu0  ;;  %v4680_v22 = vmul.f32 %v30120_v12, %v4464_v17  ;;  %v4463_v25 = vsel %vm4391_vm4, %v4355_v54, %v4427_v20  ;;  %v2539_v39 = vpop.f32.mrb[27].mxu1  ;;  %33144 = vst [vmem:[#allocation6_spill] sm:$0xff] %v30186_v3 }
 0x22c   : > { %vm4394_vm7 = vcmp.ge.f32.partialorder %v4358_v16, 0.0  ;;  %v4430_v33 = vmul.f32 0.2, %v4358_v16  ;;  %v27533_v30 = vadd.f32 %v25205_v21, %v24981_v48  ;;  %v4233_v42 = vpop.f32.mrb[25].mxu0  ;;  %v4679_v36 = vmul.f32 %v30130_v38, %v4463_v25 }
 0x22d   : > { %vm4393_vm8 = vcmp.ge.f32.partialorder %v4357_v58, 0.0  ;;  %v4429_v41 = vmul.f32 0.2, %v4357_v58  ;;  %v27534_v49 = vadd.f32 %v4233_v42, %v2529_v7  ;;  %4773 = vrot.lane.b32.xlu1 %v4680_v22, %s28979_s18 }
 0x22e   : > { %v4360_v50 = vadd.f32 %v27533_v30, %v30054_v8  ;;  %4771 = vrot.lane.b32.xlu0 %v4679_v36, %s28979_s18  ;;  %v4466_v52 = vsel %vm4394_vm7, %v4358_v16, %v4430_v33  ;;  %v24987_v53 = vpop.f32.mrb[28].mxu1 }
 0x22f   : > { %v4359_v31 = vadd.f32 %v27534_v49, %v30054_v8  ;;  %v25208_v23 = vpop.f32.mrb[26].mxu0  ;;  %v4682_v45 = vmul.f32 %v30136_v24, %v4466_v52  ;;  %v4465_v56 = vsel %vm4393_vm8, %v4357_v58, %v4429_v41  ;;  %v2549_v48 = vpop.f32.mrb[29].mxu1  ;;  %vm4839_vm8 = vcmask 97344  }
 0x230   : > { %vm4396_vm9 = vcmp.ge.f32.partialorder %v4360_v50, 0.0  ;;  %v4432_v59 = vmul.f32 0.2, %v4360_v50  ;;  %v27535_v54 = vadd.f32 %v25208_v23, %v24984_v19  ;;  %v4243_v60 = vpop.f32.mrb[27].mxu0  ;;  %v4681_v63 = vmul.f32 %v30146_v14, %v4465_v56 }
 0x231   : > { %vm4395_vm10 = vcmp.ge.f32.partialorder %v4359_v31, 0.0  ;;  %v4431_v5 = vmul.f32 0.2, %v4359_v31  ;;  %v27536_v13 = vadd.f32 %v4243_v60, %v2539_v39  ;;  %4777 = vrot.lane.b32.xlu1 %v4682_v45, %s28979_s18  ;;  %v30194_v39 = vpop.permute.xlu0 %4621  ;;  %v30202_v60 = vpop.permute.xlu1 %4636 }
 0x232   : > { %v4362_v7 = vadd.f32 %v27535_v54, %v30054_v8  ;;  %4775 = vrot.lane.b32.xlu0 %v4681_v63, %s28979_s18  ;;  %v4468_v32 = vsel %vm4396_vm9, %v4360_v50, %v4432_v59  ;;  %v24990_v20 = vpop.f32.mrb[30].mxu1  ;;  %33145 = vst [vmem:[#allocation7_spill] sm:$0xff] %v30194_v39  ;;  %33146 = vst [vmem:[#allocation8_spill] sm:$0xff] %v30202_v60 }
 0x233   : > { %v4361_v1 = vadd.f32 %v27536_v13, %v30054_v8  ;;  %v25211_v15 = vpop.f32.mrb[28].mxu0  ;;  %v4684_v16 = vmul.f32 %v30154_v28, %v4468_v32  ;;  %v4467_v17 = vsel %vm4395_vm10, %v4359_v31, %v4431_v5  ;;  %v2559_v21 = vpop.f32.mrb[31].mxu1 }
 0x234   : > { %vm4398_vm11 = vcmp.ge.f32.partialorder %v4362_v7, 0.0  ;;  %v4434_v58 = vmul.f32 0.2, %v4362_v7  ;;  %v27537_v19 = vadd.f32 %v25211_v15, %v24987_v53  ;;  %v4253_v22 = vpop.f32.mrb[29].mxu0  ;;  %v4683_v25 = vmul.f32 %v30162_v55, %v4467_v17 }
 0x235   : > { %vm4397_vm12 = vcmp.ge.f32.partialorder %v4361_v1, 0.0  ;;  %v4433_v33 = vmul.f32 0.2, %v4361_v1  ;;  %v27538_v30 = vadd.f32 %v4253_v22, %v2549_v48  ;;  %4781 = vrot.lane.b32.xlu1 %v4684_v16, %s28979_s18 }
 0x236   : > { %v4364_v42 = vadd.f32 %v27537_v19, %v30054_v8  ;;  %4779 = vrot.lane.b32.xlu0 %v4683_v25, %s28979_s18  ;;  %v4470_v36 = vsel %vm4398_vm11, %v4362_v7, %v4434_v58  ;;  %v24993_v49 = vpop.f32.mrb[32].mxu1 }
 0x237   : > { %v4363_v41 = vadd.f32 %v27538_v30, %v30054_v8  ;;  %v25214_v50 = vpop.f32.mrb[30].mxu0  ;;  %v4686_v52 = vmul.f32 %v30170_v35, %v4470_v36  ;;  %v4469_v31 = vsel %vm4397_vm12, %v4361_v1, %v4433_v33  ;;  %v2569_v45 = vpop.f32.mrb[33].mxu1  ;;  %v6993_v35 = vld [vmem:[%s33097_s4 + $0x44] sm:$0xf] }
 0x238   : > { %vm4400_vm13 = vcmp.ge.f32.partialorder %v4364_v42, 0.0  ;;  %v4436_v53 = vmul.f32 0.2, %v4364_v42  ;;  %v27539_v23 = vadd.f32 %v25214_v50, %v24990_v20  ;;  %v4263_v56 = vpop.f32.mrb[31].mxu0  ;;  %v4685_v59 = vmul.f32 %v30178_v46, %v4469_v31  ;;  %v6992_v46 = vld [vmem:[%s33097_s4 + $0x3c] sm:$0xff] }
 0x239   : > { %vm4399_vm14 = vcmp.ge.f32.partialorder %v4363_v41, 0.0  ;;  %v4435_v54 = vmul.f32 0.2, %v4363_v41  ;;  %v27540_v48 = vadd.f32 %v4263_v56, %v2559_v21  ;;  %4785 = vrot.lane.b32.xlu1 %v4686_v52, %s28979_s18  ;;  %v30209_v21 = vpop.permute.xlu0 %4631  ;;  %v30222_v56 = vpop.permute.xlu1 %4646  ;;  %v27375_v55 = vpack.c.bf16 %v6993_v35, %v6992_v46 }
 0x23a   : > { %v4366_v63 = vadd.f32 %v27539_v23, %v30054_v8  ;;  %4783 = vrot.lane.b32.xlu0 %v4685_v59, %s28979_s18  ;;  %v4472_v5 = vsel %vm4400_vm13, %v4364_v42, %v4436_v53  ;;  %v24996_v7 = vpop.f32.mrb[34].mxu1  ;;  %33147 = vst [vmem:[#allocation9_spill] sm:$0xff] %v30209_v21  ;;  %33148 = vst [vmem:[#allocation10_spill] sm:$0xff] %v30222_v56 }
 0x23b   : > { %v4365_v13 = vadd.f32 %v27540_v48, %v30054_v8  ;;  %v25217_v32 = vpop.f32.mrb[32].mxu0  ;;  %v4688_v1 = vmul.f32 %v30186_v3, %v4472_v5  ;;  %v4471_v20 = vsel %vm4399_vm14, %v4363_v41, %v4435_v54  ;;  %v2579_v17 = vpop.f32.mrb[35].mxu1  ;;  %v5702_v5 = vld [vmem:[%s33097_s4 + $0x18] sm:$0xff] }
 0x23c   : > { %vm4402_vm15 = vcmp.ge.f32.partialorder %v4366_v63, 0.0  ;;  %v4438_v15 = vmul.f32 0.2, %v4366_v63  ;;  %v27541_v16 = vadd.f32 %v25217_v32, %v24993_v49  ;;  %v4273_v58 = vpop.f32.mrb[33].mxu0  ;;  %v4687_v19 = vmul.f32 %v30194_v39, %v4471_v20  ;;  %v564_v20 = vld [vmem:[%s33094_s1 + $0x110] sm:$0xff] }
 0x23d   : > { %vm4401_vm2 = vcmp.ge.f32.partialorder %v4365_v13, 0.0  ;;  %v4437_v22 = vmul.f32 0.2, %v4365_v13  ;;  %v27542_v25 = vadd.f32 %v4273_v58, %v2569_v45  ;;  %4789 = vrot.lane.b32.xlu1 %v4688_v1, %s28979_s18  ;;  %v30225_v54 = vpop.permute.xlu0 %4641  ;;  %v565_v1 = vld [vmem:[%s33094_s1 + $0x118] sm:$0xff] }
 0x23e   : > { %v4368_v33 = vadd.f32 %v27541_v16, %v30054_v8  ;;  %4787 = vrot.lane.b32.xlu0 %v4687_v19, %s28979_s18  ;;  %v4474_v30 = vsel %vm4402_vm15, %v4366_v63, %v4438_v15  ;;  %33149 = vst [vmem:[#allocation11_spill] sm:$0xff] %v30225_v54 }
 0x23f   : > { %v4367_v42 = vadd.f32 %v27542_v25, %v30054_v8  ;;  %v25220_v36 = vpop.f32.mrb[34].mxu0  ;;  %v4690_v41 = vmul.f32 %v30202_v60, %v4474_v30  ;;  %v4473_v49 = vsel %vm4401_vm2, %v4365_v13, %v4437_v22  ;;  %v5703_v13 = vld [vmem:[%s33097_s4 + $0x20] sm:$0xf] }
 0x240   : > { %vm4404_vm4 = vcmp.ge.f32.partialorder %v4368_v33, 0.0  ;;  %v4440_v50 = vmul.f32 0.2, %v4368_v33  ;;  %v30216_v52 = vadd.f32 %v25220_v36, %v24996_v7  ;;  %v4283_v31 = vpop.f32.mrb[35].mxu0  ;;  %v4689_v53 = vmul.f32 %v30209_v21, %v4473_v49 }
 0x241   : > { %vm4403_vm7 = vcmp.ge.f32.partialorder %v4367_v42, 0.0  ;;  %v4439_v23 = vmul.f32 0.2, %v4367_v42  ;;  %v30219_v45 = vadd.f32 %v4283_v31, %v2579_v17  ;;  %4793 = vrot.lane.b32.xlu1 %v4690_v41, %s28979_s18  ;;  %v30235_v32 = vpack.c.bf16 %v5703_v13, %v5702_v5 }
 0x242   : > { %4791 = vrot.lane.b32.xlu0 %v4689_v53, %s28979_s18  ;;  %v4476_v59 = vsel %vm4404_vm4, %v4368_v33, %v4440_v50 }
 0x243   : > { %v4692_v48 = vmul.f32 %v30222_v56, %v4476_v59  ;;  %v4475_v63 = vsel %vm4403_vm7, %v4367_v42, %v4439_v23  ;;  %27359 = vmatprep.subr.msk.bf16.mxu1 %vm29993_vm5, %v30235_v32 }
 0x244   : > { %v4691_v7 = vmul.f32 %v30225_v54, %v4475_v63 }
 0x245   : > { %4797 = vrot.lane.b32.xlu1 %v4692_v48, %s28979_s18 }
 0x246   : > { %4795 = vrot.lane.b32.xlu0 %v4691_v7, %s28979_s18 }
 0x249   : > { %4656 = vperm.xlu1 %28966, %v565_v1  }
 0x24a   : > { %4651 = vperm.xlu0 %28965, %v564_v20  }
 0x277   : > { %v4734_v15 = vpop.permute.xlu1 %4733 }
 0x278   : > { %v4732_v16 = vpop.permute.xlu0 %4731  ;;  %4841 = vst.msk [vmem:[#allocation2 + $0x1b] sm:$0xff] %vm4839_vm8, %v4734_v15 }
 0x279   : > { %4840 = vst.msk [vmem:[#allocation2 + $0x13] sm:$0xff] %vm4839_vm8, %v4732_v16 }
 0x27b   : > { %v4738_v17 = vpop.permute.xlu1 %4737 }
 0x27c   : > { %v4736_v58 = vpop.permute.xlu0 %4735  ;;  %4843 = vst.msk [vmem:[#allocation2 + $0x2b] sm:$0xff] %vm4839_vm8, %v4738_v17 }
 0x27d   : > { %4842 = vst.msk [vmem:[#allocation2 + $0x23] sm:$0xff] %vm4839_vm8, %v4736_v58 }
 0x27f   : > { %v4742_v19 = vpop.permute.xlu1 %4741 }
 0x280   : > { %v4740_v22 = vpop.permute.xlu0 %4739  ;;  %v4916_v25 = vld [vmem:[#allocation2 + $0x11] sm:$0xff]  ;;  %4845 = vst.msk [vmem:[#allocation2 + $0x3b] sm:$0xff] %vm4839_vm8, %v4742_v19  ;;  %v4917_v33 = vld [vmem:[#allocation2 + $0x19] sm:$0xff] }
 0x281   : > { %25228 = vmatprep.mubr.msk.f32.mxu1 %vm4952_vm6, %v4916_v25  ;;  %4844 = vst.msk [vmem:[#allocation2 + $0x33] sm:$0xff] %vm4839_vm8, %v4740_v22 }
 0x282   : > { %25229 = vmatmul.mubr.msk.f32.gmra.mrb[38].mxu1 %vm4952_vm6, %v4917_v33 }
 0x283   : > { %v4746_v30 = vpop.permute.xlu1 %4745 }
 0x284   : > { %4847 = vst.msk [vmem:[#allocation2 + $0x4b] sm:$0xff] %vm4839_vm8, %v4746_v30  ;;  %v4744_v42 = vpop.permute.xlu0 %4743  ;;  %v4918_v36 = vld [vmem:[#allocation2 + $0x21] sm:$0xff]  ;;  %v4919_v41 = vld [vmem:[#allocation2 + $0x29] sm:$0xff] }
 0x285   : > { %4846 = vst.msk [vmem:[#allocation2 + $0x43] sm:$0xff] %vm4839_vm8, %v4744_v42  ;;  %25231 = vmatprep.mubr.msk.f32.mxu1 %vm4952_vm6, %v4918_v36 }
 0x286   : > { %25232 = vmatmul.mubr.msk.f32.gmra.mrb[40].mxu1 %vm4952_vm6, %v4919_v41 }
 0x287   : > { %v4750_v49 = vpop.permute.xlu1 %4749 }
 0x288   : > { %4849 = vst.msk [vmem:[#allocation2 + $0x5b] sm:$0xff] %vm4839_vm8, %v4750_v49  ;;  %v4748_v50 = vpop.permute.xlu0 %4747  ;;  %v4920_v31 = vld [vmem:[#allocation2 + $0x31] sm:$0xff]  ;;  %v4921_v53 = vld [vmem:[#allocation2 + $0x39] sm:$0xff] }
 0x289   : > { %4848 = vst.msk [vmem:[#allocation2 + $0x53] sm:$0xff] %vm4839_vm8, %v4748_v50  ;;  %25234 = vmatprep.mubr.msk.f32.mxu1 %vm4952_vm6, %v4920_v31 }
 0x28a   : > { %25235 = vmatmul.mubr.msk.f32.gmra.mrb[42].mxu1 %vm4952_vm6, %v4921_v53 }
 0x28b   : > { %v4754_v23 = vpop.permute.xlu1 %4753 }
 0x28c   : > { %4851 = vst.msk [vmem:[#allocation2 + $0x6b] sm:$0xff] %vm4839_vm8, %v4754_v23  ;;  %v4752_v59 = vpop.permute.xlu0 %4751  ;;  %v4922_v48 = vld [vmem:[#allocation2 + $0x41] sm:$0xff]  ;;  %v4923_v63 = vld [vmem:[#allocation2 + $0x49] sm:$0xff] }
 0x28d   : > { %4850 = vst.msk [vmem:[#allocation2 + $0x63] sm:$0xff] %vm4839_vm8, %v4752_v59  ;;  %25237 = vmatprep.mubr.msk.f32.mxu1 %vm4952_vm6, %v4922_v48 }
 0x28e   : > { %25238 = vmatmul.mubr.msk.f32.gmra.mrb[44].mxu1 %vm4952_vm6, %v4923_v63 }
 0x28f   : > { %v4758_v5 = vpop.permute.xlu1 %4757 }
 0x290   : > { %4853 = vst.msk [vmem:[#allocation2 + $0x7b] sm:$0xff] %vm4839_vm8, %v4758_v5  ;;  %v4756_v13 = vpop.permute.xlu0 %4755  ;;  %v4924_v7 = vld [vmem:[#allocation2 + $0x51] sm:$0xff]  ;;  %v4925_v1 = vld [vmem:[#allocation2 + $0x59] sm:$0xff] }
 0x291   : > { %4852 = vst.msk [vmem:[#allocation2 + $0x73] sm:$0xff] %vm4839_vm8, %v4756_v13  ;;  %25240 = vmatprep.mubr.msk.f32.mxu1 %vm4952_vm6, %v4924_v7 }
 0x292   : > { %25241 = vmatmul.mubr.msk.f32.gmra.mrb[46].mxu1 %vm4952_vm6, %v4925_v1 }
 0x293   : > { %v4762_v20 = vpop.permute.xlu1 %4761 }
 0x294   : > { %4855 = vst.msk [vmem:[#allocation2 + $0x8b] sm:$0xff] %vm4839_vm8, %v4762_v20  ;;  %v4760_v15 = vpop.permute.xlu0 %4759  ;;  %v4926_v16 = vld [vmem:[#allocation2 + $0x61] sm:$0xff]  ;;  %v4927_v17 = vld [vmem:[#allocation2 + $0x69] sm:$0xff] }
 0x295   : > { %4854 = vst.msk [vmem:[#allocation2 + $0x83] sm:$0xff] %vm4839_vm8, %v4760_v15  ;;  %25243 = vmatprep.mubr.msk.f32.mxu1 %vm4952_vm6, %v4926_v16 }
 0x296   : > { %25244 = vmatmul.mubr.msk.f32.gmra.mrb[48].mxu1 %vm4952_vm6, %v4927_v17 }
 0x297   : > { %v4766_v58 = vpop.permute.xlu1 %4765 }
 0x298   : > { %4857 = vst.msk [vmem:[#allocation2 + $0x9b] sm:$0xff] %vm4839_vm8, %v4766_v58  ;;  %v4764_v19 = vpop.permute.xlu0 %4763  ;;  %v4928_v22 = vld [vmem:[#allocation2 + $0x71] sm:$0xff]  ;;  %v4929_v25 = vld [vmem:[#allocation2 + $0x79] sm:$0xff] }
 0x299   : > { %4856 = vst.msk [vmem:[#allocation2 + $0x93] sm:$0xff] %vm4839_vm8, %v4764_v19  ;;  %25246 = vmatprep.mubr.msk.f32.mxu1 %vm4952_vm6, %v4928_v22  ;;  %v7825_v0 = vld [vmem:[#allocation2 + $0x6d] sm:$0xff] }
 0x29a   : > { %25247 = vmatmul.mubr.msk.f32.gmra.mrb[50].mxu1 %vm4952_vm6, %v4929_v25 }
 0x29b   : > { %v4770_v33 = vpop.permute.xlu1 %4769 }
 0x29c   : > { %4859 = vst.msk [vmem:[#allocation2 + $0xab] sm:$0xff] %vm4839_vm8, %v4770_v33  ;;  %v4768_v30 = vpop.permute.xlu0 %4767  ;;  %v4930_v42 = vld [vmem:[#allocation2 + $0x81] sm:$0xff]  ;;  %v4931_v36 = vld [vmem:[#allocation2 + $0x89] sm:$0xff] }
 0x29d   : > { %4858 = vst.msk [vmem:[#allocation2 + $0xa3] sm:$0xff] %vm4839_vm8, %v4768_v30  ;;  %25249 = vmatprep.mubr.msk.f32.mxu1 %vm4952_vm6, %v4930_v42 }
 0x29e   : > { %25250 = vmatmul.mubr.msk.f32.gmra.mrb[52].mxu1 %vm4952_vm6, %v4931_v36 }
 0x29f   : > { %v4774_v41 = vpop.permute.xlu1 %4773 }
 0x2a0   : > { %4861 = vst.msk [vmem:[#allocation2 + $0xbb] sm:$0xff] %vm4839_vm8, %v4774_v41  ;;  %v4772_v49 = vpop.permute.xlu0 %4771  ;;  %v4932_v50 = vld [vmem:[#allocation2 + $0x91] sm:$0xff]  ;;  %v4933_v31 = vld [vmem:[#allocation2 + $0x99] sm:$0xff] }
 0x2a1   : > { %4860 = vst.msk [vmem:[#allocation2 + $0xb3] sm:$0xff] %vm4839_vm8, %v4772_v49  ;;  %25252 = vmatprep.mubr.msk.f32.mxu1 %vm4952_vm6, %v4932_v50 }
 0x2a2   : > { %25253 = vmatmul.mubr.msk.f32.gmra.mrb[54].mxu1 %vm4952_vm6, %v4933_v31 }
 0x2a3   : > { %v4778_v53 = vpop.permute.xlu1 %4777 }
 0x2a4   : > { %4863 = vst.msk [vmem:[#allocation2 + $0xcb] sm:$0xff] %vm4839_vm8, %v4778_v53  ;;  %v4776_v23 = vpop.permute.xlu0 %4775  ;;  %v4934_v59 = vld [vmem:[#allocation2 + $0xa1] sm:$0xff]  ;;  %v4935_v48 = vld [vmem:[#allocation2 + $0xa9] sm:$0xff] }
 0x2a5   : > { %4862 = vst.msk [vmem:[#allocation2 + $0xc3] sm:$0xff] %vm4839_vm8, %v4776_v23  ;;  %25255 = vmatprep.mubr.msk.f32.mxu1 %vm4952_vm6, %v4934_v59  ;;  %v4370_v23 = vadd.f32 %v30216_v52, %v30054_v8  ;;  %v4877_v52 = vld [vmem:[#allocation2 + $0x8] sm:$0xff] }
 0x2a6   : > { %25256 = vmatmul.mubr.msk.f32.gmra.mrb[56].mxu1 %vm4952_vm6, %v4935_v48 }
 0x2a7   : > { %v4782_v63 = vpop.permute.xlu1 %4781  ;;  %vm4406_vm9 = vcmp.ge.f32.partialorder %v4370_v23, 0.0 }
 0x2a8   : > { %4865 = vst.msk [vmem:[#allocation2 + $0xdb] sm:$0xff] %vm4839_vm8, %v4782_v63  ;;  %v4780_v5 = vpop.permute.xlu0 %4779  ;;  %v4936_v13 = vld [vmem:[#allocation2 + $0xb1] sm:$0xff]  ;;  %v4937_v7 = vld [vmem:[#allocation2 + $0xb9] sm:$0xff] }
 0x2a9   : > { %4864 = vst.msk [vmem:[#allocation2 + $0xd3] sm:$0xff] %vm4839_vm8, %v4780_v5  ;;  %25258 = vmatprep.mubr.msk.f32.mxu1 %vm4952_vm6, %v4936_v13  ;;  %v4876_v63 = vld [vmem:[#allocation2] sm:$0xff]  ;;  %v4369_v5 = vadd.f32 %v30219_v45, %v30054_v8  ;;  %v4878_v45 = vld [vmem:[#allocation2 + $0x10] sm:$0xff] }
 0x2aa   : > { %25259 = vmatmul.mubr.msk.f32.gmra.mrb[58].mxu1 %vm4952_vm6, %v4937_v7  ;;  %v6132_v13 = vld [vmem:[%s33097_s4 + $0x24] sm:$0xff]  ;;  %v6133_v7 = vld [vmem:[%s33097_s4 + $0x2c] sm:$0xf] }
 0x2ab   : > { %v4786_v1 = vpop.permute.xlu1 %4785  ;;  %v4441_v8 = vmul.f32 0.2, %v4369_v5  ;;  %vm4405_vm10 = vcmp.ge.f32.partialorder %v4369_v5, 0.0 }
 0x2ac   : > { %4867 = vst.msk [vmem:[#allocation2 + $0xeb] sm:$0xff] %vm4839_vm8, %v4786_v1  ;;  %v4784_v20 = vpop.permute.xlu0 %4783  ;;  %v4938_v15 = vld [vmem:[#allocation2 + $0xc1] sm:$0xff]  ;;  %v4939_v16 = vld [vmem:[#allocation2 + $0xc9] sm:$0xff]  ;;  %v4442_v1 = vmul.f32 0.2, %v4370_v23 }
 0x2ad   : > { %4866 = vst.msk [vmem:[#allocation2 + $0xe3] sm:$0xff] %vm4839_vm8, %v4784_v20  ;;  %25261 = vmatprep.mubr.msk.f32.mxu1 %vm4952_vm6, %v4938_v15  ;;  %v30327_v20 = vpack.c.bf16 %v6133_v7, %v6132_v13  ;;  %v4895_v13 = vld [vmem:[#allocation2 + $0x98] sm:$0xff]  ;;  %v4896_v7 = vld [vmem:[#allocation2 + $0xa0] sm:$0xff] }
 0x2ae   : > { %25262 = vmatmul.mubr.msk.f32.gmra.mrb[60].mxu1 %vm4952_vm6, %v4939_v16  ;;  %v4478_v16 = vsel %vm4406_vm9, %v4370_v23, %v4442_v1  ;;  %v4890_v23 = vld [vmem:[#allocation2 + $0x70] sm:$0xff] }
 0x2af   : > { %v4790_v17 = vpop.permute.xlu1 %4789  ;;  %v4898_v1 = vld [vmem:[#allocation2 + $0xb0] sm:$0xff] }
 0x2b0   : > { %4869 = vst.msk [vmem:[#allocation2 + $0xfb] sm:$0xff] %vm4839_vm8, %v4790_v17  ;;  %v4788_v58 = vpop.permute.xlu0 %4787  ;;  %v4940_v19 = vld [vmem:[#allocation2 + $0xd1] sm:$0xff]  ;;  %v4941_v22 = vld [vmem:[#allocation2 + $0xd9] sm:$0xff] }
 0x2b1   : > { %4868 = vst.msk [vmem:[#allocation2 + $0xf3] sm:$0xff] %vm4839_vm8, %v4788_v58  ;;  %25264 = vmatprep.mubr.msk.f32.mxu1 %vm4952_vm6, %v4940_v19  ;;  %v4879_v58 = vld [vmem:[#allocation2 + $0x18] sm:$0xff] }
 0x2b2   : > { %25265 = vmatmul.mubr.msk.f32.gmra.mrb[62].mxu1 %vm4952_vm6, %v4941_v22  ;;  %v4477_v22 = vsel %vm4405_vm10, %v4369_v5, %v4441_v8  ;;  %v4894_v5 = vld [vmem:[#allocation2 + $0x90] sm:$0xff]  ;;  %v4899_v8 = vld [vmem:[#allocation2 + $0xb8] sm:$0xff] }
 0x2b3   : > { %v4794_v25 = vpop.permute.xlu1 %4793 }
 0x2b4   : > { %4871 = vst.msk [vmem:[#allocation2 + $0x10b] sm:$0xff] %vm4839_vm8, %v4794_v25  ;;  %v4792_v33 = vpop.permute.xlu0 %4791  ;;  %v4942_v30 = vld [vmem:[#allocation2 + $0xe1] sm:$0xff]  ;;  %v4943_v42 = vld [vmem:[#allocation2 + $0xe9] sm:$0xff] }
 0x2b5   : > { %4870 = vst.msk [vmem:[#allocation2 + $0x103] sm:$0xff] %vm4839_vm8, %v4792_v33  ;;  %25267 = vmatprep.mubr.msk.f32.mxu1 %vm4952_vm6, %v4942_v30  ;;  %v4880_v25 = vld [vmem:[#allocation2 + $0x20] sm:$0xff]  ;;  %v4881_v33 = vld [vmem:[#allocation2 + $0x28] sm:$0xff]  ;;  %v4882_v30 = vld [vmem:[#allocation2 + $0x30] sm:$0xff] }
 0x2b6   : > { %25268 = vmatmul.mubr.msk.f32.gmra.mrb[64].mxu1 %vm4952_vm6, %v4943_v42  ;;  %v4883_v42 = vld [vmem:[#allocation2 + $0x38] sm:$0xff]  ;;  %v5694_v54 = vld [vmem:[#allocation2 + $0xe2] sm:$0xff]  ;;  %v5695_v56 = vld [vmem:[#allocation2 + $0xea] sm:$0xff] }
 0x2b7   : > { %v4798_v36 = vpop.permute.xlu1 %4797 }
 0x2b8   : > { %4873 = vst.msk [vmem:[#allocation2 + $0x11b] sm:$0xff] %vm4839_vm8, %v4798_v36  ;;  %v4796_v41 = vpop.permute.xlu0 %4795  ;;  %v4944_v49 = vld [vmem:[#allocation2 + $0xf1] sm:$0xff]  ;;  %v4945_v50 = vld [vmem:[#allocation2 + $0xf9] sm:$0xff] }
 0x2b9   : > { %4872 = vst.msk [vmem:[#allocation2 + $0x113] sm:$0xff] %vm4839_vm8, %v4796_v41  ;;  %25270 = vmatprep.mubr.msk.f32.mxu1 %vm4952_vm6, %v4944_v49  ;;  %v4884_v36 = vld [vmem:[#allocation2 + $0x40] sm:$0xff]  ;;  %v4885_v41 = vld [vmem:[#allocation2 + $0x48] sm:$0xff]  ;;  %v4886_v49 = vld [vmem:[#allocation2 + $0x50] sm:$0xff] }
 0x2ba   : > { %25271 = vmatmul.mubr.msk.f32.gmra.mrb[66].mxu1 %vm4952_vm6, %v4945_v50  ;;  %v4887_v50 = vld [vmem:[#allocation2 + $0x58] sm:$0xff] }
 0x2bb   : > { %v5696_v21 = vld [vmem:[#allocation2 + $0xf2] sm:$0xff] }
 0x2bc   : > { %v4946_v31 = vld [vmem:[#allocation2 + $0x101] sm:$0xff]  ;;  %v4947_v53 = vld [vmem:[#allocation2 + $0x109] sm:$0xff] }
 0x2bd   : > { %25273 = vmatprep.mubr.msk.f32.mxu1 %vm4952_vm6, %v4946_v31  ;;  %v4888_v31 = vld [vmem:[#allocation2 + $0x60] sm:$0xff] }
 0x2be   : > { %25274 = vmatmul.mubr.msk.f32.gmra.mrb[68].mxu1 %vm4952_vm6, %v4947_v53  ;;  %v4889_v53 = vld [vmem:[#allocation2 + $0x68] sm:$0xff] }
 0x2bf   : > { %v5698_v60 = vld [vmem:[#allocation2 + $0x102] sm:$0xff] }
 0x2c0   : > { %v4948_v59 = vld [vmem:[#allocation2 + $0x111] sm:$0xff]  ;;  %v4949_v48 = vld [vmem:[#allocation2 + $0x119] sm:$0xff] }
 0x2c1   : > { %25276 = vmatprep.mubr.msk.f32.mxu1 %vm4952_vm6, %v4948_v59  ;;  %v4891_v59 = vld [vmem:[#allocation2 + $0x78] sm:$0xff] }
 0x2c2   : > { %25277 = vmatmul.mubr.msk.f32.gmra.mrb[70].mxu1 %vm4952_vm6, %v4949_v48  ;;  %v4892_v48 = vld [vmem:[#allocation2 + $0x80] sm:$0xff]  ;;  %v5700_v39 = vld [vmem:[#allocation2 + $0x112] sm:$0xff] }
 0x2c3   : > { %25283 = vmatprep.mubr.msk.f32.mxu1 %vm4952_vm6, %v4876_v63  ;;  %v4893_v63 = vld [vmem:[#allocation2 + $0x88] sm:$0xff]  ;;  %v5701_v3 = vld [vmem:[#allocation2 + $0x11a] sm:$0xff] }
 0x2c6   : > { %25284 = vmatmul.mubr.msk.f32.vlgmr.msra.gmra.mrb[36].mxu1 %vm4952_vm6, %v4877_v52  ;;  %v4897_v52 = vld [vmem:[#allocation2 + $0xa8] sm:$0xff] }
 0x2c7   : > { %27362 = vmatpush3.bf16.msk.msra.mxu1 %vm29993_vm5, %v30235_v32  ;;  %25286 = vmatprep.mubr.msk.f32.mxu1 %vm4952_vm6, %v4878_v45  ;;  %v4900_v45 = vld [vmem:[#allocation2 + $0xc0] sm:$0xff] }
 0x2c8   : > { %v30334_v15 = vpop.permute.xlu1 %4656  ;;  %27365 = vmatprep.subr.msk.bf16.mxu1 %vm29993_vm5, %v30327_v20 }
 0x2c9   : > { %33150 = vst [vmem:[#allocation12_spill] sm:$0xff] %v30334_v15  ;;  %v30339_v17 = vpop.permute.xlu0 %4651  ;;  %v4694_v19 = vmul.f32 %v30334_v15, %v4478_v16  ;;  %v4901_v16 = vld [vmem:[#allocation2 + $0xc8] sm:$0xff]  ;;  %v5693_v15 = vld [vmem:[#allocation2 + $0xda] sm:$0xff] }
 0x2ca   : > { %33151 = vst [vmem:[#allocation13_spill] sm:$0xff] %v30339_v17  ;;  %25287 = vmatmul.mubr.msk.f32.gmra.mrb[38].mxu1 %vm4952_vm6, %v4879_v58  ;;  %v4693_v32 = vmul.f32 %v30339_v17, %v4477_v22  ;;  %v4902_v58 = vld [vmem:[#allocation2 + $0xd0] sm:$0xff]  ;;  %v4904_v22 = vld [vmem:[#allocation2 + $0xe0] sm:$0xff] }
 0x2cb   : > { %25289 = vmatprep.mubr.msk.f32.mxu1 %vm4952_vm6, %v4880_v25  ;;  %4801 = vrot.lane.b32.xlu1 %v4694_v19, %s28979_s18  ;;  %v4903_v19 = vld [vmem:[#allocation2 + $0xd8] sm:$0xff]  ;;  %v4905_v25 = vld [vmem:[#allocation2 + $0xe8] sm:$0xff] }
 0x2cc   : > { %4799 = vrot.lane.b32.xlu0 %v4693_v32, %s28979_s18  ;;  %v4906_v32 = vld [vmem:[#allocation2 + $0xf0] sm:$0xff] }
 0x2cd   : > { %v5692_v17 = vld [vmem:[#allocation2 + $0xd2] sm:$0xff] }
 0x2ce   : > { %25290 = vmatmul.mubr.msk.f32.gmra.mrb[40].mxu1 %vm4952_vm6, %v4881_v33  ;;  %v4907_v33 = vld [vmem:[#allocation2 + $0xf8] sm:$0xff] }
 0x2cf   : > { %25292 = vmatprep.mubr.msk.f32.mxu1 %vm4952_vm6, %v4882_v30  ;;  %v4908_v30 = vld [vmem:[#allocation2 + $0x100] sm:$0xff] }
 0x2d2   : > { %25293 = vmatmul.mubr.msk.f32.gmra.mrb[42].mxu1 %vm4952_vm6, %v4883_v42  ;;  %v4909_v42 = vld [vmem:[#allocation2 + $0x108] sm:$0xff] }
 0x2d3   : > { %25295 = vmatprep.mubr.msk.f32.mxu1 %vm4952_vm6, %v4884_v36  ;;  %v4910_v36 = vld [vmem:[#allocation2 + $0x110] sm:$0xff] }
 0x2d6   : > { %25296 = vmatmul.mubr.msk.f32.gmra.mrb[44].mxu1 %vm4952_vm6, %v4885_v41  ;;  %v5666_v41 = vld [vmem:[#allocation2 + $0x2] sm:$0xff] }
 0x2d7   : > { %25298 = vmatprep.mubr.msk.f32.mxu1 %vm4952_vm6, %v4886_v49  ;;  %v4911_v49 = vld [vmem:[#allocation2 + $0x118] sm:$0xff] }
 0x2da   : > { %25299 = vmatmul.mubr.msk.f32.gmra.mrb[46].mxu1 %vm4952_vm6, %v4887_v50  ;;  %v6562_v50 = vld [vmem:[%s33097_s4 + $0x30] sm:$0xff] }
 0x2db   : > { %25301 = vmatprep.mubr.msk.f32.mxu1 %vm4952_vm6, %v4888_v31  ;;  %v6563_v31 = vld [vmem:[%s33097_s4 + $0x38] sm:$0xf] }
 0x2de   : > { %25302 = vmatmul.mubr.msk.f32.gmra.mrb[48].mxu1 %vm4952_vm6, %v4889_v53  ;;  %v5667_v53 = vld [vmem:[#allocation2 + $0xa] sm:$0xff] }
 0x2df   : > { %25304 = vmatprep.mubr.msk.f32.mxu1 %vm4952_vm6, %v4890_v23  ;;  %v30385_v23 = vpack.c.bf16 %v6563_v31, %v6562_v50  ;;  %v5691_v31 = vld [vmem:[#allocation2 + $0xca] sm:$0xff] }
 0x2e2   : > { %25305 = vmatmul.mubr.msk.f32.gmra.mrb[50].mxu1 %vm4952_vm6, %v4891_v59  ;;  %v30388_v59 = vld [vmem:[#allocation2 + $0x12] sm:$0xff] }
 0x2e3   : > { %25307 = vmatprep.mubr.msk.f32.mxu1 %vm4952_vm6, %v4892_v48  ;;  %v30398_v48 = vld [vmem:[#allocation2 + $0x1a] sm:$0xff] }
 0x2e6   : > { %25308 = vmatmul.mubr.msk.f32.gmra.mrb[52].mxu1 %vm4952_vm6, %v4893_v63  ;;  %v30402_v63 = vld [vmem:[#allocation2 + $0x22] sm:$0xff] }
 0x2e7   : > { %25310 = vmatprep.mubr.msk.f32.mxu1 %vm4952_vm6, %v4894_v5  ;;  %v30406_v5 = vld [vmem:[#allocation2 + $0x2a] sm:$0xff] }
 0x2ea   : > { %25311 = vmatmul.mubr.msk.f32.gmra.mrb[54].mxu1 %vm4952_vm6, %v4895_v13  ;;  %v30414_v13 = vld [vmem:[#allocation2 + $0x3a] sm:$0xff] }
 0x2eb   : > { %25313 = vmatprep.mubr.msk.f32.mxu1 %vm4952_vm6, %v4896_v7  ;;  %v30418_v7 = vld [vmem:[#allocation2 + $0x42] sm:$0xff] }
 0x2ee   : > { %25314 = vmatmul.mubr.msk.f32.gmra.mrb[56].mxu1 %vm4952_vm6, %v4897_v52  ;;  %v30422_v52 = vld [vmem:[#allocation2 + $0x4a] sm:$0xff] }
 0x2ef   : > { %25316 = vmatprep.mubr.msk.f32.mxu1 %vm4952_vm6, %v4898_v1  ;;  %v30426_v1 = vld [vmem:[#allocation2 + $0x52] sm:$0xff] }
 0x2f2   : > { %25317 = vmatmul.mubr.msk.f32.gmra.mrb[58].mxu1 %vm4952_vm6, %v4899_v8  ;;  %v30430_v8 = vld [vmem:[#allocation2 + $0x5a] sm:$0xff] }
 0x2f3   : > { %25319 = vmatprep.mubr.msk.f32.mxu1 %vm4952_vm6, %v4900_v45  ;;  %v30434_v45 = vld [vmem:[#allocation2 + $0x62] sm:$0xff] }
 0x2f6   : > { %25320 = vmatmul.mubr.msk.f32.gmra.mrb[60].mxu1 %vm4952_vm6, %v4901_v16  ;;  %v30438_v16 = vld [vmem:[#allocation2 + $0x6a] sm:$0xff] }
 0x2f7   : > { %25322 = vmatprep.mubr.msk.f32.mxu1 %vm4952_vm6, %v4902_v58  ;;  %v30442_v58 = vld [vmem:[#allocation2 + $0x72] sm:$0xff] }
 0x2fa   : > { %25323 = vmatmul.mubr.msk.f32.gmra.mrb[62].mxu1 %vm4952_vm6, %v4903_v19  ;;  %v30446_v19 = vld [vmem:[#allocation2 + $0x7a] sm:$0xff] }
 0x2fb   : > { %25325 = vmatprep.mubr.msk.f32.mxu1 %vm4952_vm6, %v4904_v22  ;;  %v30450_v22 = vld [vmem:[#allocation2 + $0x82] sm:$0xff] }
 0x2fe   : > { %25326 = vmatmul.mubr.msk.f32.gmra.mrb[64].mxu1 %vm4952_vm6, %v4905_v25  ;;  %v5683_v25 = vld [vmem:[#allocation2 + $0x8a] sm:$0xff] }
 0x2ff   : > { %25328 = vmatprep.mubr.msk.f32.mxu1 %vm4952_vm6, %v4906_v32  ;;  %v5684_v32 = vld [vmem:[#allocation2 + $0x92] sm:$0xff] }
 0x302   : > { %25329 = vmatmul.mubr.msk.f32.gmra.mrb[66].mxu1 %vm4952_vm6, %v4907_v33  ;;  %v5685_v33 = vld [vmem:[#allocation2 + $0x9a] sm:$0xff] }
 0x303   : > { %25331 = vmatprep.mubr.msk.f32.mxu1 %vm4952_vm6, %v4908_v30  ;;  %v5686_v30 = vld [vmem:[#allocation2 + $0xa2] sm:$0xff] }
 0x306   : > { %25332 = vmatmul.mubr.msk.f32.gmra.mrb[68].mxu1 %vm4952_vm6, %v4909_v42  ;;  %v5687_v42 = vld [vmem:[#allocation2 + $0xaa] sm:$0xff] }
 0x307   : > { %25334 = vmatprep.mubr.msk.f32.mxu1 %vm4952_vm6, %v4910_v36  ;;  %v5688_v36 = vld [vmem:[#allocation2 + $0xb2] sm:$0xff] }
 0x30a   : > { %25335 = vmatmul.mubr.msk.f32.gmra.mrb[70].mxu1 %vm4952_vm6, %v4911_v49  ;;  %v5690_v49 = vld [vmem:[#allocation2 + $0xc2] sm:$0xff] }
 0x30b   : > { %25341 = vmatprep.mubr.msk.f32.mxu1 %vm4952_vm6, %v5666_v41  ;;  %v5689_v41 = vld [vmem:[#allocation2 + $0xba] sm:$0xff] }
 0x30e   : > { %25342 = vmatmul.mubr.msk.f32.vlgmr.msra.gmra.mrb[36].mxu1 %vm4952_vm6, %v5667_v53 }
 0x30f   : > { %27368 = vmatpush3.bf16.msk.msra.mxu1 %vm29993_vm5, %v30327_v20  ;;  %25344 = vmatprep.mubr.msk.f32.mxu1 %vm4952_vm6, %v30388_v59  ;;  %v30410_v20 = vld [vmem:[#allocation2 + $0x32] sm:$0xff] }
 0x310   : > { %27371 = vmatprep.subr.msk.bf16.mxu1 %vm29993_vm5, %v30385_v23 }
 0x312   : > { %25345 = vmatmul.mubr.msk.f32.gmra.mrb[38].mxu1 %vm4952_vm6, %v30398_v48 }
 0x313   : > { %25347 = vmatprep.mubr.msk.f32.mxu1 %vm4952_vm6, %v30402_v63 }
 0x316   : > { %25348 = vmatmul.mubr.msk.f32.gmra.mrb[40].mxu1 %vm4952_vm6, %v30406_v5 }
 0x317   : > { %25350 = vmatprep.mubr.msk.f32.mxu1 %vm4952_vm6, %v30410_v20 }
 0x31a   : > { %25351 = vmatmul.mubr.msk.f32.gmra.mrb[42].mxu1 %vm4952_vm6, %v30414_v13 }
 0x31b   : > { %25353 = vmatprep.mubr.msk.f32.mxu1 %vm4952_vm6, %v30418_v7 }
 0x31e   : > { %25354 = vmatmul.mubr.msk.f32.gmra.mrb[44].mxu1 %vm4952_vm6, %v30422_v52 }
 0x31f   : > { %25356 = vmatprep.mubr.msk.f32.mxu1 %vm4952_vm6, %v30426_v1 }
 0x322   : > { %25357 = vmatmul.mubr.msk.f32.gmra.mrb[46].mxu1 %vm4952_vm6, %v30430_v8 }
 0x323   : > { %25359 = vmatprep.mubr.msk.f32.mxu1 %vm4952_vm6, %v30434_v45 }
 0x326   : > { %25360 = vmatmul.mubr.msk.f32.gmra.mrb[48].mxu1 %vm4952_vm6, %v30438_v16 }
 0x327   : > { %25362 = vmatprep.mubr.msk.f32.mxu1 %vm4952_vm6, %v30442_v58 }
 0x32a   : > { %25363 = vmatmul.mubr.msk.f32.gmra.mrb[50].mxu1 %vm4952_vm6, %v30446_v19 }
 0x32b   : > { %25365 = vmatprep.mubr.msk.f32.mxu1 %vm4952_vm6, %v30450_v22 }
 0x32e   : > { %25366 = vmatmul.mubr.msk.f32.gmra.mrb[52].mxu1 %vm4952_vm6, %v5683_v25 }
 0x32f   : > { %25368 = vmatprep.mubr.msk.f32.mxu1 %vm4952_vm6, %v5684_v32 }
 0x332   : > { %25369 = vmatmul.mubr.msk.f32.gmra.mrb[54].mxu1 %vm4952_vm6, %v5685_v33 }
 0x333   : > { %25371 = vmatprep.mubr.msk.f32.mxu1 %vm4952_vm6, %v5686_v30 }
 0x336   : > { %25372 = vmatmul.mubr.msk.f32.gmra.mrb[56].mxu1 %vm4952_vm6, %v5687_v42 }
 0x337   : > { %25374 = vmatprep.mubr.msk.f32.mxu1 %vm4952_vm6, %v5688_v36 }
 0x33a   : > { %25375 = vmatmul.mubr.msk.f32.gmra.mrb[58].mxu1 %vm4952_vm6, %v5689_v41 }
 0x33b   : > { %25377 = vmatprep.mubr.msk.f32.mxu1 %vm4952_vm6, %v5690_v49 }
 0x33d   : > { %v4802_v50 = vpop.permute.xlu1 %4801 }
 0x33e   : > { %4875 = vst.msk [vmem:[#allocation2 + $0x12b] sm:$0xff] %vm4839_vm8, %v4802_v50  ;;  %25378 = vmatmul.mubr.msk.f32.gmra.mrb[60].mxu1 %vm4952_vm6, %v5691_v31  ;;  %v4800_v53 = vpop.permute.xlu0 %4799  ;;  %v5697_v50 = vld [vmem:[#allocation2 + $0xfa] sm:$0xff] }
 0x33f   : > { %4874 = vst.msk [vmem:[#allocation2 + $0x123] sm:$0xff] %vm4839_vm8, %v4800_v53  ;;  %25380 = vmatprep.mubr.msk.f32.mxu1 %vm4952_vm6, %v5692_v17  ;;  %v5699_v53 = vld [vmem:[#allocation2 + $0x10a] sm:$0xff] }
 0x342   : > { %25381 = vmatmul.mubr.msk.f32.gmra.mrb[62].mxu1 %vm4952_vm6, %v5693_v15 }
 0x343   : > { %25383 = vmatprep.mubr.msk.f32.mxu1 %vm4952_vm6, %v5694_v54 }
 0x346   : > { %25384 = vmatmul.mubr.msk.f32.gmra.mrb[64].mxu1 %vm4952_vm6, %v5695_v56  ;;  %v6130_v35 = vld [vmem:[#allocation2 + $0x122] sm:$0xff]  ;;  %v6131_v46 = vld [vmem:[#allocation2 + $0x12a] sm:$0xff] }
 0x347   : > { %25386 = vmatprep.mubr.msk.f32.mxu1 %vm4952_vm6, %v5696_v21 }
 0x34a   : > { %25387 = vmatmul.mubr.msk.f32.gmra.mrb[66].mxu1 %vm4952_vm6, %v5697_v50 }
 0x34b   : > { %25389 = vmatprep.mubr.msk.f32.mxu1 %vm4952_vm6, %v5698_v60 }
 0x34e   : > { %25390 = vmatmul.mubr.msk.f32.gmra.mrb[68].mxu1 %vm4952_vm6, %v5699_v53 }
 0x34f   : > { %25392 = vmatprep.mubr.msk.f32.mxu1 %vm4952_vm6, %v5700_v39 }
 0x352   : > { %25393 = vmatmul.mubr.msk.f32.gmra.mrb[70].mxu1 %vm4952_vm6, %v5701_v3 }
 0x353   : > { %25399 = vmatprep.mubr.msk.f32.mxu1 %vm4952_vm6, %v30388_v59  ;;  %v6532_v59 = vld [vmem:[#allocation2 + $0x43] sm:$0xff] }
 0x356   : > { %25400 = vmatmul.mubr.msk.f32.vlgmr.msra.gmra.mrb[36].mxu1 %vm4952_vm6, %v30398_v48  ;;  %v6533_v48 = vld [vmem:[#allocation2 + $0x4b] sm:$0xff] }
 0x357   : > { %27374 = vmatpush3.bf16.msk.msra.mxu1 %vm29993_vm5, %v30385_v23  ;;  %25402 = vmatprep.mubr.msk.f32.mxu1 %vm4952_vm6, %v30402_v63  ;;  %v6531_v23 = vld [vmem:[#allocation2 + $0x3b] sm:$0xff] }
 0x358   : > { %27377 = vmatprep.subr.msk.bf16.mxu1 %vm29993_vm5, %v27375_v55  ;;  %v6535_v63 = vld [vmem:[#allocation2 + $0x5b] sm:$0xff] }
 0x35a   : > { %25403 = vmatmul.mubr.msk.f32.gmra.mrb[38].mxu1 %vm4952_vm6, %v30406_v5  ;;  %v6536_v5 = vld [vmem:[#allocation2 + $0x63] sm:$0xff] }
 0x35b   : > { %25405 = vmatprep.mubr.msk.f32.mxu1 %vm4952_vm6, %v30410_v20  ;;  %v6537_v20 = vld [vmem:[#allocation2 + $0x6b] sm:$0xff] }
 0x35e   : > { %25406 = vmatmul.mubr.msk.f32.gmra.mrb[40].mxu1 %vm4952_vm6, %v30414_v13  ;;  %v6538_v13 = vld [vmem:[#allocation2 + $0x73] sm:$0xff] }
 0x35f   : > { %25408 = vmatprep.mubr.msk.f32.mxu1 %vm4952_vm6, %v30418_v7  ;;  %v6539_v7 = vld [vmem:[#allocation2 + $0x7b] sm:$0xff] }
 0x362   : > { %25409 = vmatmul.mubr.msk.f32.gmra.mrb[42].mxu1 %vm4952_vm6, %v30422_v52  ;;  %v6540_v52 = vld [vmem:[#allocation2 + $0x83] sm:$0xff] }
 0x363   : > { %25411 = vmatprep.mubr.msk.f32.mxu1 %vm4952_vm6, %v30426_v1  ;;  %v6541_v1 = vld [vmem:[#allocation2 + $0x8b] sm:$0xff] }
 0x366   : > { %25412 = vmatmul.mubr.msk.f32.gmra.mrb[44].mxu1 %vm4952_vm6, %v30430_v8  ;;  %v6542_v8 = vld [vmem:[#allocation2 + $0x93] sm:$0xff] }
 0x367   : > { %25414 = vmatprep.mubr.msk.f32.mxu1 %vm4952_vm6, %v30434_v45  ;;  %v6543_v45 = vld [vmem:[#allocation2 + $0x9b] sm:$0xff] }
 0x36a   : > { %25415 = vmatmul.mubr.msk.f32.gmra.mrb[46].mxu1 %vm4952_vm6, %v30438_v16  ;;  %v6544_v16 = vld [vmem:[#allocation2 + $0xa3] sm:$0xff] }
 0x36b   : > { %25417 = vmatprep.mubr.msk.f32.mxu1 %vm4952_vm6, %v30442_v58  ;;  %v6545_v58 = vld [vmem:[#allocation2 + $0xab] sm:$0xff] }
 0x36e   : > { %25418 = vmatmul.mubr.msk.f32.gmra.mrb[48].mxu1 %vm4952_vm6, %v30446_v19  ;;  %v6546_v19 = vld [vmem:[#allocation2 + $0xb3] sm:$0xff] }
 0x36f   : > { %25420 = vmatprep.mubr.msk.f32.mxu1 %vm4952_vm6, %v30450_v22  ;;  %v6547_v22 = vld [vmem:[#allocation2 + $0xbb] sm:$0xff] }
 0x372   : > { %25421 = vmatmul.mubr.msk.f32.gmra.mrb[50].mxu1 %vm4952_vm6, %v5683_v25  ;;  %v6548_v25 = vld [vmem:[#allocation2 + $0xc3] sm:$0xff] }
 0x373   : > { %25423 = vmatprep.mubr.msk.f32.mxu1 %vm4952_vm6, %v5684_v32  ;;  %v6549_v32 = vld [vmem:[#allocation2 + $0xcb] sm:$0xff] }
 0x376   : > { %25424 = vmatmul.mubr.msk.f32.gmra.mrb[52].mxu1 %vm4952_vm6, %v5685_v33  ;;  %v6550_v33 = vld [vmem:[#allocation2 + $0xd3] sm:$0xff] }
 0x377   : > { %25426 = vmatprep.mubr.msk.f32.mxu1 %vm4952_vm6, %v5686_v30  ;;  %v6551_v30 = vld [vmem:[#allocation2 + $0xdb] sm:$0xff] }
 0x37a   : > { %25427 = vmatmul.mubr.msk.f32.gmra.mrb[54].mxu1 %vm4952_vm6, %v5687_v42  ;;  %v6552_v42 = vld [vmem:[#allocation2 + $0xe3] sm:$0xff] }
 0x37b   : > { %25429 = vmatprep.mubr.msk.f32.mxu1 %vm4952_vm6, %v5688_v36  ;;  %v6553_v36 = vld [vmem:[#allocation2 + $0xeb] sm:$0xff] }
 0x37e   : > { %25430 = vmatmul.mubr.msk.f32.gmra.mrb[56].mxu1 %vm4952_vm6, %v5689_v41  ;;  %v6554_v41 = vld [vmem:[#allocation2 + $0xf3] sm:$0xff] }
 0x37f   : > { %25432 = vmatprep.mubr.msk.f32.mxu1 %vm4952_vm6, %v5690_v49  ;;  %v6555_v49 = vld [vmem:[#allocation2 + $0xfb] sm:$0xff] }
 0x382   : > { %25433 = vmatmul.mubr.msk.f32.gmra.mrb[58].mxu1 %vm4952_vm6, %v5691_v31  ;;  %v6556_v31 = vld [vmem:[#allocation2 + $0x103] sm:$0xff] }
 0x383   : > { %25435 = vmatprep.mubr.msk.f32.mxu1 %vm4952_vm6, %v5692_v17  ;;  %v6530_v17 = vld [vmem:[#allocation2 + $0x33] sm:$0xff] }
 0x386   : > { %25436 = vmatmul.mubr.msk.f32.gmra.mrb[60].mxu1 %vm4952_vm6, %v5693_v15  ;;  %v6529_v15 = vld [vmem:[#allocation2 + $0x2b] sm:$0xff] }
 0x387   : > { %25438 = vmatprep.mubr.msk.f32.mxu1 %vm4952_vm6, %v5694_v54  ;;  %v6528_v54 = vld [vmem:[#allocation2 + $0x23] sm:$0xff] }
 0x38a   : > { %25439 = vmatmul.mubr.msk.f32.gmra.mrb[62].mxu1 %vm4952_vm6, %v5695_v56  ;;  %v7422_v56 = vld [vmem:[%s33097_s4 + $0x48] sm:$0xff] }
 0x38b   : > { %25441 = vmatprep.mubr.msk.f32.mxu1 %vm4952_vm6, %v5696_v21  ;;  %v7423_v21 = vld [vmem:[%s33097_s4 + $0x50] sm:$0xf] }
 0x38e   : > { %25442 = vmatmul.mubr.msk.f32.gmra.mrb[64].mxu1 %vm4952_vm6, %v5697_v50  ;;  %v6557_v50 = vld [vmem:[#allocation2 + $0x10b] sm:$0xff] }
 0x38f   : > { %25444 = vmatprep.mubr.msk.f32.mxu1 %vm4952_vm6, %v5698_v60  ;;  %v6526_v60 = vld [vmem:[#allocation2 + $0x13] sm:$0xff] }
 0x392   : > { %25445 = vmatmul.mubr.msk.f32.gmra.mrb[66].mxu1 %vm4952_vm6, %v5699_v53  ;;  %v6558_v53 = vld [vmem:[#allocation2 + $0x113] sm:$0xff] }
 0x393   : > { %25447 = vmatprep.mubr.msk.f32.mxu1 %vm4952_vm6, %v5700_v39  ;;  %v30544_v39 = vpack.c.bf16 %v7423_v21, %v7422_v56  ;;  %v6561_v56 = vld [vmem:[#allocation2 + $0x12b] sm:$0xff]  ;;  %v7852_v21 = vld [vmem:[%s33097_s4 + $0x54] sm:$0xff] }
 0x396   : > { %25448 = vmatmul.mubr.msk.f32.gmra.mrb[68].mxu1 %vm4952_vm6, %v5701_v3  ;;  %v6527_v3 = vld [vmem:[#allocation2 + $0x1b] sm:$0xff] }
 0x397   : > { %25450 = vmatprep.mubr.msk.f32.mxu1 %vm4952_vm6, %v6130_v35  ;;  %v6559_v35 = vld [vmem:[#allocation2 + $0x11b] sm:$0xff] }
 0x39a   : > { %25451 = vmatmul.mubr.msk.f32.gmra.mrb[70].mxu1 %vm4952_vm6, %v6131_v46  ;;  %v6560_v46 = vld [vmem:[#allocation2 + $0x123] sm:$0xff] }
 0x39b   : > { %25457 = vmatprep.mubr.msk.f32.mxu1 %vm4952_vm6, %v6526_v60  ;;  %v7853_v60 = vld [vmem:[%s33097_s4 + $0x5c] sm:$0xf] }
 0x39e   : > { %25458 = vmatmul.mubr.msk.f32.vlgmr.msra.gmra.mrb[36].mxu1 %vm4952_vm6, %v6527_v3  ;;  %v6956_v3 = vld [vmem:[#allocation2 + $0x14] sm:$0xff] }
 0x39f   : > { %27380 = vmatpush3.bf16.msk.msra.mxu1 %vm29993_vm5, %v27375_v55  ;;  %25460 = vmatprep.mubr.msk.f32.mxu1 %vm4952_vm6, %v6528_v54  ;;  %v6534_v55 = vld [vmem:[#allocation2 + $0x53] sm:$0xff]  ;;  %v30593_v54 = vpack.c.bf16 %v7853_v60, %v7852_v21  ;;  %v8282_v60 = vld [vmem:[%s33097_s4 + $0x60] sm:$0xff] }
 0x3a0   : > { %27383 = vmatprep.subr.msk.bf16.mxu1 %vm29993_vm5, %v30544_v39  ;;  %v6991_v21 = vld [vmem:[#allocation2 + $0x12c] sm:$0xff] }
 0x3a2   : > { %25461 = vmatmul.mubr.msk.f32.gmra.mrb[38].mxu1 %vm4952_vm6, %v6529_v15  ;;  %v6957_v15 = vld [vmem:[#allocation2 + $0x1c] sm:$0xff] }
 0x3a3   : > { %25463 = vmatprep.mubr.msk.f32.mxu1 %vm4952_vm6, %v6530_v17  ;;  %v30596_v17 = vld [vmem:[#allocation2 + $0x24] sm:$0xff] }
 0x3a6   : > { %25464 = vmatmul.mubr.msk.f32.gmra.mrb[40].mxu1 %vm4952_vm6, %v6531_v23  ;;  %v30606_v23 = vld [vmem:[#allocation2 + $0x2c] sm:$0xff] }
 0x3a7   : > { %25466 = vmatprep.mubr.msk.f32.mxu1 %vm4952_vm6, %v6532_v59  ;;  %v30610_v59 = vld [vmem:[#allocation2 + $0x34] sm:$0xff] }
 0x3aa   : > { %25467 = vmatmul.mubr.msk.f32.gmra.mrb[42].mxu1 %vm4952_vm6, %v6533_v48  ;;  %v30614_v48 = vld [vmem:[#allocation2 + $0x3c] sm:$0xff] }
 0x3ab   : > { %25469 = vmatprep.mubr.msk.f32.mxu1 %vm4952_vm6, %v6534_v55  ;;  %v30622_v55 = vld [vmem:[#allocation2 + $0x4c] sm:$0xff] }
 0x3ae   : > { %25470 = vmatmul.mubr.msk.f32.gmra.mrb[44].mxu1 %vm4952_vm6, %v6535_v63  ;;  %v30626_v63 = vld [vmem:[#allocation2 + $0x54] sm:$0xff] }
 0x3af   : > { %25472 = vmatprep.mubr.msk.f32.mxu1 %vm4952_vm6, %v6536_v5  ;;  %v30630_v5 = vld [vmem:[#allocation2 + $0x5c] sm:$0xff] }
 0x3b2   : > { %25473 = vmatmul.mubr.msk.f32.gmra.mrb[46].mxu1 %vm4952_vm6, %v6537_v20  ;;  %v30634_v20 = vld [vmem:[#allocation2 + $0x64] sm:$0xff] }
 0x3b3   : > { %25475 = vmatprep.mubr.msk.f32.mxu1 %vm4952_vm6, %v6538_v13  ;;  %v30638_v13 = vld [vmem:[#allocation2 + $0x6c] sm:$0xff] }
 0x3b6   : > { %25476 = vmatmul.mubr.msk.f32.gmra.mrb[48].mxu1 %vm4952_vm6, %v6539_v7  ;;  %v30642_v7 = vld [vmem:[#allocation2 + $0x74] sm:$0xff] }
 0x3b7   : > { %25478 = vmatprep.mubr.msk.f32.mxu1 %vm4952_vm6, %v6540_v52  ;;  %v6969_v52 = vld [vmem:[#allocation2 + $0x7c] sm:$0xff] }
 0x3ba   : > { %25479 = vmatmul.mubr.msk.f32.gmra.mrb[50].mxu1 %vm4952_vm6, %v6541_v1  ;;  %v6970_v1 = vld [vmem:[#allocation2 + $0x84] sm:$0xff] }
 0x3bb   : > { %25481 = vmatprep.mubr.msk.f32.mxu1 %vm4952_vm6, %v6542_v8  ;;  %v6971_v8 = vld [vmem:[#allocation2 + $0x8c] sm:$0xff] }
 0x3be   : > { %25482 = vmatmul.mubr.msk.f32.gmra.mrb[52].mxu1 %vm4952_vm6, %v6543_v45  ;;  %v6972_v45 = vld [vmem:[#allocation2 + $0x94] sm:$0xff] }
 0x3bf   : > { %25484 = vmatprep.mubr.msk.f32.mxu1 %vm4952_vm6, %v6544_v16  ;;  %v6973_v16 = vld [vmem:[#allocation2 + $0x9c] sm:$0xff] }
 0x3c2   : > { %25485 = vmatmul.mubr.msk.f32.gmra.mrb[54].mxu1 %vm4952_vm6, %v6545_v58  ;;  %v6974_v58 = vld [vmem:[#allocation2 + $0xa4] sm:$0xff] }
 0x3c3   : > { %25487 = vmatprep.mubr.msk.f32.mxu1 %vm4952_vm6, %v6546_v19  ;;  %v6975_v19 = vld [vmem:[#allocation2 + $0xac] sm:$0xff] }
 0x3c6   : > { %25488 = vmatmul.mubr.msk.f32.gmra.mrb[56].mxu1 %vm4952_vm6, %v6547_v22  ;;  %v6976_v22 = vld [vmem:[#allocation2 + $0xb4] sm:$0xff] }
 0x3c7   : > { %25490 = vmatprep.mubr.msk.f32.mxu1 %vm4952_vm6, %v6548_v25  ;;  %v6977_v25 = vld [vmem:[#allocation2 + $0xbc] sm:$0xff] }
 0x3ca   : > { %25491 = vmatmul.mubr.msk.f32.gmra.mrb[58].mxu1 %vm4952_vm6, %v6549_v32  ;;  %v6978_v32 = vld [vmem:[#allocation2 + $0xc4] sm:$0xff] }
 0x3cb   : > { %25493 = vmatprep.mubr.msk.f32.mxu1 %vm4952_vm6, %v6550_v33  ;;  %v6979_v33 = vld [vmem:[#allocation2 + $0xcc] sm:$0xff] }
 0x3ce   : > { %25494 = vmatmul.mubr.msk.f32.gmra.mrb[60].mxu1 %vm4952_vm6, %v6551_v30  ;;  %v6980_v30 = vld [vmem:[#allocation2 + $0xd4] sm:$0xff] }
 0x3cf   : > { %25496 = vmatprep.mubr.msk.f32.mxu1 %vm4952_vm6, %v6552_v42  ;;  %v6981_v42 = vld [vmem:[#allocation2 + $0xdc] sm:$0xff] }
 0x3d2   : > { %25497 = vmatmul.mubr.msk.f32.gmra.mrb[62].mxu1 %vm4952_vm6, %v6553_v36  ;;  %v6982_v36 = vld [vmem:[#allocation2 + $0xe4] sm:$0xff] }
 0x3d3   : > { %25499 = vmatprep.mubr.msk.f32.mxu1 %vm4952_vm6, %v6554_v41  ;;  %v6983_v41 = vld [vmem:[#allocation2 + $0xec] sm:$0xff] }
 0x3d6   : > { %25500 = vmatmul.mubr.msk.f32.gmra.mrb[64].mxu1 %vm4952_vm6, %v6555_v49  ;;  %v6984_v49 = vld [vmem:[#allocation2 + $0xf4] sm:$0xff] }
 0x3d7   : > { %25502 = vmatprep.mubr.msk.f32.mxu1 %vm4952_vm6, %v6556_v31  ;;  %v6985_v31 = vld [vmem:[#allocation2 + $0xfc] sm:$0xff] }
 0x3da   : > { %25503 = vmatmul.mubr.msk.f32.gmra.mrb[66].mxu1 %vm4952_vm6, %v6557_v50  ;;  %v6986_v50 = vld [vmem:[#allocation2 + $0x104] sm:$0xff] }
 0x3db   : > { %25505 = vmatprep.mubr.msk.f32.mxu1 %vm4952_vm6, %v6558_v53  ;;  %v6987_v53 = vld [vmem:[#allocation2 + $0x10c] sm:$0xff] }
 0x3de   : > { %25506 = vmatmul.mubr.msk.f32.gmra.mrb[68].mxu1 %vm4952_vm6, %v6559_v35  ;;  %v6988_v35 = vld [vmem:[#allocation2 + $0x114] sm:$0xff] }
 0x3df   : > { %25508 = vmatprep.mubr.msk.f32.mxu1 %vm4952_vm6, %v6560_v46  ;;  %v6989_v46 = vld [vmem:[#allocation2 + $0x11c] sm:$0xff] }
 0x3e2   : > { %25509 = vmatmul.mubr.msk.f32.gmra.mrb[70].mxu1 %vm4952_vm6, %v6561_v56  ;;  %v6990_v56 = vld [vmem:[#allocation2 + $0x124] sm:$0xff] }
 0x3e3   : > { %25515 = vmatprep.mubr.msk.f32.mxu1 %vm4952_vm6, %v6956_v3  ;;  %v8283_v3 = vld [vmem:[%s33097_s4 + $0x68] sm:$0xf] }
 0x3e6   : > { %25516 = vmatmul.mubr.msk.f32.vlgmr.msra.gmra.mrb[36].mxu1 %vm4952_vm6, %v6957_v15  ;;  %v27393_v15 = vpack.c.bf16 %v8283_v3, %v8282_v60  ;;  %v7849_v60 = vld [vmem:[#allocation2 + $0x12d] sm:$0xff]  ;;  %v7851_v3 = vld [vmem:[#allocation2 + $0x13d] sm:$0xff] }
 0x3e7   : > { %27386 = vmatpush3.bf16.msk.msra.mxu1 %vm29993_vm5, %v30544_v39  ;;  %25518 = vmatprep.mubr.msk.f32.mxu1 %vm4952_vm6, %v30596_v17  ;;  %v30618_v39 = vld [vmem:[#allocation2 + $0x44] sm:$0xff] }
 0x3e8   : > { %27389 = vmatprep.subr.msk.bf16.mxu1 %vm29993_vm5, %v30593_v54 }
 0x3ea   : > { %25519 = vmatmul.mubr.msk.f32.gmra.mrb[38].mxu1 %vm4952_vm6, %v30606_v23 }
 0x3eb   : > { %25521 = vmatprep.mubr.msk.f32.mxu1 %vm4952_vm6, %v30610_v59 }
 0x3ee   : > { %25522 = vmatmul.mubr.msk.f32.gmra.mrb[40].mxu1 %vm4952_vm6, %v30614_v48 }
 0x3ef   : > { %25524 = vmatprep.mubr.msk.f32.mxu1 %vm4952_vm6, %v30618_v39 }
 0x3f2   : > { %25525 = vmatmul.mubr.msk.f32.gmra.mrb[42].mxu1 %vm4952_vm6, %v30622_v55 }
 0x3f3   : > { %25527 = vmatprep.mubr.msk.f32.mxu1 %vm4952_vm6, %v30626_v63 }
 0x3f6   : > { %25528 = vmatmul.mubr.msk.f32.gmra.mrb[44].mxu1 %vm4952_vm6, %v30630_v5 }
 0x3f7   : > { %25530 = vmatprep.mubr.msk.f32.mxu1 %vm4952_vm6, %v30634_v20 }
 0x3fa   : > { %25531 = vmatmul.mubr.msk.f32.gmra.mrb[46].mxu1 %vm4952_vm6, %v30638_v13 }
 0x3fb   : > { %25533 = vmatprep.mubr.msk.f32.mxu1 %vm4952_vm6, %v30642_v7 }
 0x3fe   : > { %25534 = vmatmul.mubr.msk.f32.gmra.mrb[48].mxu1 %vm4952_vm6, %v6969_v52 }
 0x3ff   : > { %25536 = vmatprep.mubr.msk.f32.mxu1 %vm4952_vm6, %v6970_v1 }
 0x402   : > { %25537 = vmatmul.mubr.msk.f32.gmra.mrb[50].mxu1 %vm4952_vm6, %v6971_v8 }
 0x403   : > { %25539 = vmatprep.mubr.msk.f32.mxu1 %vm4952_vm6, %v6972_v45 }
 0x406   : > { %25540 = vmatmul.mubr.msk.f32.gmra.mrb[52].mxu1 %vm4952_vm6, %v6973_v16 }
 0x407   : > { %25542 = vmatprep.mubr.msk.f32.mxu1 %vm4952_vm6, %v6974_v58 }
 0x40a   : > { %25543 = vmatmul.mubr.msk.f32.gmra.mrb[54].mxu1 %vm4952_vm6, %v6975_v19 }
 0x40b   : > { %25545 = vmatprep.mubr.msk.f32.mxu1 %vm4952_vm6, %v6976_v22 }
 0x40e   : > { %25546 = vmatmul.mubr.msk.f32.gmra.mrb[56].mxu1 %vm4952_vm6, %v6977_v25 }
 0x40f   : > { %25548 = vmatprep.mubr.msk.f32.mxu1 %vm4952_vm6, %v6978_v32 }
 0x412   : > { %25549 = vmatmul.mubr.msk.f32.gmra.mrb[58].mxu1 %vm4952_vm6, %v6979_v33 }
 0x413   : > { %25551 = vmatprep.mubr.msk.f32.mxu1 %vm4952_vm6, %v6980_v30 }
 0x416   : > { %25552 = vmatmul.mubr.msk.f32.gmra.mrb[60].mxu1 %vm4952_vm6, %v6981_v42 }
 0x417   : > { %25554 = vmatprep.mubr.msk.f32.mxu1 %vm4952_vm6, %v6982_v36 }
 0x41a   : > { %25555 = vmatmul.mubr.msk.f32.gmra.mrb[62].mxu1 %vm4952_vm6, %v6983_v41 }
 0x41b   : > { %25557 = vmatprep.mubr.msk.f32.mxu1 %vm4952_vm6, %v6984_v49 }
 0x41e   : > { %25558 = vmatmul.mubr.msk.f32.gmra.mrb[64].mxu1 %vm4952_vm6, %v6985_v31 }
 0x41f   : > { %25560 = vmatprep.mubr.msk.f32.mxu1 %vm4952_vm6, %v6986_v50 }
 0x422   : > { %25561 = vmatmul.mubr.msk.f32.gmra.mrb[66].mxu1 %vm4952_vm6, %v6987_v53 }
 0x423   : > { %25563 = vmatprep.mubr.msk.f32.mxu1 %vm4952_vm6, %v6988_v35 }
 0x426   : > { %25564 = vmatmul.mubr.msk.f32.gmra.mrb[68].mxu1 %vm4952_vm6, %v6989_v46 }
 0x427   : > { %25566 = vmatprep.mubr.msk.f32.mxu1 %vm4952_vm6, %v6990_v56 }
 0x42a   : > { %25567 = vmatmul.mubr.msk.f32.gmra.mrb[70].mxu1 %vm4952_vm6, %v6991_v21 }
 0x42b   : > { %25573 = vmatprep.mubr.msk.f32.mxu1 %vm4952_vm6, %v30596_v17  ;;  %v7421_v17 = vld [vmem:[#allocation2 + $0x13c] sm:$0xff] }
 0x42e   : > { %25574 = vmatmul.mubr.msk.f32.vlgmr.msra.gmra.mrb[36].mxu1 %vm4952_vm6, %v30606_v23  ;;  %v7816_v23 = vld [vmem:[#allocation2 + $0x25] sm:$0xff] }
 0x42f   : > { %27392 = vmatpush3.bf16.msk.msra.mxu1 %vm29993_vm5, %v30593_v54  ;;  %25576 = vmatprep.mubr.msk.f32.mxu1 %vm4952_vm6, %v30610_v59  ;;  %v7420_v54 = vld [vmem:[#allocation2 + $0x134] sm:$0xff] }
 0x430   : > { %27395 = vmatprep.subr.msk.bf16.mxu1 %vm29993_vm5, %v27393_v15  ;;  %v7817_v59 = vld [vmem:[#allocation2 + $0x2d] sm:$0xff] }
 0x432   : > { %25577 = vmatmul.mubr.msk.f32.gmra.mrb[38].mxu1 %vm4952_vm6, %v30614_v48  ;;  %v7818_v48 = vld [vmem:[#allocation2 + $0x35] sm:$0xff] }
 0x433   : > { %25579 = vmatprep.mubr.msk.f32.mxu1 %vm4952_vm6, %v30618_v39  ;;  %v7819_v39 = vld [vmem:[#allocation2 + $0x3d] sm:$0xff] }
 0x436   : > { %25580 = vmatmul.mubr.msk.f32.gmra.mrb[40].mxu1 %vm4952_vm6, %v30622_v55  ;;  %v7820_v55 = vld [vmem:[#allocation2 + $0x45] sm:$0xff] }
 0x437   : > { %25582 = vmatprep.mubr.msk.f32.mxu1 %vm4952_vm6, %v30626_v63  ;;  %v7821_v63 = vld [vmem:[#allocation2 + $0x4d] sm:$0xff] }
 0x43a   : > { %25583 = vmatmul.mubr.msk.f32.gmra.mrb[42].mxu1 %vm4952_vm6, %v30630_v5  ;;  %v7822_v5 = vld [vmem:[#allocation2 + $0x55] sm:$0xff] }
 0x43b   : > { %25585 = vmatprep.mubr.msk.f32.mxu1 %vm4952_vm6, %v30634_v20  ;;  %v7823_v20 = vld [vmem:[#allocation2 + $0x5d] sm:$0xff] }
 0x43e   : > { %25586 = vmatmul.mubr.msk.f32.gmra.mrb[44].mxu1 %vm4952_vm6, %v30638_v13  ;;  %v7824_v13 = vld [vmem:[#allocation2 + $0x65] sm:$0xff] }
 0x43f   : > { %25588 = vmatprep.mubr.msk.f32.mxu1 %vm4952_vm6, %v30642_v7  ;;  %v7826_v7 = vld [vmem:[#allocation2 + $0x75] sm:$0xff] }
 0x442   : > { %25589 = vmatmul.mubr.msk.f32.gmra.mrb[46].mxu1 %vm4952_vm6, %v6969_v52  ;;  %v7827_v52 = vld [vmem:[#allocation2 + $0x7d] sm:$0xff] }
 0x443   : > { %25591 = vmatprep.mubr.msk.f32.mxu1 %vm4952_vm6, %v6970_v1  ;;  %v7828_v1 = vld [vmem:[#allocation2 + $0x85] sm:$0xff] }
 0x446   : > { %25592 = vmatmul.mubr.msk.f32.gmra.mrb[48].mxu1 %vm4952_vm6, %v6971_v8  ;;  %v7829_v8 = vld [vmem:[#allocation2 + $0x8d] sm:$0xff] }
 0x447   : > { %25594 = vmatprep.mubr.msk.f32.mxu1 %vm4952_vm6, %v6972_v45  ;;  %v7830_v45 = vld [vmem:[#allocation2 + $0x95] sm:$0xff] }
 0x44a   : > { %25595 = vmatmul.mubr.msk.f32.gmra.mrb[50].mxu1 %vm4952_vm6, %v6973_v16  ;;  %v7831_v16 = vld [vmem:[#allocation2 + $0x9d] sm:$0xff] }
 0x44b   : > { %25597 = vmatprep.mubr.msk.f32.mxu1 %vm4952_vm6, %v6974_v58  ;;  %v7832_v58 = vld [vmem:[#allocation2 + $0xa5] sm:$0xff] }
 0x44e   : > { %25598 = vmatmul.mubr.msk.f32.gmra.mrb[52].mxu1 %vm4952_vm6, %v6975_v19  ;;  %v7833_v19 = vld [vmem:[#allocation2 + $0xad] sm:$0xff] }
 0x44f   : > { %25600 = vmatprep.mubr.msk.f32.mxu1 %vm4952_vm6, %v6976_v22  ;;  %v7834_v22 = vld [vmem:[#allocation2 + $0xb5] sm:$0xff] }
 0x452   : > { %25601 = vmatmul.mubr.msk.f32.gmra.mrb[54].mxu1 %vm4952_vm6, %v6977_v25  ;;  %v7835_v25 = vld [vmem:[#allocation2 + $0xbd] sm:$0xff] }
 0x453   : > { %25603 = vmatprep.mubr.msk.f32.mxu1 %vm4952_vm6, %v6978_v32  ;;  %v7836_v32 = vld [vmem:[#allocation2 + $0xc5] sm:$0xff] }
 0x456   : > { %25604 = vmatmul.mubr.msk.f32.gmra.mrb[56].mxu1 %vm4952_vm6, %v6979_v33  ;;  %v7837_v33 = vld [vmem:[#allocation2 + $0xcd] sm:$0xff] }
 0x457   : > { %25606 = vmatprep.mubr.msk.f32.mxu1 %vm4952_vm6, %v6980_v30  ;;  %v7838_v30 = vld [vmem:[#allocation2 + $0xd5] sm:$0xff] }
 0x45a   : > { %25607 = vmatmul.mubr.msk.f32.gmra.mrb[58].mxu1 %vm4952_vm6, %v6981_v42  ;;  %v7839_v42 = vld [vmem:[#allocation2 + $0xdd] sm:$0xff] }
 0x45b   : > { %25609 = vmatprep.mubr.msk.f32.mxu1 %vm4952_vm6, %v6982_v36  ;;  %v7840_v36 = vld [vmem:[#allocation2 + $0xe5] sm:$0xff] }
 0x45e   : > { %25610 = vmatmul.mubr.msk.f32.gmra.mrb[60].mxu1 %vm4952_vm6, %v6983_v41  ;;  %v7841_v41 = vld [vmem:[#allocation2 + $0xed] sm:$0xff] }
 0x45f   : > { %25612 = vmatprep.mubr.msk.f32.mxu1 %vm4952_vm6, %v6984_v49  ;;  %v7842_v49 = vld [vmem:[#allocation2 + $0xf5] sm:$0xff] }
 0x462   : > { %25613 = vmatmul.mubr.msk.f32.gmra.mrb[62].mxu1 %vm4952_vm6, %v6985_v31  ;;  %v7843_v31 = vld [vmem:[#allocation2 + $0xfd] sm:$0xff] }
 0x463   : > { %25615 = vmatprep.mubr.msk.f32.mxu1 %vm4952_vm6, %v6986_v50  ;;  %v7844_v50 = vld [vmem:[#allocation2 + $0x105] sm:$0xff] }
 0x466   : > { %25616 = vmatmul.mubr.msk.f32.gmra.mrb[64].mxu1 %vm4952_vm6, %v6987_v53  ;;  %v7845_v53 = vld [vmem:[#allocation2 + $0x10d] sm:$0xff] }
 0x467   : > { %25618 = vmatprep.mubr.msk.f32.mxu1 %vm4952_vm6, %v6988_v35  ;;  %v7846_v35 = vld [vmem:[#allocation2 + $0x115] sm:$0xff] }
 0x46a   : > { %25619 = vmatmul.mubr.msk.f32.gmra.mrb[66].mxu1 %vm4952_vm6, %v6989_v46  ;;  %v7847_v46 = vld [vmem:[#allocation2 + $0x11d] sm:$0xff] }
 0x46b   : > { %25621 = vmatprep.mubr.msk.f32.mxu1 %vm4952_vm6, %v6990_v56  ;;  %v7848_v56 = vld [vmem:[#allocation2 + $0x125] sm:$0xff] }
 0x46e   : > { %25622 = vmatmul.mubr.msk.f32.gmra.mrb[68].mxu1 %vm4952_vm6, %v6991_v21  ;;  %v7850_v21 = vld [vmem:[#allocation2 + $0x135] sm:$0xff] }
 0x46f   : > { %25624 = vmatprep.mubr.msk.f32.mxu1 %vm4952_vm6, %v7420_v54  ;;  %v8247_v54 = vld [vmem:[#allocation2 + $0x2e] sm:$0xff] }
 0x472   : > { %25625 = vmatmul.mubr.msk.f32.gmra.mrb[70].mxu1 %vm4952_vm6, %v7421_v17  ;;  %v8248_v17 = vld [vmem:[#allocation2 + $0x36] sm:$0xff] }
 0x473   : > { %25631 = vmatprep.mubr.msk.f32.mxu1 %vm4952_vm6, %v7816_v23  ;;  %v8249_v23 = vld [vmem:[#allocation2 + $0x3e] sm:$0xff] }
 0x476   : > { %25632 = vmatmul.mubr.msk.f32.vlgmr.msra.gmra.mrb[36].mxu1 %vm4952_vm6, %v7817_v59  ;;  %v8250_v59 = vld [vmem:[#allocation2 + $0x46] sm:$0xff] }
 0x477   : > { %27398 = vmatpush3.bf16.msk.msra.mxu1 %vm29993_vm5, %v27393_v15  ;;  %25634 = vmatprep.mubr.msk.f32.mxu1 %vm4952_vm6, %v7818_v48  ;;  %v8246_v15 = vld [vmem:[#allocation2 + $0x26] sm:$0xff]  ;;  %v8251_v48 = vld [vmem:[#allocation2 + $0x4e] sm:$0xff]  ;;  %vm9120_vm5 = vcmask 130048  }
 0x47a   : > { %25635 = vmatmul.mubr.msk.f32.gmra.mrb[38].mxu1 %vm4952_vm6, %v7819_v39  ;;  %v8252_v39 = vld [vmem:[#allocation2 + $0x56] sm:$0xff] }
 0x47b   : > { %25637 = vmatprep.mubr.msk.f32.mxu1 %vm4952_vm6, %v7820_v55  ;;  %v8253_v55 = vld [vmem:[#allocation2 + $0x5e] sm:$0xff] }
 0x47e   : > { %25638 = vmatmul.mubr.msk.f32.gmra.mrb[40].mxu1 %vm4952_vm6, %v7821_v63  ;;  %v8254_v63 = vld [vmem:[#allocation2 + $0x66] sm:$0xff] }
 0x47f   : > { %25640 = vmatprep.mubr.msk.f32.mxu1 %vm4952_vm6, %v7822_v5  ;;  %v8255_v5 = vld [vmem:[#allocation2 + $0x6e] sm:$0xff] }
 0x482   : > { %25641 = vmatmul.mubr.msk.f32.gmra.mrb[42].mxu1 %vm4952_vm6, %v7823_v20  ;;  %v8256_v20 = vld [vmem:[#allocation2 + $0x76] sm:$0xff] }
 0x483   : > { %25643 = vmatprep.mubr.msk.f32.mxu1 %vm4952_vm6, %v7824_v13  ;;  %v8257_v13 = vld [vmem:[#allocation2 + $0x7e] sm:$0xff] }
 0x486   : > { %25644 = vmatmul.mubr.msk.f32.gmra.mrb[44].mxu1 %vm4952_vm6, %v7825_v0  ;;  %v8258_v0 = vld [vmem:[#allocation2 + $0x86] sm:$0xff] }
 0x487   : > { %25646 = vmatprep.mubr.msk.f32.mxu1 %vm4952_vm6, %v7826_v7  ;;  %v8259_v7 = vld [vmem:[#allocation2 + $0x8e] sm:$0xff] }
 0x48a   : > { %25647 = vmatmul.mubr.msk.f32.gmra.mrb[46].mxu1 %vm4952_vm6, %v7827_v52  ;;  %v8260_v52 = vld [vmem:[#allocation2 + $0x96] sm:$0xff] }
 0x48b   : > { %25649 = vmatprep.mubr.msk.f32.mxu1 %vm4952_vm6, %v7828_v1  ;;  %v8261_v1 = vld [vmem:[#allocation2 + $0x9e] sm:$0xff] }
 0x48e   : > { %25650 = vmatmul.mubr.msk.f32.gmra.mrb[48].mxu1 %vm4952_vm6, %v7829_v8  ;;  %v8262_v8 = vld [vmem:[#allocation2 + $0xa6] sm:$0xff] }
 0x48f   : > { %25652 = vmatprep.mubr.msk.f32.mxu1 %vm4952_vm6, %v7830_v45  ;;  %v8263_v45 = vld [vmem:[#allocation2 + $0xae] sm:$0xff] }
 0x492   : > { %25653 = vmatmul.mubr.msk.f32.gmra.mrb[50].mxu1 %vm4952_vm6, %v7831_v16  ;;  %v8264_v16 = vld [vmem:[#allocation2 + $0xb6] sm:$0xff] }
 0x493   : > { %25655 = vmatprep.mubr.msk.f32.mxu1 %vm4952_vm6, %v7832_v58  ;;  %v8265_v58 = vld [vmem:[#allocation2 + $0xbe] sm:$0xff] }
 0x496   : > { %25656 = vmatmul.mubr.msk.f32.gmra.mrb[52].mxu1 %vm4952_vm6, %v7833_v19  ;;  %v8266_v19 = vld [vmem:[#allocation2 + $0xc6] sm:$0xff] }
 0x497   : > { %25658 = vmatprep.mubr.msk.f32.mxu1 %vm4952_vm6, %v7834_v22  ;;  %v8267_v22 = vld [vmem:[#allocation2 + $0xce] sm:$0xff] }
 0x49a   : > { %25659 = vmatmul.mubr.msk.f32.gmra.mrb[54].mxu1 %vm4952_vm6, %v7835_v25  ;;  %v8268_v25 = vld [vmem:[#allocation2 + $0xd6] sm:$0xff] }
 0x49b   : > { %25661 = vmatprep.mubr.msk.f32.mxu1 %vm4952_vm6, %v7836_v32  ;;  %v8269_v32 = vld [vmem:[#allocation2 + $0xde] sm:$0xff] }
 0x49e   : > { %25662 = vmatmul.mubr.msk.f32.gmra.mrb[56].mxu1 %vm4952_vm6, %v7837_v33  ;;  %v8270_v33 = vld [vmem:[#allocation2 + $0xe6] sm:$0xff] }
 0x49f   : > { %25664 = vmatprep.mubr.msk.f32.mxu1 %vm4952_vm6, %v7838_v30  ;;  %v8271_v30 = vld [vmem:[#allocation2 + $0xee] sm:$0xff] }
 0x4a2   : > { %25665 = vmatmul.mubr.msk.f32.gmra.mrb[58].mxu1 %vm4952_vm6, %v7839_v42  ;;  %v8272_v42 = vld [vmem:[#allocation2 + $0xf6] sm:$0xff] }
 0x4a3   : > { %25667 = vmatprep.mubr.msk.f32.mxu1 %vm4952_vm6, %v7840_v36  ;;  %v8273_v36 = vld [vmem:[#allocation2 + $0xfe] sm:$0xff] }
 0x4a6   : > { %25668 = vmatmul.mubr.msk.f32.gmra.mrb[60].mxu1 %vm4952_vm6, %v7841_v41  ;;  %v8274_v41 = vld [vmem:[#allocation2 + $0x106] sm:$0xff] }
 0x4a7   : > { %25670 = vmatprep.mubr.msk.f32.mxu1 %vm4952_vm6, %v7842_v49  ;;  %v8275_v49 = vld [vmem:[#allocation2 + $0x10e] sm:$0xff] }
 0x4aa   : > { %25671 = vmatmul.mubr.msk.f32.gmra.mrb[62].mxu1 %vm4952_vm6, %v7843_v31  ;;  %v8276_v31 = vld [vmem:[#allocation2 + $0x116] sm:$0xff] }
 0x4ab   : > { %25673 = vmatprep.mubr.msk.f32.mxu1 %vm4952_vm6, %v7844_v50  ;;  %v8277_v50 = vld [vmem:[#allocation2 + $0x11e] sm:$0xff] }
 0x4ae   : > { %25674 = vmatmul.mubr.msk.f32.gmra.mrb[64].mxu1 %vm4952_vm6, %v7845_v53  ;;  %v8278_v53 = vld [vmem:[#allocation2 + $0x126] sm:$0xff] }
 0x4af   : > { %25676 = vmatprep.mubr.msk.f32.mxu1 %vm4952_vm6, %v7846_v35  ;;  %v8280_v35 = vld [vmem:[#allocation2 + $0x136] sm:$0xff] }
 0x4b2   : > { %25677 = vmatmul.mubr.msk.f32.gmra.mrb[66].mxu1 %vm4952_vm6, %v7847_v46  ;;  %v8279_v46 = vld [vmem:[#allocation2 + $0x12e] sm:$0xff] }
 0x4b3   : > { %25679 = vmatprep.mubr.msk.f32.mxu1 %vm4952_vm6, %v7848_v56  ;;  %v8281_v56 = vld [vmem:[#allocation2 + $0x13e] sm:$0xff] }
 0x4b6   : > { %25680 = vmatmul.mubr.msk.f32.gmra.mrb[68].mxu1 %vm4952_vm6, %v7849_v60  ;;  %v9119_v60 = vld [vmem:[%s33099_s6 + $0x18] sm:$0xff] }
 0x4b7   : > { %25682 = vmatprep.mubr.msk.f32.mxu1 %vm4952_vm6, %v7850_v21  ;;  %v9118_v21 = vld [vmem:[%s33099_s6 + $0x10] sm:$0xff] }
 0x4ba   : > { %25683 = vmatmul.mubr.msk.f32.gmra.mrb[70].mxu1 %vm4952_vm6, %v7851_v3  ;;  %v27399_v3 = vpack.c.bf16 %v9119_v60, %v9118_v21 }
 0x4bb   : > { %25689 = vmatprep.mubr.msk.f32.mxu1 %vm4952_vm6, %v8246_v15  ;;  %v30810_v15 = vld [vmem:[%s33098_s5] ss:$0 sm:$0xff] }
 0x4bc   : > { %27400 = vmatprep.subr.bf16.mxu0 %v27399_v3 }
 0x4bd   : > { %27402 = vmatpush3.bf16.msra.mxu0 %v27399_v3 }
 0x4be   : > { %25690 = vmatmul.mubr.msk.f32.vlgmr.msra.gmra.mrb[36].mxu1 %vm4952_vm6, %v8247_v54  ;;  %v9082_v54 = vld [vmem:[#allocation2 + $0x1] sm:$0xff] }
 0x4bf   : > { %25692 = vmatprep.mubr.msk.f32.mxu1 %vm4952_vm6, %v8248_v17  ;;  %v9080_v17 = vld [vmem:[%s33099_s6] sm:$0xff]  ;;  %25747 = vmatprep.mubr.msk.f32.mxu0 %vm9120_vm5, %v9082_v54 }
 0x4c2   : > { %25693 = vmatmul.mubr.msk.f32.gmra.mrb[38].mxu1 %vm4952_vm6, %v8249_v23  ;;  %v9081_v23 = vld [vmem:[%s33099_s6 + $0x8] sm:$0xff] }
 0x4c3   : > { %25695 = vmatprep.mubr.msk.f32.mxu1 %vm4952_vm6, %v8250_v59 }
 0x4c6   : > { %25696 = vmatmul.mubr.msk.f32.gmra.mrb[40].mxu1 %vm4952_vm6, %v8251_v48  ;;  %v27403_v48 = vpack.c.bf16 %v9081_v23, %v9080_v17 }
 0x4c7   : > { %25698 = vmatprep.mubr.msk.f32.mxu1 %vm4952_vm6, %v8252_v39  ;;  %v9083_v39 = vld [vmem:[#allocation2 + $0x9] sm:$0xff] }
 0x4c8   : > { %25748 = vmatmul.mubr.msk.f32.vlgmr.msra.gmra.mrb[36].mxu0 %vm9120_vm5, %v9083_v39  ;;  %27404 = vmatprep.subr.bf16.mxu0 %v27403_v48 }
 0x4c9   : > { %27406 = vmatpush3.bf16.msra.mxu0 %v27403_v48 }
 0x4ca   : > { %25699 = vmatmul.mubr.msk.f32.gmra.mrb[42].mxu1 %vm4952_vm6, %v8253_v55 }
 0x4cb   : > { %25701 = vmatprep.mubr.msk.f32.mxu1 %vm4952_vm6, %v8254_v63 }
 0x4ce   : > { %25702 = vmatmul.mubr.msk.f32.gmra.mrb[44].mxu1 %vm4952_vm6, %v8255_v5 }
 0x4cf   : > { %25704 = vmatprep.mubr.msk.f32.mxu1 %vm4952_vm6, %v8256_v20 }
 0x4d2   : > { %25705 = vmatmul.mubr.msk.f32.gmra.mrb[46].mxu1 %vm4952_vm6, %v8257_v13 }
 0x4d3   : > { %25707 = vmatprep.mubr.msk.f32.mxu1 %vm4952_vm6, %v8258_v0 }
 0x4d6   : > { %25708 = vmatmul.mubr.msk.f32.gmra.mrb[48].mxu1 %vm4952_vm6, %v8259_v7 }
 0x4d7   : > { %25710 = vmatprep.mubr.msk.f32.mxu1 %vm4952_vm6, %v8260_v52 }
 0x4da   : > { %25711 = vmatmul.mubr.msk.f32.gmra.mrb[50].mxu1 %vm4952_vm6, %v8261_v1 }
 0x4db   : > { %25713 = vmatprep.mubr.msk.f32.mxu1 %vm4952_vm6, %v8262_v8 }
 0x4de   : > { %25714 = vmatmul.mubr.msk.f32.gmra.mrb[52].mxu1 %vm4952_vm6, %v8263_v45 }
 0x4df   : > { %25716 = vmatprep.mubr.msk.f32.mxu1 %vm4952_vm6, %v8264_v16 }
 0x4e2   : > { %25717 = vmatmul.mubr.msk.f32.gmra.mrb[54].mxu1 %vm4952_vm6, %v8265_v58 }
 0x4e3   : > { %25719 = vmatprep.mubr.msk.f32.mxu1 %vm4952_vm6, %v8266_v19 }
 0x4e6   : > { %25720 = vmatmul.mubr.msk.f32.gmra.mrb[56].mxu1 %vm4952_vm6, %v8267_v22 }
 0x4e7   : > { %25722 = vmatprep.mubr.msk.f32.mxu1 %vm4952_vm6, %v8268_v25 }
 0x4ea   : > { %25723 = vmatmul.mubr.msk.f32.gmra.mrb[58].mxu1 %vm4952_vm6, %v8269_v32 }
 0x4eb   : > { %25725 = vmatprep.mubr.msk.f32.mxu1 %vm4952_vm6, %v8270_v33 }
 0x4ee   : > { %25726 = vmatmul.mubr.msk.f32.gmra.mrb[60].mxu1 %vm4952_vm6, %v8271_v30 }
 0x4ef   : > { %25728 = vmatprep.mubr.msk.f32.mxu1 %vm4952_vm6, %v8272_v42 }
 0x4f2   : > { %25729 = vmatmul.mubr.msk.f32.gmra.mrb[62].mxu1 %vm4952_vm6, %v8273_v36 }
 0x4f3   : > { %25731 = vmatprep.mubr.msk.f32.mxu1 %vm4952_vm6, %v8274_v41 }
 0x4f6   : > { %25732 = vmatmul.mubr.msk.f32.gmra.mrb[64].mxu1 %vm4952_vm6, %v8275_v49 }
 0x4f7   : > { %25734 = vmatprep.mubr.msk.f32.mxu1 %vm4952_vm6, %v8276_v31 }
 0x4fa   : > { %25735 = vmatmul.mubr.msk.f32.gmra.mrb[66].mxu1 %vm4952_vm6, %v8277_v50 }
 0x4fb   : > { %25737 = vmatprep.mubr.msk.f32.mxu1 %vm4952_vm6, %v8278_v53 }
 0x4fe   : > { %25738 = vmatmul.mubr.msk.f32.gmra.mrb[68].mxu1 %vm4952_vm6, %v8279_v46 }
 0x4ff   : > { %25740 = vmatprep.mubr.msk.f32.mxu1 %vm4952_vm6, %v8280_v35 }
 0x502   : > { %25741 = vmatmul.mubr.msk.f32.gmra.mrb[70].mxu1 %vm4952_vm6, %v8281_v56 }
 0x591   : > { %v25691_v59 = vpop.f32.mrb[36].mxu1 }
 0x592   : > { %v8684_v55 = vadd.f32 %v25691_v59, %v30810_v15  ;;  %v8461_v63 = vpop.f32.mrb[37].mxu1 }
 0x593   : > { %v8683_v5 = vadd.f32 %v30810_v15, %v8461_v63 }
 0x594   : > { %vm8720_vm6 = vcmp.ge.f32.partialorder %v8684_v55, 0.0  ;;  %v8756_v20 = vmul.f32 0.2, %v8684_v55 }
 0x595   : > { %vm8719_vm11 = vcmp.ge.f32.partialorder %v8683_v5, 0.0  ;;  %v8755_v13 = vmul.f32 0.2, %v8683_v5  ;;  %v25694_v0 = vpop.f32.mrb[38].mxu1 }
 0x596   : > { %v8686_v7 = vadd.f32 %v25694_v0, %v30810_v15  ;;  %v8471_v52 = vpop.f32.mrb[39].mxu1  ;;  %v8792_v1 = vsel %vm8720_vm6, %v8684_v55, %v8756_v20 }
 0x597   : > { %v8685_v8 = vadd.f32 %v30810_v15, %v8471_v52  ;;  %v8828_v45 = vmul.f32 %v8792_v1, %v30013_v40  ;;  %v8791_v16 = vsel %vm8719_vm11, %v8683_v5, %v8755_v13 }
 0x598   : > { %vm8722_vm12 = vcmp.ge.f32.partialorder %v8686_v7, 0.0  ;;  %v8758_v58 = vmul.f32 0.2, %v8686_v7  ;;  %v8827_v19 = vmul.f32 %v8791_v16, %v30003_v18 }
 0x599   : > { %vm8721_vm13 = vcmp.ge.f32.partialorder %v8685_v8, 0.0  ;;  %v8757_v22 = vmul.f32 0.2, %v8685_v8  ;;  %8901 = vrot.lane.b32.xlu1 %v8828_v45, %s28980_s16  ;;  %v25697_v25 = vpop.f32.mrb[40].mxu1 }
 0x59a   : > { %v8688_v32 = vadd.f32 %v25697_v25, %v30810_v15  ;;  %8899 = vrot.lane.b32.xlu0 %v8827_v19, %s28980_s16  ;;  %v8481_v33 = vpop.f32.mrb[41].mxu1  ;;  %v8794_v30 = vsel %vm8722_vm12, %v8686_v7, %v8758_v58 }
 0x59b   : > { %v8687_v42 = vadd.f32 %v30810_v15, %v8481_v33  ;;  %v8830_v36 = vmul.f32 %v8794_v30, %v30007_v26  ;;  %v8793_v41 = vsel %vm8721_vm13, %v8685_v8, %v8757_v22 }
 0x59c   : > { %vm8724_vm14 = vcmp.ge.f32.partialorder %v8688_v32, 0.0  ;;  %v8760_v49 = vmul.f32 0.2, %v8688_v32  ;;  %v8829_v31 = vmul.f32 %v8793_v41, %v30001_v10 }
 0x59d   : > { %vm8723_vm15 = vcmp.ge.f32.partialorder %v8687_v42, 0.0  ;;  %v8759_v50 = vmul.f32 0.2, %v8687_v42  ;;  %8905 = vrot.lane.b32.xlu1 %v8830_v36, %s28980_s16  ;;  %v25700_v53 = vpop.f32.mrb[42].mxu1 }
 0x59e   : > { %v8690_v35 = vadd.f32 %v25700_v53, %v30810_v15  ;;  %8903 = vrot.lane.b32.xlu0 %v8829_v31, %s28980_s16  ;;  %v8491_v46 = vpop.f32.mrb[43].mxu1  ;;  %v8796_v56 = vsel %vm8724_vm14, %v8688_v32, %v8760_v49 }
 0x59f   : > { %v8689_v21 = vadd.f32 %v30810_v15, %v8491_v46  ;;  %v8832_v60 = vmul.f32 %v8796_v56, %v30017_v27  ;;  %v8795_v3 = vsel %vm8723_vm15, %v8687_v42, %v8759_v50 }
 0x5a0   : > { %vm8726_vm2 = vcmp.ge.f32.partialorder %v8690_v35, 0.0  ;;  %v8762_v54 = vmul.f32 0.2, %v8690_v35  ;;  %v8831_v17 = vmul.f32 %v8795_v3, %v30023_v34 }
 0x5a1   : > { %vm8725_vm4 = vcmp.ge.f32.partialorder %v8689_v21, 0.0  ;;  %v8761_v23 = vmul.f32 0.2, %v8689_v21  ;;  %8909 = vrot.lane.b32.xlu1 %v8832_v60, %s28980_s16  ;;  %v25703_v59 = vpop.f32.mrb[44].mxu1 }
 0x5a2   : > { %v8692_v48 = vadd.f32 %v25703_v59, %v30810_v15  ;;  %8907 = vrot.lane.b32.xlu0 %v8831_v17, %s28980_s16  ;;  %v8501_v39 = vpop.f32.mrb[45].mxu1  ;;  %v8798_v55 = vsel %vm8726_vm2, %v8690_v35, %v8762_v54 }
 0x5a3   : > { %v8691_v63 = vadd.f32 %v30810_v15, %v8501_v39  ;;  %v8834_v5 = vmul.f32 %v8798_v55, %v30027_v37  ;;  %v8797_v20 = vsel %vm8725_vm4, %v8689_v21, %v8761_v23 }
 0x5a4   : > { %vm8728_vm7 = vcmp.ge.f32.partialorder %v8692_v48, 0.0  ;;  %v8764_v13 = vmul.f32 0.2, %v8692_v48  ;;  %v8833_v0 = vmul.f32 %v8797_v20, %v30033_v43 }
 0x5a5   : > { %vm8727_vm8 = vcmp.ge.f32.partialorder %v8691_v63, 0.0  ;;  %v8763_v7 = vmul.f32 0.2, %v8691_v63  ;;  %8913 = vrot.lane.b32.xlu1 %v8834_v5, %s28980_s16  ;;  %v25706_v52 = vpop.f32.mrb[46].mxu1 }
 0x5a6   : > { %v8694_v1 = vadd.f32 %v25706_v52, %v30810_v15  ;;  %8911 = vrot.lane.b32.xlu0 %v8833_v0, %s28980_s16  ;;  %v8511_v8 = vpop.f32.mrb[47].mxu1  ;;  %v8800_v45 = vsel %vm8728_vm7, %v8692_v48, %v8764_v13 }
 0x5a7   : > { %v8693_v16 = vadd.f32 %v30810_v15, %v8511_v8  ;;  %v8836_v58 = vmul.f32 %v8800_v45, %v30037_v47  ;;  %v8799_v19 = vsel %vm8727_vm8, %v8691_v63, %v8763_v7 }
 0x5a8   : > { %vm8730_vm9 = vcmp.ge.f32.partialorder %v8694_v1, 0.0  ;;  %v8766_v22 = vmul.f32 0.2, %v8694_v1  ;;  %v8835_v25 = vmul.f32 %v8799_v19, %v30043_v57 }
 0x5a9   : > { %vm8729_vm10 = vcmp.ge.f32.partialorder %v8693_v16, 0.0  ;;  %v8765_v32 = vmul.f32 0.2, %v8693_v16  ;;  %8917 = vrot.lane.b32.xlu1 %v8836_v58, %s28980_s16  ;;  %v25709_v33 = vpop.f32.mrb[48].mxu1 }
 0x5aa   : > { %v8696_v30 = vadd.f32 %v25709_v33, %v30810_v15  ;;  %8915 = vrot.lane.b32.xlu0 %v8835_v25, %s28980_s16  ;;  %v8521_v42 = vpop.f32.mrb[49].mxu1  ;;  %v8802_v36 = vsel %vm8730_vm9, %v8694_v1, %v8766_v22 }
 0x5ab   : > { %v8695_v41 = vadd.f32 %v30810_v15, %v8521_v42  ;;  %v8838_v49 = vmul.f32 %v8802_v36, %v30047_v61  ;;  %v8801_v31 = vsel %vm8729_vm10, %v8693_v16, %v8765_v32 }
 0x5ac   : > { %vm8732_vm6 = vcmp.ge.f32.partialorder %v8696_v30, 0.0  ;;  %v8768_v50 = vmul.f32 0.2, %v8696_v30  ;;  %v8837_v53 = vmul.f32 %v8801_v31, %v30049_v62 }
 0x5ad   : > { %vm8731_vm11 = vcmp.ge.f32.partialorder %v8695_v41, 0.0  ;;  %v8767_v35 = vmul.f32 0.2, %v8695_v41  ;;  %8921 = vrot.lane.b32.xlu1 %v8838_v49, %s28980_s16  ;;  %v25712_v46 = vpop.f32.mrb[50].mxu1 }
 0x5ae   : > { %v8698_v56 = vadd.f32 %v25712_v46, %v30810_v15  ;;  %8919 = vrot.lane.b32.xlu0 %v8837_v53, %s28980_s16  ;;  %v8531_v21 = vpop.f32.mrb[51].mxu1  ;;  %v8804_v60 = vsel %vm8732_vm6, %v8696_v30, %v8768_v50 }
 0x5af   : > { %v8697_v3 = vadd.f32 %v30810_v15, %v8531_v21  ;;  %v8840_v54 = vmul.f32 %v8804_v60, %v30056_v6  ;;  %v8803_v17 = vsel %vm8731_vm11, %v8695_v41, %v8767_v35 }
 0x5b0   : > { %vm8734_vm12 = vcmp.ge.f32.partialorder %v8698_v56, 0.0  ;;  %v8770_v23 = vmul.f32 0.2, %v8698_v56  ;;  %v8839_v59 = vmul.f32 %v8803_v17, %v30070_v29 }
 0x5b1   : > { %vm8733_vm13 = vcmp.ge.f32.partialorder %v8697_v3, 0.0  ;;  %v8769_v48 = vmul.f32 0.2, %v8697_v3  ;;  %8925 = vrot.lane.b32.xlu1 %v8840_v54, %s28980_s16  ;;  %v25715_v39 = vpop.f32.mrb[52].mxu1 }
 0x5b2   : > { %v8700_v55 = vadd.f32 %v25715_v39, %v30810_v15  ;;  %8923 = vrot.lane.b32.xlu0 %v8839_v59, %s28980_s16  ;;  %v8541_v63 = vpop.f32.mrb[53].mxu1  ;;  %v8806_v5 = vsel %vm8734_vm12, %v8698_v56, %v8770_v23 }
 0x5b3   : > { %v8699_v20 = vadd.f32 %v30810_v15, %v8541_v63  ;;  %v8842_v13 = vmul.f32 %v8806_v5, %v30074_v44  ;;  %v8805_v0 = vsel %vm8733_vm13, %v8697_v3, %v8769_v48 }
 0x5b4   : > { %vm8736_vm14 = vcmp.ge.f32.partialorder %v8700_v55, 0.0  ;;  %v8772_v7 = vmul.f32 0.2, %v8700_v55  ;;  %v8841_v52 = vmul.f32 %v8805_v0, %v30082_v4 }
 0x5b5   : > { %vm8735_vm15 = vcmp.ge.f32.partialorder %v8699_v20, 0.0  ;;  %v8771_v1 = vmul.f32 0.2, %v8699_v20  ;;  %8929 = vrot.lane.b32.xlu1 %v8842_v13, %s28980_s16  ;;  %v25718_v8 = vpop.f32.mrb[54].mxu1 }
 0x5b6   : > { %v8702_v45 = vadd.f32 %v25718_v8, %v30810_v15  ;;  %8927 = vrot.lane.b32.xlu0 %v8841_v52, %s28980_s16  ;;  %v8551_v16 = vpop.f32.mrb[55].mxu1  ;;  %v8808_v58 = vsel %vm8736_vm14, %v8700_v55, %v8772_v7 }
 0x5b7   : > { %v8701_v19 = vadd.f32 %v30810_v15, %v8551_v16  ;;  %v8844_v22 = vmul.f32 %v8808_v58, %v30088_v11  ;;  %v8807_v25 = vsel %vm8735_vm15, %v8699_v20, %v8771_v1 }
 0x5b8   : > { %vm8738_vm2 = vcmp.ge.f32.partialorder %v8702_v45, 0.0  ;;  %v8774_v32 = vmul.f32 0.2, %v8702_v45  ;;  %v8843_v33 = vmul.f32 %v8807_v25, %v30098_v2 }
 0x5b9   : > { %vm8737_vm4 = vcmp.ge.f32.partialorder %v8701_v19, 0.0  ;;  %v8773_v30 = vmul.f32 0.2, %v8701_v19  ;;  %8933 = vrot.lane.b32.xlu1 %v8844_v22, %s28980_s16  ;;  %v25721_v42 = vpop.f32.mrb[56].mxu1 }
 0x5ba   : > { %v8704_v36 = vadd.f32 %v25721_v42, %v30810_v15  ;;  %8931 = vrot.lane.b32.xlu0 %v8843_v33, %s28980_s16  ;;  %v8561_v41 = vpop.f32.mrb[57].mxu1  ;;  %v8810_v49 = vsel %vm8738_vm2, %v8702_v45, %v8774_v32  ;;  %v33152_v42 = vld [vmem:[#allocation3_spill] sm:$0xff] }
 0x5bb   : > { %v8703_v31 = vadd.f32 %v30810_v15, %v8561_v41  ;;  %v8846_v50 = vmul.f32 %v8810_v49, %v30104_v51  ;;  %v8809_v53 = vsel %vm8737_vm4, %v8701_v19, %v8773_v30 }
 0x5bc   : > { %vm8740_vm7 = vcmp.ge.f32.partialorder %v8704_v36, 0.0  ;;  %v8776_v35 = vmul.f32 0.2, %v8704_v36  ;;  %v8845_v46 = vmul.f32 %v8809_v53, %v30114_v9 }
 0x5bd   : > { %vm8739_vm8 = vcmp.ge.f32.partialorder %v8703_v31, 0.0  ;;  %v8775_v56 = vmul.f32 0.2, %v8703_v31  ;;  %8937 = vrot.lane.b32.xlu1 %v8846_v50, %s28980_s16  ;;  %v25724_v21 = vpop.f32.mrb[58].mxu1 }
 0x5be   : > { %v8706_v60 = vadd.f32 %v25724_v21, %v30810_v15  ;;  %8935 = vrot.lane.b32.xlu0 %v8845_v46, %s28980_s16  ;;  %v8571_v3 = vpop.f32.mrb[59].mxu1  ;;  %v8812_v54 = vsel %vm8740_vm7, %v8704_v36, %v8776_v35  ;;  %v33153_v35 = vld [vmem:[#allocation4_spill] sm:$0xff] }
 0x5bf   : > { %v8705_v17 = vadd.f32 %v30810_v15, %v8571_v3  ;;  %v8848_v23 = vmul.f32 %v8812_v54, %v30120_v12  ;;  %v8811_v59 = vsel %vm8739_vm8, %v8703_v31, %v8775_v56 }
 0x5c0   : > { %vm8742_vm9 = vcmp.ge.f32.partialorder %v8706_v60, 0.0  ;;  %v8778_v48 = vmul.f32 0.2, %v8706_v60  ;;  %v8847_v39 = vmul.f32 %v8811_v59, %v30130_v38 }
 0x5c1   : > { %vm8741_vm10 = vcmp.ge.f32.partialorder %v8705_v17, 0.0  ;;  %v8777_v55 = vmul.f32 0.2, %v8705_v17  ;;  %8941 = vrot.lane.b32.xlu1 %v8848_v23, %s28980_s16  ;;  %v25727_v63 = vpop.f32.mrb[60].mxu1 }
 0x5c2   : > { %v8708_v5 = vadd.f32 %v25727_v63, %v30810_v15  ;;  %8939 = vrot.lane.b32.xlu0 %v8847_v39, %s28980_s16  ;;  %v8581_v20 = vpop.f32.mrb[61].mxu1  ;;  %v8814_v13 = vsel %vm8742_vm9, %v8706_v60, %v8778_v48  ;;  %v33154_v60 = vld [vmem:[#allocation5_spill] sm:$0xff] }
 0x5c3   : > { %v8707_v0 = vadd.f32 %v30810_v15, %v8581_v20  ;;  %v8850_v7 = vmul.f32 %v8814_v13, %v30136_v24  ;;  %v8813_v52 = vsel %vm8741_vm10, %v8705_v17, %v8777_v55  ;;  %v33155_v55 = vld [vmem:[#allocation6_spill] sm:$0xff]  ;;  %v33156_v13 = vld [vmem:[#allocation7_spill] sm:$0xff] }
 0x5c4   : > { %vm8744_vm6 = vcmp.ge.f32.partialorder %v8708_v5, 0.0  ;;  %v8780_v1 = vmul.f32 0.2, %v8708_v5  ;;  %v8849_v8 = vmul.f32 %v8813_v52, %v30146_v14 }
 0x5c5   : > { %vm8743_vm11 = vcmp.ge.f32.partialorder %v8707_v0, 0.0  ;;  %v8779_v45 = vmul.f32 0.2, %v8707_v0  ;;  %8945 = vrot.lane.b32.xlu1 %v8850_v7, %s28980_s16  ;;  %v25730_v16 = vpop.f32.mrb[62].mxu1 }
 0x5c6   : > { %v8710_v58 = vadd.f32 %v25730_v16, %v30810_v15  ;;  %8943 = vrot.lane.b32.xlu0 %v8849_v8, %s28980_s16  ;;  %v8591_v19 = vpop.f32.mrb[63].mxu1  ;;  %v8816_v22 = vsel %vm8744_vm6, %v8708_v5, %v8780_v1  ;;  %vm9007_vm6 = vcmask 130144  }
 0x5c7   : > { %v8709_v25 = vadd.f32 %v30810_v15, %v8591_v19  ;;  %v8852_v32 = vmul.f32 %v8816_v22, %v30154_v28  ;;  %v8815_v33 = vsel %vm8743_vm11, %v8707_v0, %v8779_v45 }
 0x5c8   : > { %vm8746_vm12 = vcmp.ge.f32.partialorder %v8710_v58, 0.0  ;;  %v8782_v30 = vmul.f32 0.2, %v8710_v58  ;;  %v8851_v36 = vmul.f32 %v8815_v33, %v33152_v42 }
 0x5c9   : > { %vm8745_vm13 = vcmp.ge.f32.partialorder %v8709_v25, 0.0  ;;  %v8781_v41 = vmul.f32 0.2, %v8709_v25  ;;  %8949 = vrot.lane.b32.xlu1 %v8852_v32, %s28980_s16  ;;  %v25733_v49 = vpop.f32.mrb[64].mxu1  ;;  %v33158_v32 = vld [vmem:[#allocation9_spill] sm:$0xff] }
 0x5ca   : > { %v8818_v31 = vsel %vm8746_vm12, %v8710_v58, %v8782_v30  ;;  %v8712_v50 = vadd.f32 %v25733_v49, %v30810_v15  ;;  %8947 = vrot.lane.b32.xlu0 %v8851_v36, %s28980_s16  ;;  %v8601_v53 = vpop.f32.mrb[65].mxu1  ;;  %v33157_v58 = vld [vmem:[#allocation8_spill] sm:$0xff] }
 0x5cb   : > { %v8854_v46 = vmul.f32 %v8818_v31, %v33153_v35  ;;  %v8817_v56 = vsel %vm8745_vm13, %v8709_v25, %v8781_v41  ;;  %v8711_v21 = vadd.f32 %v30810_v15, %v8601_v53  ;;  %v33159_v53 = vld [vmem:[#allocation10_spill] sm:$0xff] }
 0x5cc   : > { %v8853_v3 = vmul.f32 %v8817_v56, %v33154_v60  ;;  %vm8748_vm14 = vcmp.ge.f32.partialorder %v8712_v50, 0.0  ;;  %v8784_v54 = vmul.f32 0.2, %v8712_v50  ;;  %v11145_v60 = vld [vmem:[%s33099_s6 + $0x58] sm:$0xff] }
 0x5cd   : > { %vm8747_vm15 = vcmp.ge.f32.partialorder %v8711_v21, 0.0  ;;  %v8783_v17 = vmul.f32 0.2, %v8711_v21  ;;  %8953 = vrot.lane.b32.xlu1 %v8854_v46, %s28980_s16  ;;  %v25736_v23 = vpop.f32.mrb[66].mxu1 }
 0x5ce   : > { %v8820_v59 = vsel %vm8748_vm14, %v8712_v50, %v8784_v54  ;;  %v8714_v48 = vadd.f32 %v25736_v23, %v30810_v15  ;;  %8951 = vrot.lane.b32.xlu0 %v8853_v3, %s28980_s16  ;;  %v8611_v39 = vpop.f32.mrb[67].mxu1  ;;  %v9863_v3 = vld [vmem:[%s33099_s6 + $0x20] sm:$0xff]  ;;  %v9864_v54 = vld [vmem:[%s33099_s6 + $0x28] sm:$0xff] }
 0x5cf   : > { %v8856_v63 = vmul.f32 %v8820_v59, %v33155_v55  ;;  %v8819_v5 = vsel %vm8747_vm15, %v8711_v21, %v8783_v17  ;;  %v8713_v20 = vadd.f32 %v30810_v15, %v8611_v39  ;;  %v33160_v17 = vld [vmem:[#allocation11_spill] sm:$0xff]  ;;  %v11144_v55 = vld [vmem:[%s33099_s6 + $0x50] sm:$0xff] }
 0x5d0   : > { %v8855_v0 = vmul.f32 %v8819_v5, %v33156_v13  ;;  %vm8750_vm2 = vcmp.ge.f32.partialorder %v8714_v48, 0.0  ;;  %v8786_v7 = vmul.f32 0.2, %v8714_v48  ;;  %v27419_v35 = vpack.c.bf16 %v11145_v60, %v11144_v55 }
 0x5d1   : > { %vm8749_vm4 = vcmp.ge.f32.partialorder %v8713_v20, 0.0  ;;  %v8785_v52 = vmul.f32 0.2, %v8713_v20  ;;  %8957 = vrot.lane.b32.xlu1 %v8856_v63, %s28980_s16  ;;  %v25739_v1 = vpop.f32.mrb[68].mxu1 }
 0x5d2   : > { %v8822_v8 = vsel %vm8750_vm2, %v8714_v48, %v8786_v7  ;;  %v8716_v45 = vadd.f32 %v25739_v1, %v30810_v15  ;;  %8955 = vrot.lane.b32.xlu0 %v8855_v0, %s28980_s16  ;;  %v8621_v16 = vpop.f32.mrb[69].mxu1  ;;  %v30928_v48 = vpack.c.bf16 %v9864_v54, %v9863_v3  ;;  %v33162_v0 = vld [vmem:[#allocation13_spill] sm:$0xff] }
 0x5d3   : > { %v8858_v19 = vmul.f32 %v8822_v8, %v33157_v58  ;;  %v8821_v22 = vsel %vm8749_vm4, %v8713_v20, %v8785_v52  ;;  %v8715_v25 = vadd.f32 %v30810_v15, %v8621_v16 }
 0x5d4   : > { %v8857_v33 = vmul.f32 %v8821_v22, %v33158_v32  ;;  %vm8752_vm7 = vcmp.ge.f32.partialorder %v8716_v45, 0.0  ;;  %v8788_v30 = vmul.f32 0.2, %v8716_v45  ;;  %27408 = vmatprep.subr.bf16.mxu0 %v30928_v48 }
 0x5d5   : > { %vm8751_vm8 = vcmp.ge.f32.partialorder %v8715_v25, 0.0  ;;  %v8787_v36 = vmul.f32 0.2, %v8715_v25  ;;  %8961 = vrot.lane.b32.xlu1 %v8858_v19, %s28980_s16  ;;  %v25742_v41 = vpop.f32.mrb[70].mxu1 }
 0x5d6   : > { %v8824_v49 = vsel %vm8752_vm7, %v8716_v45, %v8788_v30  ;;  %v8718_v31 = vadd.f32 %v25742_v41, %v30810_v15  ;;  %8959 = vrot.lane.b32.xlu0 %v8857_v33, %s28980_s16  ;;  %v8631_v50 = vpop.f32.mrb[71].mxu1 }
 0x5d7   : > { %v8860_v46 = vmul.f32 %v8824_v49, %v33159_v53  ;;  %v8823_v56 = vsel %vm8751_vm8, %v8715_v25, %v8787_v36  ;;  %v8717_v21 = vadd.f32 %v30810_v15, %v8631_v50  ;;  %v33161_v15 = vld [vmem:[#allocation12_spill] sm:$0xff] }
 0x5d8   : > { %v8859_v23 = vmul.f32 %v8823_v56, %v33160_v17  ;;  %vm8754_vm9 = vcmp.ge.f32.partialorder %v8718_v31, 0.0  ;;  %v8790_v59 = vmul.f32 0.2, %v8718_v31 }
 0x5d9   : > { %vm8753_vm10 = vcmp.ge.f32.partialorder %v8717_v21, 0.0  ;;  %v8789_v39 = vmul.f32 0.2, %v8717_v21  ;;  %8965 = vrot.lane.b32.xlu1 %v8860_v46, %s28980_s16 }
 0x5da   : > { %v8826_v63 = vsel %vm8754_vm9, %v8718_v31, %v8790_v59  ;;  %8963 = vrot.lane.b32.xlu0 %v8859_v23, %s28980_s16 }
 0x5db   : > { %v8862_v5 = vmul.f32 %v8826_v63, %v33161_v15  ;;  %v8825_v20 = vsel %vm8753_vm10, %v8717_v21, %v8789_v39 }
 0x5dc   : > { %v8861_v7 = vmul.f32 %v8825_v20, %v33162_v0 }
 0x5dd   : > { %8969 = vrot.lane.b32.xlu1 %v8862_v5, %s28980_s16 }
 0x5de   : > { %8967 = vrot.lane.b32.xlu0 %v8861_v7, %s28980_s16 }
 0x60b   : > { %v8902_v52 = vpop.permute.xlu1 %8901 }
 0x60c   : > { %v8900_v1 = vpop.permute.xlu0 %8899  ;;  %9009 = vst.msk [vmem:[#allocation2 + $0x1b] sm:$0xff] %vm9007_vm6, %v8902_v52 }
 0x60d   : > { %9008 = vst.msk [vmem:[#allocation2 + $0x13] sm:$0xff] %vm9007_vm6, %v8900_v1 }
 0x60f   : > { %v8906_v8 = vpop.permute.xlu1 %8905 }
 0x610   : > { %v8904_v45 = vpop.permute.xlu0 %8903  ;;  %9011 = vst.msk [vmem:[#allocation2 + $0x2b] sm:$0xff] %vm9007_vm6, %v8906_v8 }
 0x611   : > { %9010 = vst.msk [vmem:[#allocation2 + $0x23] sm:$0xff] %vm9007_vm6, %v8904_v45 }
 0x613   : > { %v8910_v16 = vpop.permute.xlu1 %8909 }
 0x614   : > { %v8908_v19 = vpop.permute.xlu0 %8907  ;;  %v9084_v22 = vld [vmem:[#allocation2 + $0x11] sm:$0xff]  ;;  %9013 = vst.msk [vmem:[#allocation2 + $0x3b] sm:$0xff] %vm9007_vm6, %v8910_v16  ;;  %v9085_v25 = vld [vmem:[#allocation2 + $0x19] sm:$0xff] }
 0x615   : > { %25750 = vmatprep.mubr.msk.f32.mxu0 %vm9120_vm5, %v9084_v22  ;;  %9012 = vst.msk [vmem:[#allocation2 + $0x33] sm:$0xff] %vm9007_vm6, %v8908_v19 }
 0x616   : > { %25751 = vmatmul.mubr.msk.f32.gmra.mrb[38].mxu0 %vm9120_vm5, %v9085_v25 }
 0x617   : > { %v8914_v33 = vpop.permute.xlu1 %8913 }
 0x618   : > { %9015 = vst.msk [vmem:[#allocation2 + $0x4b] sm:$0xff] %vm9007_vm6, %v8914_v33  ;;  %v8912_v30 = vpop.permute.xlu0 %8911  ;;  %v9086_v36 = vld [vmem:[#allocation2 + $0x21] sm:$0xff]  ;;  %v9087_v41 = vld [vmem:[#allocation2 + $0x29] sm:$0xff] }
 0x619   : > { %9014 = vst.msk [vmem:[#allocation2 + $0x43] sm:$0xff] %vm9007_vm6, %v8912_v30  ;;  %25753 = vmatprep.mubr.msk.f32.mxu0 %vm9120_vm5, %v9086_v36 }
 0x61a   : > { %25754 = vmatmul.mubr.msk.f32.gmra.mrb[40].mxu0 %vm9120_vm5, %v9087_v41 }
 0x61b   : > { %v8918_v49 = vpop.permute.xlu1 %8917 }
 0x61c   : > { %9017 = vst.msk [vmem:[#allocation2 + $0x5b] sm:$0xff] %vm9007_vm6, %v8918_v49  ;;  %v8916_v31 = vpop.permute.xlu0 %8915  ;;  %v9088_v50 = vld [vmem:[#allocation2 + $0x31] sm:$0xff]  ;;  %v9089_v46 = vld [vmem:[#allocation2 + $0x39] sm:$0xff] }
 0x61d   : > { %9016 = vst.msk [vmem:[#allocation2 + $0x53] sm:$0xff] %vm9007_vm6, %v8916_v31  ;;  %25756 = vmatprep.mubr.msk.f32.mxu0 %vm9120_vm5, %v9088_v50 }
 0x61e   : > { %25757 = vmatmul.mubr.msk.f32.gmra.mrb[42].mxu0 %vm9120_vm5, %v9089_v46 }
 0x61f   : > { %v8922_v56 = vpop.permute.xlu1 %8921 }
 0x620   : > { %9019 = vst.msk [vmem:[#allocation2 + $0x6b] sm:$0xff] %vm9007_vm6, %v8922_v56  ;;  %v8920_v21 = vpop.permute.xlu0 %8919  ;;  %v9090_v3 = vld [vmem:[#allocation2 + $0x41] sm:$0xff]  ;;  %v9091_v54 = vld [vmem:[#allocation2 + $0x49] sm:$0xff] }
 0x621   : > { %9018 = vst.msk [vmem:[#allocation2 + $0x63] sm:$0xff] %vm9007_vm6, %v8920_v21  ;;  %25759 = vmatprep.mubr.msk.f32.mxu0 %vm9120_vm5, %v9090_v3 }
 0x622   : > { %25760 = vmatmul.mubr.msk.f32.gmra.mrb[44].mxu0 %vm9120_vm5, %v9091_v54 }
 0x623   : > { %v8926_v23 = vpop.permute.xlu1 %8925 }
 0x624   : > { %9021 = vst.msk [vmem:[#allocation2 + $0x7b] sm:$0xff] %vm9007_vm6, %v8926_v23  ;;  %v8924_v59 = vpop.permute.xlu0 %8923  ;;  %v9092_v39 = vld [vmem:[#allocation2 + $0x51] sm:$0xff]  ;;  %v9093_v63 = vld [vmem:[#allocation2 + $0x59] sm:$0xff] }
 0x625   : > { %9020 = vst.msk [vmem:[#allocation2 + $0x73] sm:$0xff] %vm9007_vm6, %v8924_v59  ;;  %25762 = vmatprep.mubr.msk.f32.mxu0 %vm9120_vm5, %v9092_v39 }
 0x626   : > { %25763 = vmatmul.mubr.msk.f32.gmra.mrb[46].mxu0 %vm9120_vm5, %v9093_v63 }
 0x627   : > { %v8930_v5 = vpop.permute.xlu1 %8929 }
 0x628   : > { %9023 = vst.msk [vmem:[#allocation2 + $0x8b] sm:$0xff] %vm9007_vm6, %v8930_v5  ;;  %v8928_v20 = vpop.permute.xlu0 %8927  ;;  %v9094_v7 = vld [vmem:[#allocation2 + $0x61] sm:$0xff]  ;;  %v9095_v52 = vld [vmem:[#allocation2 + $0x69] sm:$0xff] }
 0x629   : > { %9022 = vst.msk [vmem:[#allocation2 + $0x83] sm:$0xff] %vm9007_vm6, %v8928_v20  ;;  %25765 = vmatprep.mubr.msk.f32.mxu0 %vm9120_vm5, %v9094_v7 }
 0x62a   : > { %25766 = vmatmul.mubr.msk.f32.gmra.mrb[48].mxu0 %vm9120_vm5, %v9095_v52 }
 0x62b   : > { %v8934_v1 = vpop.permute.xlu1 %8933 }
 0x62c   : > { %9025 = vst.msk [vmem:[#allocation2 + $0x9b] sm:$0xff] %vm9007_vm6, %v8934_v1  ;;  %v8932_v8 = vpop.permute.xlu0 %8931  ;;  %v9096_v45 = vld [vmem:[#allocation2 + $0x71] sm:$0xff]  ;;  %v9097_v16 = vld [vmem:[#allocation2 + $0x79] sm:$0xff] }
 0x62d   : > { %9024 = vst.msk [vmem:[#allocation2 + $0x93] sm:$0xff] %vm9007_vm6, %v8932_v8  ;;  %25768 = vmatprep.mubr.msk.f32.mxu0 %vm9120_vm5, %v9096_v45 }
 0x62e   : > { %25769 = vmatmul.mubr.msk.f32.gmra.mrb[50].mxu0 %vm9120_vm5, %v9097_v16 }
 0x62f   : > { %v8938_v19 = vpop.permute.xlu1 %8937 }
 0x630   : > { %9027 = vst.msk [vmem:[#allocation2 + $0xab] sm:$0xff] %vm9007_vm6, %v8938_v19  ;;  %v8936_v22 = vpop.permute.xlu0 %8935  ;;  %v9098_v25 = vld [vmem:[#allocation2 + $0x81] sm:$0xff]  ;;  %v9099_v33 = vld [vmem:[#allocation2 + $0x89] sm:$0xff] }
 0x631   : > { %9026 = vst.msk [vmem:[#allocation2 + $0xa3] sm:$0xff] %vm9007_vm6, %v8936_v22  ;;  %25771 = vmatprep.mubr.msk.f32.mxu0 %vm9120_vm5, %v9098_v25 }
 0x632   : > { %25772 = vmatmul.mubr.msk.f32.gmra.mrb[52].mxu0 %vm9120_vm5, %v9099_v33 }
 0x633   : > { %v8942_v30 = vpop.permute.xlu1 %8941 }
 0x634   : > { %9029 = vst.msk [vmem:[#allocation2 + $0xbb] sm:$0xff] %vm9007_vm6, %v8942_v30  ;;  %v8940_v36 = vpop.permute.xlu0 %8939  ;;  %v9100_v41 = vld [vmem:[#allocation2 + $0x91] sm:$0xff]  ;;  %v9101_v49 = vld [vmem:[#allocation2 + $0x99] sm:$0xff] }
 0x635   : > { %9028 = vst.msk [vmem:[#allocation2 + $0xb3] sm:$0xff] %vm9007_vm6, %v8940_v36  ;;  %25774 = vmatprep.mubr.msk.f32.mxu0 %vm9120_vm5, %v9100_v41 }
 0x636   : > { %25775 = vmatmul.mubr.msk.f32.gmra.mrb[54].mxu0 %vm9120_vm5, %v9101_v49 }
 0x637   : > { %v8946_v31 = vpop.permute.xlu1 %8945 }
 0x638   : > { %9031 = vst.msk [vmem:[#allocation2 + $0xcb] sm:$0xff] %vm9007_vm6, %v8946_v31  ;;  %v8944_v50 = vpop.permute.xlu0 %8943  ;;  %v9102_v46 = vld [vmem:[#allocation2 + $0xa1] sm:$0xff]  ;;  %v9103_v56 = vld [vmem:[#allocation2 + $0xa9] sm:$0xff] }
 0x639   : > { %9030 = vst.msk [vmem:[#allocation2 + $0xc3] sm:$0xff] %vm9007_vm6, %v8944_v50  ;;  %25777 = vmatprep.mubr.msk.f32.mxu0 %vm9120_vm5, %v9102_v46 }
 0x63a   : > { %25778 = vmatmul.mubr.msk.f32.gmra.mrb[56].mxu0 %vm9120_vm5, %v9103_v56  ;;  %v9044_v56 = vld [vmem:[#allocation2] sm:$0xff] }
 0x63b   : > { %v8950_v21 = vpop.permute.xlu1 %8949 }
 0x63c   : > { %9033 = vst.msk [vmem:[#allocation2 + $0xdb] sm:$0xff] %vm9007_vm6, %v8950_v21  ;;  %v8948_v3 = vpop.permute.xlu0 %8947  ;;  %v9104_v54 = vld [vmem:[#allocation2 + $0xb1] sm:$0xff]  ;;  %v9105_v23 = vld [vmem:[#allocation2 + $0xb9] sm:$0xff] }
 0x63d   : > { %9032 = vst.msk [vmem:[#allocation2 + $0xd3] sm:$0xff] %vm9007_vm6, %v8948_v3  ;;  %25780 = vmatprep.mubr.msk.f32.mxu0 %vm9120_vm5, %v9104_v54  ;;  %v10290_v21 = vld [vmem:[%s33099_s6 + $0x30] sm:$0xff]  ;;  %v10291_v3 = vld [vmem:[%s33099_s6 + $0x38] sm:$0xff]  ;;  %v9045_v54 = vld [vmem:[#allocation2 + $0x8] sm:$0xff] }
 0x63e   : > { %25781 = vmatmul.mubr.msk.f32.gmra.mrb[58].mxu0 %vm9120_vm5, %v9105_v23  ;;  %v31014_v23 = vpack.c.bf16 %v10291_v3, %v10290_v21 }
 0x63f   : > { %v8954_v59 = vpop.permute.xlu1 %8953 }
 0x640   : > { %9035 = vst.msk [vmem:[#allocation2 + $0xeb] sm:$0xff] %vm9007_vm6, %v8954_v59  ;;  %v8952_v39 = vpop.permute.xlu0 %8951  ;;  %v9106_v63 = vld [vmem:[#allocation2 + $0xc1] sm:$0xff]  ;;  %v9107_v5 = vld [vmem:[#allocation2 + $0xc9] sm:$0xff] }
 0x641   : > { %9034 = vst.msk [vmem:[#allocation2 + $0xe3] sm:$0xff] %vm9007_vm6, %v8952_v39  ;;  %25783 = vmatprep.mubr.msk.f32.mxu0 %vm9120_vm5, %v9106_v63  ;;  %v9046_v59 = vld [vmem:[#allocation2 + $0x10] sm:$0xff]  ;;  %v9047_v39 = vld [vmem:[#allocation2 + $0x18] sm:$0xff]  ;;  %v9048_v63 = vld [vmem:[#allocation2 + $0x20] sm:$0xff] }
 0x642   : > { %25784 = vmatmul.mubr.msk.f32.gmra.mrb[60].mxu0 %vm9120_vm5, %v9107_v5  ;;  %v9049_v5 = vld [vmem:[#allocation2 + $0x28] sm:$0xff] }
 0x643   : > { %v8958_v20 = vpop.permute.xlu1 %8957 }
 0x644   : > { %9037 = vst.msk [vmem:[#allocation2 + $0xfb] sm:$0xff] %vm9007_vm6, %v8958_v20  ;;  %v8956_v7 = vpop.permute.xlu0 %8955  ;;  %v9108_v52 = vld [vmem:[#allocation2 + $0xd1] sm:$0xff]  ;;  %v9109_v1 = vld [vmem:[#allocation2 + $0xd9] sm:$0xff] }
 0x645   : > { %9036 = vst.msk [vmem:[#allocation2 + $0xf3] sm:$0xff] %vm9007_vm6, %v8956_v7  ;;  %25786 = vmatprep.mubr.msk.f32.mxu0 %vm9120_vm5, %v9108_v52  ;;  %v9050_v20 = vld [vmem:[#allocation2 + $0x30] sm:$0xff]  ;;  %v9051_v7 = vld [vmem:[#allocation2 + $0x38] sm:$0xff]  ;;  %v9053_v52 = vld [vmem:[#allocation2 + $0x48] sm:$0xff] }
 0x646   : > { %25787 = vmatmul.mubr.msk.f32.gmra.mrb[62].mxu0 %vm9120_vm5, %v9109_v1  ;;  %v9054_v1 = vld [vmem:[#allocation2 + $0x50] sm:$0xff]  ;;  %v9071_v3 = vld [vmem:[#allocation2 + $0xd8] sm:$0xff] }
 0x647   : > { %v8962_v8 = vpop.permute.xlu1 %8961  ;;  %v9070_v21 = vld [vmem:[#allocation2 + $0xd0] sm:$0xff] }
 0x648   : > { %9039 = vst.msk [vmem:[#allocation2 + $0x10b] sm:$0xff] %vm9007_vm6, %v8962_v8  ;;  %v8960_v45 = vpop.permute.xlu0 %8959  ;;  %v9110_v16 = vld [vmem:[#allocation2 + $0xe1] sm:$0xff]  ;;  %v9111_v19 = vld [vmem:[#allocation2 + $0xe9] sm:$0xff]  ;;  %v9055_v8 = vld [vmem:[#allocation2 + $0x58] sm:$0xff] }
 0x649   : > { %9038 = vst.msk [vmem:[#allocation2 + $0x103] sm:$0xff] %vm9007_vm6, %v8960_v45  ;;  %25789 = vmatprep.mubr.msk.f32.mxu0 %vm9120_vm5, %v9110_v16  ;;  %v9056_v45 = vld [vmem:[#allocation2 + $0x60] sm:$0xff]  ;;  %v9057_v16 = vld [vmem:[#allocation2 + $0x68] sm:$0xff] }
 0x64a   : > { %25790 = vmatmul.mubr.msk.f32.gmra.mrb[64].mxu0 %vm9120_vm5, %v9111_v19  ;;  %v9058_v19 = vld [vmem:[#allocation2 + $0x70] sm:$0xff] }
 0x64b   : > { %v8966_v22 = vpop.permute.xlu1 %8965  ;;  %v9856_v0 = vld [vmem:[#allocation2 + $0xea] sm:$0xff] }
 0x64c   : > { %9041 = vst.msk [vmem:[#allocation2 + $0x11b] sm:$0xff] %vm9007_vm6, %v8966_v22  ;;  %v8964_v25 = vpop.permute.xlu0 %8963  ;;  %v9112_v33 = vld [vmem:[#allocation2 + $0xf1] sm:$0xff]  ;;  %v9113_v30 = vld [vmem:[#allocation2 + $0xf9] sm:$0xff] }
 0x64d   : > { %9040 = vst.msk [vmem:[#allocation2 + $0x113] sm:$0xff] %vm9007_vm6, %v8964_v25  ;;  %25792 = vmatprep.mubr.msk.f32.mxu0 %vm9120_vm5, %v9112_v33  ;;  %v9059_v22 = vld [vmem:[#allocation2 + $0x78] sm:$0xff]  ;;  %v9060_v25 = vld [vmem:[#allocation2 + $0x80] sm:$0xff]  ;;  %v9061_v33 = vld [vmem:[#allocation2 + $0x88] sm:$0xff] }
 0x64e   : > { %25793 = vmatmul.mubr.msk.f32.gmra.mrb[66].mxu0 %vm9120_vm5, %v9113_v30  ;;  %v9062_v30 = vld [vmem:[#allocation2 + $0x90] sm:$0xff]  ;;  %v9858_v17 = vld [vmem:[#allocation2 + $0xfa] sm:$0xff] }
 0x64f   : > { %v8970_v36 = vpop.permute.xlu1 %8969  ;;  %v9857_v15 = vld [vmem:[#allocation2 + $0xf2] sm:$0xff] }
 0x650   : > { %9043 = vst.msk [vmem:[#allocation2 + $0x12b] sm:$0xff] %vm9007_vm6, %v8970_v36  ;;  %v8968_v41 = vpop.permute.xlu0 %8967  ;;  %v9114_v49 = vld [vmem:[#allocation2 + $0x101] sm:$0xff]  ;;  %v9115_v31 = vld [vmem:[#allocation2 + $0x109] sm:$0xff]  ;;  %v9063_v36 = vld [vmem:[#allocation2 + $0x98] sm:$0xff] }
 0x651   : > { %9042 = vst.msk [vmem:[#allocation2 + $0x123] sm:$0xff] %vm9007_vm6, %v8968_v41  ;;  %25795 = vmatprep.mubr.msk.f32.mxu0 %vm9120_vm5, %v9114_v49  ;;  %v9064_v41 = vld [vmem:[#allocation2 + $0xa0] sm:$0xff]  ;;  %v9065_v49 = vld [vmem:[#allocation2 + $0xa8] sm:$0xff] }
 0x652   : > { %25796 = vmatmul.mubr.msk.f32.gmra.mrb[68].mxu0 %vm9120_vm5, %v9115_v31  ;;  %v9066_v31 = vld [vmem:[#allocation2 + $0xb0] sm:$0xff]  ;;  %v9859_v53 = vld [vmem:[#allocation2 + $0x102] sm:$0xff] }
 0x653   : > { %v9860_v32 = vld [vmem:[#allocation2 + $0x10a] sm:$0xff] }
 0x654   : > { %v9116_v50 = vld [vmem:[#allocation2 + $0x111] sm:$0xff]  ;;  %v9117_v46 = vld [vmem:[#allocation2 + $0x119] sm:$0xff] }
 0x655   : > { %25798 = vmatprep.mubr.msk.f32.mxu0 %vm9120_vm5, %v9116_v50  ;;  %v9067_v50 = vld [vmem:[#allocation2 + $0xb8] sm:$0xff] }
 0x656   : > { %25799 = vmatmul.mubr.msk.f32.gmra.mrb[70].mxu0 %vm9120_vm5, %v9117_v46  ;;  %v9068_v46 = vld [vmem:[#allocation2 + $0xc0] sm:$0xff]  ;;  %v9861_v58 = vld [vmem:[#allocation2 + $0x112] sm:$0xff] }
 0x657   : > { %25805 = vmatprep.mubr.msk.f32.mxu0 %vm9120_vm5, %v9044_v56  ;;  %v9069_v56 = vld [vmem:[#allocation2 + $0xc8] sm:$0xff]  ;;  %v9862_v13 = vld [vmem:[#allocation2 + $0x11a] sm:$0xff] }
 0x658   : > { %v10288_v60 = vld [vmem:[#allocation2 + $0x122] sm:$0xff]  ;;  %v10289_v55 = vld [vmem:[#allocation2 + $0x12a] sm:$0xff] }
 0x65a   : > { %25806 = vmatmul.mubr.msk.f32.vlgmr.msra.gmra.mrb[36].mxu0 %vm9120_vm5, %v9045_v54  ;;  %v9072_v54 = vld [vmem:[#allocation2 + $0xe0] sm:$0xff] }
 0x65b   : > { %27410 = vmatpush3.bf16.msra.mxu0 %v30928_v48  ;;  %25808 = vmatprep.mubr.msk.f32.mxu0 %vm9120_vm5, %v9046_v59  ;;  %v9052_v48 = vld [vmem:[#allocation2 + $0x40] sm:$0xff]  ;;  %v9073_v59 = vld [vmem:[#allocation2 + $0xe8] sm:$0xff] }
 0x65c   : > { %27412 = vmatprep.subr.bf16.mxu0 %v31014_v23 }
 0x65e   : > { %25809 = vmatmul.mubr.msk.f32.gmra.mrb[38].mxu0 %vm9120_vm5, %v9047_v39  ;;  %v9074_v39 = vld [vmem:[#allocation2 + $0xf0] sm:$0xff] }
 0x65f   : > { %25811 = vmatprep.mubr.msk.f32.mxu0 %vm9120_vm5, %v9048_v63  ;;  %v9075_v63 = vld [vmem:[#allocation2 + $0xf8] sm:$0xff] }
 0x662   : > { %25812 = vmatmul.mubr.msk.f32.gmra.mrb[40].mxu0 %vm9120_vm5, %v9049_v5  ;;  %v9076_v5 = vld [vmem:[#allocation2 + $0x100] sm:$0xff] }
 0x663   : > { %25814 = vmatprep.mubr.msk.f32.mxu0 %vm9120_vm5, %v9050_v20  ;;  %v9077_v20 = vld [vmem:[#allocation2 + $0x108] sm:$0xff] }
 0x666   : > { %25815 = vmatmul.mubr.msk.f32.gmra.mrb[42].mxu0 %vm9120_vm5, %v9051_v7  ;;  %v9078_v7 = vld [vmem:[#allocation2 + $0x110] sm:$0xff] }
 0x667   : > { %25817 = vmatprep.mubr.msk.f32.mxu0 %vm9120_vm5, %v9052_v48  ;;  %v9827_v48 = vld [vmem:[#allocation2 + $0x2] sm:$0xff] }
 0x66a   : > { %25818 = vmatmul.mubr.msk.f32.gmra.mrb[44].mxu0 %vm9120_vm5, %v9053_v52  ;;  %v9079_v52 = vld [vmem:[#allocation2 + $0x118] sm:$0xff] }
 0x66b   : > { %25820 = vmatprep.mubr.msk.f32.mxu0 %vm9120_vm5, %v9054_v1  ;;  %v10717_v1 = vld [vmem:[%s33099_s6 + $0x40] sm:$0xff] }
 0x66e   : > { %25821 = vmatmul.mubr.msk.f32.gmra.mrb[46].mxu0 %vm9120_vm5, %v9055_v8  ;;  %v10718_v8 = vld [vmem:[%s33099_s6 + $0x48] sm:$0xff] }
 0x66f   : > { %25823 = vmatprep.mubr.msk.f32.mxu0 %vm9120_vm5, %v9056_v45  ;;  %v9828_v45 = vld [vmem:[#allocation2 + $0xa] sm:$0xff] }
 0x672   : > { %25824 = vmatmul.mubr.msk.f32.gmra.mrb[48].mxu0 %vm9120_vm5, %v9057_v16  ;;  %v31060_v16 = vpack.c.bf16 %v10718_v8, %v10717_v1  ;;  %v9853_v1 = vld [vmem:[#allocation2 + $0xd2] sm:$0xff]  ;;  %v9854_v8 = vld [vmem:[#allocation2 + $0xda] sm:$0xff] }
 0x673   : > { %25826 = vmatprep.mubr.msk.f32.mxu0 %vm9120_vm5, %v9058_v19  ;;  %v31063_v19 = vld [vmem:[#allocation2 + $0x12] sm:$0xff] }
 0x676   : > { %25827 = vmatmul.mubr.msk.f32.gmra.mrb[50].mxu0 %vm9120_vm5, %v9059_v22  ;;  %v31069_v22 = vld [vmem:[#allocation2 + $0x1a] sm:$0xff] }
 0x677   : > { %25829 = vmatprep.mubr.msk.f32.mxu0 %vm9120_vm5, %v9060_v25  ;;  %v31073_v25 = vld [vmem:[#allocation2 + $0x22] sm:$0xff] }
 0x67a   : > { %25830 = vmatmul.mubr.msk.f32.gmra.mrb[52].mxu0 %vm9120_vm5, %v9061_v33  ;;  %v31077_v33 = vld [vmem:[#allocation2 + $0x2a] sm:$0xff] }
 0x67b   : > { %25832 = vmatprep.mubr.msk.f32.mxu0 %vm9120_vm5, %v9062_v30  ;;  %v31085_v30 = vld [vmem:[#allocation2 + $0x3a] sm:$0xff] }
 0x67e   : > { %25833 = vmatmul.mubr.msk.f32.gmra.mrb[54].mxu0 %vm9120_vm5, %v9063_v36  ;;  %v31089_v36 = vld [vmem:[#allocation2 + $0x42] sm:$0xff] }
 0x67f   : > { %25835 = vmatprep.mubr.msk.f32.mxu0 %vm9120_vm5, %v9064_v41  ;;  %v31093_v41 = vld [vmem:[#allocation2 + $0x4a] sm:$0xff] }
 0x682   : > { %25836 = vmatmul.mubr.msk.f32.gmra.mrb[56].mxu0 %vm9120_vm5, %v9065_v49  ;;  %v31097_v49 = vld [vmem:[#allocation2 + $0x52] sm:$0xff] }
 0x683   : > { %25838 = vmatprep.mubr.msk.f32.mxu0 %vm9120_vm5, %v9066_v31  ;;  %v31101_v31 = vld [vmem:[#allocation2 + $0x5a] sm:$0xff] }
 0x686   : > { %25839 = vmatmul.mubr.msk.f32.gmra.mrb[58].mxu0 %vm9120_vm5, %v9067_v50  ;;  %v31105_v50 = vld [vmem:[#allocation2 + $0x62] sm:$0xff] }
 0x687   : > { %25841 = vmatprep.mubr.msk.f32.mxu0 %vm9120_vm5, %v9068_v46  ;;  %v9840_v46 = vld [vmem:[#allocation2 + $0x6a] sm:$0xff] }
 0x68a   : > { %25842 = vmatmul.mubr.msk.f32.gmra.mrb[60].mxu0 %vm9120_vm5, %v9069_v56  ;;  %v9841_v56 = vld [vmem:[#allocation2 + $0x72] sm:$0xff] }
 0x68b   : > { %25844 = vmatprep.mubr.msk.f32.mxu0 %vm9120_vm5, %v9070_v21  ;;  %v9842_v21 = vld [vmem:[#allocation2 + $0x7a] sm:$0xff] }
 0x68e   : > { %25845 = vmatmul.mubr.msk.f32.gmra.mrb[62].mxu0 %vm9120_vm5, %v9071_v3  ;;  %v9843_v3 = vld [vmem:[#allocation2 + $0x82] sm:$0xff] }
 0x68f   : > { %25847 = vmatprep.mubr.msk.f32.mxu0 %vm9120_vm5, %v9072_v54  ;;  %v9844_v54 = vld [vmem:[#allocation2 + $0x8a] sm:$0xff] }
 0x692   : > { %25848 = vmatmul.mubr.msk.f32.gmra.mrb[64].mxu0 %vm9120_vm5, %v9073_v59  ;;  %v9845_v59 = vld [vmem:[#allocation2 + $0x92] sm:$0xff] }
 0x693   : > { %25850 = vmatprep.mubr.msk.f32.mxu0 %vm9120_vm5, %v9074_v39  ;;  %v9846_v39 = vld [vmem:[#allocation2 + $0x9a] sm:$0xff] }
 0x696   : > { %25851 = vmatmul.mubr.msk.f32.gmra.mrb[66].mxu0 %vm9120_vm5, %v9075_v63  ;;  %v9847_v63 = vld [vmem:[#allocation2 + $0xa2] sm:$0xff] }
 0x697   : > { %25853 = vmatprep.mubr.msk.f32.mxu0 %vm9120_vm5, %v9076_v5  ;;  %v9848_v5 = vld [vmem:[#allocation2 + $0xaa] sm:$0xff] }
 0x69a   : > { %25854 = vmatmul.mubr.msk.f32.gmra.mrb[68].mxu0 %vm9120_vm5, %v9077_v20  ;;  %v9849_v20 = vld [vmem:[#allocation2 + $0xb2] sm:$0xff] }
 0x69b   : > { %25856 = vmatprep.mubr.msk.f32.mxu0 %vm9120_vm5, %v9078_v7  ;;  %v9850_v7 = vld [vmem:[#allocation2 + $0xba] sm:$0xff] }
 0x69e   : > { %25857 = vmatmul.mubr.msk.f32.gmra.mrb[70].mxu0 %vm9120_vm5, %v9079_v52  ;;  %v9852_v52 = vld [vmem:[#allocation2 + $0xca] sm:$0xff] }
 0x69f   : > { %25863 = vmatprep.mubr.msk.f32.mxu0 %vm9120_vm5, %v9827_v48  ;;  %v9851_v48 = vld [vmem:[#allocation2 + $0xc2] sm:$0xff] }
 0x6a2   : > { %25864 = vmatmul.mubr.msk.f32.vlgmr.msra.gmra.mrb[36].mxu0 %vm9120_vm5, %v9828_v45  ;;  %v9855_v45 = vld [vmem:[#allocation2 + $0xe2] sm:$0xff] }
 0x6a3   : > { %27414 = vmatpush3.bf16.msra.mxu0 %v31014_v23  ;;  %25866 = vmatprep.mubr.msk.f32.mxu0 %vm9120_vm5, %v31063_v19  ;;  %v31081_v23 = vld [vmem:[#allocation2 + $0x32] sm:$0xff] }
 0x6a4   : > { %27416 = vmatprep.subr.bf16.mxu0 %v31060_v16 }
 0x6a6   : > { %25867 = vmatmul.mubr.msk.f32.gmra.mrb[38].mxu0 %vm9120_vm5, %v31069_v22 }
 0x6a7   : > { %25869 = vmatprep.mubr.msk.f32.mxu0 %vm9120_vm5, %v31073_v25 }
 0x6aa   : > { %25870 = vmatmul.mubr.msk.f32.gmra.mrb[40].mxu0 %vm9120_vm5, %v31077_v33 }
 0x6ab   : > { %25872 = vmatprep.mubr.msk.f32.mxu0 %vm9120_vm5, %v31081_v23 }
 0x6ae   : > { %25873 = vmatmul.mubr.msk.f32.gmra.mrb[42].mxu0 %vm9120_vm5, %v31085_v30 }
 0x6af   : > { %25875 = vmatprep.mubr.msk.f32.mxu0 %vm9120_vm5, %v31089_v36 }
 0x6b2   : > { %25876 = vmatmul.mubr.msk.f32.gmra.mrb[44].mxu0 %vm9120_vm5, %v31093_v41 }
 0x6b3   : > { %25878 = vmatprep.mubr.msk.f32.mxu0 %vm9120_vm5, %v31097_v49 }
 0x6b6   : > { %25879 = vmatmul.mubr.msk.f32.gmra.mrb[46].mxu0 %vm9120_vm5, %v31101_v31 }
 0x6b7   : > { %25881 = vmatprep.mubr.msk.f32.mxu0 %vm9120_vm5, %v31105_v50 }
 0x6ba   : > { %25882 = vmatmul.mubr.msk.f32.gmra.mrb[48].mxu0 %vm9120_vm5, %v9840_v46 }
 0x6bb   : > { %25884 = vmatprep.mubr.msk.f32.mxu0 %vm9120_vm5, %v9841_v56 }
 0x6be   : > { %25885 = vmatmul.mubr.msk.f32.gmra.mrb[50].mxu0 %vm9120_vm5, %v9842_v21 }
 0x6bf   : > { %25887 = vmatprep.mubr.msk.f32.mxu0 %vm9120_vm5, %v9843_v3 }
 0x6c2   : > { %25888 = vmatmul.mubr.msk.f32.gmra.mrb[52].mxu0 %vm9120_vm5, %v9844_v54 }
 0x6c3   : > { %25890 = vmatprep.mubr.msk.f32.mxu0 %vm9120_vm5, %v9845_v59 }
 0x6c6   : > { %25891 = vmatmul.mubr.msk.f32.gmra.mrb[54].mxu0 %vm9120_vm5, %v9846_v39 }
 0x6c7   : > { %25893 = vmatprep.mubr.msk.f32.mxu0 %vm9120_vm5, %v9847_v63 }
 0x6ca   : > { %25894 = vmatmul.mubr.msk.f32.gmra.mrb[56].mxu0 %vm9120_vm5, %v9848_v5 }
 0x6cb   : > { %25896 = vmatprep.mubr.msk.f32.mxu0 %vm9120_vm5, %v9849_v20 }
 0x6ce   : > { %25897 = vmatmul.mubr.msk.f32.gmra.mrb[58].mxu0 %vm9120_vm5, %v9850_v7 }
 0x6cf   : > { %25899 = vmatprep.mubr.msk.f32.mxu0 %vm9120_vm5, %v9851_v48 }
 0x6d2   : > { %25900 = vmatmul.mubr.msk.f32.gmra.mrb[60].mxu0 %vm9120_vm5, %v9852_v52 }
 0x6d3   : > { %25902 = vmatprep.mubr.msk.f32.mxu0 %vm9120_vm5, %v9853_v1 }
 0x6d6   : > { %25903 = vmatmul.mubr.msk.f32.gmra.mrb[62].mxu0 %vm9120_vm5, %v9854_v8 }
 0x6d7   : > { %25905 = vmatprep.mubr.msk.f32.mxu0 %vm9120_vm5, %v9855_v45 }
 0x6da   : > { %25906 = vmatmul.mubr.msk.f32.gmra.mrb[64].mxu0 %vm9120_vm5, %v9856_v0 }
 0x6db   : > { %25908 = vmatprep.mubr.msk.f32.mxu0 %vm9120_vm5, %v9857_v15 }
 0x6de   : > { %25909 = vmatmul.mubr.msk.f32.gmra.mrb[66].mxu0 %vm9120_vm5, %v9858_v17 }
 0x6df   : > { %25911 = vmatprep.mubr.msk.f32.mxu0 %vm9120_vm5, %v9859_v53 }
 0x6e2   : > { %25912 = vmatmul.mubr.msk.f32.gmra.mrb[68].mxu0 %vm9120_vm5, %v9860_v32 }
 0x6e3   : > { %25914 = vmatprep.mubr.msk.f32.mxu0 %vm9120_vm5, %v9861_v58 }
 0x6e6   : > { %25915 = vmatmul.mubr.msk.f32.gmra.mrb[70].mxu0 %vm9120_vm5, %v9862_v13 }
 0x6e7   : > { %25921 = vmatprep.mubr.msk.f32.mxu0 %vm9120_vm5, %v31063_v19  ;;  %v10686_v19 = vld [vmem:[#allocation2 + $0x3b] sm:$0xff] }
 0x6ea   : > { %25922 = vmatmul.mubr.msk.f32.vlgmr.msra.gmra.mrb[36].mxu0 %vm9120_vm5, %v31069_v22  ;;  %v10687_v22 = vld [vmem:[#allocation2 + $0x43] sm:$0xff] }
 0x6eb   : > { %27418 = vmatpush3.bf16.msra.mxu0 %v31060_v16  ;;  %25924 = vmatprep.mubr.msk.f32.mxu0 %vm9120_vm5, %v31073_v25  ;;  %v10685_v16 = vld [vmem:[#allocation2 + $0x33] sm:$0xff]  ;;  %v10688_v25 = vld [vmem:[#allocation2 + $0x4b] sm:$0xff] }
 0x6ec   : > { %27420 = vmatprep.subr.bf16.mxu0 %v27419_v35 }
 0x6ee   : > { %25925 = vmatmul.mubr.msk.f32.gmra.mrb[38].mxu0 %vm9120_vm5, %v31077_v33  ;;  %v10690_v33 = vld [vmem:[#allocation2 + $0x5b] sm:$0xff] }
 0x6ef   : > { %25927 = vmatprep.mubr.msk.f32.mxu0 %vm9120_vm5, %v31081_v23  ;;  %v10691_v23 = vld [vmem:[#allocation2 + $0x63] sm:$0xff] }
 0x6f2   : > { %25928 = vmatmul.mubr.msk.f32.gmra.mrb[40].mxu0 %vm9120_vm5, %v31085_v30  ;;  %v10692_v30 = vld [vmem:[#allocation2 + $0x6b] sm:$0xff] }
 0x6f3   : > { %25930 = vmatprep.mubr.msk.f32.mxu0 %vm9120_vm5, %v31089_v36  ;;  %v10693_v36 = vld [vmem:[#allocation2 + $0x73] sm:$0xff] }
 0x6f6   : > { %25931 = vmatmul.mubr.msk.f32.gmra.mrb[42].mxu0 %vm9120_vm5, %v31093_v41  ;;  %v10694_v41 = vld [vmem:[#allocation2 + $0x7b] sm:$0xff] }
 0x6f7   : > { %25933 = vmatprep.mubr.msk.f32.mxu0 %vm9120_vm5, %v31097_v49  ;;  %v10695_v49 = vld [vmem:[#allocation2 + $0x83] sm:$0xff] }
 0x6fa   : > { %25934 = vmatmul.mubr.msk.f32.gmra.mrb[44].mxu0 %vm9120_vm5, %v31101_v31  ;;  %v10696_v31 = vld [vmem:[#allocation2 + $0x8b] sm:$0xff] }
 0x6fb   : > { %25936 = vmatprep.mubr.msk.f32.mxu0 %vm9120_vm5, %v31105_v50  ;;  %v10697_v50 = vld [vmem:[#allocation2 + $0x93] sm:$0xff] }
 0x6fe   : > { %25937 = vmatmul.mubr.msk.f32.gmra.mrb[46].mxu0 %vm9120_vm5, %v9840_v46  ;;  %v10698_v46 = vld [vmem:[#allocation2 + $0x9b] sm:$0xff] }
 0x6ff   : > { %25939 = vmatprep.mubr.msk.f32.mxu0 %vm9120_vm5, %v9841_v56  ;;  %v10699_v56 = vld [vmem:[#allocation2 + $0xa3] sm:$0xff] }
 0x702   : > { %25940 = vmatmul.mubr.msk.f32.gmra.mrb[48].mxu0 %vm9120_vm5, %v9842_v21  ;;  %v10700_v21 = vld [vmem:[#allocation2 + $0xab] sm:$0xff] }
 0x703   : > { %25942 = vmatprep.mubr.msk.f32.mxu0 %vm9120_vm5, %v9843_v3  ;;  %v10701_v3 = vld [vmem:[#allocation2 + $0xb3] sm:$0xff] }
 0x706   : > { %25943 = vmatmul.mubr.msk.f32.gmra.mrb[50].mxu0 %vm9120_vm5, %v9844_v54  ;;  %v10702_v54 = vld [vmem:[#allocation2 + $0xbb] sm:$0xff] }
 0x707   : > { %25945 = vmatprep.mubr.msk.f32.mxu0 %vm9120_vm5, %v9845_v59  ;;  %v10703_v59 = vld [vmem:[#allocation2 + $0xc3] sm:$0xff] }
 0x70a   : > { %25946 = vmatmul.mubr.msk.f32.gmra.mrb[52].mxu0 %vm9120_vm5, %v9846_v39  ;;  %v10704_v39 = vld [vmem:[#allocation2 + $0xcb] sm:$0xff] }
 0x70b   : > { %25948 = vmatprep.mubr.msk.f32.mxu0 %vm9120_vm5, %v9847_v63  ;;  %v10705_v63 = vld [vmem:[#allocation2 + $0xd3] sm:$0xff] }
 0x70e   : > { %25949 = vmatmul.mubr.msk.f32.gmra.mrb[54].mxu0 %vm9120_vm5, %v9848_v5  ;;  %v10706_v5 = vld [vmem:[#allocation2 + $0xdb] sm:$0xff] }
 0x70f   : > { %25951 = vmatprep.mubr.msk.f32.mxu0 %vm9120_vm5, %v9849_v20  ;;  %v10707_v20 = vld [vmem:[#allocation2 + $0xe3] sm:$0xff] }
 0x712   : > { %25952 = vmatmul.mubr.msk.f32.gmra.mrb[56].mxu0 %vm9120_vm5, %v9850_v7  ;;  %v10708_v7 = vld [vmem:[#allocation2 + $0xeb] sm:$0xff] }
 0x713   : > { %25954 = vmatprep.mubr.msk.f32.mxu0 %vm9120_vm5, %v9851_v48  ;;  %v10709_v48 = vld [vmem:[#allocation2 + $0xf3] sm:$0xff] }
 0x716   : > { %25955 = vmatmul.mubr.msk.f32.gmra.mrb[58].mxu0 %vm9120_vm5, %v9852_v52  ;;  %v10710_v52 = vld [vmem:[#allocation2 + $0xfb] sm:$0xff] }
 0x717   : > { %25957 = vmatprep.mubr.msk.f32.mxu0 %vm9120_vm5, %v9853_v1  ;;  %v10711_v1 = vld [vmem:[#allocation2 + $0x103] sm:$0xff] }
 0x71a   : > { %25958 = vmatmul.mubr.msk.f32.gmra.mrb[60].mxu0 %vm9120_vm5, %v9854_v8  ;;  %v10712_v8 = vld [vmem:[#allocation2 + $0x10b] sm:$0xff] }
 0x71b   : > { %25960 = vmatprep.mubr.msk.f32.mxu0 %vm9120_vm5, %v9855_v45  ;;  %v10713_v45 = vld [vmem:[#allocation2 + $0x113] sm:$0xff] }
 0x71e   : > { %25961 = vmatmul.mubr.msk.f32.gmra.mrb[62].mxu0 %vm9120_vm5, %v9856_v0  ;;  %v11571_v0 = vld [vmem:[%s33099_s6 + $0x60] sm:$0xff] }
 0x71f   : > { %25963 = vmatprep.mubr.msk.f32.mxu0 %vm9120_vm5, %v9857_v15  ;;  %v10684_v15 = vld [vmem:[#allocation2 + $0x2b] sm:$0xff] }
 0x722   : > { %25964 = vmatmul.mubr.msk.f32.gmra.mrb[64].mxu0 %vm9120_vm5, %v9858_v17  ;;  %v11572_v17 = vld [vmem:[%s33099_s6 + $0x68] sm:$0xff] }
 0x723   : > { %25966 = vmatprep.mubr.msk.f32.mxu0 %vm9120_vm5, %v9859_v53  ;;  %v10681_v53 = vld [vmem:[#allocation2 + $0x13] sm:$0xff] }
 0x726   : > { %25967 = vmatmul.mubr.msk.f32.gmra.mrb[66].mxu0 %vm9120_vm5, %v9860_v32  ;;  %v10683_v32 = vld [vmem:[#allocation2 + $0x23] sm:$0xff] }
 0x727   : > { %25969 = vmatprep.mubr.msk.f32.mxu0 %vm9120_vm5, %v9861_v58  ;;  %v31193_v58 = vpack.c.bf16 %v11572_v17, %v11571_v0  ;;  %v10716_v0 = vld [vmem:[#allocation2 + $0x12b] sm:$0xff] }
 0x728   : > { %v11998_v17 = vld [vmem:[%s33099_s6 + $0x70] sm:$0xff] }
 0x72a   : > { %25970 = vmatmul.mubr.msk.f32.gmra.mrb[68].mxu0 %vm9120_vm5, %v9862_v13  ;;  %v10682_v13 = vld [vmem:[#allocation2 + $0x1b] sm:$0xff] }
 0x72b   : > { %25972 = vmatprep.mubr.msk.f32.mxu0 %vm9120_vm5, %v10288_v60  ;;  %v10714_v60 = vld [vmem:[#allocation2 + $0x11b] sm:$0xff] }
 0x72e   : > { %25973 = vmatmul.mubr.msk.f32.gmra.mrb[70].mxu0 %vm9120_vm5, %v10289_v55  ;;  %v10715_v55 = vld [vmem:[#allocation2 + $0x123] sm:$0xff] }
 0x72f   : > { %25979 = vmatprep.mubr.msk.f32.mxu0 %vm9120_vm5, %v10681_v53  ;;  %v11999_v53 = vld [vmem:[%s33099_s6 + $0x78] sm:$0xff] }
 0x732   : > { %25980 = vmatmul.mubr.msk.f32.vlgmr.msra.gmra.mrb[36].mxu0 %vm9120_vm5, %v10682_v13  ;;  %v11108_v13 = vld [vmem:[#allocation2 + $0x14] sm:$0xff] }
 0x733   : > { %27422 = vmatpush3.bf16.msra.mxu0 %v27419_v35  ;;  %25982 = vmatprep.mubr.msk.f32.mxu0 %vm9120_vm5, %v10683_v32  ;;  %v10689_v35 = vld [vmem:[#allocation2 + $0x53] sm:$0xff]  ;;  %v31238_v32 = vpack.c.bf16 %v11999_v53, %v11998_v17  ;;  %v12425_v53 = vld [vmem:[%s33099_s6 + $0x80] sm:$0xff] }
 0x734   : > { %27424 = vmatprep.subr.bf16.mxu0 %v31193_v58  ;;  %v11143_v17 = vld [vmem:[#allocation2 + $0x12c] sm:$0xff] }
 0x736   : > { %25983 = vmatmul.mubr.msk.f32.gmra.mrb[38].mxu0 %vm9120_vm5, %v10684_v15  ;;  %v11109_v15 = vld [vmem:[#allocation2 + $0x1c] sm:$0xff] }
 0x737   : > { %25985 = vmatprep.mubr.msk.f32.mxu0 %vm9120_vm5, %v10685_v16  ;;  %v31241_v16 = vld [vmem:[#allocation2 + $0x24] sm:$0xff] }
 0x73a   : > { %25986 = vmatmul.mubr.msk.f32.gmra.mrb[40].mxu0 %vm9120_vm5, %v10686_v19  ;;  %v31247_v19 = vld [vmem:[#allocation2 + $0x2c] sm:$0xff] }
 0x73b   : > { %25988 = vmatprep.mubr.msk.f32.mxu0 %vm9120_vm5, %v10687_v22  ;;  %v31251_v22 = vld [vmem:[#allocation2 + $0x34] sm:$0xff] }
 0x73e   : > { %25989 = vmatmul.mubr.msk.f32.gmra.mrb[42].mxu0 %vm9120_vm5, %v10688_v25  ;;  %v31255_v25 = vld [vmem:[#allocation2 + $0x3c] sm:$0xff] }
 0x73f   : > { %25991 = vmatprep.mubr.msk.f32.mxu0 %vm9120_vm5, %v10689_v35  ;;  %v31263_v35 = vld [vmem:[#allocation2 + $0x4c] sm:$0xff] }
 0x742   : > { %25992 = vmatmul.mubr.msk.f32.gmra.mrb[44].mxu0 %vm9120_vm5, %v10690_v33  ;;  %v31267_v33 = vld [vmem:[#allocation2 + $0x54] sm:$0xff] }
 0x743   : > { %25994 = vmatprep.mubr.msk.f32.mxu0 %vm9120_vm5, %v10691_v23  ;;  %v31271_v23 = vld [vmem:[#allocation2 + $0x5c] sm:$0xff] }
 0x746   : > { %25995 = vmatmul.mubr.msk.f32.gmra.mrb[46].mxu0 %vm9120_vm5, %v10692_v30  ;;  %v31275_v30 = vld [vmem:[#allocation2 + $0x64] sm:$0xff] }
 0x747   : > { %25997 = vmatprep.mubr.msk.f32.mxu0 %vm9120_vm5, %v10693_v36  ;;  %v31279_v36 = vld [vmem:[#allocation2 + $0x6c] sm:$0xff] }
 0x74a   : > { %25998 = vmatmul.mubr.msk.f32.gmra.mrb[48].mxu0 %vm9120_vm5, %v10694_v41  ;;  %v31283_v41 = vld [vmem:[#allocation2 + $0x74] sm:$0xff] }
 0x74b   : > { %26000 = vmatprep.mubr.msk.f32.mxu0 %vm9120_vm5, %v10695_v49  ;;  %v11121_v49 = vld [vmem:[#allocation2 + $0x7c] sm:$0xff] }
 0x74e   : > { %26001 = vmatmul.mubr.msk.f32.gmra.mrb[50].mxu0 %vm9120_vm5, %v10696_v31  ;;  %v11122_v31 = vld [vmem:[#allocation2 + $0x84] sm:$0xff] }
 0x74f   : > { %26003 = vmatprep.mubr.msk.f32.mxu0 %vm9120_vm5, %v10697_v50  ;;  %v11123_v50 = vld [vmem:[#allocation2 + $0x8c] sm:$0xff] }
 0x752   : > { %26004 = vmatmul.mubr.msk.f32.gmra.mrb[52].mxu0 %vm9120_vm5, %v10698_v46  ;;  %v11124_v46 = vld [vmem:[#allocation2 + $0x94] sm:$0xff] }
 0x753   : > { %26006 = vmatprep.mubr.msk.f32.mxu0 %vm9120_vm5, %v10699_v56  ;;  %v11125_v56 = vld [vmem:[#allocation2 + $0x9c] sm:$0xff] }
 0x756   : > { %26007 = vmatmul.mubr.msk.f32.gmra.mrb[54].mxu0 %vm9120_vm5, %v10700_v21  ;;  %v11126_v21 = vld [vmem:[#allocation2 + $0xa4] sm:$0xff] }
 0x757   : > { %26009 = vmatprep.mubr.msk.f32.mxu0 %vm9120_vm5, %v10701_v3  ;;  %v11127_v3 = vld [vmem:[#allocation2 + $0xac] sm:$0xff] }
 0x75a   : > { %26010 = vmatmul.mubr.msk.f32.gmra.mrb[56].mxu0 %vm9120_vm5, %v10702_v54  ;;  %v11128_v54 = vld [vmem:[#allocation2 + $0xb4] sm:$0xff] }
 0x75b   : > { %26012 = vmatprep.mubr.msk.f32.mxu0 %vm9120_vm5, %v10703_v59  ;;  %v11129_v59 = vld [vmem:[#allocation2 + $0xbc] sm:$0xff] }
 0x75e   : > { %26013 = vmatmul.mubr.msk.f32.gmra.mrb[58].mxu0 %vm9120_vm5, %v10704_v39  ;;  %v11130_v39 = vld [vmem:[#allocation2 + $0xc4] sm:$0xff] }
 0x75f   : > { %26015 = vmatprep.mubr.msk.f32.mxu0 %vm9120_vm5, %v10705_v63  ;;  %v11131_v63 = vld [vmem:[#allocation2 + $0xcc] sm:$0xff] }
 0x762   : > { %26016 = vmatmul.mubr.msk.f32.gmra.mrb[60].mxu0 %vm9120_vm5, %v10706_v5  ;;  %v11132_v5 = vld [vmem:[#allocation2 + $0xd4] sm:$0xff] }
 0x763   : > { %26018 = vmatprep.mubr.msk.f32.mxu0 %vm9120_vm5, %v10707_v20  ;;  %v11133_v20 = vld [vmem:[#allocation2 + $0xdc] sm:$0xff] }
 0x766   : > { %26019 = vmatmul.mubr.msk.f32.gmra.mrb[62].mxu0 %vm9120_vm5, %v10708_v7  ;;  %v11134_v7 = vld [vmem:[#allocation2 + $0xe4] sm:$0xff] }
 0x767   : > { %26021 = vmatprep.mubr.msk.f32.mxu0 %vm9120_vm5, %v10709_v48  ;;  %v11135_v48 = vld [vmem:[#allocation2 + $0xec] sm:$0xff] }
 0x76a   : > { %26022 = vmatmul.mubr.msk.f32.gmra.mrb[64].mxu0 %vm9120_vm5, %v10710_v52  ;;  %v11136_v52 = vld [vmem:[#allocation2 + $0xf4] sm:$0xff] }
 0x76b   : > { %26024 = vmatprep.mubr.msk.f32.mxu0 %vm9120_vm5, %v10711_v1  ;;  %v11137_v1 = vld [vmem:[#allocation2 + $0xfc] sm:$0xff] }
 0x76e   : > { %26025 = vmatmul.mubr.msk.f32.gmra.mrb[66].mxu0 %vm9120_vm5, %v10712_v8  ;;  %v11138_v8 = vld [vmem:[#allocation2 + $0x104] sm:$0xff] }
 0x76f   : > { %26027 = vmatprep.mubr.msk.f32.mxu0 %vm9120_vm5, %v10713_v45  ;;  %v11139_v45 = vld [vmem:[#allocation2 + $0x10c] sm:$0xff] }
 0x772   : > { %26028 = vmatmul.mubr.msk.f32.gmra.mrb[68].mxu0 %vm9120_vm5, %v10714_v60  ;;  %v11140_v60 = vld [vmem:[#allocation2 + $0x114] sm:$0xff] }
 0x773   : > { %26030 = vmatprep.mubr.msk.f32.mxu0 %vm9120_vm5, %v10715_v55  ;;  %v11141_v55 = vld [vmem:[#allocation2 + $0x11c] sm:$0xff] }
 0x776   : > { %26031 = vmatmul.mubr.msk.f32.gmra.mrb[70].mxu0 %vm9120_vm5, %v10716_v0  ;;  %v11142_v0 = vld [vmem:[#allocation2 + $0x124] sm:$0xff] }
 0x777   : > { %26037 = vmatprep.mubr.msk.f32.mxu0 %vm9120_vm5, %v11108_v13  ;;  %v12426_v13 = vld [vmem:[%s33099_s6 + $0x88] sm:$0xff] }
 0x77a   : > { %26038 = vmatmul.mubr.msk.f32.vlgmr.msra.gmra.mrb[36].mxu0 %vm9120_vm5, %v11109_v15  ;;  %v27431_v15 = vpack.c.bf16 %v12426_v13, %v12425_v53  ;;  %v11996_v53 = vld [vmem:[#allocation2 + $0x135] sm:$0xff]  ;;  %v11995_v13 = vld [vmem:[#allocation2 + $0x12d] sm:$0xff] }
 0x77b   : > { %27426 = vmatpush3.bf16.msra.mxu0 %v31193_v58  ;;  %26040 = vmatprep.mubr.msk.f32.mxu0 %vm9120_vm5, %v31241_v16  ;;  %v31259_v58 = vld [vmem:[#allocation2 + $0x44] sm:$0xff] }
 0x77c   : > { %27428 = vmatprep.subr.bf16.mxu0 %v31238_v32 }
 0x77e   : > { %26041 = vmatmul.mubr.msk.f32.gmra.mrb[38].mxu0 %vm9120_vm5, %v31247_v19 }
 0x77f   : > { %26043 = vmatprep.mubr.msk.f32.mxu0 %vm9120_vm5, %v31251_v22 }
 0x782   : > { %26044 = vmatmul.mubr.msk.f32.gmra.mrb[40].mxu0 %vm9120_vm5, %v31255_v25 }
 0x783   : > { %26046 = vmatprep.mubr.msk.f32.mxu0 %vm9120_vm5, %v31259_v58 }
 0x786   : > { %26047 = vmatmul.mubr.msk.f32.gmra.mrb[42].mxu0 %vm9120_vm5, %v31263_v35 }
 0x787   : > { %26049 = vmatprep.mubr.msk.f32.mxu0 %vm9120_vm5, %v31267_v33 }
 0x78a   : > { %26050 = vmatmul.mubr.msk.f32.gmra.mrb[44].mxu0 %vm9120_vm5, %v31271_v23 }
 0x78b   : > { %26052 = vmatprep.mubr.msk.f32.mxu0 %vm9120_vm5, %v31275_v30 }
 0x78e   : > { %26053 = vmatmul.mubr.msk.f32.gmra.mrb[46].mxu0 %vm9120_vm5, %v31279_v36 }
 0x78f   : > { %26055 = vmatprep.mubr.msk.f32.mxu0 %vm9120_vm5, %v31283_v41 }
 0x792   : > { %26056 = vmatmul.mubr.msk.f32.gmra.mrb[48].mxu0 %vm9120_vm5, %v11121_v49 }
 0x793   : > { %26058 = vmatprep.mubr.msk.f32.mxu0 %vm9120_vm5, %v11122_v31 }
 0x796   : > { %26059 = vmatmul.mubr.msk.f32.gmra.mrb[50].mxu0 %vm9120_vm5, %v11123_v50 }
 0x797   : > { %26061 = vmatprep.mubr.msk.f32.mxu0 %vm9120_vm5, %v11124_v46 }
 0x79a   : > { %26062 = vmatmul.mubr.msk.f32.gmra.mrb[52].mxu0 %vm9120_vm5, %v11125_v56 }
 0x79b   : > { %26064 = vmatprep.mubr.msk.f32.mxu0 %vm9120_vm5, %v11126_v21 }
 0x79e   : > { %26065 = vmatmul.mubr.msk.f32.gmra.mrb[54].mxu0 %vm9120_vm5, %v11127_v3 }
 0x79f   : > { %26067 = vmatprep.mubr.msk.f32.mxu0 %vm9120_vm5, %v11128_v54 }
 0x7a2   : > { %26068 = vmatmul.mubr.msk.f32.gmra.mrb[56].mxu0 %vm9120_vm5, %v11129_v59 }
 0x7a3   : > { %26070 = vmatprep.mubr.msk.f32.mxu0 %vm9120_vm5, %v11130_v39 }
 0x7a6   : > { %26071 = vmatmul.mubr.msk.f32.gmra.mrb[58].mxu0 %vm9120_vm5, %v11131_v63 }
 0x7a7   : > { %26073 = vmatprep.mubr.msk.f32.mxu0 %vm9120_vm5, %v11132_v5 }
 0x7aa   : > { %26074 = vmatmul.mubr.msk.f32.gmra.mrb[60].mxu0 %vm9120_vm5, %v11133_v20 }
 0x7ab   : > { %26076 = vmatprep.mubr.msk.f32.mxu0 %vm9120_vm5, %v11134_v7 }
 0x7ae   : > { %26077 = vmatmul.mubr.msk.f32.gmra.mrb[62].mxu0 %vm9120_vm5, %v11135_v48 }
 0x7af   : > { %26079 = vmatprep.mubr.msk.f32.mxu0 %vm9120_vm5, %v11136_v52 }
 0x7b2   : > { %26080 = vmatmul.mubr.msk.f32.gmra.mrb[64].mxu0 %vm9120_vm5, %v11137_v1 }
 0x7b3   : > { %26082 = vmatprep.mubr.msk.f32.mxu0 %vm9120_vm5, %v11138_v8 }
 0x7b6   : > { %26083 = vmatmul.mubr.msk.f32.gmra.mrb[66].mxu0 %vm9120_vm5, %v11139_v45 }
 0x7b7   : > { %26085 = vmatprep.mubr.msk.f32.mxu0 %vm9120_vm5, %v11140_v60 }
 0x7ba   : > { %26086 = vmatmul.mubr.msk.f32.gmra.mrb[68].mxu0 %vm9120_vm5, %v11141_v55 }
 0x7bb   : > { %26088 = vmatprep.mubr.msk.f32.mxu0 %vm9120_vm5, %v11142_v0 }
 0x7be   : > { %26089 = vmatmul.mubr.msk.f32.gmra.mrb[70].mxu0 %vm9120_vm5, %v11143_v17 }
 0x7bf   : > { %26095 = vmatprep.mubr.msk.f32.mxu0 %vm9120_vm5, %v31241_v16  ;;  %v11570_v16 = vld [vmem:[#allocation2 + $0x13c] sm:$0xff] }
 0x7c2   : > { %26096 = vmatmul.mubr.msk.f32.vlgmr.msra.gmra.mrb[36].mxu0 %vm9120_vm5, %v31247_v19  ;;  %v11962_v19 = vld [vmem:[#allocation2 + $0x25] sm:$0xff] }
 0x7c3   : > { %27430 = vmatpush3.bf16.msra.mxu0 %v31238_v32  ;;  %26098 = vmatprep.mubr.msk.f32.mxu0 %vm9120_vm5, %v31251_v22  ;;  %v11569_v32 = vld [vmem:[#allocation2 + $0x134] sm:$0xff] }
 0x7c4   : > { %27432 = vmatprep.subr.bf16.mxu0 %v27431_v15  ;;  %v11963_v22 = vld [vmem:[#allocation2 + $0x2d] sm:$0xff] }
 0x7c6   : > { %26099 = vmatmul.mubr.msk.f32.gmra.mrb[38].mxu0 %vm9120_vm5, %v31255_v25  ;;  %v11964_v25 = vld [vmem:[#allocation2 + $0x35] sm:$0xff] }
 0x7c7   : > { %26101 = vmatprep.mubr.msk.f32.mxu0 %vm9120_vm5, %v31259_v58  ;;  %v11965_v58 = vld [vmem:[#allocation2 + $0x3d] sm:$0xff] }
 0x7ca   : > { %26102 = vmatmul.mubr.msk.f32.gmra.mrb[40].mxu0 %vm9120_vm5, %v31263_v35  ;;  %v11966_v35 = vld [vmem:[#allocation2 + $0x45] sm:$0xff] }
 0x7cb   : > { %26104 = vmatprep.mubr.msk.f32.mxu0 %vm9120_vm5, %v31267_v33  ;;  %v11967_v33 = vld [vmem:[#allocation2 + $0x4d] sm:$0xff] }
 0x7ce   : > { %26105 = vmatmul.mubr.msk.f32.gmra.mrb[42].mxu0 %vm9120_vm5, %v31271_v23  ;;  %v11968_v23 = vld [vmem:[#allocation2 + $0x55] sm:$0xff] }
 0x7cf   : > { %26107 = vmatprep.mubr.msk.f32.mxu0 %vm9120_vm5, %v31275_v30  ;;  %v11969_v30 = vld [vmem:[#allocation2 + $0x5d] sm:$0xff] }
 0x7d2   : > { %26108 = vmatmul.mubr.msk.f32.gmra.mrb[44].mxu0 %vm9120_vm5, %v31279_v36  ;;  %v11970_v36 = vld [vmem:[#allocation2 + $0x65] sm:$0xff] }
 0x7d3   : > { %26110 = vmatprep.mubr.msk.f32.mxu0 %vm9120_vm5, %v31283_v41  ;;  %v11971_v41 = vld [vmem:[#allocation2 + $0x6d] sm:$0xff] }
 0x7d6   : > { %26111 = vmatmul.mubr.msk.f32.gmra.mrb[46].mxu0 %vm9120_vm5, %v11121_v49  ;;  %v11972_v49 = vld [vmem:[#allocation2 + $0x75] sm:$0xff] }
 0x7d7   : > { %26113 = vmatprep.mubr.msk.f32.mxu0 %vm9120_vm5, %v11122_v31  ;;  %v11973_v31 = vld [vmem:[#allocation2 + $0x7d] sm:$0xff] }
 0x7da   : > { %26114 = vmatmul.mubr.msk.f32.gmra.mrb[48].mxu0 %vm9120_vm5, %v11123_v50  ;;  %v11974_v50 = vld [vmem:[#allocation2 + $0x85] sm:$0xff] }
 0x7db   : > { %26116 = vmatprep.mubr.msk.f32.mxu0 %vm9120_vm5, %v11124_v46  ;;  %v11975_v46 = vld [vmem:[#allocation2 + $0x8d] sm:$0xff] }
 0x7de   : > { %26117 = vmatmul.mubr.msk.f32.gmra.mrb[50].mxu0 %vm9120_vm5, %v11125_v56  ;;  %v11976_v56 = vld [vmem:[#allocation2 + $0x95] sm:$0xff] }
 0x7df   : > { %26119 = vmatprep.mubr.msk.f32.mxu0 %vm9120_vm5, %v11126_v21  ;;  %v11977_v21 = vld [vmem:[#allocation2 + $0x9d] sm:$0xff] }
 0x7e2   : > { %26120 = vmatmul.mubr.msk.f32.gmra.mrb[52].mxu0 %vm9120_vm5, %v11127_v3  ;;  %v11978_v3 = vld [vmem:[#allocation2 + $0xa5] sm:$0xff] }
 0x7e3   : > { %26122 = vmatprep.mubr.msk.f32.mxu0 %vm9120_vm5, %v11128_v54  ;;  %v11979_v54 = vld [vmem:[#allocation2 + $0xad] sm:$0xff] }
 0x7e6   : > { %26123 = vmatmul.mubr.msk.f32.gmra.mrb[54].mxu0 %vm9120_vm5, %v11129_v59  ;;  %v11980_v59 = vld [vmem:[#allocation2 + $0xb5] sm:$0xff] }
 0x7e7   : > { %26125 = vmatprep.mubr.msk.f32.mxu0 %vm9120_vm5, %v11130_v39  ;;  %v11981_v39 = vld [vmem:[#allocation2 + $0xbd] sm:$0xff] }
 0x7ea   : > { %26126 = vmatmul.mubr.msk.f32.gmra.mrb[56].mxu0 %vm9120_vm5, %v11131_v63  ;;  %v11982_v63 = vld [vmem:[#allocation2 + $0xc5] sm:$0xff] }
 0x7eb   : > { %26128 = vmatprep.mubr.msk.f32.mxu0 %vm9120_vm5, %v11132_v5  ;;  %v11983_v5 = vld [vmem:[#allocation2 + $0xcd] sm:$0xff] }
 0x7ee   : > { %26129 = vmatmul.mubr.msk.f32.gmra.mrb[58].mxu0 %vm9120_vm5, %v11133_v20  ;;  %v11984_v20 = vld [vmem:[#allocation2 + $0xd5] sm:$0xff] }
 0x7ef   : > { %26131 = vmatprep.mubr.msk.f32.mxu0 %vm9120_vm5, %v11134_v7  ;;  %v11985_v7 = vld [vmem:[#allocation2 + $0xdd] sm:$0xff] }
 0x7f2   : > { %26132 = vmatmul.mubr.msk.f32.gmra.mrb[60].mxu0 %vm9120_vm5, %v11135_v48  ;;  %v11986_v48 = vld [vmem:[#allocation2 + $0xe5] sm:$0xff] }
 0x7f3   : > { %26134 = vmatprep.mubr.msk.f32.mxu0 %vm9120_vm5, %v11136_v52  ;;  %v11987_v52 = vld [vmem:[#allocation2 + $0xed] sm:$0xff] }
 0x7f6   : > { %26135 = vmatmul.mubr.msk.f32.gmra.mrb[62].mxu0 %vm9120_vm5, %v11137_v1  ;;  %v11988_v1 = vld [vmem:[#allocation2 + $0xf5] sm:$0xff] }
 0x7f7   : > { %26137 = vmatprep.mubr.msk.f32.mxu0 %vm9120_vm5, %v11138_v8  ;;  %v11989_v8 = vld [vmem:[#allocation2 + $0xfd] sm:$0xff] }
 0x7fa   : > { %26138 = vmatmul.mubr.msk.f32.gmra.mrb[64].mxu0 %vm9120_vm5, %v11139_v45  ;;  %v11990_v45 = vld [vmem:[#allocation2 + $0x105] sm:$0xff] }
 0x7fb   : > { %26140 = vmatprep.mubr.msk.f32.mxu0 %vm9120_vm5, %v11140_v60  ;;  %v11991_v60 = vld [vmem:[#allocation2 + $0x10d] sm:$0xff] }
 0x7fe   : > { %26141 = vmatmul.mubr.msk.f32.gmra.mrb[66].mxu0 %vm9120_vm5, %v11141_v55  ;;  %v11992_v55 = vld [vmem:[#allocation2 + $0x115] sm:$0xff] }
 0x7ff   : > { %26143 = vmatprep.mubr.msk.f32.mxu0 %vm9120_vm5, %v11142_v0  ;;  %v11993_v0 = vld [vmem:[#allocation2 + $0x11d] sm:$0xff] }
 0x802   : > { %26144 = vmatmul.mubr.msk.f32.gmra.mrb[68].mxu0 %vm9120_vm5, %v11143_v17  ;;  %v11994_v17 = vld [vmem:[#allocation2 + $0x125] sm:$0xff] }
 0x803   : > { %26146 = vmatprep.mubr.msk.f32.mxu0 %vm9120_vm5, %v11569_v32  ;;  %v12389_v32 = vld [vmem:[#allocation2 + $0x26] sm:$0xff] }
 0x806   : > { %26147 = vmatmul.mubr.msk.f32.gmra.mrb[70].mxu0 %vm9120_vm5, %v11570_v16  ;;  %v12390_v16 = vld [vmem:[#allocation2 + $0x2e] sm:$0xff] }
 0x807   : > { %26153 = vmatprep.mubr.msk.f32.mxu0 %vm9120_vm5, %v11962_v19  ;;  %v12391_v19 = vld [vmem:[#allocation2 + $0x36] sm:$0xff] }
 0x80a   : > { %26154 = vmatmul.mubr.msk.f32.vlgmr.msra.gmra.mrb[36].mxu0 %vm9120_vm5, %v11963_v22  ;;  %v12392_v22 = vld [vmem:[#allocation2 + $0x3e] sm:$0xff] }
 0x80b   : > { %27434 = vmatpush3.bf16.msra.mxu0 %v27431_v15  ;;  %26156 = vmatprep.mubr.msk.f32.mxu0 %vm9120_vm5, %v11964_v25  ;;  %v11997_v15 = vld [vmem:[#allocation2 + $0x13d] sm:$0xff]  ;;  %v12393_v25 = vld [vmem:[#allocation2 + $0x46] sm:$0xff] }
 0x80e   : > { %26157 = vmatmul.mubr.msk.f32.gmra.mrb[38].mxu0 %vm9120_vm5, %v11965_v58  ;;  %v12394_v58 = vld [vmem:[#allocation2 + $0x4e] sm:$0xff] }
 0x80f   : > { %26159 = vmatprep.mubr.msk.f32.mxu0 %vm9120_vm5, %v11966_v35  ;;  %v12395_v35 = vld [vmem:[#allocation2 + $0x56] sm:$0xff] }
 0x812   : > { %26160 = vmatmul.mubr.msk.f32.gmra.mrb[40].mxu0 %vm9120_vm5, %v11967_v33  ;;  %v12396_v33 = vld [vmem:[#allocation2 + $0x5e] sm:$0xff] }
 0x813   : > { %26162 = vmatprep.mubr.msk.f32.mxu0 %vm9120_vm5, %v11968_v23  ;;  %v12397_v23 = vld [vmem:[#allocation2 + $0x66] sm:$0xff] }
 0x816   : > { %26163 = vmatmul.mubr.msk.f32.gmra.mrb[42].mxu0 %vm9120_vm5, %v11969_v30  ;;  %v12398_v30 = vld [vmem:[#allocation2 + $0x6e] sm:$0xff] }
 0x817   : > { %26165 = vmatprep.mubr.msk.f32.mxu0 %vm9120_vm5, %v11970_v36  ;;  %v12399_v36 = vld [vmem:[#allocation2 + $0x76] sm:$0xff] }
 0x81a   : > { %26166 = vmatmul.mubr.msk.f32.gmra.mrb[44].mxu0 %vm9120_vm5, %v11971_v41  ;;  %v12400_v41 = vld [vmem:[#allocation2 + $0x7e] sm:$0xff] }
 0x81b   : > { %26168 = vmatprep.mubr.msk.f32.mxu0 %vm9120_vm5, %v11972_v49  ;;  %v12401_v49 = vld [vmem:[#allocation2 + $0x86] sm:$0xff] }
 0x81e   : > { %26169 = vmatmul.mubr.msk.f32.gmra.mrb[46].mxu0 %vm9120_vm5, %v11973_v31  ;;  %v12402_v31 = vld [vmem:[#allocation2 + $0x8e] sm:$0xff] }
 0x81f   : > { %26171 = vmatprep.mubr.msk.f32.mxu0 %vm9120_vm5, %v11974_v50  ;;  %v12403_v50 = vld [vmem:[#allocation2 + $0x96] sm:$0xff] }
 0x822   : > { %26172 = vmatmul.mubr.msk.f32.gmra.mrb[48].mxu0 %vm9120_vm5, %v11975_v46  ;;  %v12404_v46 = vld [vmem:[#allocation2 + $0x9e] sm:$0xff] }
 0x823   : > { %26174 = vmatprep.mubr.msk.f32.mxu0 %vm9120_vm5, %v11976_v56  ;;  %v12405_v56 = vld [vmem:[#allocation2 + $0xa6] sm:$0xff] }
 0x826   : > { %26175 = vmatmul.mubr.msk.f32.gmra.mrb[50].mxu0 %vm9120_vm5, %v11977_v21  ;;  %v12406_v21 = vld [vmem:[#allocation2 + $0xae] sm:$0xff] }
 0x827   : > { %26177 = vmatprep.mubr.msk.f32.mxu0 %vm9120_vm5, %v11978_v3  ;;  %v12407_v3 = vld [vmem:[#allocation2 + $0xb6] sm:$0xff] }
 0x82a   : > { %26178 = vmatmul.mubr.msk.f32.gmra.mrb[52].mxu0 %vm9120_vm5, %v11979_v54  ;;  %v12408_v54 = vld [vmem:[#allocation2 + $0xbe] sm:$0xff] }
 0x82b   : > { %26180 = vmatprep.mubr.msk.f32.mxu0 %vm9120_vm5, %v11980_v59  ;;  %v12409_v59 = vld [vmem:[#allocation2 + $0xc6] sm:$0xff] }
 0x82e   : > { %26181 = vmatmul.mubr.msk.f32.gmra.mrb[54].mxu0 %vm9120_vm5, %v11981_v39  ;;  %v12410_v39 = vld [vmem:[#allocation2 + $0xce] sm:$0xff] }
 0x82f   : > { %26183 = vmatprep.mubr.msk.f32.mxu0 %vm9120_vm5, %v11982_v63  ;;  %v12411_v63 = vld [vmem:[#allocation2 + $0xd6] sm:$0xff] }
 0x832   : > { %26184 = vmatmul.mubr.msk.f32.gmra.mrb[56].mxu0 %vm9120_vm5, %v11983_v5  ;;  %v12412_v5 = vld [vmem:[#allocation2 + $0xde] sm:$0xff] }
 0x833   : > { %26186 = vmatprep.mubr.msk.f32.mxu0 %vm9120_vm5, %v11984_v20  ;;  %v12413_v20 = vld [vmem:[#allocation2 + $0xe6] sm:$0xff] }
 0x836   : > { %26187 = vmatmul.mubr.msk.f32.gmra.mrb[58].mxu0 %vm9120_vm5, %v11985_v7  ;;  %v12414_v7 = vld [vmem:[#allocation2 + $0xee] sm:$0xff] }
 0x837   : > { %26189 = vmatprep.mubr.msk.f32.mxu0 %vm9120_vm5, %v11986_v48  ;;  %v12415_v48 = vld [vmem:[#allocation2 + $0xf6] sm:$0xff] }
 0x83a   : > { %26190 = vmatmul.mubr.msk.f32.gmra.mrb[60].mxu0 %vm9120_vm5, %v11987_v52  ;;  %v12416_v52 = vld [vmem:[#allocation2 + $0xfe] sm:$0xff] }
 0x83b   : > { %26192 = vmatprep.mubr.msk.f32.mxu0 %vm9120_vm5, %v11988_v1  ;;  %v12417_v1 = vld [vmem:[#allocation2 + $0x106] sm:$0xff] }
 0x83e   : > { %26193 = vmatmul.mubr.msk.f32.gmra.mrb[62].mxu0 %vm9120_vm5, %v11989_v8  ;;  %v12418_v8 = vld [vmem:[#allocation2 + $0x10e] sm:$0xff] }
 0x83f   : > { %26195 = vmatprep.mubr.msk.f32.mxu0 %vm9120_vm5, %v11990_v45  ;;  %v12419_v45 = vld [vmem:[#allocation2 + $0x116] sm:$0xff] }
 0x842   : > { %26196 = vmatmul.mubr.msk.f32.gmra.mrb[64].mxu0 %vm9120_vm5, %v11991_v60  ;;  %v12420_v60 = vld [vmem:[#allocation2 + $0x11e] sm:$0xff] }
 0x843   : > { %26198 = vmatprep.mubr.msk.f32.mxu0 %vm9120_vm5, %v11992_v55  ;;  %v12421_v55 = vld [vmem:[#allocation2 + $0x126] sm:$0xff] }
 0x846   : > { %26199 = vmatmul.mubr.msk.f32.gmra.mrb[66].mxu0 %vm9120_vm5, %v11993_v0  ;;  %v12423_v0 = vld [vmem:[#allocation2 + $0x136] sm:$0xff] }
 0x847   : > { %26201 = vmatprep.mubr.msk.f32.mxu0 %vm9120_vm5, %v11994_v17  ;;  %v12422_v17 = vld [vmem:[#allocation2 + $0x12e] sm:$0xff] }
 0x84a   : > { %26202 = vmatmul.mubr.msk.f32.gmra.mrb[68].mxu0 %vm9120_vm5, %v11995_v13  ;;  %v13259_v13 = vld [vmem:[%s33101_s8 + $0x14] sm:$0xff] }
 0x84b   : > { %26204 = vmatprep.mubr.msk.f32.mxu0 %vm9120_vm5, %v11996_v53  ;;  %v12424_v53 = vld [vmem:[#allocation2 + $0x13e] sm:$0xff] }
 0x84e   : > { %26205 = vmatmul.mubr.msk.f32.gmra.mrb[70].mxu0 %vm9120_vm5, %v11997_v15  ;;  %v13260_v15 = vld [vmem:[%s33101_s8 + $0x1c] sm:$0xff] }
 0x84f   : > { %26211 = vmatprep.mubr.msk.f32.mxu0 %vm9120_vm5, %v12389_v32  ;;  %v27435_v32 = vpack.c.bf16 %v13260_v15, %v13259_v13 }
 0x851   : > { %27436 = vmatprep.subr.bf16.mxu1 %v27435_v32 }
 0x852   : > { %26212 = vmatmul.mubr.msk.f32.vlgmr.msra.gmra.mrb[36].mxu0 %vm9120_vm5, %v12390_v16  ;;  %27438 = vmatpush3.bf16.msra.mxu1 %v27435_v32  ;;  %v13261_v16 = vld [vmem:[%s33101_s8 + $0x24] sm:$0xf] }
 0x853   : > { %26214 = vmatprep.mubr.msk.f32.mxu0 %vm9120_vm5, %v12391_v19  ;;  %26269 = vmatprep.subr.msk.mxu1 %vm5061_vm3, %v13261_v16  ;;  %v31450_v19 = vld [vmem:[%s33100_s7] ss:$0 sm:$0xff] }
 0x856   : > { %26215 = vmatmul.mubr.msk.f32.gmra.mrb[38].mxu0 %vm9120_vm5, %v12392_v22  ;;  %26270 = vmatpush3.msk.msra.mxu1 %vm5061_vm3, %v13261_v16  ;;  %v13223_v22 = vld [vmem:[#allocation2 + $0x1] sm:$0xff] }
 0x857   : > { %26217 = vmatprep.mubr.msk.f32.mxu0 %vm9120_vm5, %v12393_v25  ;;  %v13220_v25 = vld [vmem:[%s33101_s8] sm:$0xff] }
 0x85a   : > { %26218 = vmatmul.mubr.msk.f32.gmra.mrb[40].mxu0 %vm9120_vm5, %v12394_v58  ;;  %v13221_v58 = vld [vmem:[%s33101_s8 + $0x8] sm:$0xff] }
 0x85b   : > { %26220 = vmatprep.mubr.msk.f32.mxu0 %vm9120_vm5, %v12395_v35 }
 0x85e   : > { %26221 = vmatmul.mubr.msk.f32.gmra.mrb[42].mxu0 %vm9120_vm5, %v12396_v33  ;;  %v27439_v33 = vpack.c.bf16 %v13221_v58, %v13220_v25 }
 0x85f   : > { %26223 = vmatprep.mubr.msk.f32.mxu0 %vm9120_vm5, %v12397_v23  ;;  %v13224_v23 = vld [vmem:[#allocation2 + $0x9] sm:$0xff] }
 0x860   : > { %27440 = vmatprep.subr.bf16.mxu1 %v27439_v33 }
 0x862   : > { %26224 = vmatmul.mubr.msk.f32.gmra.mrb[44].mxu0 %vm9120_vm5, %v12398_v30 }
 0x863   : > { %26226 = vmatprep.mubr.msk.f32.mxu0 %vm9120_vm5, %v12399_v36 }
 0x866   : > { %26227 = vmatmul.mubr.msk.f32.gmra.mrb[46].mxu0 %vm9120_vm5, %v12400_v41 }
 0x867   : > { %26229 = vmatprep.mubr.msk.f32.mxu0 %vm9120_vm5, %v12401_v49 }
 0x86a   : > { %26230 = vmatmul.mubr.msk.f32.gmra.mrb[48].mxu0 %vm9120_vm5, %v12402_v31 }
 0x86b   : > { %26232 = vmatprep.mubr.msk.f32.mxu0 %vm9120_vm5, %v12403_v50 }
 0x86e   : > { %26233 = vmatmul.mubr.msk.f32.gmra.mrb[50].mxu0 %vm9120_vm5, %v12404_v46 }
 0x86f   : > { %26235 = vmatprep.mubr.msk.f32.mxu0 %vm9120_vm5, %v12405_v56 }
 0x872   : > { %26236 = vmatmul.mubr.msk.f32.gmra.mrb[52].mxu0 %vm9120_vm5, %v12406_v21 }
 0x873   : > { %26238 = vmatprep.mubr.msk.f32.mxu0 %vm9120_vm5, %v12407_v3 }
 0x876   : > { %26239 = vmatmul.mubr.msk.f32.gmra.mrb[54].mxu0 %vm9120_vm5, %v12408_v54 }
 0x877   : > { %26241 = vmatprep.mubr.msk.f32.mxu0 %vm9120_vm5, %v12409_v59 }
 0x87a   : > { %26242 = vmatmul.mubr.msk.f32.gmra.mrb[56].mxu0 %vm9120_vm5, %v12410_v39 }
 0x87b   : > { %26244 = vmatprep.mubr.msk.f32.mxu0 %vm9120_vm5, %v12411_v63 }
 0x87e   : > { %26245 = vmatmul.mubr.msk.f32.gmra.mrb[58].mxu0 %vm9120_vm5, %v12412_v5 }
 0x87f   : > { %26247 = vmatprep.mubr.msk.f32.mxu0 %vm9120_vm5, %v12413_v20 }
 0x882   : > { %26248 = vmatmul.mubr.msk.f32.gmra.mrb[60].mxu0 %vm9120_vm5, %v12414_v7 }
 0x883   : > { %26250 = vmatprep.mubr.msk.f32.mxu0 %vm9120_vm5, %v12415_v48 }
 0x886   : > { %26251 = vmatmul.mubr.msk.f32.gmra.mrb[62].mxu0 %vm9120_vm5, %v12416_v52 }
 0x887   : > { %26253 = vmatprep.mubr.msk.f32.mxu0 %vm9120_vm5, %v12417_v1 }
 0x88a   : > { %26254 = vmatmul.mubr.msk.f32.gmra.mrb[64].mxu0 %vm9120_vm5, %v12418_v8 }
 0x88b   : > { %26256 = vmatprep.mubr.msk.f32.mxu0 %vm9120_vm5, %v12419_v45 }
 0x88e   : > { %26257 = vmatmul.mubr.msk.f32.gmra.mrb[66].mxu0 %vm9120_vm5, %v12420_v60 }
 0x88f   : > { %26259 = vmatprep.mubr.msk.f32.mxu0 %vm9120_vm5, %v12421_v55 }
 0x892   : > { %26260 = vmatmul.mubr.msk.f32.gmra.mrb[68].mxu0 %vm9120_vm5, %v12422_v17 }
 0x893   : > { %26262 = vmatprep.mubr.msk.f32.mxu0 %vm9120_vm5, %v12423_v0 }
 0x896   : > { %26263 = vmatmul.mubr.msk.f32.gmra.mrb[70].mxu0 %vm9120_vm5, %v12424_v53  ;;  %vm13262_vm5 = vcmask 162816  }
 0x897   : > { %26271 = vmatprep.mubr.msk.f32.mxu1 %vm13262_vm5, %v13223_v22 }
 0x898   : > { %26272 = vmatmul.mubr.msk.f32.vlgmr.msra.gmra.mrb[72].mxu1 %vm13262_vm5, %v13224_v23 }
 0x899   : > { %27442 = vmatpush3.bf16.msra.mxu1 %v27439_v33 }
 0x925   : > { %v26213_v35 = vpop.f32.mrb[36].mxu0 }
 0x926   : > { %v12824_v30 = vadd.f32 %v26213_v35, %v31450_v19  ;;  %v12601_v36 = vpop.f32.mrb[37].mxu0 }
 0x927   : > { %v12823_v41 = vadd.f32 %v31450_v19, %v12601_v36 }
 0x928   : > { %vm12860_vm11 = vcmp.ge.f32.partialorder %v12824_v30, 0.0  ;;  %v12896_v49 = vmul.f32 0.2, %v12824_v30 }
 0x929   : > { %vm12859_vm12 = vcmp.ge.f32.partialorder %v12823_v41, 0.0  ;;  %v12895_v31 = vmul.f32 0.2, %v12823_v41  ;;  %v26216_v50 = vpop.f32.mrb[38].mxu0 }
 0x92a   : > { %v12932_v46 = vsel %vm12860_vm11, %v12824_v30, %v12896_v49  ;;  %v12826_v56 = vadd.f32 %v26216_v50, %v31450_v19  ;;  %v12611_v21 = vpop.f32.mrb[39].mxu0 }
 0x92b   : > { %v12968_v3 = vmul.f32 %v12932_v46, %v30013_v40  ;;  %v12931_v54 = vsel %vm12859_vm12, %v12823_v41, %v12895_v31  ;;  %v12825_v59 = vadd.f32 %v31450_v19, %v12611_v21 }
 0x92c   : > { %v12967_v39 = vmul.f32 %v12931_v54, %v30003_v18  ;;  %vm12862_vm13 = vcmp.ge.f32.partialorder %v12826_v56, 0.0  ;;  %v12898_v63 = vmul.f32 0.2, %v12826_v56 }
 0x92d   : > { %vm12861_vm14 = vcmp.ge.f32.partialorder %v12825_v59, 0.0  ;;  %v12897_v5 = vmul.f32 0.2, %v12825_v59  ;;  %13041 = vrot.lane.b32.xlu1 %v12968_v3, %s28981_s29  ;;  %v26219_v20 = vpop.f32.mrb[40].mxu0 }
 0x92e   : > { %v12934_v7 = vsel %vm12862_vm13, %v12826_v56, %v12898_v63  ;;  %v12828_v48 = vadd.f32 %v26219_v20, %v31450_v19  ;;  %13039 = vrot.lane.b32.xlu0 %v12967_v39, %s28981_s29  ;;  %v12621_v52 = vpop.f32.mrb[41].mxu0 }
 0x92f   : > { %v12970_v1 = vmul.f32 %v12934_v7, %v30007_v26  ;;  %v12933_v8 = vsel %vm12861_vm14, %v12825_v59, %v12897_v5  ;;  %v12827_v45 = vadd.f32 %v31450_v19, %v12621_v52 }
 0x930   : > { %v12969_v60 = vmul.f32 %v12933_v8, %v30001_v10  ;;  %vm12864_vm15 = vcmp.ge.f32.partialorder %v12828_v48, 0.0  ;;  %v12900_v55 = vmul.f32 0.2, %v12828_v48 }
 0x931   : > { %vm12863_vm2 = vcmp.ge.f32.partialorder %v12827_v45, 0.0  ;;  %v12899_v0 = vmul.f32 0.2, %v12827_v45  ;;  %13045 = vrot.lane.b32.xlu1 %v12970_v1, %s28981_s29  ;;  %v26222_v17 = vpop.f32.mrb[42].mxu0 }
 0x932   : > { %v12936_v53 = vsel %vm12864_vm15, %v12828_v48, %v12900_v55  ;;  %v12830_v13 = vadd.f32 %v26222_v17, %v31450_v19  ;;  %13043 = vrot.lane.b32.xlu0 %v12969_v60, %s28981_s29  ;;  %v12631_v15 = vpop.f32.mrb[43].mxu0 }
 0x933   : > { %v12972_v32 = vmul.f32 %v12936_v53, %v30017_v27  ;;  %v12935_v16 = vsel %vm12863_vm2, %v12827_v45, %v12899_v0  ;;  %v12829_v22 = vadd.f32 %v31450_v19, %v12631_v15 }
 0x934   : > { %v12971_v25 = vmul.f32 %v12935_v16, %v30023_v34  ;;  %vm12866_vm4 = vcmp.ge.f32.partialorder %v12830_v13, 0.0  ;;  %v12902_v58 = vmul.f32 0.2, %v12830_v13 }
 0x935   : > { %vm12865_vm7 = vcmp.ge.f32.partialorder %v12829_v22, 0.0  ;;  %v12901_v35 = vmul.f32 0.2, %v12829_v22  ;;  %13049 = vrot.lane.b32.xlu1 %v12972_v32, %s28981_s29  ;;  %v26225_v33 = vpop.f32.mrb[44].mxu0 }
 0x936   : > { %v12938_v23 = vsel %vm12866_vm4, %v12830_v13, %v12902_v58  ;;  %v12832_v30 = vadd.f32 %v26225_v33, %v31450_v19  ;;  %13047 = vrot.lane.b32.xlu0 %v12971_v25, %s28981_s29  ;;  %v12641_v36 = vpop.f32.mrb[45].mxu0 }
 0x937   : > { %v12974_v41 = vmul.f32 %v12938_v23, %v30027_v37  ;;  %v12937_v49 = vsel %vm12865_vm7, %v12829_v22, %v12901_v35  ;;  %v12831_v31 = vadd.f32 %v31450_v19, %v12641_v36 }
 0x938   : > { %v12973_v50 = vmul.f32 %v12937_v49, %v30033_v43  ;;  %vm12868_vm8 = vcmp.ge.f32.partialorder %v12832_v30, 0.0  ;;  %v12904_v46 = vmul.f32 0.2, %v12832_v30 }
 0x939   : > { %vm12867_vm9 = vcmp.ge.f32.partialorder %v12831_v31, 0.0  ;;  %v12903_v56 = vmul.f32 0.2, %v12831_v31  ;;  %13053 = vrot.lane.b32.xlu1 %v12974_v41, %s28981_s29  ;;  %v26228_v21 = vpop.f32.mrb[46].mxu0 }
 0x93a   : > { %v12940_v3 = vsel %vm12868_vm8, %v12832_v30, %v12904_v46  ;;  %v12834_v54 = vadd.f32 %v26228_v21, %v31450_v19  ;;  %13051 = vrot.lane.b32.xlu0 %v12973_v50, %s28981_s29  ;;  %v12651_v59 = vpop.f32.mrb[47].mxu0 }
 0x93b   : > { %v12976_v39 = vmul.f32 %v12940_v3, %v30037_v47  ;;  %v12939_v63 = vsel %vm12867_vm9, %v12831_v31, %v12903_v56  ;;  %v12833_v5 = vadd.f32 %v31450_v19, %v12651_v59 }
 0x93c   : > { %v12975_v20 = vmul.f32 %v12939_v63, %v30043_v57  ;;  %vm12870_vm10 = vcmp.ge.f32.partialorder %v12834_v54, 0.0  ;;  %v12906_v7 = vmul.f32 0.2, %v12834_v54 }
 0x93d   : > { %vm12869_vm6 = vcmp.ge.f32.partialorder %v12833_v5, 0.0  ;;  %v12905_v48 = vmul.f32 0.2, %v12833_v5  ;;  %13057 = vrot.lane.b32.xlu1 %v12976_v39, %s28981_s29  ;;  %v26231_v52 = vpop.f32.mrb[48].mxu0  ;;  %v13222_v39 = vld [vmem:[%s33101_s8 + $0x10] sm:$0xf] }
 0x93e   : > { %v12942_v1 = vsel %vm12870_vm10, %v12834_v54, %v12906_v7  ;;  %v12836_v8 = vadd.f32 %v26231_v52, %v31450_v19  ;;  %13055 = vrot.lane.b32.xlu0 %v12975_v20, %s28981_s29  ;;  %v12661_v45 = vpop.f32.mrb[49].mxu0  ;;  %26329 = vmatprep.subr.msk.mxu1 %vm5061_vm3, %v13222_v39 }
 0x93f   : > { %v12978_v60 = vmul.f32 %v12942_v1, %v30047_v61  ;;  %v12941_v55 = vsel %vm12869_vm6, %v12833_v5, %v12905_v48  ;;  %v12835_v0 = vadd.f32 %v31450_v19, %v12661_v45  ;;  %26330 = vmatpush3.msk.msra.mxu1 %vm5061_vm3, %v13222_v39 }
 0x940   : > { %v12977_v17 = vmul.f32 %v12941_v55, %v30049_v62  ;;  %vm12872_vm11 = vcmp.ge.f32.partialorder %v12836_v8, 0.0  ;;  %v12908_v53 = vmul.f32 0.2, %v12836_v8 }
 0x941   : > { %vm12871_vm12 = vcmp.ge.f32.partialorder %v12835_v0, 0.0  ;;  %v12907_v13 = vmul.f32 0.2, %v12835_v0  ;;  %13061 = vrot.lane.b32.xlu1 %v12978_v60, %s28981_s29  ;;  %v26234_v15 = vpop.f32.mrb[50].mxu0 }
 0x942   : > { %v12944_v32 = vsel %vm12872_vm11, %v12836_v8, %v12908_v53  ;;  %v12838_v16 = vadd.f32 %v26234_v15, %v31450_v19  ;;  %13059 = vrot.lane.b32.xlu0 %v12977_v17, %s28981_s29  ;;  %v12671_v22 = vpop.f32.mrb[51].mxu0 }
 0x943   : > { %v12980_v25 = vmul.f32 %v12944_v32, %v30056_v6  ;;  %v12943_v58 = vsel %vm12871_vm12, %v12835_v0, %v12907_v13  ;;  %v12837_v35 = vadd.f32 %v31450_v19, %v12671_v22 }
 0x944   : > { %v12979_v33 = vmul.f32 %v12943_v58, %v30070_v29  ;;  %vm12874_vm13 = vcmp.ge.f32.partialorder %v12838_v16, 0.0  ;;  %v12910_v23 = vmul.f32 0.2, %v12838_v16 }
 0x945   : > { %vm12873_vm14 = vcmp.ge.f32.partialorder %v12837_v35, 0.0  ;;  %v12909_v30 = vmul.f32 0.2, %v12837_v35  ;;  %13065 = vrot.lane.b32.xlu1 %v12980_v25, %s28981_s29  ;;  %v26237_v36 = vpop.f32.mrb[52].mxu0 }
 0x946   : > { %v12946_v41 = vsel %vm12874_vm13, %v12838_v16, %v12910_v23  ;;  %v12840_v49 = vadd.f32 %v26237_v36, %v31450_v19  ;;  %13063 = vrot.lane.b32.xlu0 %v12979_v33, %s28981_s29  ;;  %v12681_v31 = vpop.f32.mrb[53].mxu0 }
 0x947   : > { %v12982_v50 = vmul.f32 %v12946_v41, %v30074_v44  ;;  %v12945_v46 = vsel %vm12873_vm14, %v12837_v35, %v12909_v30  ;;  %v12839_v56 = vadd.f32 %v31450_v19, %v12681_v31 }
 0x948   : > { %v12981_v21 = vmul.f32 %v12945_v46, %v30082_v4  ;;  %vm12876_vm15 = vcmp.ge.f32.partialorder %v12840_v49, 0.0  ;;  %v12912_v3 = vmul.f32 0.2, %v12840_v49 }
 0x949   : > { %vm12875_vm2 = vcmp.ge.f32.partialorder %v12839_v56, 0.0  ;;  %v12911_v54 = vmul.f32 0.2, %v12839_v56  ;;  %13069 = vrot.lane.b32.xlu1 %v12982_v50, %s28981_s29  ;;  %v26240_v59 = vpop.f32.mrb[54].mxu0 }
 0x94a   : > { %v12948_v63 = vsel %vm12876_vm15, %v12840_v49, %v12912_v3  ;;  %v12842_v5 = vadd.f32 %v26240_v59, %v31450_v19  ;;  %13067 = vrot.lane.b32.xlu0 %v12981_v21, %s28981_s29  ;;  %v12691_v20 = vpop.f32.mrb[55].mxu0 }
 0x94b   : > { %v12984_v7 = vmul.f32 %v12948_v63, %v30088_v11  ;;  %v12947_v48 = vsel %vm12875_vm2, %v12839_v56, %v12911_v54  ;;  %v12841_v52 = vadd.f32 %v31450_v19, %v12691_v20 }
 0x94c   : > { %v12983_v1 = vmul.f32 %v12947_v48, %v30098_v2  ;;  %vm12878_vm4 = vcmp.ge.f32.partialorder %v12842_v5, 0.0  ;;  %v12914_v8 = vmul.f32 0.2, %v12842_v5 }
 0x94d   : > { %vm12877_vm7 = vcmp.ge.f32.partialorder %v12841_v52, 0.0  ;;  %v12913_v45 = vmul.f32 0.2, %v12841_v52  ;;  %13073 = vrot.lane.b32.xlu1 %v12984_v7, %s28981_s29  ;;  %v26243_v60 = vpop.f32.mrb[56].mxu0 }
 0x94e   : > { %v12950_v55 = vsel %vm12878_vm4, %v12842_v5, %v12914_v8  ;;  %v12844_v0 = vadd.f32 %v26243_v60, %v31450_v19  ;;  %13071 = vrot.lane.b32.xlu0 %v12983_v1, %s28981_s29  ;;  %v12701_v17 = vpop.f32.mrb[57].mxu0 }
 0x94f   : > { %v12986_v53 = vmul.f32 %v12950_v55, %v30104_v51  ;;  %v12949_v13 = vsel %vm12877_vm7, %v12841_v52, %v12913_v45  ;;  %v12843_v15 = vadd.f32 %v31450_v19, %v12701_v17 }
 0x950   : > { %v12985_v32 = vmul.f32 %v12949_v13, %v30114_v9  ;;  %vm12880_vm8 = vcmp.ge.f32.partialorder %v12844_v0, 0.0  ;;  %v12916_v16 = vmul.f32 0.2, %v12844_v0 }
 0x951   : > { %vm12879_vm9 = vcmp.ge.f32.partialorder %v12843_v15, 0.0  ;;  %v12915_v22 = vmul.f32 0.2, %v12843_v15  ;;  %13077 = vrot.lane.b32.xlu1 %v12986_v53, %s28981_s29  ;;  %v26246_v25 = vpop.f32.mrb[58].mxu0 }
 0x952   : > { %v12952_v58 = vsel %vm12880_vm8, %v12844_v0, %v12916_v16  ;;  %v12846_v35 = vadd.f32 %v26246_v25, %v31450_v19  ;;  %13075 = vrot.lane.b32.xlu0 %v12985_v32, %s28981_s29  ;;  %v12711_v33 = vpop.f32.mrb[59].mxu0  ;;  %v33163_v32 = vld [vmem:[#allocation4_spill] sm:$0xff] }
 0x953   : > { %v12988_v23 = vmul.f32 %v12952_v58, %v30120_v12  ;;  %v12951_v30 = vsel %vm12879_vm9, %v12843_v15, %v12915_v22  ;;  %v12845_v36 = vadd.f32 %v31450_v19, %v12711_v33  ;;  %v33164_v58 = vld [vmem:[#allocation5_spill] sm:$0xff] }
 0x954   : > { %v12987_v41 = vmul.f32 %v12951_v30, %v30130_v38  ;;  %vm12882_vm10 = vcmp.ge.f32.partialorder %v12846_v35, 0.0  ;;  %v12918_v49 = vmul.f32 0.2, %v12846_v35 }
 0x955   : > { %vm12881_vm6 = vcmp.ge.f32.partialorder %v12845_v36, 0.0  ;;  %v12917_v31 = vmul.f32 0.2, %v12845_v36  ;;  %13081 = vrot.lane.b32.xlu1 %v12988_v23, %s28981_s29  ;;  %v26249_v50 = vpop.f32.mrb[60].mxu0 }
 0x956   : > { %v12954_v46 = vsel %vm12882_vm10, %v12846_v35, %v12918_v49  ;;  %v12848_v56 = vadd.f32 %v26249_v50, %v31450_v19  ;;  %13079 = vrot.lane.b32.xlu0 %v12987_v41, %s28981_s29  ;;  %v12721_v21 = vpop.f32.mrb[61].mxu0 }
 0x957   : > { %v12990_v3 = vmul.f32 %v12954_v46, %v30136_v24  ;;  %v12953_v54 = vsel %vm12881_vm6, %v12845_v36, %v12917_v31  ;;  %v12847_v59 = vadd.f32 %v31450_v19, %v12721_v21  ;;  %v33165_v31 = vld [vmem:[#allocation6_spill] sm:$0xff]  ;;  %v33166_v21 = vld [vmem:[#allocation7_spill] sm:$0xff] }
 0x958   : > { %v12989_v39 = vmul.f32 %v12953_v54, %v30146_v14  ;;  %vm12884_vm11 = vcmp.ge.f32.partialorder %v12848_v56, 0.0  ;;  %v12920_v63 = vmul.f32 0.2, %v12848_v56 }
 0x959   : > { %vm12883_vm12 = vcmp.ge.f32.partialorder %v12847_v59, 0.0  ;;  %v12919_v5 = vmul.f32 0.2, %v12847_v59  ;;  %13085 = vrot.lane.b32.xlu1 %v12990_v3, %s28981_s29  ;;  %v26252_v20 = vpop.f32.mrb[62].mxu0 }
 0x95a   : > { %v12956_v7 = vsel %vm12884_vm11, %v12848_v56, %v12920_v63  ;;  %v12850_v48 = vadd.f32 %v26252_v20, %v31450_v19  ;;  %13083 = vrot.lane.b32.xlu0 %v12989_v39, %s28981_s29  ;;  %v12731_v52 = vpop.f32.mrb[63].mxu0  ;;  %vm13147_vm11 = vcmask 162944  }
 0x95b   : > { %v12992_v1 = vmul.f32 %v12956_v7, %v30154_v28  ;;  %v12955_v8 = vsel %vm12883_vm12, %v12847_v59, %v12919_v5  ;;  %v12849_v45 = vadd.f32 %v31450_v19, %v12731_v52  ;;  %v33167_v7 = vld [vmem:[#allocation8_spill] sm:$0xff] }
 0x95c   : > { %v12991_v60 = vmul.f32 %v12955_v8, %v33152_v42  ;;  %vm12886_vm13 = vcmp.ge.f32.partialorder %v12850_v48, 0.0  ;;  %v12922_v55 = vmul.f32 0.2, %v12850_v48  ;;  %v33168_v8 = vld [vmem:[#allocation9_spill] sm:$0xff] }
 0x95d   : > { %vm12885_vm14 = vcmp.ge.f32.partialorder %v12849_v45, 0.0  ;;  %v12921_v0 = vmul.f32 0.2, %v12849_v45  ;;  %13089 = vrot.lane.b32.xlu1 %v12992_v1, %s28981_s29  ;;  %v26255_v17 = vpop.f32.mrb[64].mxu0 }
 0x95e   : > { %v12958_v53 = vsel %vm12886_vm13, %v12850_v48, %v12922_v55  ;;  %v12852_v13 = vadd.f32 %v26255_v17, %v31450_v19  ;;  %13087 = vrot.lane.b32.xlu0 %v12991_v60, %s28981_s29  ;;  %v12741_v15 = vpop.f32.mrb[65].mxu0 }
 0x95f   : > { %v12994_v16 = vmul.f32 %v12958_v53, %v33163_v32  ;;  %v12957_v22 = vsel %vm12885_vm14, %v12849_v45, %v12921_v0  ;;  %v12851_v25 = vadd.f32 %v31450_v19, %v12741_v15  ;;  %v33169_v15 = vld [vmem:[#allocation10_spill] sm:$0xff]  ;;  %v15305_v32 = vld [vmem:[%s33101_s8 + $0x6c] sm:$0xff] }
 0x960   : > { %v12993_v35 = vmul.f32 %v12957_v22, %v33164_v58  ;;  %vm12888_vm15 = vcmp.ge.f32.partialorder %v12852_v13, 0.0  ;;  %v12924_v33 = vmul.f32 0.2, %v12852_v13  ;;  %v15304_v58 = vld [vmem:[%s33101_s8 + $0x64] sm:$0xff] }
 0x961   : > { %vm12887_vm2 = vcmp.ge.f32.partialorder %v12851_v25, 0.0  ;;  %v12923_v23 = vmul.f32 0.2, %v12851_v25  ;;  %13093 = vrot.lane.b32.xlu1 %v12994_v16, %s28981_s29  ;;  %v26258_v30 = vpop.f32.mrb[66].mxu0 }
 0x962   : > { %v12960_v36 = vsel %vm12888_vm15, %v12852_v13, %v12924_v33  ;;  %v12854_v41 = vadd.f32 %v26258_v30, %v31450_v19  ;;  %13091 = vrot.lane.b32.xlu0 %v12993_v35, %s28981_s29  ;;  %v12751_v49 = vpop.f32.mrb[67].mxu0  ;;  %v14011_v35 = vld [vmem:[%s33101_s8 + $0x28] sm:$0xff]  ;;  %v14012_v33 = vld [vmem:[%s33101_s8 + $0x30] sm:$0xff] }
 0x963   : > { %v12996_v50 = vmul.f32 %v12960_v36, %v33165_v31  ;;  %v12959_v46 = vsel %vm12887_vm2, %v12851_v25, %v12923_v23  ;;  %v12853_v56 = vadd.f32 %v31450_v19, %v12751_v49  ;;  %v33170_v23 = vld [vmem:[#allocation11_spill] sm:$0xff]  ;;  %v14875_v31 = vld [vmem:[%s33101_s8 + $0x60] sm:$0xf] }
 0x964   : > { %v12995_v3 = vmul.f32 %v12959_v46, %v33166_v21  ;;  %vm12890_vm4 = vcmp.ge.f32.partialorder %v12854_v41, 0.0  ;;  %v12926_v54 = vmul.f32 0.2, %v12854_v41 }
 0x965   : > { %vm12889_vm7 = vcmp.ge.f32.partialorder %v12853_v56, 0.0  ;;  %v12925_v59 = vmul.f32 0.2, %v12853_v56  ;;  %13097 = vrot.lane.b32.xlu1 %v12996_v50, %s28981_s29  ;;  %v26261_v39 = vpop.f32.mrb[68].mxu0 }
 0x966   : > { %v12962_v63 = vsel %vm12890_vm4, %v12854_v41, %v12926_v54  ;;  %v12856_v5 = vadd.f32 %v26261_v39, %v31450_v19  ;;  %13095 = vrot.lane.b32.xlu0 %v12995_v3, %s28981_s29  ;;  %v12761_v20 = vpop.f32.mrb[69].mxu0  ;;  %v31573_v41 = vpack.c.bf16 %v14012_v33, %v14011_v35  ;;  %v33172_v3 = vld [vmem:[#allocation13_spill] sm:$0xff] }
 0x967   : > { %v12998_v48 = vmul.f32 %v12962_v63, %v33167_v7  ;;  %v12961_v52 = vsel %vm12889_vm7, %v12853_v56, %v12925_v59  ;;  %v12855_v1 = vadd.f32 %v31450_v19, %v12761_v20 }
 0x968   : > { %v12997_v45 = vmul.f32 %v12961_v52, %v33168_v8  ;;  %vm12892_vm8 = vcmp.ge.f32.partialorder %v12856_v5, 0.0  ;;  %v12928_v60 = vmul.f32 0.2, %v12856_v5  ;;  %27444 = vmatprep.subr.bf16.mxu1 %v31573_v41 }
 0x969   : > { %vm12891_vm9 = vcmp.ge.f32.partialorder %v12855_v1, 0.0  ;;  %v12927_v55 = vmul.f32 0.2, %v12855_v1  ;;  %13101 = vrot.lane.b32.xlu1 %v12998_v48, %s28981_s29  ;;  %v26264_v0 = vpop.f32.mrb[70].mxu0 }
 0x96a   : > { %v12964_v17 = vsel %vm12892_vm8, %v12856_v5, %v12928_v60  ;;  %v12858_v53 = vadd.f32 %v26264_v0, %v31450_v19  ;;  %13099 = vrot.lane.b32.xlu0 %v12997_v45, %s28981_s29  ;;  %v12771_v13 = vpop.f32.mrb[71].mxu0 }
 0x96b   : > { %v13000_v16 = vmul.f32 %v12964_v17, %v33169_v15  ;;  %v12963_v22 = vsel %vm12891_vm9, %v12855_v1, %v12927_v55  ;;  %v12857_v25 = vadd.f32 %v31450_v19, %v12771_v13  ;;  %v33171_v19 = vld [vmem:[#allocation12_spill] sm:$0xff] }
 0x96c   : > { %v12999_v30 = vmul.f32 %v12963_v22, %v33170_v23  ;;  %vm12894_vm10 = vcmp.ge.f32.partialorder %v12858_v53, 0.0  ;;  %v12930_v36 = vmul.f32 0.2, %v12858_v53 }
 0x96d   : > { %vm12893_vm6 = vcmp.ge.f32.partialorder %v12857_v25, 0.0  ;;  %v12929_v49 = vmul.f32 0.2, %v12857_v25  ;;  %13105 = vrot.lane.b32.xlu1 %v13000_v16, %s28981_s29 }
 0x96e   : > { %v12966_v50 = vsel %vm12894_vm10, %v12858_v53, %v12930_v36  ;;  %13103 = vrot.lane.b32.xlu0 %v12999_v30, %s28981_s29 }
 0x96f   : > { %v13002_v46 = vmul.f32 %v12966_v50, %v33171_v19  ;;  %v12965_v56 = vsel %vm12893_vm6, %v12857_v25, %v12929_v49 }
 0x970   : > { %v13001_v54 = vmul.f32 %v12965_v56, %v33172_v3 }
 0x971   : > { %13109 = vrot.lane.b32.xlu1 %v13002_v46, %s28981_s29 }
 0x972   : > { %13107 = vrot.lane.b32.xlu0 %v13001_v54, %s28981_s29 }
 0x99f   : > { %v13042_v59 = vpop.permute.xlu1 %13041 }
 0x9a0   : > { %v13040_v39 = vpop.permute.xlu0 %13039  ;;  %13149 = vst.msk [vmem:[#allocation2 + $0x1b] sm:$0xff] %vm13147_vm11, %v13042_v59 }
 0x9a1   : > { %13148 = vst.msk [vmem:[#allocation2 + $0x13] sm:$0xff] %vm13147_vm11, %v13040_v39 }
 0x9a3   : > { %v13046_v63 = vpop.permute.xlu1 %13045 }
 0x9a4   : > { %v13044_v5 = vpop.permute.xlu0 %13043  ;;  %13151 = vst.msk [vmem:[#allocation2 + $0x2b] sm:$0xff] %vm13147_vm11, %v13046_v63 }
 0x9a5   : > { %13150 = vst.msk [vmem:[#allocation2 + $0x23] sm:$0xff] %vm13147_vm11, %v13044_v5 }
 0x9a7   : > { %v13050_v20 = vpop.permute.xlu1 %13049 }
 0x9a8   : > { %v13048_v48 = vpop.permute.xlu0 %13047  ;;  %v13225_v52 = vld [vmem:[#allocation2 + $0x11] sm:$0xff]  ;;  %13153 = vst.msk [vmem:[#allocation2 + $0x3b] sm:$0xff] %vm13147_vm11, %v13050_v20  ;;  %v13226_v1 = vld [vmem:[#allocation2 + $0x19] sm:$0xff] }
 0x9a9   : > { %26274 = vmatprep.mubr.msk.f32.mxu1 %vm13262_vm5, %v13225_v52  ;;  %13152 = vst.msk [vmem:[#allocation2 + $0x33] sm:$0xff] %vm13147_vm11, %v13048_v48 }
 0x9aa   : > { %26275 = vmatmul.mubr.msk.f32.gmra.mrb[74].mxu1 %vm13262_vm5, %v13226_v1 }
 0x9ab   : > { %v13054_v45 = vpop.permute.xlu1 %13053 }
 0x9ac   : > { %13155 = vst.msk [vmem:[#allocation2 + $0x4b] sm:$0xff] %vm13147_vm11, %v13054_v45  ;;  %v13052_v60 = vpop.permute.xlu0 %13051  ;;  %v13227_v55 = vld [vmem:[#allocation2 + $0x21] sm:$0xff]  ;;  %v13228_v0 = vld [vmem:[#allocation2 + $0x29] sm:$0xff] }
 0x9ad   : > { %13154 = vst.msk [vmem:[#allocation2 + $0x43] sm:$0xff] %vm13147_vm11, %v13052_v60  ;;  %26277 = vmatprep.mubr.msk.f32.mxu1 %vm13262_vm5, %v13227_v55 }
 0x9ae   : > { %26278 = vmatmul.mubr.msk.f32.gmra.mrb[76].mxu1 %vm13262_vm5, %v13228_v0 }
 0x9af   : > { %v13058_v17 = vpop.permute.xlu1 %13057 }
 0x9b0   : > { %13157 = vst.msk [vmem:[#allocation2 + $0x5b] sm:$0xff] %vm13147_vm11, %v13058_v17  ;;  %v13056_v53 = vpop.permute.xlu0 %13055  ;;  %v13229_v13 = vld [vmem:[#allocation2 + $0x31] sm:$0xff]  ;;  %v13230_v16 = vld [vmem:[#allocation2 + $0x39] sm:$0xff] }
 0x9b1   : > { %13156 = vst.msk [vmem:[#allocation2 + $0x53] sm:$0xff] %vm13147_vm11, %v13056_v53  ;;  %26280 = vmatprep.mubr.msk.f32.mxu1 %vm13262_vm5, %v13229_v13 }
 0x9b2   : > { %26281 = vmatmul.mubr.msk.f32.gmra.mrb[78].mxu1 %vm13262_vm5, %v13230_v16 }
 0x9b3   : > { %v13062_v22 = vpop.permute.xlu1 %13061 }
 0x9b4   : > { %13159 = vst.msk [vmem:[#allocation2 + $0x6b] sm:$0xff] %vm13147_vm11, %v13062_v22  ;;  %v13060_v25 = vpop.permute.xlu0 %13059  ;;  %v13231_v35 = vld [vmem:[#allocation2 + $0x41] sm:$0xff]  ;;  %v13232_v33 = vld [vmem:[#allocation2 + $0x49] sm:$0xff] }
 0x9b5   : > { %13158 = vst.msk [vmem:[#allocation2 + $0x63] sm:$0xff] %vm13147_vm11, %v13060_v25  ;;  %26283 = vmatprep.mubr.msk.f32.mxu1 %vm13262_vm5, %v13231_v35 }
 0x9b6   : > { %26284 = vmatmul.mubr.msk.f32.gmra.mrb[80].mxu1 %vm13262_vm5, %v13232_v33 }
 0x9b7   : > { %v13066_v30 = vpop.permute.xlu1 %13065 }
 0x9b8   : > { %13161 = vst.msk [vmem:[#allocation2 + $0x7b] sm:$0xff] %vm13147_vm11, %v13066_v30  ;;  %v13064_v36 = vpop.permute.xlu0 %13063  ;;  %v13233_v49 = vld [vmem:[#allocation2 + $0x51] sm:$0xff]  ;;  %v13234_v50 = vld [vmem:[#allocation2 + $0x59] sm:$0xff] }
 0x9b9   : > { %13160 = vst.msk [vmem:[#allocation2 + $0x73] sm:$0xff] %vm13147_vm11, %v13064_v36  ;;  %26286 = vmatprep.mubr.msk.f32.mxu1 %vm13262_vm5, %v13233_v49 }
 0x9ba   : > { %26287 = vmatmul.mubr.msk.f32.gmra.mrb[82].mxu1 %vm13262_vm5, %v13234_v50 }
 0x9bb   : > { %v13070_v46 = vpop.permute.xlu1 %13069 }
 0x9bc   : > { %13163 = vst.msk [vmem:[#allocation2 + $0x8b] sm:$0xff] %vm13147_vm11, %v13070_v46  ;;  %v13068_v56 = vpop.permute.xlu0 %13067  ;;  %v13235_v54 = vld [vmem:[#allocation2 + $0x61] sm:$0xff]  ;;  %v13236_v59 = vld [vmem:[#allocation2 + $0x69] sm:$0xff] }
 0x9bd   : > { %13162 = vst.msk [vmem:[#allocation2 + $0x83] sm:$0xff] %vm13147_vm11, %v13068_v56  ;;  %26289 = vmatprep.mubr.msk.f32.mxu1 %vm13262_vm5, %v13235_v54 }
 0x9be   : > { %26290 = vmatmul.mubr.msk.f32.gmra.mrb[84].mxu1 %vm13262_vm5, %v13236_v59 }
 0x9bf   : > { %v13074_v39 = vpop.permute.xlu1 %13073 }
 0x9c0   : > { %13165 = vst.msk [vmem:[#allocation2 + $0x9b] sm:$0xff] %vm13147_vm11, %v13074_v39  ;;  %v13072_v63 = vpop.permute.xlu0 %13071  ;;  %v13237_v5 = vld [vmem:[#allocation2 + $0x71] sm:$0xff]  ;;  %v13238_v20 = vld [vmem:[#allocation2 + $0x79] sm:$0xff] }
 0x9c1   : > { %13164 = vst.msk [vmem:[#allocation2 + $0x93] sm:$0xff] %vm13147_vm11, %v13072_v63  ;;  %26292 = vmatprep.mubr.msk.f32.mxu1 %vm13262_vm5, %v13237_v5 }
 0x9c2   : > { %26293 = vmatmul.mubr.msk.f32.gmra.mrb[86].mxu1 %vm13262_vm5, %v13238_v20 }
 0x9c3   : > { %v13078_v48 = vpop.permute.xlu1 %13077 }
 0x9c4   : > { %13167 = vst.msk [vmem:[#allocation2 + $0xab] sm:$0xff] %vm13147_vm11, %v13078_v48  ;;  %v13076_v52 = vpop.permute.xlu0 %13075  ;;  %v13239_v1 = vld [vmem:[#allocation2 + $0x81] sm:$0xff]  ;;  %v13240_v45 = vld [vmem:[#allocation2 + $0x89] sm:$0xff] }
 0x9c5   : > { %13166 = vst.msk [vmem:[#allocation2 + $0xa3] sm:$0xff] %vm13147_vm11, %v13076_v52  ;;  %26295 = vmatprep.mubr.msk.f32.mxu1 %vm13262_vm5, %v13239_v1 }
 0x9c6   : > { %26296 = vmatmul.mubr.msk.f32.gmra.mrb[88].mxu1 %vm13262_vm5, %v13240_v45 }
 0x9c7   : > { %v13082_v60 = vpop.permute.xlu1 %13081 }
 0x9c8   : > { %13169 = vst.msk [vmem:[#allocation2 + $0xbb] sm:$0xff] %vm13147_vm11, %v13082_v60  ;;  %v13080_v55 = vpop.permute.xlu0 %13079  ;;  %v13241_v0 = vld [vmem:[#allocation2 + $0x91] sm:$0xff]  ;;  %v13242_v17 = vld [vmem:[#allocation2 + $0x99] sm:$0xff] }
 0x9c9   : > { %13168 = vst.msk [vmem:[#allocation2 + $0xb3] sm:$0xff] %vm13147_vm11, %v13080_v55  ;;  %26298 = vmatprep.mubr.msk.f32.mxu1 %vm13262_vm5, %v13241_v0 }
 0x9ca   : > { %26299 = vmatmul.mubr.msk.f32.gmra.mrb[90].mxu1 %vm13262_vm5, %v13242_v17 }
 0x9cb   : > { %v13086_v53 = vpop.permute.xlu1 %13085 }
 0x9cc   : > { %13171 = vst.msk [vmem:[#allocation2 + $0xcb] sm:$0xff] %vm13147_vm11, %v13086_v53  ;;  %v13084_v13 = vpop.permute.xlu0 %13083  ;;  %v13243_v16 = vld [vmem:[#allocation2 + $0xa1] sm:$0xff]  ;;  %v13244_v22 = vld [vmem:[#allocation2 + $0xa9] sm:$0xff] }
 0x9cd   : > { %13170 = vst.msk [vmem:[#allocation2 + $0xc3] sm:$0xff] %vm13147_vm11, %v13084_v13  ;;  %26301 = vmatprep.mubr.msk.f32.mxu1 %vm13262_vm5, %v13243_v16 }
 0x9ce   : > { %26302 = vmatmul.mubr.msk.f32.gmra.mrb[92].mxu1 %vm13262_vm5, %v13244_v22  ;;  %v13184_v22 = vld [vmem:[#allocation2] sm:$0xff] }
 0x9cf   : > { %v13090_v25 = vpop.permute.xlu1 %13089 }
 0x9d0   : > { %13173 = vst.msk [vmem:[#allocation2 + $0xdb] sm:$0xff] %vm13147_vm11, %v13090_v25  ;;  %v13088_v35 = vpop.permute.xlu0 %13087  ;;  %v13245_v33 = vld [vmem:[#allocation2 + $0xb1] sm:$0xff]  ;;  %v13246_v30 = vld [vmem:[#allocation2 + $0xb9] sm:$0xff]  ;;  %v13185_v25 = vld [vmem:[#allocation2 + $0x8] sm:$0xff] }
 0x9d1   : > { %13172 = vst.msk [vmem:[#allocation2 + $0xd3] sm:$0xff] %vm13147_vm11, %v13088_v35  ;;  %26304 = vmatprep.mubr.msk.f32.mxu1 %vm13262_vm5, %v13245_v33  ;;  %v14013_v35 = vld [vmem:[%s33101_s8 + $0x38] sm:$0xf]  ;;  %v14442_v33 = vld [vmem:[%s33101_s8 + $0x3c] sm:$0xff] }
 0x9d2   : > { %26305 = vmatmul.mubr.msk.f32.gmra.mrb[94].mxu1 %vm13262_vm5, %v13246_v30  ;;  %v14443_v30 = vld [vmem:[%s33101_s8 + $0x44] sm:$0xff] }
 0x9d3   : > { %v13094_v36 = vpop.permute.xlu1 %13093 }
 0x9d4   : > { %13175 = vst.msk [vmem:[#allocation2 + $0xeb] sm:$0xff] %vm13147_vm11, %v13094_v36  ;;  %v13092_v49 = vpop.permute.xlu0 %13091  ;;  %v13247_v50 = vld [vmem:[#allocation2 + $0xc1] sm:$0xff]  ;;  %v13248_v46 = vld [vmem:[#allocation2 + $0xc9] sm:$0xff] }
 0x9d5   : > { %13174 = vst.msk [vmem:[#allocation2 + $0xe3] sm:$0xff] %vm13147_vm11, %v13092_v49  ;;  %26307 = vmatprep.mubr.msk.f32.mxu1 %vm13262_vm5, %v13247_v50  ;;  %v13186_v36 = vld [vmem:[#allocation2 + $0x10] sm:$0xff]  ;;  %v31666_v49 = vpack.c.bf16 %v14443_v30, %v14442_v33  ;;  %v13187_v50 = vld [vmem:[#allocation2 + $0x18] sm:$0xff] }
 0x9d6   : > { %26308 = vmatmul.mubr.msk.f32.gmra.mrb[96].mxu1 %vm13262_vm5, %v13248_v46  ;;  %v13188_v46 = vld [vmem:[#allocation2 + $0x20] sm:$0xff] }
 0x9d7   : > { %v13098_v56 = vpop.permute.xlu1 %13097 }
 0x9d8   : > { %13177 = vst.msk [vmem:[#allocation2 + $0xfb] sm:$0xff] %vm13147_vm11, %v13098_v56  ;;  %v13096_v54 = vpop.permute.xlu0 %13095  ;;  %v13249_v59 = vld [vmem:[#allocation2 + $0xd1] sm:$0xff]  ;;  %v13250_v39 = vld [vmem:[#allocation2 + $0xd9] sm:$0xff]  ;;  %v13189_v56 = vld [vmem:[#allocation2 + $0x28] sm:$0xff] }
 0x9d9   : > { %13176 = vst.msk [vmem:[#allocation2 + $0xf3] sm:$0xff] %vm13147_vm11, %v13096_v54  ;;  %26310 = vmatprep.mubr.msk.f32.mxu1 %vm13262_vm5, %v13249_v59  ;;  %v13191_v54 = vld [vmem:[#allocation2 + $0x38] sm:$0xff]  ;;  %v13192_v59 = vld [vmem:[#allocation2 + $0x40] sm:$0xff] }
 0x9da   : > { %26311 = vmatmul.mubr.msk.f32.gmra.mrb[98].mxu1 %vm13262_vm5, %v13250_v39  ;;  %v13193_v39 = vld [vmem:[#allocation2 + $0x48] sm:$0xff]  ;;  %v13211_v33 = vld [vmem:[#allocation2 + $0xd8] sm:$0xff] }
 0x9db   : > { %v13102_v63 = vpop.permute.xlu1 %13101 }
 0x9dc   : > { %13179 = vst.msk [vmem:[#allocation2 + $0x10b] sm:$0xff] %vm13147_vm11, %v13102_v63  ;;  %v13100_v5 = vpop.permute.xlu0 %13099  ;;  %v13251_v20 = vld [vmem:[#allocation2 + $0xe1] sm:$0xff]  ;;  %v13252_v48 = vld [vmem:[#allocation2 + $0xe9] sm:$0xff] }
 0x9dd   : > { %13178 = vst.msk [vmem:[#allocation2 + $0x103] sm:$0xff] %vm13147_vm11, %v13100_v5  ;;  %26313 = vmatprep.mubr.msk.f32.mxu1 %vm13262_vm5, %v13251_v20  ;;  %v13194_v63 = vld [vmem:[#allocation2 + $0x50] sm:$0xff]  ;;  %v13195_v5 = vld [vmem:[#allocation2 + $0x58] sm:$0xff]  ;;  %v13196_v20 = vld [vmem:[#allocation2 + $0x60] sm:$0xff] }
 0x9de   : > { %26314 = vmatmul.mubr.msk.f32.gmra.mrb[100].mxu1 %vm13262_vm5, %v13252_v48  ;;  %v13197_v48 = vld [vmem:[#allocation2 + $0x68] sm:$0xff]  ;;  %v13212_v30 = vld [vmem:[#allocation2 + $0xe0] sm:$0xff] }
 0x9df   : > { %v13106_v52 = vpop.permute.xlu1 %13105  ;;  %v14004_v3 = vld [vmem:[#allocation2 + $0xea] sm:$0xff] }
 0x9e0   : > { %13181 = vst.msk [vmem:[#allocation2 + $0x11b] sm:$0xff] %vm13147_vm11, %v13106_v52  ;;  %v13104_v1 = vpop.permute.xlu0 %13103  ;;  %v13253_v45 = vld [vmem:[#allocation2 + $0xf1] sm:$0xff]  ;;  %v13254_v60 = vld [vmem:[#allocation2 + $0xf9] sm:$0xff] }
 0x9e1   : > { %13180 = vst.msk [vmem:[#allocation2 + $0x113] sm:$0xff] %vm13147_vm11, %v13104_v1  ;;  %26316 = vmatprep.mubr.msk.f32.mxu1 %vm13262_vm5, %v13253_v45  ;;  %v13198_v52 = vld [vmem:[#allocation2 + $0x70] sm:$0xff]  ;;  %v13199_v1 = vld [vmem:[#allocation2 + $0x78] sm:$0xff]  ;;  %v13200_v45 = vld [vmem:[#allocation2 + $0x80] sm:$0xff] }
 0x9e2   : > { %26317 = vmatmul.mubr.msk.f32.gmra.mrb[102].mxu1 %vm13262_vm5, %v13254_v60  ;;  %v13201_v60 = vld [vmem:[#allocation2 + $0x88] sm:$0xff]  ;;  %v14005_v19 = vld [vmem:[#allocation2 + $0xf2] sm:$0xff]  ;;  %v14006_v23 = vld [vmem:[#allocation2 + $0xfa] sm:$0xff] }
 0x9e3   : > { %v13110_v55 = vpop.permute.xlu1 %13109 }
 0x9e4   : > { %13183 = vst.msk [vmem:[#allocation2 + $0x12b] sm:$0xff] %vm13147_vm11, %v13110_v55  ;;  %v13108_v0 = vpop.permute.xlu0 %13107  ;;  %v13255_v17 = vld [vmem:[#allocation2 + $0x101] sm:$0xff]  ;;  %v13256_v53 = vld [vmem:[#allocation2 + $0x109] sm:$0xff] }
 0x9e5   : > { %13182 = vst.msk [vmem:[#allocation2 + $0x123] sm:$0xff] %vm13147_vm11, %v13108_v0  ;;  %26319 = vmatprep.mubr.msk.f32.mxu1 %vm13262_vm5, %v13255_v17  ;;  %v13202_v55 = vld [vmem:[#allocation2 + $0x90] sm:$0xff]  ;;  %v13203_v0 = vld [vmem:[#allocation2 + $0x98] sm:$0xff]  ;;  %v13204_v17 = vld [vmem:[#allocation2 + $0xa0] sm:$0xff] }
 0x9e6   : > { %26320 = vmatmul.mubr.msk.f32.gmra.mrb[104].mxu1 %vm13262_vm5, %v13256_v53  ;;  %v13205_v53 = vld [vmem:[#allocation2 + $0xa8] sm:$0xff] }
 0x9e7   : > { %v14007_v15 = vld [vmem:[#allocation2 + $0x102] sm:$0xff]  ;;  %v14008_v8 = vld [vmem:[#allocation2 + $0x10a] sm:$0xff] }
 0x9e8   : > { %v13257_v13 = vld [vmem:[#allocation2 + $0x111] sm:$0xff]  ;;  %v13258_v16 = vld [vmem:[#allocation2 + $0x119] sm:$0xff] }
 0x9e9   : > { %26322 = vmatprep.mubr.msk.f32.mxu1 %vm13262_vm5, %v13257_v13  ;;  %v13206_v13 = vld [vmem:[#allocation2 + $0xb0] sm:$0xff]  ;;  %v14010_v21 = vld [vmem:[#allocation2 + $0x11a] sm:$0xff] }
 0x9ea   : > { %26323 = vmatmul.mubr.msk.f32.gmra.mrb[106].mxu1 %vm13262_vm5, %v13258_v16  ;;  %v13207_v16 = vld [vmem:[#allocation2 + $0xb8] sm:$0xff] }
 0x9eb   : > { %26331 = vmatprep.mubr.msk.f32.mxu1 %vm13262_vm5, %v13184_v22  ;;  %v13208_v22 = vld [vmem:[#allocation2 + $0xc0] sm:$0xff]  ;;  %v14009_v7 = vld [vmem:[#allocation2 + $0x112] sm:$0xff] }
 0x9ee   : > { %26332 = vmatmul.mubr.msk.f32.vlgmr.msra.gmra.mrb[72].mxu1 %vm13262_vm5, %v13185_v25  ;;  %v13209_v25 = vld [vmem:[#allocation2 + $0xc8] sm:$0xff] }
 0x9ef   : > { %27446 = vmatpush3.bf16.msra.mxu1 %v31573_v41  ;;  %26334 = vmatprep.mubr.msk.f32.mxu1 %vm13262_vm5, %v13186_v36  ;;  %v13190_v41 = vld [vmem:[#allocation2 + $0x30] sm:$0xff]  ;;  %v13213_v36 = vld [vmem:[#allocation2 + $0xe8] sm:$0xff] }
 0x9f0   : > { %26389 = vmatprep.subr.msk.mxu1 %vm5061_vm3, %v14013_v35 }
 0x9f2   : > { %26335 = vmatmul.mubr.msk.f32.gmra.mrb[74].mxu1 %vm13262_vm5, %v13187_v50  ;;  %v13214_v50 = vld [vmem:[#allocation2 + $0xf0] sm:$0xff] }
 0x9f3   : > { %26337 = vmatprep.mubr.msk.f32.mxu1 %vm13262_vm5, %v13188_v46  ;;  %26390 = vmatpush3.msk.msra.mxu1 %vm5061_vm3, %v14013_v35  ;;  %v13210_v35 = vld [vmem:[#allocation2 + $0xd0] sm:$0xff]  ;;  %v13215_v46 = vld [vmem:[#allocation2 + $0xf8] sm:$0xff] }
 0x9f4   : > { %27448 = vmatprep.subr.bf16.mxu1 %v31666_v49 }
 0x9f6   : > { %26338 = vmatmul.mubr.msk.f32.gmra.mrb[76].mxu1 %vm13262_vm5, %v13189_v56  ;;  %v13216_v56 = vld [vmem:[#allocation2 + $0x100] sm:$0xff] }
 0x9f7   : > { %26340 = vmatprep.mubr.msk.f32.mxu1 %vm13262_vm5, %v13190_v41  ;;  %v13217_v41 = vld [vmem:[#allocation2 + $0x108] sm:$0xff] }
 0x9fa   : > { %26341 = vmatmul.mubr.msk.f32.gmra.mrb[78].mxu1 %vm13262_vm5, %v13191_v54  ;;  %v13218_v54 = vld [vmem:[#allocation2 + $0x110] sm:$0xff] }
 0x9fb   : > { %26343 = vmatprep.mubr.msk.f32.mxu1 %vm13262_vm5, %v13192_v59  ;;  %v13975_v59 = vld [vmem:[#allocation2 + $0x2] sm:$0xff] }
 0x9fe   : > { %26344 = vmatmul.mubr.msk.f32.gmra.mrb[80].mxu1 %vm13262_vm5, %v13193_v39  ;;  %v13219_v39 = vld [vmem:[#allocation2 + $0x118] sm:$0xff] }
 0x9ff   : > { %26346 = vmatprep.mubr.msk.f32.mxu1 %vm13262_vm5, %v13194_v63  ;;  %v13976_v63 = vld [vmem:[#allocation2 + $0xa] sm:$0xff] }
 0xa02   : > { %26347 = vmatmul.mubr.msk.f32.gmra.mrb[82].mxu1 %vm13262_vm5, %v13195_v5  ;;  %v14444_v5 = vld [vmem:[%s33101_s8 + $0x4c] sm:$0xf] }
 0xa03   : > { %26349 = vmatprep.mubr.msk.f32.mxu1 %vm13262_vm5, %v13196_v20  ;;  %v14873_v20 = vld [vmem:[%s33101_s8 + $0x50] sm:$0xff] }
 0xa06   : > { %26350 = vmatmul.mubr.msk.f32.gmra.mrb[84].mxu1 %vm13262_vm5, %v13197_v48  ;;  %v14874_v48 = vld [vmem:[%s33101_s8 + $0x58] sm:$0xff] }
 0xa07   : > { %26352 = vmatprep.mubr.msk.f32.mxu1 %vm13262_vm5, %v13198_v52  ;;  %v31714_v52 = vld [vmem:[#allocation2 + $0x12] sm:$0xff] }
 0xa0a   : > { %26353 = vmatmul.mubr.msk.f32.gmra.mrb[86].mxu1 %vm13262_vm5, %v13199_v1  ;;  %v31720_v1 = vpack.c.bf16 %v14874_v48, %v14873_v20  ;;  %v14002_v20 = vld [vmem:[#allocation2 + $0xda] sm:$0xff]  ;;  %v14003_v48 = vld [vmem:[#allocation2 + $0xe2] sm:$0xff] }
 0xa0b   : > { %26355 = vmatprep.mubr.msk.f32.mxu1 %vm13262_vm5, %v13200_v45  ;;  %v31722_v45 = vld [vmem:[#allocation2 + $0x1a] sm:$0xff] }
 0xa0e   : > { %26356 = vmatmul.mubr.msk.f32.gmra.mrb[88].mxu1 %vm13262_vm5, %v13201_v60  ;;  %v31726_v60 = vld [vmem:[#allocation2 + $0x22] sm:$0xff] }
 0xa0f   : > { %26358 = vmatprep.mubr.msk.f32.mxu1 %vm13262_vm5, %v13202_v55  ;;  %v31736_v55 = vld [vmem:[#allocation2 + $0x32] sm:$0xff] }
 0xa12   : > { %26359 = vmatmul.mubr.msk.f32.gmra.mrb[90].mxu1 %vm13262_vm5, %v13203_v0  ;;  %v31740_v0 = vld [vmem:[#allocation2 + $0x3a] sm:$0xff] }
 0xa13   : > { %26361 = vmatprep.mubr.msk.f32.mxu1 %vm13262_vm5, %v13204_v17  ;;  %v31744_v17 = vld [vmem:[#allocation2 + $0x42] sm:$0xff] }
 0xa16   : > { %26362 = vmatmul.mubr.msk.f32.gmra.mrb[92].mxu1 %vm13262_vm5, %v13205_v53  ;;  %v31748_v53 = vld [vmem:[#allocation2 + $0x4a] sm:$0xff] }
 0xa17   : > { %26364 = vmatprep.mubr.msk.f32.mxu1 %vm13262_vm5, %v13206_v13  ;;  %v31752_v13 = vld [vmem:[#allocation2 + $0x52] sm:$0xff] }
 0xa1a   : > { %26365 = vmatmul.mubr.msk.f32.gmra.mrb[94].mxu1 %vm13262_vm5, %v13207_v16  ;;  %v31756_v16 = vld [vmem:[#allocation2 + $0x5a] sm:$0xff] }
 0xa1b   : > { %26367 = vmatprep.mubr.msk.f32.mxu1 %vm13262_vm5, %v13208_v22  ;;  %v31760_v22 = vld [vmem:[#allocation2 + $0x62] sm:$0xff] }
 0xa1e   : > { %26368 = vmatmul.mubr.msk.f32.gmra.mrb[96].mxu1 %vm13262_vm5, %v13209_v25  ;;  %v31764_v25 = vld [vmem:[#allocation2 + $0x6a] sm:$0xff] }
 0xa1f   : > { %26370 = vmatprep.mubr.msk.f32.mxu1 %vm13262_vm5, %v13210_v35  ;;  %v31768_v35 = vld [vmem:[#allocation2 + $0x72] sm:$0xff] }
 0xa22   : > { %26371 = vmatmul.mubr.msk.f32.gmra.mrb[98].mxu1 %vm13262_vm5, %v13211_v33  ;;  %v31772_v33 = vld [vmem:[#allocation2 + $0x7a] sm:$0xff] }
 0xa23   : > { %26373 = vmatprep.mubr.msk.f32.mxu1 %vm13262_vm5, %v13212_v30  ;;  %v13991_v30 = vld [vmem:[#allocation2 + $0x82] sm:$0xff] }
 0xa26   : > { %26374 = vmatmul.mubr.msk.f32.gmra.mrb[100].mxu1 %vm13262_vm5, %v13213_v36  ;;  %v13992_v36 = vld [vmem:[#allocation2 + $0x8a] sm:$0xff] }
 0xa27   : > { %26376 = vmatprep.mubr.msk.f32.mxu1 %vm13262_vm5, %v13214_v50  ;;  %v13993_v50 = vld [vmem:[#allocation2 + $0x92] sm:$0xff] }
 0xa2a   : > { %26377 = vmatmul.mubr.msk.f32.gmra.mrb[102].mxu1 %vm13262_vm5, %v13215_v46  ;;  %v13994_v46 = vld [vmem:[#allocation2 + $0x9a] sm:$0xff] }
 0xa2b   : > { %26379 = vmatprep.mubr.msk.f32.mxu1 %vm13262_vm5, %v13216_v56  ;;  %v13995_v56 = vld [vmem:[#allocation2 + $0xa2] sm:$0xff] }
 0xa2e   : > { %26380 = vmatmul.mubr.msk.f32.gmra.mrb[104].mxu1 %vm13262_vm5, %v13217_v41  ;;  %v13996_v41 = vld [vmem:[#allocation2 + $0xaa] sm:$0xff] }
 0xa2f   : > { %26382 = vmatprep.mubr.msk.f32.mxu1 %vm13262_vm5, %v13218_v54  ;;  %v13997_v54 = vld [vmem:[#allocation2 + $0xb2] sm:$0xff] }
 0xa32   : > { %26383 = vmatmul.mubr.msk.f32.gmra.mrb[106].mxu1 %vm13262_vm5, %v13219_v39  ;;  %v13999_v39 = vld [vmem:[#allocation2 + $0xc2] sm:$0xff] }
 0xa33   : > { %26391 = vmatprep.mubr.msk.f32.mxu1 %vm13262_vm5, %v13975_v59  ;;  %v13998_v59 = vld [vmem:[#allocation2 + $0xba] sm:$0xff] }
 0xa36   : > { %26392 = vmatmul.mubr.msk.f32.vlgmr.msra.gmra.mrb[72].mxu1 %vm13262_vm5, %v13976_v63  ;;  %v14000_v63 = vld [vmem:[#allocation2 + $0xca] sm:$0xff] }
 0xa37   : > { %27450 = vmatpush3.bf16.msra.mxu1 %v31666_v49  ;;  %26394 = vmatprep.mubr.msk.f32.mxu1 %vm13262_vm5, %v31714_v52  ;;  %v31732_v49 = vld [vmem:[#allocation2 + $0x2a] sm:$0xff] }
 0xa38   : > { %26449 = vmatprep.subr.msk.mxu1 %vm5061_vm3, %v14444_v5 }
 0xa3a   : > { %26395 = vmatmul.mubr.msk.f32.gmra.mrb[74].mxu1 %vm13262_vm5, %v31722_v45 }
 0xa3b   : > { %26397 = vmatprep.mubr.msk.f32.mxu1 %vm13262_vm5, %v31726_v60  ;;  %26450 = vmatpush3.msk.msra.mxu1 %vm5061_vm3, %v14444_v5  ;;  %v14001_v5 = vld [vmem:[#allocation2 + $0xd2] sm:$0xff] }
 0xa3c   : > { %27452 = vmatprep.subr.bf16.mxu1 %v31720_v1 }
 0xa3e   : > { %26398 = vmatmul.mubr.msk.f32.gmra.mrb[76].mxu1 %vm13262_vm5, %v31732_v49 }
 0xa3f   : > { %26400 = vmatprep.mubr.msk.f32.mxu1 %vm13262_vm5, %v31736_v55 }
 0xa42   : > { %26401 = vmatmul.mubr.msk.f32.gmra.mrb[78].mxu1 %vm13262_vm5, %v31740_v0 }
 0xa43   : > { %26403 = vmatprep.mubr.msk.f32.mxu1 %vm13262_vm5, %v31744_v17 }
 0xa46   : > { %26404 = vmatmul.mubr.msk.f32.gmra.mrb[80].mxu1 %vm13262_vm5, %v31748_v53 }
 0xa47   : > { %26406 = vmatprep.mubr.msk.f32.mxu1 %vm13262_vm5, %v31752_v13 }
 0xa4a   : > { %26407 = vmatmul.mubr.msk.f32.gmra.mrb[82].mxu1 %vm13262_vm5, %v31756_v16 }
 0xa4b   : > { %26409 = vmatprep.mubr.msk.f32.mxu1 %vm13262_vm5, %v31760_v22 }
 0xa4e   : > { %26410 = vmatmul.mubr.msk.f32.gmra.mrb[84].mxu1 %vm13262_vm5, %v31764_v25 }
 0xa4f   : > { %26412 = vmatprep.mubr.msk.f32.mxu1 %vm13262_vm5, %v31768_v35 }
 0xa52   : > { %26413 = vmatmul.mubr.msk.f32.gmra.mrb[86].mxu1 %vm13262_vm5, %v31772_v33 }
 0xa53   : > { %26415 = vmatprep.mubr.msk.f32.mxu1 %vm13262_vm5, %v13991_v30 }
 0xa56   : > { %26416 = vmatmul.mubr.msk.f32.gmra.mrb[88].mxu1 %vm13262_vm5, %v13992_v36 }
 0xa57   : > { %26418 = vmatprep.mubr.msk.f32.mxu1 %vm13262_vm5, %v13993_v50 }
 0xa5a   : > { %26419 = vmatmul.mubr.msk.f32.gmra.mrb[90].mxu1 %vm13262_vm5, %v13994_v46 }
 0xa5b   : > { %26421 = vmatprep.mubr.msk.f32.mxu1 %vm13262_vm5, %v13995_v56 }
 0xa5e   : > { %26422 = vmatmul.mubr.msk.f32.gmra.mrb[92].mxu1 %vm13262_vm5, %v13996_v41 }
 0xa5f   : > { %26424 = vmatprep.mubr.msk.f32.mxu1 %vm13262_vm5, %v13997_v54 }
 0xa62   : > { %26425 = vmatmul.mubr.msk.f32.gmra.mrb[94].mxu1 %vm13262_vm5, %v13998_v59 }
 0xa63   : > { %26427 = vmatprep.mubr.msk.f32.mxu1 %vm13262_vm5, %v13999_v39 }
 0xa66   : > { %26428 = vmatmul.mubr.msk.f32.gmra.mrb[96].mxu1 %vm13262_vm5, %v14000_v63 }
 0xa67   : > { %26430 = vmatprep.mubr.msk.f32.mxu1 %vm13262_vm5, %v14001_v5 }
 0xa6a   : > { %26431 = vmatmul.mubr.msk.f32.gmra.mrb[98].mxu1 %vm13262_vm5, %v14002_v20 }
 0xa6b   : > { %26433 = vmatprep.mubr.msk.f32.mxu1 %vm13262_vm5, %v14003_v48 }
 0xa6e   : > { %26434 = vmatmul.mubr.msk.f32.gmra.mrb[100].mxu1 %vm13262_vm5, %v14004_v3 }
 0xa6f   : > { %26436 = vmatprep.mubr.msk.f32.mxu1 %vm13262_vm5, %v14005_v19 }
 0xa72   : > { %26437 = vmatmul.mubr.msk.f32.gmra.mrb[102].mxu1 %vm13262_vm5, %v14006_v23 }
 0xa73   : > { %26439 = vmatprep.mubr.msk.f32.mxu1 %vm13262_vm5, %v14007_v15 }
 0xa76   : > { %26440 = vmatmul.mubr.msk.f32.gmra.mrb[104].mxu1 %vm13262_vm5, %v14008_v8 }
 0xa77   : > { %26442 = vmatprep.mubr.msk.f32.mxu1 %vm13262_vm5, %v14009_v7 }
 0xa7a   : > { %26443 = vmatmul.mubr.msk.f32.gmra.mrb[106].mxu1 %vm13262_vm5, %v14010_v21 }
 0xa7b   : > { %26451 = vmatprep.mubr.msk.f32.mxu1 %vm13262_vm5, %v31714_v52  ;;  %v27455_v52 = vpack.c.bf16 %v15305_v32, %v15304_v58  ;;  %v14440_v32 = vld [vmem:[#allocation2 + $0x122] sm:$0xff]  ;;  %v14441_v58 = vld [vmem:[#allocation2 + $0x12a] sm:$0xff] }
 0xa7e   : > { %26452 = vmatmul.mubr.msk.f32.vlgmr.msra.gmra.mrb[72].mxu1 %vm13262_vm5, %v31722_v45  ;;  %v14842_v45 = vld [vmem:[#allocation2 + $0x3b] sm:$0xff] }
 0xa7f   : > { %27454 = vmatpush3.bf16.msra.mxu1 %v31720_v1  ;;  %26454 = vmatprep.mubr.msk.f32.mxu1 %vm13262_vm5, %v31726_v60  ;;  %v14841_v1 = vld [vmem:[#allocation2 + $0x33] sm:$0xff]  ;;  %v14843_v60 = vld [vmem:[#allocation2 + $0x43] sm:$0xff] }
 0xa80   : > { %26509 = vmatprep.subr.msk.mxu1 %vm5061_vm3, %v14875_v31 }
 0xa82   : > { %26455 = vmatmul.mubr.msk.f32.gmra.mrb[74].mxu1 %vm13262_vm5, %v31732_v49  ;;  %v14844_v49 = vld [vmem:[#allocation2 + $0x4b] sm:$0xff] }
 0xa83   : > { %26457 = vmatprep.mubr.msk.f32.mxu1 %vm13262_vm5, %v31736_v55  ;;  %26510 = vmatpush3.msk.msra.mxu1 %vm5061_vm3, %v14875_v31  ;;  %v14837_v31 = vld [vmem:[#allocation2 + $0x13] sm:$0xff] }
 0xa84   : > { %27456 = vmatprep.subr.bf16.mxu1 %v27455_v52  ;;  %v14845_v55 = vld [vmem:[#allocation2 + $0x53] sm:$0xff] }
 0xa86   : > { %26458 = vmatmul.mubr.msk.f32.gmra.mrb[76].mxu1 %vm13262_vm5, %v31740_v0  ;;  %v14846_v0 = vld [vmem:[#allocation2 + $0x5b] sm:$0xff] }
 0xa87   : > { %26460 = vmatprep.mubr.msk.f32.mxu1 %vm13262_vm5, %v31744_v17  ;;  %v14847_v17 = vld [vmem:[#allocation2 + $0x63] sm:$0xff] }
 0xa8a   : > { %26461 = vmatmul.mubr.msk.f32.gmra.mrb[78].mxu1 %vm13262_vm5, %v31748_v53  ;;  %v14848_v53 = vld [vmem:[#allocation2 + $0x6b] sm:$0xff] }
 0xa8b   : > { %26463 = vmatprep.mubr.msk.f32.mxu1 %vm13262_vm5, %v31752_v13  ;;  %v14849_v13 = vld [vmem:[#allocation2 + $0x73] sm:$0xff] }
 0xa8e   : > { %26464 = vmatmul.mubr.msk.f32.gmra.mrb[80].mxu1 %vm13262_vm5, %v31756_v16  ;;  %v14850_v16 = vld [vmem:[#allocation2 + $0x7b] sm:$0xff] }
 0xa8f   : > { %26466 = vmatprep.mubr.msk.f32.mxu1 %vm13262_vm5, %v31760_v22  ;;  %v14851_v22 = vld [vmem:[#allocation2 + $0x83] sm:$0xff] }
 0xa92   : > { %26467 = vmatmul.mubr.msk.f32.gmra.mrb[82].mxu1 %vm13262_vm5, %v31764_v25  ;;  %v14852_v25 = vld [vmem:[#allocation2 + $0x8b] sm:$0xff] }
 0xa93   : > { %26469 = vmatprep.mubr.msk.f32.mxu1 %vm13262_vm5, %v31768_v35  ;;  %v14853_v35 = vld [vmem:[#allocation2 + $0x93] sm:$0xff] }
 0xa96   : > { %26470 = vmatmul.mubr.msk.f32.gmra.mrb[84].mxu1 %vm13262_vm5, %v31772_v33  ;;  %v14854_v33 = vld [vmem:[#allocation2 + $0x9b] sm:$0xff] }
 0xa97   : > { %26472 = vmatprep.mubr.msk.f32.mxu1 %vm13262_vm5, %v13991_v30  ;;  %v14855_v30 = vld [vmem:[#allocation2 + $0xa3] sm:$0xff] }
 0xa9a   : > { %26473 = vmatmul.mubr.msk.f32.gmra.mrb[86].mxu1 %vm13262_vm5, %v13992_v36  ;;  %v14856_v36 = vld [vmem:[#allocation2 + $0xab] sm:$0xff] }
 0xa9b   : > { %26475 = vmatprep.mubr.msk.f32.mxu1 %vm13262_vm5, %v13993_v50  ;;  %v14857_v50 = vld [vmem:[#allocation2 + $0xb3] sm:$0xff] }
 0xa9e   : > { %26476 = vmatmul.mubr.msk.f32.gmra.mrb[88].mxu1 %vm13262_vm5, %v13994_v46  ;;  %v14858_v46 = vld [vmem:[#allocation2 + $0xbb] sm:$0xff] }
 0xa9f   : > { %26478 = vmatprep.mubr.msk.f32.mxu1 %vm13262_vm5, %v13995_v56  ;;  %v14859_v56 = vld [vmem:[#allocation2 + $0xc3] sm:$0xff] }
 0xaa2   : > { %26479 = vmatmul.mubr.msk.f32.gmra.mrb[90].mxu1 %vm13262_vm5, %v13996_v41  ;;  %v14860_v41 = vld [vmem:[#allocation2 + $0xcb] sm:$0xff] }
 0xaa3   : > { %26481 = vmatprep.mubr.msk.f32.mxu1 %vm13262_vm5, %v13997_v54  ;;  %v14861_v54 = vld [vmem:[#allocation2 + $0xd3] sm:$0xff] }
 0xaa6   : > { %26482 = vmatmul.mubr.msk.f32.gmra.mrb[92].mxu1 %vm13262_vm5, %v13998_v59  ;;  %v14862_v59 = vld [vmem:[#allocation2 + $0xdb] sm:$0xff] }
 0xaa7   : > { %26484 = vmatprep.mubr.msk.f32.mxu1 %vm13262_vm5, %v13999_v39  ;;  %v14863_v39 = vld [vmem:[#allocation2 + $0xe3] sm:$0xff] }
 0xaaa   : > { %26485 = vmatmul.mubr.msk.f32.gmra.mrb[94].mxu1 %vm13262_vm5, %v14000_v63  ;;  %v14864_v63 = vld [vmem:[#allocation2 + $0xeb] sm:$0xff] }
 0xaab   : > { %26487 = vmatprep.mubr.msk.f32.mxu1 %vm13262_vm5, %v14001_v5  ;;  %v14865_v5 = vld [vmem:[#allocation2 + $0xf3] sm:$0xff] }
 0xaae   : > { %26488 = vmatmul.mubr.msk.f32.gmra.mrb[96].mxu1 %vm13262_vm5, %v14002_v20  ;;  %v14866_v20 = vld [vmem:[#allocation2 + $0xfb] sm:$0xff] }
 0xaaf   : > { %26490 = vmatprep.mubr.msk.f32.mxu1 %vm13262_vm5, %v14003_v48  ;;  %v14867_v48 = vld [vmem:[#allocation2 + $0x103] sm:$0xff] }
 0xab2   : > { %26491 = vmatmul.mubr.msk.f32.gmra.mrb[98].mxu1 %vm13262_vm5, %v14004_v3  ;;  %v14840_v3 = vld [vmem:[#allocation2 + $0x2b] sm:$0xff] }
 0xab3   : > { %26493 = vmatprep.mubr.msk.f32.mxu1 %vm13262_vm5, %v14005_v19  ;;  %v14838_v19 = vld [vmem:[#allocation2 + $0x1b] sm:$0xff] }
 0xab6   : > { %26494 = vmatmul.mubr.msk.f32.gmra.mrb[100].mxu1 %vm13262_vm5, %v14006_v23 }
 0xab7   : > { %26496 = vmatprep.mubr.msk.f32.mxu1 %vm13262_vm5, %v14007_v15  ;;  %v15306_v15 = vld [vmem:[%s33101_s8 + $0x74] sm:$0xf] }
 0xaba   : > { %26497 = vmatmul.mubr.msk.f32.gmra.mrb[102].mxu1 %vm13262_vm5, %v14008_v8  ;;  %v14839_v8 = vld [vmem:[#allocation2 + $0x23] sm:$0xff] }
 0xabb   : > { %26499 = vmatprep.mubr.msk.f32.mxu1 %vm13262_vm5, %v14009_v7  ;;  %v15735_v7 = vld [vmem:[%s33101_s8 + $0x78] sm:$0xff] }
 0xabe   : > { %26500 = vmatmul.mubr.msk.f32.gmra.mrb[104].mxu1 %vm13262_vm5, %v14010_v21  ;;  %v15736_v21 = vld [vmem:[%s33101_s8 + $0x80] sm:$0xff] }
 0xabf   : > { %26502 = vmatprep.mubr.msk.f32.mxu1 %vm13262_vm5, %v14440_v32  ;;  %v31871_v23 = vpack.c.bf16 %v15736_v21, %v15735_v7  ;;  %v14869_v32 = vld [vmem:[#allocation2 + $0x113] sm:$0xff]  ;;  %v15269_v7 = vld [vmem:[#allocation2 + $0x1c] sm:$0xff]  ;;  %v15737_v21 = vld [vmem:[%s33101_s8 + $0x88] sm:$0xf] }
 0xac2   : > { %26503 = vmatmul.mubr.msk.f32.gmra.mrb[106].mxu1 %vm13262_vm5, %v14441_v58  ;;  %v14870_v58 = vld [vmem:[#allocation2 + $0x11b] sm:$0xff] }
 0xac3   : > { %26511 = vmatprep.mubr.msk.f32.mxu1 %vm13262_vm5, %v14837_v31  ;;  %v14871_v31 = vld [vmem:[#allocation2 + $0x123] sm:$0xff] }
 0xac6   : > { %26512 = vmatmul.mubr.msk.f32.vlgmr.msra.gmra.mrb[72].mxu1 %vm13262_vm5, %v14838_v19  ;;  %v14872_v19 = vld [vmem:[#allocation2 + $0x12b] sm:$0xff] }
 0xac7   : > { %27458 = vmatpush3.bf16.msra.mxu1 %v27455_v52  ;;  %26514 = vmatprep.mubr.msk.f32.mxu1 %vm13262_vm5, %v14839_v8  ;;  %v14868_v52 = vld [vmem:[#allocation2 + $0x10b] sm:$0xff] }
 0xac8   : > { %26569 = vmatprep.subr.msk.mxu1 %vm5061_vm3, %v15306_v15  ;;  %v16166_v8 = vld [vmem:[%s33101_s8 + $0x8c] sm:$0xff] }
 0xaca   : > { %26515 = vmatmul.mubr.msk.f32.gmra.mrb[74].mxu1 %vm13262_vm5, %v14840_v3  ;;  %v16167_v3 = vld [vmem:[%s33101_s8 + $0x94] sm:$0xff] }
 0xacb   : > { %26517 = vmatprep.mubr.msk.f32.mxu1 %vm13262_vm5, %v14841_v1  ;;  %26570 = vmatpush3.msk.msra.mxu1 %vm5061_vm3, %v15306_v15  ;;  %v15268_v15 = vld [vmem:[#allocation2 + $0x14] sm:$0xff]  ;;  %v31919_v1 = vld [vmem:[#allocation2 + $0x24] sm:$0xff] }
 0xacc   : > { %27460 = vmatprep.subr.bf16.mxu1 %v31871_v23 }
 0xace   : > { %26518 = vmatmul.mubr.msk.f32.gmra.mrb[76].mxu1 %vm13262_vm5, %v14842_v45  ;;  %v31925_v45 = vpack.c.bf16 %v16167_v3, %v16166_v8  ;;  %v16597_v8 = vld [vmem:[%s33101_s8 + $0xa0] sm:$0xff]  ;;  %v16598_v3 = vld [vmem:[%s33101_s8 + $0xa8] sm:$0xff] }
 0xacf   : > { %26520 = vmatprep.mubr.msk.f32.mxu1 %vm13262_vm5, %v14843_v60  ;;  %v31927_v60 = vld [vmem:[#allocation2 + $0x2c] sm:$0xff] }
 0xad2   : > { %26521 = vmatmul.mubr.msk.f32.gmra.mrb[78].mxu1 %vm13262_vm5, %v14844_v49  ;;  %v31931_v49 = vld [vmem:[#allocation2 + $0x34] sm:$0xff] }
 0xad3   : > { %26523 = vmatprep.mubr.msk.f32.mxu1 %vm13262_vm5, %v14845_v55  ;;  %v31941_v55 = vld [vmem:[#allocation2 + $0x44] sm:$0xff] }
 0xad6   : > { %26524 = vmatmul.mubr.msk.f32.gmra.mrb[80].mxu1 %vm13262_vm5, %v14846_v0  ;;  %v31945_v0 = vld [vmem:[#allocation2 + $0x4c] sm:$0xff] }
 0xad7   : > { %26526 = vmatprep.mubr.msk.f32.mxu1 %vm13262_vm5, %v14847_v17  ;;  %v31949_v17 = vld [vmem:[#allocation2 + $0x54] sm:$0xff] }
 0xada   : > { %26527 = vmatmul.mubr.msk.f32.gmra.mrb[82].mxu1 %vm13262_vm5, %v14848_v53  ;;  %v31953_v53 = vld [vmem:[#allocation2 + $0x5c] sm:$0xff] }
 0xadb   : > { %26529 = vmatprep.mubr.msk.f32.mxu1 %vm13262_vm5, %v14849_v13  ;;  %v31957_v13 = vld [vmem:[#allocation2 + $0x64] sm:$0xff] }
 0xade   : > { %26530 = vmatmul.mubr.msk.f32.gmra.mrb[84].mxu1 %vm13262_vm5, %v14850_v16  ;;  %v31961_v16 = vld [vmem:[#allocation2 + $0x6c] sm:$0xff] }
 0xadf   : > { %26532 = vmatprep.mubr.msk.f32.mxu1 %vm13262_vm5, %v14851_v22  ;;  %v31965_v22 = vld [vmem:[#allocation2 + $0x74] sm:$0xff] }
 0xae2   : > { %26533 = vmatmul.mubr.msk.f32.gmra.mrb[86].mxu1 %vm13262_vm5, %v14852_v25  ;;  %v31969_v25 = vld [vmem:[#allocation2 + $0x7c] sm:$0xff] }
 0xae3   : > { %26535 = vmatprep.mubr.msk.f32.mxu1 %vm13262_vm5, %v14853_v35  ;;  %v31973_v35 = vld [vmem:[#allocation2 + $0x84] sm:$0xff] }
 0xae6   : > { %26536 = vmatmul.mubr.msk.f32.gmra.mrb[88].mxu1 %vm13262_vm5, %v14854_v33  ;;  %v31977_v33 = vld [vmem:[#allocation2 + $0x8c] sm:$0xff] }
 0xae7   : > { %26538 = vmatprep.mubr.msk.f32.mxu1 %vm13262_vm5, %v14855_v30  ;;  %v15284_v30 = vld [vmem:[#allocation2 + $0x94] sm:$0xff] }
 0xaea   : > { %26539 = vmatmul.mubr.msk.f32.gmra.mrb[90].mxu1 %vm13262_vm5, %v14856_v36  ;;  %v15285_v36 = vld [vmem:[#allocation2 + $0x9c] sm:$0xff] }
 0xaeb   : > { %26541 = vmatprep.mubr.msk.f32.mxu1 %vm13262_vm5, %v14857_v50  ;;  %v15286_v50 = vld [vmem:[#allocation2 + $0xa4] sm:$0xff] }
 0xaee   : > { %26542 = vmatmul.mubr.msk.f32.gmra.mrb[92].mxu1 %vm13262_vm5, %v14858_v46  ;;  %v15287_v46 = vld [vmem:[#allocation2 + $0xac] sm:$0xff] }
 0xaef   : > { %26544 = vmatprep.mubr.msk.f32.mxu1 %vm13262_vm5, %v14859_v56  ;;  %v15288_v56 = vld [vmem:[#allocation2 + $0xb4] sm:$0xff] }
 0xaf2   : > { %26545 = vmatmul.mubr.msk.f32.gmra.mrb[94].mxu1 %vm13262_vm5, %v14860_v41  ;;  %v15289_v41 = vld [vmem:[#allocation2 + $0xbc] sm:$0xff] }
 0xaf3   : > { %26547 = vmatprep.mubr.msk.f32.mxu1 %vm13262_vm5, %v14861_v54  ;;  %v15290_v54 = vld [vmem:[#allocation2 + $0xc4] sm:$0xff] }
 0xaf6   : > { %26548 = vmatmul.mubr.msk.f32.gmra.mrb[96].mxu1 %vm13262_vm5, %v14862_v59  ;;  %v15291_v59 = vld [vmem:[#allocation2 + $0xcc] sm:$0xff] }
 0xaf7   : > { %26550 = vmatprep.mubr.msk.f32.mxu1 %vm13262_vm5, %v14863_v39  ;;  %v15292_v39 = vld [vmem:[#allocation2 + $0xd4] sm:$0xff] }
 0xafa   : > { %26551 = vmatmul.mubr.msk.f32.gmra.mrb[98].mxu1 %vm13262_vm5, %v14864_v63  ;;  %v15293_v63 = vld [vmem:[#allocation2 + $0xdc] sm:$0xff] }
 0xafb   : > { %26553 = vmatprep.mubr.msk.f32.mxu1 %vm13262_vm5, %v14865_v5  ;;  %v15294_v5 = vld [vmem:[#allocation2 + $0xe4] sm:$0xff] }
 0xafe   : > { %26554 = vmatmul.mubr.msk.f32.gmra.mrb[100].mxu1 %vm13262_vm5, %v14866_v20  ;;  %v15295_v20 = vld [vmem:[#allocation2 + $0xec] sm:$0xff] }
 0xaff   : > { %26556 = vmatprep.mubr.msk.f32.mxu1 %vm13262_vm5, %v14867_v48  ;;  %v15296_v48 = vld [vmem:[#allocation2 + $0xf4] sm:$0xff] }
 0xb02   : > { %26557 = vmatmul.mubr.msk.f32.gmra.mrb[102].mxu1 %vm13262_vm5, %v14868_v52  ;;  %v15297_v52 = vld [vmem:[#allocation2 + $0xfc] sm:$0xff] }
 0xb03   : > { %26559 = vmatprep.mubr.msk.f32.mxu1 %vm13262_vm5, %v14869_v32  ;;  %v15298_v32 = vld [vmem:[#allocation2 + $0x104] sm:$0xff] }
 0xb06   : > { %26560 = vmatmul.mubr.msk.f32.gmra.mrb[104].mxu1 %vm13262_vm5, %v14870_v58  ;;  %v15299_v58 = vld [vmem:[#allocation2 + $0x10c] sm:$0xff] }
 0xb07   : > { %26562 = vmatprep.mubr.msk.f32.mxu1 %vm13262_vm5, %v14871_v31  ;;  %v15300_v31 = vld [vmem:[#allocation2 + $0x114] sm:$0xff] }
 0xb0a   : > { %26563 = vmatmul.mubr.msk.f32.gmra.mrb[106].mxu1 %vm13262_vm5, %v14872_v19  ;;  %v15301_v19 = vld [vmem:[#allocation2 + $0x11c] sm:$0xff] }
 0xb0b   : > { %26571 = vmatprep.mubr.msk.f32.mxu1 %vm13262_vm5, %v15268_v15  ;;  %v15302_v15 = vld [vmem:[#allocation2 + $0x124] sm:$0xff] }
 0xb0e   : > { %26572 = vmatmul.mubr.msk.f32.vlgmr.msra.gmra.mrb[72].mxu1 %vm13262_vm5, %v15269_v7  ;;  %v15303_v7 = vld [vmem:[#allocation2 + $0x12c] sm:$0xff] }
 0xb0f   : > { %27462 = vmatpush3.bf16.msra.mxu1 %v31871_v23  ;;  %26574 = vmatprep.mubr.msk.f32.mxu1 %vm13262_vm5, %v31919_v1  ;;  %v31937_v23 = vld [vmem:[#allocation2 + $0x3c] sm:$0xff] }
 0xb10   : > { %26629 = vmatprep.subr.msk.mxu1 %vm5061_vm3, %v15737_v21 }
 0xb12   : > { %26575 = vmatmul.mubr.msk.f32.gmra.mrb[74].mxu1 %vm13262_vm5, %v31927_v60 }
 0xb13   : > { %26577 = vmatprep.mubr.msk.f32.mxu1 %vm13262_vm5, %v31931_v49  ;;  %26630 = vmatpush3.msk.msra.mxu1 %vm5061_vm3, %v15737_v21  ;;  %v16168_v21 = vld [vmem:[%s33101_s8 + $0x9c] sm:$0xf] }
 0xb14   : > { %27464 = vmatprep.subr.bf16.mxu1 %v31925_v45 }
 0xb16   : > { %26578 = vmatmul.mubr.msk.f32.gmra.mrb[76].mxu1 %vm13262_vm5, %v31937_v23 }
 0xb17   : > { %26580 = vmatprep.mubr.msk.f32.mxu1 %vm13262_vm5, %v31941_v55 }
 0xb1a   : > { %26581 = vmatmul.mubr.msk.f32.gmra.mrb[78].mxu1 %vm13262_vm5, %v31945_v0 }
 0xb1b   : > { %26583 = vmatprep.mubr.msk.f32.mxu1 %vm13262_vm5, %v31949_v17 }
 0xb1e   : > { %26584 = vmatmul.mubr.msk.f32.gmra.mrb[80].mxu1 %vm13262_vm5, %v31953_v53 }
 0xb1f   : > { %26586 = vmatprep.mubr.msk.f32.mxu1 %vm13262_vm5, %v31957_v13 }
 0xb22   : > { %26587 = vmatmul.mubr.msk.f32.gmra.mrb[82].mxu1 %vm13262_vm5, %v31961_v16 }
 0xb23   : > { %26589 = vmatprep.mubr.msk.f32.mxu1 %vm13262_vm5, %v31965_v22 }
 0xb26   : > { %26590 = vmatmul.mubr.msk.f32.gmra.mrb[84].mxu1 %vm13262_vm5, %v31969_v25 }
 0xb27   : > { %26592 = vmatprep.mubr.msk.f32.mxu1 %vm13262_vm5, %v31973_v35 }
 0xb2a   : > { %26593 = vmatmul.mubr.msk.f32.gmra.mrb[86].mxu1 %vm13262_vm5, %v31977_v33 }
 0xb2b   : > { %26595 = vmatprep.mubr.msk.f32.mxu1 %vm13262_vm5, %v15284_v30 }
 0xb2e   : > { %26596 = vmatmul.mubr.msk.f32.gmra.mrb[88].mxu1 %vm13262_vm5, %v15285_v36 }
 0xb2f   : > { %26598 = vmatprep.mubr.msk.f32.mxu1 %vm13262_vm5, %v15286_v50 }
 0xb32   : > { %26599 = vmatmul.mubr.msk.f32.gmra.mrb[90].mxu1 %vm13262_vm5, %v15287_v46 }
 0xb33   : > { %26601 = vmatprep.mubr.msk.f32.mxu1 %vm13262_vm5, %v15288_v56 }
 0xb36   : > { %26602 = vmatmul.mubr.msk.f32.gmra.mrb[92].mxu1 %vm13262_vm5, %v15289_v41 }
 0xb37   : > { %26604 = vmatprep.mubr.msk.f32.mxu1 %vm13262_vm5, %v15290_v54 }
 0xb3a   : > { %26605 = vmatmul.mubr.msk.f32.gmra.mrb[94].mxu1 %vm13262_vm5, %v15291_v59 }
 0xb3b   : > { %26607 = vmatprep.mubr.msk.f32.mxu1 %vm13262_vm5, %v15292_v39 }
 0xb3e   : > { %26608 = vmatmul.mubr.msk.f32.gmra.mrb[96].mxu1 %vm13262_vm5, %v15293_v63 }
 0xb3f   : > { %26610 = vmatprep.mubr.msk.f32.mxu1 %vm13262_vm5, %v15294_v5 }
 0xb42   : > { %26611 = vmatmul.mubr.msk.f32.gmra.mrb[98].mxu1 %vm13262_vm5, %v15295_v20 }
 0xb43   : > { %26613 = vmatprep.mubr.msk.f32.mxu1 %vm13262_vm5, %v15296_v48 }
 0xb46   : > { %26614 = vmatmul.mubr.msk.f32.gmra.mrb[100].mxu1 %vm13262_vm5, %v15297_v52 }
 0xb47   : > { %26616 = vmatprep.mubr.msk.f32.mxu1 %vm13262_vm5, %v15298_v32 }
 0xb4a   : > { %26617 = vmatmul.mubr.msk.f32.gmra.mrb[102].mxu1 %vm13262_vm5, %v15299_v58 }
 0xb4b   : > { %26619 = vmatprep.mubr.msk.f32.mxu1 %vm13262_vm5, %v15300_v31 }
 0xb4e   : > { %26620 = vmatmul.mubr.msk.f32.gmra.mrb[104].mxu1 %vm13262_vm5, %v15301_v19 }
 0xb4f   : > { %26622 = vmatprep.mubr.msk.f32.mxu1 %vm13262_vm5, %v15302_v15 }
 0xb52   : > { %26623 = vmatmul.mubr.msk.f32.gmra.mrb[106].mxu1 %vm13262_vm5, %v15303_v7 }
 0xb53   : > { %26631 = vmatprep.mubr.msk.f32.mxu1 %vm13262_vm5, %v31919_v1  ;;  %v27467_v1 = vpack.c.bf16 %v16598_v3, %v16597_v8  ;;  %v16162_v8 = vld [vmem:[#allocation2 + $0x125] sm:$0xff]  ;;  %v16164_v3 = vld [vmem:[#allocation2 + $0x135] sm:$0xff] }
 0xb56   : > { %26632 = vmatmul.mubr.msk.f32.vlgmr.msra.gmra.mrb[72].mxu1 %vm13262_vm5, %v31927_v60  ;;  %v15734_v60 = vld [vmem:[#allocation2 + $0x13c] sm:$0xff] }
 0xb57   : > { %27466 = vmatpush3.bf16.msra.mxu1 %v31925_v45  ;;  %26634 = vmatprep.mubr.msk.f32.mxu1 %vm13262_vm5, %v31931_v49  ;;  %v15733_v45 = vld [vmem:[#allocation2 + $0x134] sm:$0xff]  ;;  %v16130_v49 = vld [vmem:[#allocation2 + $0x25] sm:$0xff] }
 0xb58   : > { %26689 = vmatprep.subr.msk.mxu1 %vm5061_vm3, %v16168_v21 }
 0xb5a   : > { %26635 = vmatmul.mubr.msk.f32.gmra.mrb[74].mxu1 %vm13262_vm5, %v31937_v23  ;;  %v16131_v23 = vld [vmem:[#allocation2 + $0x2d] sm:$0xff] }
 0xb5b   : > { %26637 = vmatprep.mubr.msk.f32.mxu1 %vm13262_vm5, %v31941_v55  ;;  %26690 = vmatpush3.msk.msra.mxu1 %vm5061_vm3, %v16168_v21  ;;  %v16599_v55 = vld [vmem:[%s33101_s8 + $0xb0] sm:$0xf]  ;;  %v16161_v21 = vld [vmem:[#allocation2 + $0x11d] sm:$0xff] }
 0xb5c   : > { %27468 = vmatprep.subr.bf16.mxu1 %v27467_v1 }
 0xb5e   : > { %26638 = vmatmul.mubr.msk.f32.gmra.mrb[76].mxu1 %vm13262_vm5, %v31945_v0  ;;  %v16132_v0 = vld [vmem:[#allocation2 + $0x35] sm:$0xff] }
 0xb5f   : > { %26640 = vmatprep.mubr.msk.f32.mxu1 %vm13262_vm5, %v31949_v17  ;;  %v16133_v17 = vld [vmem:[#allocation2 + $0x3d] sm:$0xff] }
 0xb62   : > { %26641 = vmatmul.mubr.msk.f32.gmra.mrb[78].mxu1 %vm13262_vm5, %v31953_v53  ;;  %v16134_v53 = vld [vmem:[#allocation2 + $0x45] sm:$0xff] }
 0xb63   : > { %26643 = vmatprep.mubr.msk.f32.mxu1 %vm13262_vm5, %v31957_v13  ;;  %v16135_v13 = vld [vmem:[#allocation2 + $0x4d] sm:$0xff] }
 0xb66   : > { %26644 = vmatmul.mubr.msk.f32.gmra.mrb[80].mxu1 %vm13262_vm5, %v31961_v16  ;;  %v16136_v16 = vld [vmem:[#allocation2 + $0x55] sm:$0xff] }
 0xb67   : > { %26646 = vmatprep.mubr.msk.f32.mxu1 %vm13262_vm5, %v31965_v22  ;;  %v16137_v22 = vld [vmem:[#allocation2 + $0x5d] sm:$0xff] }
 0xb6a   : > { %26647 = vmatmul.mubr.msk.f32.gmra.mrb[82].mxu1 %vm13262_vm5, %v31969_v25  ;;  %v16138_v25 = vld [vmem:[#allocation2 + $0x65] sm:$0xff] }
 0xb6b   : > { %26649 = vmatprep.mubr.msk.f32.mxu1 %vm13262_vm5, %v31973_v35  ;;  %v16139_v35 = vld [vmem:[#allocation2 + $0x6d] sm:$0xff] }
 0xb6e   : > { %26650 = vmatmul.mubr.msk.f32.gmra.mrb[84].mxu1 %vm13262_vm5, %v31977_v33  ;;  %v16140_v33 = vld [vmem:[#allocation2 + $0x75] sm:$0xff] }
 0xb6f   : > { %26652 = vmatprep.mubr.msk.f32.mxu1 %vm13262_vm5, %v15284_v30  ;;  %v16141_v30 = vld [vmem:[#allocation2 + $0x7d] sm:$0xff] }
 0xb72   : > { %26653 = vmatmul.mubr.msk.f32.gmra.mrb[86].mxu1 %vm13262_vm5, %v15285_v36  ;;  %v16142_v36 = vld [vmem:[#allocation2 + $0x85] sm:$0xff] }
 0xb73   : > { %26655 = vmatprep.mubr.msk.f32.mxu1 %vm13262_vm5, %v15286_v50  ;;  %v16143_v50 = vld [vmem:[#allocation2 + $0x8d] sm:$0xff] }
 0xb76   : > { %26656 = vmatmul.mubr.msk.f32.gmra.mrb[88].mxu1 %vm13262_vm5, %v15287_v46  ;;  %v16144_v46 = vld [vmem:[#allocation2 + $0x95] sm:$0xff] }
 0xb77   : > { %26658 = vmatprep.mubr.msk.f32.mxu1 %vm13262_vm5, %v15288_v56  ;;  %v16145_v56 = vld [vmem:[#allocation2 + $0x9d] sm:$0xff] }
 0xb7a   : > { %26659 = vmatmul.mubr.msk.f32.gmra.mrb[90].mxu1 %vm13262_vm5, %v15289_v41  ;;  %v16146_v41 = vld [vmem:[#allocation2 + $0xa5] sm:$0xff] }
 0xb7b   : > { %26661 = vmatprep.mubr.msk.f32.mxu1 %vm13262_vm5, %v15290_v54  ;;  %v16147_v54 = vld [vmem:[#allocation2 + $0xad] sm:$0xff] }
 0xb7e   : > { %26662 = vmatmul.mubr.msk.f32.gmra.mrb[92].mxu1 %vm13262_vm5, %v15291_v59  ;;  %v16148_v59 = vld [vmem:[#allocation2 + $0xb5] sm:$0xff] }
 0xb7f   : > { %26664 = vmatprep.mubr.msk.f32.mxu1 %vm13262_vm5, %v15292_v39  ;;  %v16149_v39 = vld [vmem:[#allocation2 + $0xbd] sm:$0xff] }
 0xb82   : > { %26665 = vmatmul.mubr.msk.f32.gmra.mrb[94].mxu1 %vm13262_vm5, %v15293_v63  ;;  %v16150_v63 = vld [vmem:[#allocation2 + $0xc5] sm:$0xff] }
 0xb83   : > { %26667 = vmatprep.mubr.msk.f32.mxu1 %vm13262_vm5, %v15294_v5  ;;  %v16151_v5 = vld [vmem:[#allocation2 + $0xcd] sm:$0xff] }
 0xb86   : > { %26668 = vmatmul.mubr.msk.f32.gmra.mrb[96].mxu1 %vm13262_vm5, %v15295_v20  ;;  %v16152_v20 = vld [vmem:[#allocation2 + $0xd5] sm:$0xff] }
 0xb87   : > { %26670 = vmatprep.mubr.msk.f32.mxu1 %vm13262_vm5, %v15296_v48  ;;  %v16153_v48 = vld [vmem:[#allocation2 + $0xdd] sm:$0xff] }
 0xb8a   : > { %26671 = vmatmul.mubr.msk.f32.gmra.mrb[98].mxu1 %vm13262_vm5, %v15297_v52  ;;  %v16154_v52 = vld [vmem:[#allocation2 + $0xe5] sm:$0xff] }
 0xb8b   : > { %26673 = vmatprep.mubr.msk.f32.mxu1 %vm13262_vm5, %v15298_v32  ;;  %v16155_v32 = vld [vmem:[#allocation2 + $0xed] sm:$0xff] }
 0xb8e   : > { %26674 = vmatmul.mubr.msk.f32.gmra.mrb[100].mxu1 %vm13262_vm5, %v15299_v58  ;;  %v16156_v58 = vld [vmem:[#allocation2 + $0xf5] sm:$0xff] }
 0xb8f   : > { %26676 = vmatprep.mubr.msk.f32.mxu1 %vm13262_vm5, %v15300_v31  ;;  %v16157_v31 = vld [vmem:[#allocation2 + $0xfd] sm:$0xff] }
 0xb92   : > { %26677 = vmatmul.mubr.msk.f32.gmra.mrb[102].mxu1 %vm13262_vm5, %v15301_v19  ;;  %v16158_v19 = vld [vmem:[#allocation2 + $0x105] sm:$0xff] }
 0xb93   : > { %26679 = vmatprep.mubr.msk.f32.mxu1 %vm13262_vm5, %v15302_v15  ;;  %v16159_v15 = vld [vmem:[#allocation2 + $0x10d] sm:$0xff] }
 0xb96   : > { %26680 = vmatmul.mubr.msk.f32.gmra.mrb[104].mxu1 %vm13262_vm5, %v15303_v7  ;;  %v16160_v7 = vld [vmem:[#allocation2 + $0x115] sm:$0xff] }
 0xb97   : > { %26682 = vmatprep.mubr.msk.f32.mxu1 %vm13262_vm5, %v15733_v45  ;;  %v16165_v45 = vld [vmem:[#allocation2 + $0x13d] sm:$0xff] }
 0xb9a   : > { %26683 = vmatmul.mubr.msk.f32.gmra.mrb[106].mxu1 %vm13262_vm5, %v15734_v60  ;;  %v16561_v60 = vld [vmem:[#allocation2 + $0x26] sm:$0xff] }
 0xb9b   : > { %26691 = vmatprep.mubr.msk.f32.mxu1 %vm13262_vm5, %v16130_v49  ;;  %v16562_v49 = vld [vmem:[#allocation2 + $0x2e] sm:$0xff] }
 0xb9e   : > { %26692 = vmatmul.mubr.msk.f32.vlgmr.msra.gmra.mrb[72].mxu1 %vm13262_vm5, %v16131_v23  ;;  %v16563_v23 = vld [vmem:[#allocation2 + $0x36] sm:$0xff] }
 0xb9f   : > { %27470 = vmatpush3.bf16.msra.mxu1 %v27467_v1  ;;  %26694 = vmatprep.mubr.msk.f32.mxu1 %vm13262_vm5, %v16132_v0  ;;  %v16163_v1 = vld [vmem:[#allocation2 + $0x12d] sm:$0xff] }
 0xba0   : > { %26749 = vmatprep.subr.msk.mxu1 %vm5061_vm3, %v16599_v55  ;;  %v16565_v0 = vld [vmem:[#allocation2 + $0x46] sm:$0xff] }
 0xba2   : > { %26695 = vmatmul.mubr.msk.f32.gmra.mrb[74].mxu1 %vm13262_vm5, %v16133_v17  ;;  %v16566_v17 = vld [vmem:[#allocation2 + $0x4e] sm:$0xff] }
 0xba3   : > { %26697 = vmatprep.mubr.msk.f32.mxu1 %vm13262_vm5, %v16134_v53  ;;  %26750 = vmatpush3.msk.msra.mxu1 %vm5061_vm3, %v16599_v55  ;;  %v16564_v55 = vld [vmem:[#allocation2 + $0x3e] sm:$0xff]  ;;  %v16567_v53 = vld [vmem:[#allocation2 + $0x56] sm:$0xff] }
 0xba6   : > { %26698 = vmatmul.mubr.msk.f32.gmra.mrb[76].mxu1 %vm13262_vm5, %v16135_v13  ;;  %v16568_v13 = vld [vmem:[#allocation2 + $0x5e] sm:$0xff] }
 0xba7   : > { %26700 = vmatprep.mubr.msk.f32.mxu1 %vm13262_vm5, %v16136_v16  ;;  %v16569_v16 = vld [vmem:[#allocation2 + $0x66] sm:$0xff] }
 0xbaa   : > { %26701 = vmatmul.mubr.msk.f32.gmra.mrb[78].mxu1 %vm13262_vm5, %v16137_v22  ;;  %v16570_v22 = vld [vmem:[#allocation2 + $0x6e] sm:$0xff] }
 0xbab   : > { %26703 = vmatprep.mubr.msk.f32.mxu1 %vm13262_vm5, %v16138_v25  ;;  %v16571_v25 = vld [vmem:[#allocation2 + $0x76] sm:$0xff] }
 0xbae   : > { %26704 = vmatmul.mubr.msk.f32.gmra.mrb[80].mxu1 %vm13262_vm5, %v16139_v35  ;;  %v16572_v35 = vld [vmem:[#allocation2 + $0x7e] sm:$0xff] }
 0xbaf   : > { %26706 = vmatprep.mubr.msk.f32.mxu1 %vm13262_vm5, %v16140_v33  ;;  %v16573_v33 = vld [vmem:[#allocation2 + $0x86] sm:$0xff] }
 0xbb2   : > { %26707 = vmatmul.mubr.msk.f32.gmra.mrb[82].mxu1 %vm13262_vm5, %v16141_v30  ;;  %v16574_v30 = vld [vmem:[#allocation2 + $0x8e] sm:$0xff] }
 0xbb3   : > { %26709 = vmatprep.mubr.msk.f32.mxu1 %vm13262_vm5, %v16142_v36  ;;  %v16575_v36 = vld [vmem:[#allocation2 + $0x96] sm:$0xff] }
 0xbb6   : > { %26710 = vmatmul.mubr.msk.f32.gmra.mrb[84].mxu1 %vm13262_vm5, %v16143_v50  ;;  %v16576_v50 = vld [vmem:[#allocation2 + $0x9e] sm:$0xff] }
 0xbb7   : > { %26712 = vmatprep.mubr.msk.f32.mxu1 %vm13262_vm5, %v16144_v46  ;;  %v16577_v46 = vld [vmem:[#allocation2 + $0xa6] sm:$0xff] }
 0xbba   : > { %26713 = vmatmul.mubr.msk.f32.gmra.mrb[86].mxu1 %vm13262_vm5, %v16145_v56  ;;  %v16578_v56 = vld [vmem:[#allocation2 + $0xae] sm:$0xff] }
 0xbbb   : > { %26715 = vmatprep.mubr.msk.f32.mxu1 %vm13262_vm5, %v16146_v41  ;;  %v16579_v41 = vld [vmem:[#allocation2 + $0xb6] sm:$0xff] }
 0xbbe   : > { %26716 = vmatmul.mubr.msk.f32.gmra.mrb[88].mxu1 %vm13262_vm5, %v16147_v54  ;;  %v16580_v54 = vld [vmem:[#allocation2 + $0xbe] sm:$0xff] }
 0xbbf   : > { %26718 = vmatprep.mubr.msk.f32.mxu1 %vm13262_vm5, %v16148_v59  ;;  %v16581_v59 = vld [vmem:[#allocation2 + $0xc6] sm:$0xff] }
 0xbc2   : > { %26719 = vmatmul.mubr.msk.f32.gmra.mrb[90].mxu1 %vm13262_vm5, %v16149_v39  ;;  %v16582_v39 = vld [vmem:[#allocation2 + $0xce] sm:$0xff] }
 0xbc3   : > { %26721 = vmatprep.mubr.msk.f32.mxu1 %vm13262_vm5, %v16150_v63  ;;  %v16583_v63 = vld [vmem:[#allocation2 + $0xd6] sm:$0xff] }
 0xbc6   : > { %26722 = vmatmul.mubr.msk.f32.gmra.mrb[92].mxu1 %vm13262_vm5, %v16151_v5  ;;  %v16584_v5 = vld [vmem:[#allocation2 + $0xde] sm:$0xff] }
 0xbc7   : > { %26724 = vmatprep.mubr.msk.f32.mxu1 %vm13262_vm5, %v16152_v20  ;;  %v16585_v20 = vld [vmem:[#allocation2 + $0xe6] sm:$0xff] }
 0xbca   : > { %26725 = vmatmul.mubr.msk.f32.gmra.mrb[94].mxu1 %vm13262_vm5, %v16153_v48  ;;  %v16586_v48 = vld [vmem:[#allocation2 + $0xee] sm:$0xff] }
 0xbcb   : > { %26727 = vmatprep.mubr.msk.f32.mxu1 %vm13262_vm5, %v16154_v52  ;;  %v16587_v52 = vld [vmem:[#allocation2 + $0xf6] sm:$0xff] }
 0xbce   : > { %26728 = vmatmul.mubr.msk.f32.gmra.mrb[96].mxu1 %vm13262_vm5, %v16155_v32  ;;  %v16588_v32 = vld [vmem:[#allocation2 + $0xfe] sm:$0xff] }
 0xbcf   : > { %26730 = vmatprep.mubr.msk.f32.mxu1 %vm13262_vm5, %v16156_v58  ;;  %v16589_v58 = vld [vmem:[#allocation2 + $0x106] sm:$0xff] }
 0xbd2   : > { %26731 = vmatmul.mubr.msk.f32.gmra.mrb[98].mxu1 %vm13262_vm5, %v16157_v31  ;;  %v16590_v31 = vld [vmem:[#allocation2 + $0x10e] sm:$0xff] }
 0xbd3   : > { %26733 = vmatprep.mubr.msk.f32.mxu1 %vm13262_vm5, %v16158_v19  ;;  %v16591_v19 = vld [vmem:[#allocation2 + $0x116] sm:$0xff] }
 0xbd6   : > { %26734 = vmatmul.mubr.msk.f32.gmra.mrb[100].mxu1 %vm13262_vm5, %v16159_v15  ;;  %v16592_v15 = vld [vmem:[#allocation2 + $0x11e] sm:$0xff] }
 0xbd7   : > { %26736 = vmatprep.mubr.msk.f32.mxu1 %vm13262_vm5, %v16160_v7  ;;  %v16593_v7 = vld [vmem:[#allocation2 + $0x126] sm:$0xff] }
 0xbda   : > { %26737 = vmatmul.mubr.msk.f32.gmra.mrb[102].mxu1 %vm13262_vm5, %v16161_v21  ;;  %v16595_v21 = vld [vmem:[#allocation2 + $0x136] sm:$0xff] }
 0xbdb   : > { %26739 = vmatprep.mubr.msk.f32.mxu1 %vm13262_vm5, %v16162_v8  ;;  %v16594_v8 = vld [vmem:[#allocation2 + $0x12e] sm:$0xff] }
 0xbde   : > { %26740 = vmatmul.mubr.msk.f32.gmra.mrb[104].mxu1 %vm13262_vm5, %v16163_v1  ;;  %v17435_v1 = vld [vmem:[%s33103_s10 + $0x18] sm:$0xff] }
 0xbdf   : > { %26742 = vmatprep.mubr.msk.f32.mxu1 %vm13262_vm5, %v16164_v3  ;;  %v16596_v3 = vld [vmem:[#allocation2 + $0x13e] sm:$0xff] }
 0xbe2   : > { %26743 = vmatmul.mubr.msk.f32.gmra.mrb[106].mxu1 %vm13262_vm5, %v16165_v45  ;;  %v17436_v45 = vld [vmem:[%s33103_s10 + $0x20] sm:$0xff] }
 0xbe3   : > { %26751 = vmatprep.mubr.msk.f32.mxu1 %vm13262_vm5, %v16561_v60  ;;  %v27471_v60 = vpack.c.bf16 %v17436_v45, %v17435_v1 }
 0xbe5   : > { %27472 = vmatprep.subr.bf16.mxu0 %v27471_v60 }
 0xbe6   : > { %26752 = vmatmul.mubr.msk.f32.vlgmr.msra.gmra.mrb[72].mxu1 %vm13262_vm5, %v16562_v49  ;;  %27474 = vmatpush3.bf16.msra.mxu0 %v27471_v60  ;;  %v17437_v49 = vld [vmem:[%s33103_s10 + $0x28] sm:$0xff] }
 0xbe7   : > { %26754 = vmatprep.mubr.msk.f32.mxu1 %vm13262_vm5, %v16563_v23  ;;  %26809 = vmatprep.subr.mxu0 %v17437_v49  ;;  %v32152_v23 = vld [vmem:[%s33102_s9] ss:$0 sm:$0xff] }
 0xbea   : > { %26755 = vmatmul.mubr.msk.f32.gmra.mrb[74].mxu1 %vm13262_vm5, %v16564_v55  ;;  %26810 = vmatpush3.msra.mxu0 %v17437_v49  ;;  %v17399_v55 = vld [vmem:[#allocation2 + $0x1] sm:$0xff] }
 0xbeb   : > { %26757 = vmatprep.mubr.msk.f32.mxu1 %vm13262_vm5, %v16565_v0  ;;  %v17396_v0 = vld [vmem:[%s33103_s10] sm:$0xff]  ;;  %26811 = vmatprep.mubr.msk.f32.mxu0 %vm414_vm0, %v17399_v55 }
 0xbee   : > { %26758 = vmatmul.mubr.msk.f32.gmra.mrb[76].mxu1 %vm13262_vm5, %v16566_v17  ;;  %v17397_v17 = vld [vmem:[%s33103_s10 + $0x8] sm:$0xff] }
 0xbef   : > { %26760 = vmatprep.mubr.msk.f32.mxu1 %vm13262_vm5, %v16567_v53 }
 0xbf2   : > { %26761 = vmatmul.mubr.msk.f32.gmra.mrb[78].mxu1 %vm13262_vm5, %v16568_v13  ;;  %v27475_v13 = vpack.c.bf16 %v17397_v17, %v17396_v0 }
 0xbf3   : > { %26763 = vmatprep.mubr.msk.f32.mxu1 %vm13262_vm5, %v16569_v16  ;;  %v17400_v16 = vld [vmem:[#allocation2 + $0x9] sm:$0xff] }
 0xbf4   : > { %26812 = vmatmul.mubr.msk.f32.vlgmr.msra.gmra.mrb[72].mxu0 %vm414_vm0, %v17400_v16  ;;  %27476 = vmatprep.subr.bf16.mxu0 %v27475_v13 }
 0xbf5   : > { %27478 = vmatpush3.bf16.msra.mxu0 %v27475_v13 }
 0xbf6   : > { %26764 = vmatmul.mubr.msk.f32.gmra.mrb[80].mxu1 %vm13262_vm5, %v16570_v22 }
 0xbf7   : > { %26766 = vmatprep.mubr.msk.f32.mxu1 %vm13262_vm5, %v16571_v25 }
 0xbfa   : > { %26767 = vmatmul.mubr.msk.f32.gmra.mrb[82].mxu1 %vm13262_vm5, %v16572_v35 }
 0xbfb   : > { %26769 = vmatprep.mubr.msk.f32.mxu1 %vm13262_vm5, %v16573_v33 }
 0xbfe   : > { %26770 = vmatmul.mubr.msk.f32.gmra.mrb[84].mxu1 %vm13262_vm5, %v16574_v30 }
 0xbff   : > { %26772 = vmatprep.mubr.msk.f32.mxu1 %vm13262_vm5, %v16575_v36 }
 0xc02   : > { %26773 = vmatmul.mubr.msk.f32.gmra.mrb[86].mxu1 %vm13262_vm5, %v16576_v50 }
 0xc03   : > { %26775 = vmatprep.mubr.msk.f32.mxu1 %vm13262_vm5, %v16577_v46 }
 0xc06   : > { %26776 = vmatmul.mubr.msk.f32.gmra.mrb[88].mxu1 %vm13262_vm5, %v16578_v56 }
 0xc07   : > { %26778 = vmatprep.mubr.msk.f32.mxu1 %vm13262_vm5, %v16579_v41 }
 0xc0a   : > { %26779 = vmatmul.mubr.msk.f32.gmra.mrb[90].mxu1 %vm13262_vm5, %v16580_v54 }
 0xc0b   : > { %26781 = vmatprep.mubr.msk.f32.mxu1 %vm13262_vm5, %v16581_v59 }
 0xc0e   : > { %26782 = vmatmul.mubr.msk.f32.gmra.mrb[92].mxu1 %vm13262_vm5, %v16582_v39 }
 0xc0f   : > { %26784 = vmatprep.mubr.msk.f32.mxu1 %vm13262_vm5, %v16583_v63 }
 0xc12   : > { %26785 = vmatmul.mubr.msk.f32.gmra.mrb[94].mxu1 %vm13262_vm5, %v16584_v5 }
 0xc13   : > { %26787 = vmatprep.mubr.msk.f32.mxu1 %vm13262_vm5, %v16585_v20 }
 0xc16   : > { %26788 = vmatmul.mubr.msk.f32.gmra.mrb[96].mxu1 %vm13262_vm5, %v16586_v48 }
 0xc17   : > { %26790 = vmatprep.mubr.msk.f32.mxu1 %vm13262_vm5, %v16587_v52 }
 0xc1a   : > { %26791 = vmatmul.mubr.msk.f32.gmra.mrb[98].mxu1 %vm13262_vm5, %v16588_v32 }
 0xc1b   : > { %26793 = vmatprep.mubr.msk.f32.mxu1 %vm13262_vm5, %v16589_v58 }
 0xc1e   : > { %26794 = vmatmul.mubr.msk.f32.gmra.mrb[100].mxu1 %vm13262_vm5, %v16590_v31 }
 0xc1f   : > { %26796 = vmatprep.mubr.msk.f32.mxu1 %vm13262_vm5, %v16591_v19 }
 0xc22   : > { %26797 = vmatmul.mubr.msk.f32.gmra.mrb[102].mxu1 %vm13262_vm5, %v16592_v15 }
 0xc23   : > { %26799 = vmatprep.mubr.msk.f32.mxu1 %vm13262_vm5, %v16593_v7 }
 0xc26   : > { %26800 = vmatmul.mubr.msk.f32.gmra.mrb[104].mxu1 %vm13262_vm5, %v16594_v8 }
 0xc27   : > { %26802 = vmatprep.mubr.msk.f32.mxu1 %vm13262_vm5, %v16595_v21 }
 0xc2a   : > { %26803 = vmatmul.mubr.msk.f32.gmra.mrb[106].mxu1 %vm13262_vm5, %v16596_v3 }
 0xcb9   : > { %v26753_v53 = vpop.f32.mrb[72].mxu1 }
 0xcba   : > { %v17000_v22 = vadd.f32 %v26753_v53, %v32152_v23  ;;  %v16777_v25 = vpop.f32.mrb[73].mxu1 }
 0xcbb   : > { %v16999_v35 = vadd.f32 %v32152_v23, %v16777_v25 }
 0xcbc   : > { %vm17036_vm3 = vcmp.ge.f32.partialorder %v17000_v22, 0.0  ;;  %v17072_v33 = vmul.f32 0.2, %v17000_v22 }
 0xcbd   : > { %vm17035_vm5 = vcmp.ge.f32.partialorder %v16999_v35, 0.0  ;;  %v17071_v30 = vmul.f32 0.2, %v16999_v35  ;;  %v26756_v36 = vpop.f32.mrb[74].mxu1 }
 0xcbe   : > { %v17108_v50 = vsel %vm17036_vm3, %v17000_v22, %v17072_v33  ;;  %v17002_v46 = vadd.f32 %v26756_v36, %v32152_v23  ;;  %v16787_v56 = vpop.f32.mrb[75].mxu1 }
 0xcbf   : > { %v17144_v41 = vmul.f32 %v17108_v50, %v30013_v40  ;;  %v17107_v54 = vsel %vm17035_vm5, %v16999_v35, %v17071_v30  ;;  %v17001_v59 = vadd.f32 %v32152_v23, %v16787_v56 }
 0xcc0   : > { %v17143_v39 = vmul.f32 %v17107_v54, %v30003_v18  ;;  %vm17038_vm12 = vcmp.ge.f32.partialorder %v17002_v46, 0.0  ;;  %v17074_v63 = vmul.f32 0.2, %v17002_v46 }
 0xcc1   : > { %vm17037_vm13 = vcmp.ge.f32.partialorder %v17001_v59, 0.0  ;;  %v17073_v5 = vmul.f32 0.2, %v17001_v59  ;;  %17217 = vrot.lane.b32.xlu1 %v17144_v41, %s28982_s26  ;;  %v26759_v20 = vpop.f32.mrb[76].mxu1 }
 0xcc2   : > { %v17110_v48 = vsel %vm17038_vm12, %v17002_v46, %v17074_v63  ;;  %v17004_v52 = vadd.f32 %v26759_v20, %v32152_v23  ;;  %17215 = vrot.lane.b32.xlu0 %v17143_v39, %s28982_s26  ;;  %v16797_v32 = vpop.f32.mrb[77].mxu1 }
 0xcc3   : > { %v17146_v40 = vmul.f32 %v17110_v48, %v30007_v26  ;;  %v17109_v58 = vsel %vm17037_vm13, %v17001_v59, %v17073_v5  ;;  %v17003_v31 = vadd.f32 %v32152_v23, %v16797_v32 }
 0xcc4   : > { %v17145_v18 = vmul.f32 %v17109_v58, %v30001_v10  ;;  %vm17040_vm14 = vcmp.ge.f32.partialorder %v17004_v52, 0.0  ;;  %v17076_v19 = vmul.f32 0.2, %v17004_v52 }
 0xcc5   : > { %vm17039_vm15 = vcmp.ge.f32.partialorder %v17003_v31, 0.0  ;;  %v17075_v15 = vmul.f32 0.2, %v17003_v31  ;;  %17221 = vrot.lane.b32.xlu1 %v17146_v40, %s28982_s26  ;;  %v26762_v7 = vpop.f32.mrb[78].mxu1 }
 0xcc6   : > { %v17112_v21 = vsel %vm17040_vm14, %v17004_v52, %v17076_v19  ;;  %v17006_v8 = vadd.f32 %v26762_v7, %v32152_v23  ;;  %17219 = vrot.lane.b32.xlu0 %v17145_v18, %s28982_s26  ;;  %v16807_v3 = vpop.f32.mrb[79].mxu1 }
 0xcc7   : > { %v17148_v26 = vmul.f32 %v17112_v21, %v30017_v27  ;;  %v17111_v1 = vsel %vm17039_vm15, %v17003_v31, %v17075_v15  ;;  %v17005_v45 = vadd.f32 %v32152_v23, %v16807_v3 }
 0xcc8   : > { %v17147_v10 = vmul.f32 %v17111_v1, %v30023_v34  ;;  %vm17042_vm2 = vcmp.ge.f32.partialorder %v17006_v8, 0.0  ;;  %v17078_v60 = vmul.f32 0.2, %v17006_v8 }
 0xcc9   : > { %vm17041_vm4 = vcmp.ge.f32.partialorder %v17005_v45, 0.0  ;;  %v17077_v49 = vmul.f32 0.2, %v17005_v45  ;;  %17225 = vrot.lane.b32.xlu1 %v17148_v26, %s28982_s26  ;;  %v26765_v55 = vpop.f32.mrb[80].mxu1 }
 0xcca   : > { %v17114_v0 = vsel %vm17042_vm2, %v17006_v8, %v17078_v60  ;;  %v17008_v17 = vadd.f32 %v26765_v55, %v32152_v23  ;;  %17223 = vrot.lane.b32.xlu0 %v17147_v10, %s28982_s26  ;;  %v16817_v53 = vpop.f32.mrb[81].mxu1  ;;  %v17398_v55 = vld [vmem:[%s33103_s10 + $0x10] sm:$0xff] }
 0xccb   : > { %v17150_v27 = vmul.f32 %v17114_v0, %v30027_v37  ;;  %v17113_v13 = vsel %vm17041_vm4, %v17005_v45, %v17077_v49  ;;  %v17007_v16 = vadd.f32 %v32152_v23, %v16817_v53  ;;  %26869 = vmatprep.subr.mxu0 %v17398_v55 }
 0xccc   : > { %v17149_v34 = vmul.f32 %v17113_v13, %v30033_v43  ;;  %vm17044_vm7 = vcmp.ge.f32.partialorder %v17008_v17, 0.0  ;;  %v17080_v22 = vmul.f32 0.2, %v17008_v17  ;;  %26870 = vmatpush3.msra.mxu0 %v17398_v55 }
 0xccd   : > { %vm17043_vm8 = vcmp.ge.f32.partialorder %v17007_v16, 0.0  ;;  %v17079_v25 = vmul.f32 0.2, %v17007_v16  ;;  %17229 = vrot.lane.b32.xlu1 %v17150_v27, %s28982_s26  ;;  %v26768_v35 = vpop.f32.mrb[82].mxu1 }
 0xcce   : > { %v17116_v33 = vsel %vm17044_vm7, %v17008_v17, %v17080_v22  ;;  %v17010_v30 = vadd.f32 %v26768_v35, %v32152_v23  ;;  %17227 = vrot.lane.b32.xlu0 %v17149_v34, %s28982_s26  ;;  %v16827_v36 = vpop.f32.mrb[83].mxu1 }
 0xccf   : > { %v17152_v37 = vmul.f32 %v17116_v33, %v30037_v47  ;;  %v17115_v50 = vsel %vm17043_vm8, %v17007_v16, %v17079_v25  ;;  %v17009_v46 = vadd.f32 %v32152_v23, %v16827_v36 }
 0xcd0   : > { %v17151_v43 = vmul.f32 %v17115_v50, %v30043_v57  ;;  %vm17046_vm9 = vcmp.ge.f32.partialorder %v17010_v30, 0.0  ;;  %v17082_v56 = vmul.f32 0.2, %v17010_v30 }
 0xcd1   : > { %vm17045_vm10 = vcmp.ge.f32.partialorder %v17009_v46, 0.0  ;;  %v17081_v41 = vmul.f32 0.2, %v17009_v46  ;;  %17233 = vrot.lane.b32.xlu1 %v17152_v37, %s28982_s26  ;;  %v26771_v54 = vpop.f32.mrb[84].mxu1 }
 0xcd2   : > { %v17118_v59 = vsel %vm17046_vm9, %v17010_v30, %v17082_v56  ;;  %v17012_v39 = vadd.f32 %v26771_v54, %v32152_v23  ;;  %17231 = vrot.lane.b32.xlu0 %v17151_v43, %s28982_s26  ;;  %v16837_v63 = vpop.f32.mrb[85].mxu1 }
 0xcd3   : > { %v17154_v47 = vmul.f32 %v17118_v59, %v30047_v61  ;;  %v17117_v5 = vsel %vm17045_vm10, %v17009_v46, %v17081_v41  ;;  %v17011_v20 = vadd.f32 %v32152_v23, %v16837_v63 }
 0xcd4   : > { %v17153_v57 = vmul.f32 %v17117_v5, %v30049_v62  ;;  %vm17048_vm6 = vcmp.ge.f32.partialorder %v17012_v39, 0.0  ;;  %v17084_v48 = vmul.f32 0.2, %v17012_v39 }
 0xcd5   : > { %vm17047_vm11 = vcmp.ge.f32.partialorder %v17011_v20, 0.0  ;;  %v17083_v52 = vmul.f32 0.2, %v17011_v20  ;;  %17237 = vrot.lane.b32.xlu1 %v17154_v47, %s28982_s26  ;;  %v26774_v32 = vpop.f32.mrb[86].mxu1 }
 0xcd6   : > { %v17120_v40 = vsel %vm17048_vm6, %v17012_v39, %v17084_v48  ;;  %v17014_v58 = vadd.f32 %v26774_v32, %v32152_v23  ;;  %17235 = vrot.lane.b32.xlu0 %v17153_v57, %s28982_s26  ;;  %v16847_v31 = vpop.f32.mrb[87].mxu1 }
 0xcd7   : > { %v17156_v61 = vmul.f32 %v17120_v40, %v30056_v6  ;;  %v17119_v18 = vsel %vm17047_vm11, %v17011_v20, %v17083_v52  ;;  %v17013_v19 = vadd.f32 %v32152_v23, %v16847_v31 }
 0xcd8   : > { %v17155_v62 = vmul.f32 %v17119_v18, %v30070_v29  ;;  %vm17050_vm3 = vcmp.ge.f32.partialorder %v17014_v58, 0.0  ;;  %v17086_v15 = vmul.f32 0.2, %v17014_v58 }
 0xcd9   : > { %vm17049_vm5 = vcmp.ge.f32.partialorder %v17013_v19, 0.0  ;;  %v17085_v7 = vmul.f32 0.2, %v17013_v19  ;;  %17241 = vrot.lane.b32.xlu1 %v17156_v61, %s28982_s26  ;;  %v26777_v21 = vpop.f32.mrb[88].mxu1 }
 0xcda   : > { %v17122_v8 = vsel %vm17050_vm3, %v17014_v58, %v17086_v15  ;;  %v17016_v3 = vadd.f32 %v26777_v21, %v32152_v23  ;;  %17239 = vrot.lane.b32.xlu0 %v17155_v62, %s28982_s26  ;;  %v16857_v26 = vpop.f32.mrb[89].mxu1 }
 0xcdb   : > { %v17158_v6 = vmul.f32 %v17122_v8, %v30074_v44  ;;  %v17121_v1 = vsel %vm17049_vm5, %v17013_v19, %v17085_v7  ;;  %v17015_v45 = vadd.f32 %v32152_v23, %v16857_v26 }
 0xcdc   : > { %v17157_v29 = vmul.f32 %v17121_v1, %v30082_v4  ;;  %vm17052_vm12 = vcmp.ge.f32.partialorder %v17016_v3, 0.0  ;;  %v17088_v10 = vmul.f32 0.2, %v17016_v3 }
 0xcdd   : > { %vm17051_vm13 = vcmp.ge.f32.partialorder %v17015_v45, 0.0  ;;  %v17087_v60 = vmul.f32 0.2, %v17015_v45  ;;  %17245 = vrot.lane.b32.xlu1 %v17158_v6, %s28982_s26  ;;  %v26780_v49 = vpop.f32.mrb[90].mxu1  ;;  %v33173_v6 = vld [vmem:[#allocation4_spill] sm:$0xff] }
 0xcde   : > { %v17124_v0 = vsel %vm17052_vm12, %v17016_v3, %v17088_v10  ;;  %v17018_v17 = vadd.f32 %v26780_v49, %v32152_v23  ;;  %17243 = vrot.lane.b32.xlu0 %v17157_v29, %s28982_s26  ;;  %v16867_v44 = vpop.f32.mrb[91].mxu1  ;;  %v33174_v29 = vld [vmem:[#allocation5_spill] sm:$0xff] }
 0xcdf   : > { %v17160_v4 = vmul.f32 %v17124_v0, %v30088_v11  ;;  %v17123_v53 = vsel %vm17051_vm13, %v17015_v45, %v17087_v60  ;;  %v17017_v27 = vadd.f32 %v32152_v23, %v16867_v44  ;;  %v33175_v44 = vld [vmem:[#allocation6_spill] sm:$0xff] }
 0xce0   : > { %v17159_v13 = vmul.f32 %v17123_v53, %v30098_v2  ;;  %vm17054_vm14 = vcmp.ge.f32.partialorder %v17018_v17, 0.0  ;;  %v17090_v16 = vmul.f32 0.2, %v17018_v17 }
 0xce1   : > { %vm17053_vm15 = vcmp.ge.f32.partialorder %v17017_v27, 0.0  ;;  %v17089_v34 = vmul.f32 0.2, %v17017_v27  ;;  %17249 = vrot.lane.b32.xlu1 %v17160_v4, %s28982_s26  ;;  %v26783_v22 = vpop.f32.mrb[92].mxu1 }
 0xce2   : > { %v17126_v25 = vsel %vm17054_vm14, %v17018_v17, %v17090_v16  ;;  %v17020_v35 = vadd.f32 %v26783_v22, %v32152_v23  ;;  %17247 = vrot.lane.b32.xlu0 %v17159_v13, %s28982_s26  ;;  %v16877_v33 = vpop.f32.mrb[93].mxu1  ;;  %v33176_v13 = vld [vmem:[#allocation7_spill] sm:$0xff] }
 0xce3   : > { %v17162_v11 = vmul.f32 %v17126_v25, %v30104_v51  ;;  %v17125_v30 = vsel %vm17053_vm15, %v17017_v27, %v17089_v34  ;;  %v17019_v36 = vadd.f32 %v32152_v23, %v16877_v33 }
 0xce4   : > { %v17161_v2 = vmul.f32 %v17125_v30, %v30114_v9  ;;  %vm17056_vm2 = vcmp.ge.f32.partialorder %v17020_v35, 0.0  ;;  %v17092_v37 = vmul.f32 0.2, %v17020_v35  ;;  %v33177_v30 = vld [vmem:[#allocation8_spill] sm:$0xff] }
 0xce5   : > { %vm17055_vm4 = vcmp.ge.f32.partialorder %v17019_v36, 0.0  ;;  %v17091_v50 = vmul.f32 0.2, %v17019_v36  ;;  %17253 = vrot.lane.b32.xlu1 %v17162_v11, %s28982_s26  ;;  %v26786_v46 = vpop.f32.mrb[94].mxu1 }
 0xce6   : > { %v17128_v43 = vsel %vm17056_vm2, %v17020_v35, %v17092_v37  ;;  %v17022_v56 = vadd.f32 %v26786_v46, %v32152_v23  ;;  %17251 = vrot.lane.b32.xlu0 %v17161_v2, %s28982_s26  ;;  %v16887_v41 = vpop.f32.mrb[95].mxu1 }
 0xce7   : > { %v17164_v51 = vmul.f32 %v17128_v43, %v30120_v12  ;;  %v17127_v54 = vsel %vm17055_vm4, %v17019_v36, %v17091_v50  ;;  %v17021_v59 = vadd.f32 %v32152_v23, %v16887_v41  ;;  %v33178_v50 = vld [vmem:[#allocation9_spill] sm:$0xff] }
 0xce8   : > { %v17163_v9 = vmul.f32 %v17127_v54, %v30130_v38  ;;  %vm17058_vm7 = vcmp.ge.f32.partialorder %v17022_v56, 0.0  ;;  %v17094_v39 = vmul.f32 0.2, %v17022_v56 }
 0xce9   : > { %vm17057_vm8 = vcmp.ge.f32.partialorder %v17021_v59, 0.0  ;;  %v17093_v63 = vmul.f32 0.2, %v17021_v59  ;;  %17257 = vrot.lane.b32.xlu1 %v17164_v51, %s28982_s26  ;;  %v26789_v47 = vpop.f32.mrb[96].mxu1 }
 0xcea   : > { %v17130_v5 = vsel %vm17058_vm7, %v17022_v56, %v17094_v39  ;;  %v17024_v20 = vadd.f32 %v26789_v47, %v32152_v23  ;;  %17255 = vrot.lane.b32.xlu0 %v17163_v9, %s28982_s26  ;;  %v16897_v57 = vpop.f32.mrb[97].mxu1  ;;  %v33179_v9 = vld [vmem:[#allocation10_spill] sm:$0xff]  ;;  %vm17323_vm7 = vcmask 195744  }
 0xceb   : > { %v17166_v12 = vmul.f32 %v17130_v5, %v30136_v24  ;;  %v17129_v48 = vsel %vm17057_vm8, %v17021_v59, %v17093_v63  ;;  %v17023_v52 = vadd.f32 %v32152_v23, %v16897_v57  ;;  %v18180_v5 = vld [vmem:[%s33103_s10 + $0x30] sm:$0xff]  ;;  %v33180_v57 = vld [vmem:[#allocation11_spill] sm:$0xff] }
 0xcec   : > { %v17165_v38 = vmul.f32 %v17129_v48, %v30146_v14  ;;  %vm17060_vm9 = vcmp.ge.f32.partialorder %v17024_v20, 0.0  ;;  %v17096_v32 = vmul.f32 0.2, %v17024_v20 }
 0xced   : > { %vm17059_vm10 = vcmp.ge.f32.partialorder %v17023_v52, 0.0  ;;  %v17095_v40 = vmul.f32 0.2, %v17023_v52  ;;  %17261 = vrot.lane.b32.xlu1 %v17166_v12, %s28982_s26  ;;  %v26792_v58 = vpop.f32.mrb[98].mxu1 }
 0xcee   : > { %v17132_v31 = vsel %vm17060_vm9, %v17024_v20, %v17096_v32  ;;  %v17026_v61 = vadd.f32 %v26792_v58, %v32152_v23  ;;  %17259 = vrot.lane.b32.xlu0 %v17165_v38, %s28982_s26  ;;  %v16907_v18 = vpop.f32.mrb[99].mxu1  ;;  %v18181_v20 = vld [vmem:[%s33103_s10 + $0x38] sm:$0xff] }
 0xcef   : > { %v17168_v24 = vmul.f32 %v17132_v31, %v30154_v28  ;;  %v17131_v19 = vsel %vm17059_vm10, %v17023_v52, %v17095_v40  ;;  %v17025_v62 = vadd.f32 %v32152_v23, %v16907_v18  ;;  %v32273_v52 = vpack.c.bf16 %v18181_v20, %v18180_v5  ;;  %v33182_v31 = vld [vmem:[#allocation13_spill] sm:$0xff] }
 0xcf0   : > { %v17167_v14 = vmul.f32 %v17131_v19, %v33152_v42  ;;  %vm17062_vm6 = vcmp.ge.f32.partialorder %v17026_v61, 0.0  ;;  %v17098_v15 = vmul.f32 0.2, %v17026_v61 }
 0xcf1   : > { %vm17061_vm11 = vcmp.ge.f32.partialorder %v17025_v62, 0.0  ;;  %v17097_v7 = vmul.f32 0.2, %v17025_v62  ;;  %17265 = vrot.lane.b32.xlu1 %v17168_v24, %s28982_s26  ;;  %v26795_v21 = vpop.f32.mrb[100].mxu1  ;;  %27480 = vmatprep.subr.bf16.mxu0 %v32273_v52 }
 0xcf2   : > { %v17134_v8 = vsel %vm17062_vm6, %v17026_v61, %v17098_v15  ;;  %v17028_v3 = vadd.f32 %v26795_v21, %v32152_v23  ;;  %17263 = vrot.lane.b32.xlu0 %v17167_v14, %s28982_s26  ;;  %v16917_v26 = vpop.f32.mrb[101].mxu1 }
 0xcf3   : > { %v17170_v28 = vmul.f32 %v17134_v8, %v33173_v6  ;;  %v17133_v1 = vsel %vm17061_vm11, %v17025_v62, %v17097_v7  ;;  %v17027_v45 = vadd.f32 %v32152_v23, %v16917_v26 }
 0xcf4   : > { %v17169_v42 = vmul.f32 %v17133_v1, %v33174_v29  ;;  %vm17064_vm3 = vcmp.ge.f32.partialorder %v17028_v3, 0.0  ;;  %v17100_v10 = vmul.f32 0.2, %v17028_v3 }
 0xcf5   : > { %vm17063_vm5 = vcmp.ge.f32.partialorder %v17027_v45, 0.0  ;;  %v17099_v60 = vmul.f32 0.2, %v17027_v45  ;;  %17269 = vrot.lane.b32.xlu1 %v17170_v28, %s28982_s26  ;;  %v26798_v49 = vpop.f32.mrb[102].mxu1 }
 0xcf6   : > { %v17136_v55 = vsel %vm17064_vm3, %v17028_v3, %v17100_v10  ;;  %v17030_v0 = vadd.f32 %v26798_v49, %v32152_v23  ;;  %17267 = vrot.lane.b32.xlu0 %v17169_v42, %s28982_s26  ;;  %v16927_v17 = vpop.f32.mrb[103].mxu1 }
 0xcf7   : > { %v17172_v4 = vmul.f32 %v17136_v55, %v33175_v44  ;;  %v17135_v53 = vsel %vm17063_vm5, %v17027_v45, %v17099_v60  ;;  %v17029_v27 = vadd.f32 %v32152_v23, %v16927_v17 }
 0xcf8   : > { %v17171_v16 = vmul.f32 %v17135_v53, %v33176_v13  ;;  %vm17066_vm12 = vcmp.ge.f32.partialorder %v17030_v0, 0.0  ;;  %v17102_v34 = vmul.f32 0.2, %v17030_v0 }
 0xcf9   : > { %vm17065_vm13 = vcmp.ge.f32.partialorder %v17029_v27, 0.0  ;;  %v17101_v22 = vmul.f32 0.2, %v17029_v27  ;;  %17273 = vrot.lane.b32.xlu1 %v17172_v4, %s28982_s26  ;;  %v26801_v25 = vpop.f32.mrb[104].mxu1 }
 0xcfa   : > { %v17138_v35 = vsel %vm17066_vm12, %v17030_v0, %v17102_v34  ;;  %v17032_v33 = vadd.f32 %v26801_v25, %v32152_v23  ;;  %17271 = vrot.lane.b32.xlu0 %v17171_v16, %s28982_s26  ;;  %v16937_v11 = vpop.f32.mrb[105].mxu1 }
 0xcfb   : > { %v17174_v36 = vmul.f32 %v17138_v35, %v33177_v30  ;;  %v17137_v2 = vsel %vm17065_vm13, %v17029_v27, %v17101_v22  ;;  %v17031_v37 = vadd.f32 %v32152_v23, %v16937_v11 }
 0xcfc   : > { %v17173_v46 = vmul.f32 %v17137_v2, %v33178_v50  ;;  %vm17068_vm14 = vcmp.ge.f32.partialorder %v17032_v33, 0.0  ;;  %v17104_v43 = vmul.f32 0.2, %v17032_v33 }
 0xcfd   : > { %vm17067_vm15 = vcmp.ge.f32.partialorder %v17031_v37, 0.0  ;;  %v17103_v56 = vmul.f32 0.2, %v17031_v37  ;;  %17277 = vrot.lane.b32.xlu1 %v17174_v36, %s28982_s26  ;;  %v26804_v41 = vpop.f32.mrb[106].mxu1 }
 0xcfe   : > { %v17140_v51 = vsel %vm17068_vm14, %v17032_v33, %v17104_v43  ;;  %v17034_v54 = vadd.f32 %v26804_v41, %v32152_v23  ;;  %17275 = vrot.lane.b32.xlu0 %v17173_v46, %s28982_s26  ;;  %v16947_v59 = vpop.f32.mrb[107].mxu1 }
 0xcff   : > { %v17176_v39 = vmul.f32 %v17140_v51, %v33179_v9  ;;  %v17139_v63 = vsel %vm17067_vm15, %v17031_v37, %v17103_v56  ;;  %v17033_v47 = vadd.f32 %v32152_v23, %v16947_v59  ;;  %v33181_v23 = vld [vmem:[#allocation12_spill] sm:$0xff] }
 0xd00   : > { %v17175_v12 = vmul.f32 %v17139_v63, %v33180_v57  ;;  %vm17070_vm2 = vcmp.ge.f32.partialorder %v17034_v54, 0.0  ;;  %v17106_v48 = vmul.f32 0.2, %v17034_v54 }
 0xd01   : > { %vm17069_vm4 = vcmp.ge.f32.partialorder %v17033_v47, 0.0  ;;  %v17105_v38 = vmul.f32 0.2, %v17033_v47  ;;  %17281 = vrot.lane.b32.xlu1 %v17176_v39, %s28982_s26 }
 0xd02   : > { %v17142_v32 = vsel %vm17070_vm2, %v17034_v54, %v17106_v48  ;;  %17279 = vrot.lane.b32.xlu0 %v17175_v12, %s28982_s26 }
 0xd03   : > { %v17178_v40 = vmul.f32 %v17142_v32, %v33181_v23  ;;  %v17141_v58 = vsel %vm17069_vm4, %v17033_v47, %v17105_v38 }
 0xd04   : > { %v17177_v61 = vmul.f32 %v17141_v58, %v33182_v31 }
 0xd05   : > { %17285 = vrot.lane.b32.xlu1 %v17178_v40, %s28982_s26 }
 0xd06   : > { %17283 = vrot.lane.b32.xlu0 %v17177_v61, %s28982_s26 }
 0xd33   : > { %v17218_v18 = vpop.permute.xlu1 %17217 }
 0xd34   : > { %v17216_v24 = vpop.permute.xlu0 %17215  ;;  %17325 = vst.msk [vmem:[#allocation2 + $0x1b] sm:$0xff] %vm17323_vm7, %v17218_v18 }
 0xd35   : > { %17324 = vst.msk [vmem:[#allocation2 + $0x13] sm:$0xff] %vm17323_vm7, %v17216_v24 }
 0xd37   : > { %v17222_v19 = vpop.permute.xlu1 %17221 }
 0xd38   : > { %v17220_v62 = vpop.permute.xlu0 %17219  ;;  %17327 = vst.msk [vmem:[#allocation2 + $0x2b] sm:$0xff] %vm17323_vm7, %v17222_v19 }
 0xd39   : > { %17326 = vst.msk [vmem:[#allocation2 + $0x23] sm:$0xff] %vm17323_vm7, %v17220_v62 }
 0xd3b   : > { %v17226_v14 = vpop.permute.xlu1 %17225 }
 0xd3c   : > { %v17224_v15 = vpop.permute.xlu0 %17223  ;;  %v17401_v7 = vld [vmem:[#allocation2 + $0x11] sm:$0xff]  ;;  %17329 = vst.msk [vmem:[#allocation2 + $0x3b] sm:$0xff] %vm17323_vm7, %v17226_v14  ;;  %v17402_v21 = vld [vmem:[#allocation2 + $0x19] sm:$0xff] }
 0xd3d   : > { %26814 = vmatprep.mubr.msk.f32.mxu0 %vm414_vm0, %v17401_v7  ;;  %17328 = vst.msk [vmem:[#allocation2 + $0x33] sm:$0xff] %vm17323_vm7, %v17224_v15 }
 0xd3e   : > { %26815 = vmatmul.mubr.msk.f32.gmra.mrb[74].mxu0 %vm414_vm0, %v17402_v21  ;;  %v17360_v21 = vld [vmem:[#allocation2] sm:$0xff] }
 0xd3f   : > { %v17230_v8 = vpop.permute.xlu1 %17229 }
 0xd40   : > { %17331 = vst.msk [vmem:[#allocation2 + $0x4b] sm:$0xff] %vm17323_vm7, %v17230_v8  ;;  %v17228_v3 = vpop.permute.xlu0 %17227  ;;  %v17403_v26 = vld [vmem:[#allocation2 + $0x21] sm:$0xff]  ;;  %v17404_v6 = vld [vmem:[#allocation2 + $0x29] sm:$0xff] }
 0xd41   : > { %17330 = vst.msk [vmem:[#allocation2 + $0x43] sm:$0xff] %vm17323_vm7, %v17228_v3  ;;  %26817 = vmatprep.mubr.msk.f32.mxu0 %vm414_vm0, %v17403_v26  ;;  %v17361_v8 = vld [vmem:[#allocation2 + $0x8] sm:$0xff]  ;;  %v18182_v3 = vld [vmem:[%s33103_s10 + $0x40] sm:$0xff] }
 0xd42   : > { %26818 = vmatmul.mubr.msk.f32.gmra.mrb[76].mxu0 %vm414_vm0, %v17404_v6  ;;  %v18608_v26 = vld [vmem:[%s33103_s10 + $0x48] sm:$0xff]  ;;  %v18609_v6 = vld [vmem:[%s33103_s10 + $0x50] sm:$0xff] }
 0xd43   : > { %v17234_v28 = vpop.permute.xlu1 %17233 }
 0xd44   : > { %17333 = vst.msk [vmem:[#allocation2 + $0x5b] sm:$0xff] %vm17323_vm7, %v17234_v28  ;;  %v17232_v1 = vpop.permute.xlu0 %17231  ;;  %v17405_v45 = vld [vmem:[#allocation2 + $0x31] sm:$0xff]  ;;  %v17406_v29 = vld [vmem:[#allocation2 + $0x39] sm:$0xff] }
 0xd45   : > { %17332 = vst.msk [vmem:[#allocation2 + $0x53] sm:$0xff] %vm17323_vm7, %v17232_v1  ;;  %26820 = vmatprep.mubr.msk.f32.mxu0 %vm414_vm0, %v17405_v45  ;;  %v17362_v28 = vld [vmem:[#allocation2 + $0x10] sm:$0xff]  ;;  %v32365_v1 = vpack.c.bf16 %v18609_v6, %v18608_v26  ;;  %v17363_v45 = vld [vmem:[#allocation2 + $0x18] sm:$0xff] }
 0xd46   : > { %26821 = vmatmul.mubr.msk.f32.gmra.mrb[78].mxu0 %vm414_vm0, %v17406_v29  ;;  %v17364_v29 = vld [vmem:[#allocation2 + $0x20] sm:$0xff] }
 0xd47   : > { %v17238_v42 = vpop.permute.xlu1 %17237 }
 0xd48   : > { %17335 = vst.msk [vmem:[#allocation2 + $0x6b] sm:$0xff] %vm17323_vm7, %v17238_v42  ;;  %v17236_v10 = vpop.permute.xlu0 %17235  ;;  %v17407_v60 = vld [vmem:[#allocation2 + $0x41] sm:$0xff]  ;;  %v17408_v49 = vld [vmem:[#allocation2 + $0x49] sm:$0xff] }
 0xd49   : > { %17334 = vst.msk [vmem:[#allocation2 + $0x63] sm:$0xff] %vm17323_vm7, %v17236_v10  ;;  %26823 = vmatprep.mubr.msk.f32.mxu0 %vm414_vm0, %v17407_v60  ;;  %v17365_v42 = vld [vmem:[#allocation2 + $0x28] sm:$0xff]  ;;  %v17366_v10 = vld [vmem:[#allocation2 + $0x30] sm:$0xff]  ;;  %v17368_v60 = vld [vmem:[#allocation2 + $0x40] sm:$0xff] }
 0xd4a   : > { %26824 = vmatmul.mubr.msk.f32.gmra.mrb[80].mxu0 %vm414_vm0, %v17408_v49  ;;  %v17369_v49 = vld [vmem:[#allocation2 + $0x48] sm:$0xff] }
 0xd4b   : > { %v17242_v55 = vpop.permute.xlu1 %17241 }
 0xd4c   : > { %17337 = vst.msk [vmem:[#allocation2 + $0x7b] sm:$0xff] %vm17323_vm7, %v17242_v55  ;;  %v17240_v0 = vpop.permute.xlu0 %17239  ;;  %v17409_v17 = vld [vmem:[#allocation2 + $0x51] sm:$0xff]  ;;  %v17410_v44 = vld [vmem:[#allocation2 + $0x59] sm:$0xff] }
 0xd4d   : > { %17336 = vst.msk [vmem:[#allocation2 + $0x73] sm:$0xff] %vm17323_vm7, %v17240_v0  ;;  %26826 = vmatprep.mubr.msk.f32.mxu0 %vm414_vm0, %v17409_v17  ;;  %v17370_v55 = vld [vmem:[#allocation2 + $0x50] sm:$0xff]  ;;  %v17371_v0 = vld [vmem:[#allocation2 + $0x58] sm:$0xff] }
 0xd4e   : > { %26827 = vmatmul.mubr.msk.f32.gmra.mrb[82].mxu0 %vm414_vm0, %v17410_v44 }
 0xd4f   : > { %v17246_v4 = vpop.permute.xlu1 %17245 }
 0xd50   : > { %17339 = vst.msk [vmem:[#allocation2 + $0x8b] sm:$0xff] %vm17323_vm7, %v17246_v4  ;;  %v17244_v53 = vpop.permute.xlu0 %17243  ;;  %v17411_v27 = vld [vmem:[#allocation2 + $0x61] sm:$0xff]  ;;  %v17412_v13 = vld [vmem:[#allocation2 + $0x69] sm:$0xff] }
 0xd51   : > { %17338 = vst.msk [vmem:[#allocation2 + $0x83] sm:$0xff] %vm17323_vm7, %v17244_v53  ;;  %26829 = vmatprep.mubr.msk.f32.mxu0 %vm414_vm0, %v17411_v27  ;;  %v17372_v17 = vld [vmem:[#allocation2 + $0x60] sm:$0xff]  ;;  %v17373_v44 = vld [vmem:[#allocation2 + $0x68] sm:$0xff] }
 0xd52   : > { %26830 = vmatmul.mubr.msk.f32.gmra.mrb[84].mxu0 %vm414_vm0, %v17412_v13 }
 0xd53   : > { %v17250_v16 = vpop.permute.xlu1 %17249 }
 0xd54   : > { %17341 = vst.msk [vmem:[#allocation2 + $0x9b] sm:$0xff] %vm17323_vm7, %v17250_v16  ;;  %v17248_v34 = vpop.permute.xlu0 %17247  ;;  %v17413_v22 = vld [vmem:[#allocation2 + $0x71] sm:$0xff]  ;;  %v17414_v25 = vld [vmem:[#allocation2 + $0x79] sm:$0xff] }
 0xd55   : > { %17340 = vst.msk [vmem:[#allocation2 + $0x93] sm:$0xff] %vm17323_vm7, %v17248_v34  ;;  %26832 = vmatprep.mubr.msk.f32.mxu0 %vm414_vm0, %v17413_v22  ;;  %v17374_v4 = vld [vmem:[#allocation2 + $0x70] sm:$0xff]  ;;  %v17375_v53 = vld [vmem:[#allocation2 + $0x78] sm:$0xff] }
 0xd56   : > { %26833 = vmatmul.mubr.msk.f32.gmra.mrb[86].mxu0 %vm414_vm0, %v17414_v25 }
 0xd57   : > { %v17254_v35 = vpop.permute.xlu1 %17253 }
 0xd58   : > { %17343 = vst.msk [vmem:[#allocation2 + $0xab] sm:$0xff] %vm17323_vm7, %v17254_v35  ;;  %v17252_v33 = vpop.permute.xlu0 %17251  ;;  %v17415_v11 = vld [vmem:[#allocation2 + $0x81] sm:$0xff]  ;;  %v17416_v30 = vld [vmem:[#allocation2 + $0x89] sm:$0xff] }
 0xd59   : > { %17342 = vst.msk [vmem:[#allocation2 + $0xa3] sm:$0xff] %vm17323_vm7, %v17252_v33  ;;  %26835 = vmatprep.mubr.msk.f32.mxu0 %vm414_vm0, %v17415_v11  ;;  %v17376_v27 = vld [vmem:[#allocation2 + $0x80] sm:$0xff]  ;;  %v17377_v13 = vld [vmem:[#allocation2 + $0x88] sm:$0xff] }
 0xd5a   : > { %26836 = vmatmul.mubr.msk.f32.gmra.mrb[88].mxu0 %vm414_vm0, %v17416_v30 }
 0xd5b   : > { %v17258_v36 = vpop.permute.xlu1 %17257 }
 0xd5c   : > { %17345 = vst.msk [vmem:[#allocation2 + $0xbb] sm:$0xff] %vm17323_vm7, %v17258_v36  ;;  %v17256_v2 = vpop.permute.xlu0 %17255  ;;  %v17417_v37 = vld [vmem:[#allocation2 + $0x91] sm:$0xff]  ;;  %v17418_v50 = vld [vmem:[#allocation2 + $0x99] sm:$0xff] }
 0xd5d   : > { %17344 = vst.msk [vmem:[#allocation2 + $0xb3] sm:$0xff] %vm17323_vm7, %v17256_v2  ;;  %26838 = vmatprep.mubr.msk.f32.mxu0 %vm414_vm0, %v17417_v37  ;;  %v17378_v16 = vld [vmem:[#allocation2 + $0x90] sm:$0xff]  ;;  %v17379_v34 = vld [vmem:[#allocation2 + $0x98] sm:$0xff] }
 0xd5e   : > { %26839 = vmatmul.mubr.msk.f32.gmra.mrb[90].mxu0 %vm414_vm0, %v17418_v50 }
 0xd5f   : > { %v17262_v46 = vpop.permute.xlu1 %17261 }
 0xd60   : > { %17347 = vst.msk [vmem:[#allocation2 + $0xcb] sm:$0xff] %vm17323_vm7, %v17262_v46  ;;  %v17260_v43 = vpop.permute.xlu0 %17259  ;;  %v17419_v56 = vld [vmem:[#allocation2 + $0xa1] sm:$0xff]  ;;  %v17420_v41 = vld [vmem:[#allocation2 + $0xa9] sm:$0xff] }
 0xd61   : > { %17346 = vst.msk [vmem:[#allocation2 + $0xc3] sm:$0xff] %vm17323_vm7, %v17260_v43  ;;  %26841 = vmatprep.mubr.msk.f32.mxu0 %vm414_vm0, %v17419_v56  ;;  %v17380_v22 = vld [vmem:[#allocation2 + $0xa0] sm:$0xff]  ;;  %v17381_v25 = vld [vmem:[#allocation2 + $0xa8] sm:$0xff] }
 0xd62   : > { %26842 = vmatmul.mubr.msk.f32.gmra.mrb[92].mxu0 %vm414_vm0, %v17420_v41 }
 0xd63   : > { %v17266_v51 = vpop.permute.xlu1 %17265 }
 0xd64   : > { %17349 = vst.msk [vmem:[#allocation2 + $0xdb] sm:$0xff] %vm17323_vm7, %v17266_v51  ;;  %v17264_v54 = vpop.permute.xlu0 %17263  ;;  %v17421_v59 = vld [vmem:[#allocation2 + $0xb1] sm:$0xff]  ;;  %v17422_v9 = vld [vmem:[#allocation2 + $0xb9] sm:$0xff] }
 0xd65   : > { %17348 = vst.msk [vmem:[#allocation2 + $0xd3] sm:$0xff] %vm17323_vm7, %v17264_v54  ;;  %26844 = vmatprep.mubr.msk.f32.mxu0 %vm414_vm0, %v17421_v59  ;;  %v17382_v35 = vld [vmem:[#allocation2 + $0xb0] sm:$0xff]  ;;  %v17383_v33 = vld [vmem:[#allocation2 + $0xb8] sm:$0xff]  ;;  %v18144_v54 = vld [vmem:[#allocation2 + $0x2] sm:$0xff] }
 0xd66   : > { %26845 = vmatmul.mubr.msk.f32.gmra.mrb[94].mxu0 %vm414_vm0, %v17422_v9  ;;  %v18145_v9 = vld [vmem:[#allocation2 + $0xa] sm:$0xff]  ;;  %v18167_v26 = vld [vmem:[#allocation2 + $0xba] sm:$0xff] }
 0xd67   : > { %v17270_v39 = vpop.permute.xlu1 %17269 }
 0xd68   : > { %17351 = vst.msk [vmem:[#allocation2 + $0xeb] sm:$0xff] %vm17323_vm7, %v17270_v39  ;;  %v17268_v63 = vpop.permute.xlu0 %17267  ;;  %v17423_v47 = vld [vmem:[#allocation2 + $0xc1] sm:$0xff]  ;;  %v17424_v5 = vld [vmem:[#allocation2 + $0xc9] sm:$0xff]  ;;  %v18610_v39 = vld [vmem:[%s33103_s10 + $0x58] sm:$0xff] }
 0xd69   : > { %17350 = vst.msk [vmem:[#allocation2 + $0xe3] sm:$0xff] %vm17323_vm7, %v17268_v63  ;;  %26847 = vmatprep.mubr.msk.f32.mxu0 %vm414_vm0, %v17423_v47  ;;  %v17384_v11 = vld [vmem:[#allocation2 + $0xc0] sm:$0xff]  ;;  %v17385_v30 = vld [vmem:[#allocation2 + $0xc8] sm:$0xff] }
 0xd6a   : > { %26848 = vmatmul.mubr.msk.f32.gmra.mrb[96].mxu0 %vm414_vm0, %v17424_v5  ;;  %v19036_v63 = vld [vmem:[%s33103_s10 + $0x60] sm:$0xff]  ;;  %v19037_v47 = vld [vmem:[%s33103_s10 + $0x68] sm:$0xff]  ;;  %v32412_v5 = vld [vmem:[#allocation2 + $0x12] sm:$0xff] }
 0xd6b   : > { %v17274_v20 = vpop.permute.xlu1 %17273  ;;  %v18168_v6 = vld [vmem:[#allocation2 + $0xc2] sm:$0xff] }
 0xd6c   : > { %17353 = vst.msk [vmem:[#allocation2 + $0xfb] sm:$0xff] %vm17323_vm7, %v17274_v20  ;;  %v17272_v57 = vpop.permute.xlu0 %17271  ;;  %v17425_v12 = vld [vmem:[#allocation2 + $0xd1] sm:$0xff]  ;;  %v17426_v48 = vld [vmem:[#allocation2 + $0xd9] sm:$0xff]  ;;  %v32417_v20 = vpack.c.bf16 %v19037_v47, %v19036_v63  ;;  %v32636_v47 = vld [vmem:[#allocation2 + $0xa3] sm:$0xff] }
 0xd6d   : > { %17352 = vst.msk [vmem:[#allocation2 + $0xf3] sm:$0xff] %vm17323_vm7, %v17272_v57  ;;  %26850 = vmatprep.mubr.msk.f32.mxu0 %vm414_vm0, %v17425_v12  ;;  %v17386_v36 = vld [vmem:[#allocation2 + $0xd0] sm:$0xff]  ;;  %v17387_v2 = vld [vmem:[#allocation2 + $0xd8] sm:$0xff]  ;;  %v32423_v12 = vld [vmem:[#allocation2 + $0x22] sm:$0xff] }
 0xd6e   : > { %26851 = vmatmul.mubr.msk.f32.gmra.mrb[98].mxu0 %vm414_vm0, %v17426_v48  ;;  %v32419_v57 = vld [vmem:[#allocation2 + $0x1a] sm:$0xff]  ;;  %v32428_v48 = vld [vmem:[#allocation2 + $0x2a] sm:$0xff] }
 0xd6f   : > { %v17278_v38 = vpop.permute.xlu1 %17277  ;;  %v32632_v63 = vld [vmem:[#allocation2 + $0x9b] sm:$0xff] }
 0xd70   : > { %17355 = vst.msk [vmem:[#allocation2 + $0x10b] sm:$0xff] %vm17323_vm7, %v17278_v38  ;;  %v17276_v32 = vpop.permute.xlu0 %17275  ;;  %v17427_v23 = vld [vmem:[#allocation2 + $0xe1] sm:$0xff]  ;;  %v17428_v40 = vld [vmem:[#allocation2 + $0xe9] sm:$0xff]  ;;  %v32432_v38 = vld [vmem:[#allocation2 + $0x32] sm:$0xff] }
 0xd71   : > { %17354 = vst.msk [vmem:[#allocation2 + $0x103] sm:$0xff] %vm17323_vm7, %v17276_v32  ;;  %26853 = vmatprep.mubr.msk.f32.mxu0 %vm414_vm0, %v17427_v23  ;;  %v17388_v37 = vld [vmem:[#allocation2 + $0xe0] sm:$0xff]  ;;  %v17389_v50 = vld [vmem:[#allocation2 + $0xe8] sm:$0xff] }
 0xd72   : > { %26854 = vmatmul.mubr.msk.f32.gmra.mrb[100].mxu0 %vm414_vm0, %v17428_v40  ;;  %v32436_v32 = vld [vmem:[#allocation2 + $0x3a] sm:$0xff]  ;;  %v32440_v23 = vld [vmem:[#allocation2 + $0x42] sm:$0xff]  ;;  %v32444_v40 = vld [vmem:[#allocation2 + $0x4a] sm:$0xff] }
 0xd73   : > { %v17282_v58 = vpop.permute.xlu1 %17281 }
 0xd74   : > { %17357 = vst.msk [vmem:[#allocation2 + $0x11b] sm:$0xff] %vm17323_vm7, %v17282_v58  ;;  %v17280_v31 = vpop.permute.xlu0 %17279  ;;  %v17429_v61 = vld [vmem:[#allocation2 + $0xf1] sm:$0xff]  ;;  %v17430_v18 = vld [vmem:[#allocation2 + $0xf9] sm:$0xff] }
 0xd75   : > { %17356 = vst.msk [vmem:[#allocation2 + $0x113] sm:$0xff] %vm17323_vm7, %v17280_v31  ;;  %26856 = vmatprep.mubr.msk.f32.mxu0 %vm414_vm0, %v17429_v61  ;;  %v17390_v46 = vld [vmem:[#allocation2 + $0xf0] sm:$0xff]  ;;  %v17391_v43 = vld [vmem:[#allocation2 + $0xf8] sm:$0xff]  ;;  %v32456_v61 = vld [vmem:[#allocation2 + $0x62] sm:$0xff] }
 0xd76   : > { %26857 = vmatmul.mubr.msk.f32.gmra.mrb[102].mxu0 %vm414_vm0, %v17430_v18  ;;  %v32448_v58 = vld [vmem:[#allocation2 + $0x52] sm:$0xff]  ;;  %v32452_v31 = vld [vmem:[#allocation2 + $0x5a] sm:$0xff]  ;;  %v32460_v18 = vld [vmem:[#allocation2 + $0x6a] sm:$0xff] }
 0xd77   : > { %v17286_v24 = vpop.permute.xlu1 %17285 }
 0xd78   : > { %17359 = vst.msk [vmem:[#allocation2 + $0x12b] sm:$0xff] %vm17323_vm7, %v17286_v24  ;;  %v17284_v19 = vpop.permute.xlu0 %17283  ;;  %v17431_v62 = vld [vmem:[#allocation2 + $0x101] sm:$0xff]  ;;  %v17432_v14 = vld [vmem:[#allocation2 + $0x109] sm:$0xff]  ;;  %v32464_v24 = vld [vmem:[#allocation2 + $0x72] sm:$0xff] }
 0xd79   : > { %17358 = vst.msk [vmem:[#allocation2 + $0x123] sm:$0xff] %vm17323_vm7, %v17284_v19  ;;  %26859 = vmatprep.mubr.msk.f32.mxu0 %vm414_vm0, %v17431_v62  ;;  %v17392_v56 = vld [vmem:[#allocation2 + $0x100] sm:$0xff]  ;;  %v17393_v41 = vld [vmem:[#allocation2 + $0x108] sm:$0xff] }
 0xd7a   : > { %26860 = vmatmul.mubr.msk.f32.gmra.mrb[104].mxu0 %vm414_vm0, %v17432_v14  ;;  %v32468_v19 = vld [vmem:[#allocation2 + $0x7a] sm:$0xff]  ;;  %v18160_v62 = vld [vmem:[#allocation2 + $0x82] sm:$0xff]  ;;  %v18161_v14 = vld [vmem:[#allocation2 + $0x8a] sm:$0xff] }
 0xd7c   : > { %v17433_v15 = vld [vmem:[#allocation2 + $0x111] sm:$0xff]  ;;  %v17434_v7 = vld [vmem:[#allocation2 + $0x119] sm:$0xff] }
 0xd7d   : > { %26862 = vmatprep.mubr.msk.f32.mxu0 %vm414_vm0, %v17433_v15  ;;  %v17394_v51 = vld [vmem:[#allocation2 + $0x110] sm:$0xff]  ;;  %v17395_v59 = vld [vmem:[#allocation2 + $0x118] sm:$0xff] }
 0xd7e   : > { %26863 = vmatmul.mubr.msk.f32.gmra.mrb[106].mxu0 %vm414_vm0, %v17434_v7  ;;  %v18162_v15 = vld [vmem:[#allocation2 + $0x92] sm:$0xff]  ;;  %v18163_v7 = vld [vmem:[#allocation2 + $0x9a] sm:$0xff] }
 0xd7f   : > { %26871 = vmatprep.mubr.msk.f32.mxu0 %vm414_vm0, %v17360_v21  ;;  %v18164_v21 = vld [vmem:[#allocation2 + $0xa2] sm:$0xff] }
 0xd82   : > { %26872 = vmatmul.mubr.msk.f32.vlgmr.msra.gmra.mrb[72].mxu0 %vm414_vm0, %v17361_v8  ;;  %v18165_v8 = vld [vmem:[#allocation2 + $0xaa] sm:$0xff] }
 0xd83   : > { %27482 = vmatpush3.bf16.msra.mxu0 %v32273_v52  ;;  %26874 = vmatprep.mubr.msk.f32.mxu0 %vm414_vm0, %v17362_v28  ;;  %v17367_v52 = vld [vmem:[#allocation2 + $0x38] sm:$0xff]  ;;  %v18169_v28 = vld [vmem:[#allocation2 + $0xca] sm:$0xff] }
 0xd84   : > { %26929 = vmatprep.subr.mxu0 %v18182_v3 }
 0xd86   : > { %26875 = vmatmul.mubr.msk.f32.gmra.mrb[74].mxu0 %vm414_vm0, %v17363_v45  ;;  %v18171_v45 = vld [vmem:[#allocation2 + $0xda] sm:$0xff] }
 0xd87   : > { %26877 = vmatprep.mubr.msk.f32.mxu0 %vm414_vm0, %v17364_v29  ;;  %26930 = vmatpush3.msra.mxu0 %v18182_v3  ;;  %v18166_v3 = vld [vmem:[#allocation2 + $0xb2] sm:$0xff]  ;;  %v18172_v29 = vld [vmem:[#allocation2 + $0xe2] sm:$0xff] }
 0xd88   : > { %27484 = vmatprep.subr.bf16.mxu0 %v32365_v1 }
 0xd8a   : > { %26878 = vmatmul.mubr.msk.f32.gmra.mrb[76].mxu0 %vm414_vm0, %v17365_v42  ;;  %v18173_v42 = vld [vmem:[#allocation2 + $0xea] sm:$0xff] }
 0xd8b   : > { %26880 = vmatprep.mubr.msk.f32.mxu0 %vm414_vm0, %v17366_v10  ;;  %v18174_v10 = vld [vmem:[#allocation2 + $0xf2] sm:$0xff] }
 0xd8e   : > { %26881 = vmatmul.mubr.msk.f32.gmra.mrb[78].mxu0 %vm414_vm0, %v17367_v52  ;;  %v18175_v52 = vld [vmem:[#allocation2 + $0xfa] sm:$0xff] }
 0xd8f   : > { %26883 = vmatprep.mubr.msk.f32.mxu0 %vm414_vm0, %v17368_v60  ;;  %v18176_v60 = vld [vmem:[#allocation2 + $0x102] sm:$0xff] }
 0xd92   : > { %26884 = vmatmul.mubr.msk.f32.gmra.mrb[80].mxu0 %vm414_vm0, %v17369_v49  ;;  %v18177_v49 = vld [vmem:[#allocation2 + $0x10a] sm:$0xff] }
 0xd93   : > { %26886 = vmatprep.mubr.msk.f32.mxu0 %vm414_vm0, %v17370_v55  ;;  %v18178_v55 = vld [vmem:[#allocation2 + $0x112] sm:$0xff] }
 0xd96   : > { %26887 = vmatmul.mubr.msk.f32.gmra.mrb[82].mxu0 %vm414_vm0, %v17371_v0  ;;  %v18179_v0 = vld [vmem:[#allocation2 + $0x11a] sm:$0xff] }
 0xd97   : > { %26889 = vmatprep.mubr.msk.f32.mxu0 %vm414_vm0, %v17372_v17  ;;  %v19038_v17 = vld [vmem:[%s33103_s10 + $0x70] sm:$0xff] }
 0xd9a   : > { %26890 = vmatmul.mubr.msk.f32.gmra.mrb[84].mxu0 %vm414_vm0, %v17373_v44  ;;  %v19464_v44 = vld [vmem:[%s33103_s10 + $0x78] sm:$0xff] }
 0xd9b   : > { %26892 = vmatprep.mubr.msk.f32.mxu0 %vm414_vm0, %v17374_v4  ;;  %v19465_v4 = vld [vmem:[%s33103_s10 + $0x80] sm:$0xff] }
 0xd9e   : > { %26893 = vmatmul.mubr.msk.f32.gmra.mrb[86].mxu0 %vm414_vm0, %v17375_v53  ;;  %v27491_v53 = vpack.c.bf16 %v19465_v4, %v19464_v44  ;;  %v32775_v44 = vld [vmem:[#allocation2 + $0x8c] sm:$0xff]  ;;  %v19444_v4 = vld [vmem:[#allocation2 + $0x94] sm:$0xff] }
 0xd9f   : > { %26895 = vmatprep.mubr.msk.f32.mxu0 %vm414_vm0, %v17376_v27  ;;  %v18606_v27 = vld [vmem:[#allocation2 + $0x122] sm:$0xff] }
 0xda2   : > { %26896 = vmatmul.mubr.msk.f32.gmra.mrb[88].mxu0 %vm414_vm0, %v17377_v13  ;;  %v18607_v13 = vld [vmem:[#allocation2 + $0x12a] sm:$0xff] }
 0xda3   : > { %26898 = vmatprep.mubr.msk.f32.mxu0 %vm414_vm0, %v17378_v16  ;;  %v32552_v16 = vld [vmem:[#allocation2 + $0x13] sm:$0xff] }
 0xda6   : > { %26899 = vmatmul.mubr.msk.f32.gmra.mrb[90].mxu0 %vm414_vm0, %v17379_v34  ;;  %v32556_v34 = vld [vmem:[#allocation2 + $0x1b] sm:$0xff] }
 0xda7   : > { %26901 = vmatprep.mubr.msk.f32.mxu0 %vm414_vm0, %v17380_v22  ;;  %v19466_v22 = vld [vmem:[%s33103_s10 + $0x88] sm:$0xff] }
 0xdaa   : > { %26902 = vmatmul.mubr.msk.f32.gmra.mrb[92].mxu0 %vm414_vm0, %v17381_v25  ;;  %v19892_v25 = vld [vmem:[%s33103_s10 + $0x90] sm:$0xff] }
 0xdab   : > { %26904 = vmatprep.mubr.msk.f32.mxu0 %vm414_vm0, %v17382_v35  ;;  %v19893_v35 = vld [vmem:[%s33103_s10 + $0x98] sm:$0xff] }
 0xdae   : > { %26905 = vmatmul.mubr.msk.f32.gmra.mrb[94].mxu0 %vm414_vm0, %v17383_v33  ;;  %v32569_v33 = vld [vmem:[#allocation2 + $0x23] sm:$0xff] }
 0xdaf   : > { %26907 = vmatprep.mubr.msk.f32.mxu0 %vm414_vm0, %v17384_v11  ;;  %v32573_v11 = vpack.c.bf16 %v19893_v35, %v19892_v25  ;;  %v19449_v25 = vld [vmem:[#allocation2 + $0xbc] sm:$0xff]  ;;  %v19450_v35 = vld [vmem:[#allocation2 + $0xc4] sm:$0xff] }
 0xdb2   : > { %26908 = vmatmul.mubr.msk.f32.gmra.mrb[96].mxu0 %vm414_vm0, %v17385_v30  ;;  %v32575_v30 = vld [vmem:[#allocation2 + $0x2b] sm:$0xff] }
 0xdb3   : > { %26910 = vmatprep.mubr.msk.f32.mxu0 %vm414_vm0, %v17386_v36  ;;  %v32579_v36 = vld [vmem:[#allocation2 + $0x33] sm:$0xff] }
 0xdb6   : > { %26911 = vmatmul.mubr.msk.f32.gmra.mrb[98].mxu0 %vm414_vm0, %v17387_v2  ;;  %v32584_v2 = vld [vmem:[#allocation2 + $0x3b] sm:$0xff] }
 0xdb7   : > { %26913 = vmatprep.mubr.msk.f32.mxu0 %vm414_vm0, %v17388_v37  ;;  %v32588_v37 = vld [vmem:[#allocation2 + $0x43] sm:$0xff] }
 0xdba   : > { %26914 = vmatmul.mubr.msk.f32.gmra.mrb[100].mxu0 %vm414_vm0, %v17389_v50  ;;  %v32592_v50 = vld [vmem:[#allocation2 + $0x4b] sm:$0xff] }
 0xdbb   : > { %26916 = vmatprep.mubr.msk.f32.mxu0 %vm414_vm0, %v17390_v46  ;;  %v32596_v46 = vld [vmem:[#allocation2 + $0x53] sm:$0xff] }
 0xdbe   : > { %26917 = vmatmul.mubr.msk.f32.gmra.mrb[102].mxu0 %vm414_vm0, %v17391_v43  ;;  %v32600_v43 = vld [vmem:[#allocation2 + $0x5b] sm:$0xff] }
 0xdbf   : > { %26919 = vmatprep.mubr.msk.f32.mxu0 %vm414_vm0, %v17392_v56  ;;  %v32604_v56 = vld [vmem:[#allocation2 + $0x63] sm:$0xff] }
 0xdc2   : > { %26920 = vmatmul.mubr.msk.f32.gmra.mrb[104].mxu0 %vm414_vm0, %v17393_v41  ;;  %v32608_v41 = vld [vmem:[#allocation2 + $0x6b] sm:$0xff] }
 0xdc3   : > { %26922 = vmatprep.mubr.msk.f32.mxu0 %vm414_vm0, %v17394_v51  ;;  %v32612_v51 = vld [vmem:[#allocation2 + $0x73] sm:$0xff] }
 0xdc6   : > { %26923 = vmatmul.mubr.msk.f32.gmra.mrb[106].mxu0 %vm414_vm0, %v17395_v59  ;;  %v32620_v59 = vld [vmem:[#allocation2 + $0x83] sm:$0xff] }
 0xdc7   : > { %26931 = vmatprep.mubr.msk.f32.mxu0 %vm414_vm0, %v18144_v54  ;;  %v32616_v54 = vld [vmem:[#allocation2 + $0x7b] sm:$0xff] }
 0xdca   : > { %26932 = vmatmul.mubr.msk.f32.vlgmr.msra.gmra.mrb[72].mxu0 %vm414_vm0, %v18145_v9  ;;  %v32624_v9 = vld [vmem:[#allocation2 + $0x8b] sm:$0xff] }
 0xdcb   : > { %27486 = vmatpush3.bf16.msra.mxu0 %v32365_v1  ;;  %26934 = vmatprep.mubr.msk.f32.mxu0 %vm414_vm0, %v32412_v5  ;;  %v18170_v1 = vld [vmem:[#allocation2 + $0xd2] sm:$0xff] }
 0xdcc   : > { %26989 = vmatprep.subr.mxu0 %v18610_v39 }
 0xdce   : > { %26935 = vmatmul.mubr.msk.f32.gmra.mrb[74].mxu0 %vm414_vm0, %v32419_v57 }
 0xdcf   : > { %26937 = vmatprep.mubr.msk.f32.mxu0 %vm414_vm0, %v32423_v12  ;;  %26990 = vmatpush3.msra.mxu0 %v18610_v39  ;;  %v32628_v39 = vld [vmem:[#allocation2 + $0x93] sm:$0xff] }
 0xdd0   : > { %27488 = vmatprep.subr.bf16.mxu0 %v32417_v20 }
 0xdd2   : > { %26938 = vmatmul.mubr.msk.f32.gmra.mrb[76].mxu0 %vm414_vm0, %v32428_v48 }
 0xdd3   : > { %26940 = vmatprep.mubr.msk.f32.mxu0 %vm414_vm0, %v32432_v38 }
 0xdd6   : > { %26941 = vmatmul.mubr.msk.f32.gmra.mrb[78].mxu0 %vm414_vm0, %v32436_v32 }
 0xdd7   : > { %26943 = vmatprep.mubr.msk.f32.mxu0 %vm414_vm0, %v32440_v23 }
 0xdda   : > { %26944 = vmatmul.mubr.msk.f32.gmra.mrb[80].mxu0 %vm414_vm0, %v32444_v40 }
 0xddb   : > { %26946 = vmatprep.mubr.msk.f32.mxu0 %vm414_vm0, %v32448_v58 }
 0xdde   : > { %26947 = vmatmul.mubr.msk.f32.gmra.mrb[82].mxu0 %vm414_vm0, %v32452_v31 }
 0xddf   : > { %26949 = vmatprep.mubr.msk.f32.mxu0 %vm414_vm0, %v32456_v61 }
 0xde2   : > { %26950 = vmatmul.mubr.msk.f32.gmra.mrb[84].mxu0 %vm414_vm0, %v32460_v18 }
 0xde3   : > { %26952 = vmatprep.mubr.msk.f32.mxu0 %vm414_vm0, %v32464_v24 }
 0xde6   : > { %26953 = vmatmul.mubr.msk.f32.gmra.mrb[86].mxu0 %vm414_vm0, %v32468_v19 }
 0xde7   : > { %26955 = vmatprep.mubr.msk.f32.mxu0 %vm414_vm0, %v18160_v62 }
 0xdea   : > { %26956 = vmatmul.mubr.msk.f32.gmra.mrb[88].mxu0 %vm414_vm0, %v18161_v14 }
 0xdeb   : > { %26958 = vmatprep.mubr.msk.f32.mxu0 %vm414_vm0, %v18162_v15 }
 0xdee   : > { %26959 = vmatmul.mubr.msk.f32.gmra.mrb[90].mxu0 %vm414_vm0, %v18163_v7 }
 0xdef   : > { %26961 = vmatprep.mubr.msk.f32.mxu0 %vm414_vm0, %v18164_v21 }
 0xdf2   : > { %26962 = vmatmul.mubr.msk.f32.gmra.mrb[92].mxu0 %vm414_vm0, %v18165_v8 }
 0xdf3   : > { %26964 = vmatprep.mubr.msk.f32.mxu0 %vm414_vm0, %v18166_v3 }
 0xdf6   : > { %26965 = vmatmul.mubr.msk.f32.gmra.mrb[94].mxu0 %vm414_vm0, %v18167_v26 }
 0xdf7   : > { %26967 = vmatprep.mubr.msk.f32.mxu0 %vm414_vm0, %v18168_v6 }
 0xdfa   : > { %26968 = vmatmul.mubr.msk.f32.gmra.mrb[96].mxu0 %vm414_vm0, %v18169_v28 }
 0xdfb   : > { %26970 = vmatprep.mubr.msk.f32.mxu0 %vm414_vm0, %v18170_v1 }
 0xdfe   : > { %26971 = vmatmul.mubr.msk.f32.gmra.mrb[98].mxu0 %vm414_vm0, %v18171_v45 }
 0xdff   : > { %26973 = vmatprep.mubr.msk.f32.mxu0 %vm414_vm0, %v18172_v29 }
 0xe02   : > { %26974 = vmatmul.mubr.msk.f32.gmra.mrb[100].mxu0 %vm414_vm0, %v18173_v42 }
 0xe03   : > { %26976 = vmatprep.mubr.msk.f32.mxu0 %vm414_vm0, %v18174_v10 }
 0xe06   : > { %26977 = vmatmul.mubr.msk.f32.gmra.mrb[102].mxu0 %vm414_vm0, %v18175_v52 }
 0xe07   : > { %26979 = vmatprep.mubr.msk.f32.mxu0 %vm414_vm0, %v18176_v60 }
 0xe0a   : > { %26980 = vmatmul.mubr.msk.f32.gmra.mrb[104].mxu0 %vm414_vm0, %v18177_v49 }
 0xe0b   : > { %26982 = vmatprep.mubr.msk.f32.mxu0 %vm414_vm0, %v18178_v55 }
 0xe0e   : > { %26983 = vmatmul.mubr.msk.f32.gmra.mrb[106].mxu0 %vm414_vm0, %v18179_v0 }
 0xe0f   : > { %26991 = vmatprep.mubr.msk.f32.mxu0 %vm414_vm0, %v32412_v5  ;;  %v32640_v5 = vld [vmem:[#allocation2 + $0xab] sm:$0xff] }
 0xe12   : > { %26992 = vmatmul.mubr.msk.f32.vlgmr.msra.gmra.mrb[72].mxu0 %vm414_vm0, %v32419_v57  ;;  %v32648_v57 = vld [vmem:[#allocation2 + $0xbb] sm:$0xff] }
 0xe13   : > { %27490 = vmatpush3.bf16.msra.mxu0 %v32417_v20  ;;  %26994 = vmatprep.mubr.msk.f32.mxu0 %vm414_vm0, %v32423_v12  ;;  %v32644_v20 = vld [vmem:[#allocation2 + $0xb3] sm:$0xff]  ;;  %v32652_v12 = vld [vmem:[#allocation2 + $0xc3] sm:$0xff] }
 0xe14   : > { %27049 = vmatprep.subr.mxu0 %v19038_v17 }
 0xe16   : > { %26995 = vmatmul.mubr.msk.f32.gmra.mrb[74].mxu0 %vm414_vm0, %v32428_v48  ;;  %v32656_v48 = vld [vmem:[#allocation2 + $0xcb] sm:$0xff] }
 0xe17   : > { %26997 = vmatprep.mubr.msk.f32.mxu0 %vm414_vm0, %v32432_v38  ;;  %27050 = vmatpush3.msra.mxu0 %v19038_v17  ;;  %v32660_v38 = vld [vmem:[#allocation2 + $0xd3] sm:$0xff]  ;;  %v32771_v17 = vld [vmem:[#allocation2 + $0x84] sm:$0xff] }
 0xe18   : > { %27492 = vmatprep.subr.bf16.mxu0 %v27491_v53 }
 0xe1a   : > { %26998 = vmatmul.mubr.msk.f32.gmra.mrb[76].mxu0 %vm414_vm0, %v32436_v32  ;;  %v32664_v32 = vld [vmem:[#allocation2 + $0xdb] sm:$0xff] }
 0xe1b   : > { %27000 = vmatprep.mubr.msk.f32.mxu0 %vm414_vm0, %v32440_v23  ;;  %v32668_v23 = vld [vmem:[#allocation2 + $0xe3] sm:$0xff] }
 0xe1c   : > { %33183 = vst [vmem:[#allocation3_spill] sm:$0xff] %v32668_v23 }
 0xe1e   : > { %27001 = vmatmul.mubr.msk.f32.gmra.mrb[78].mxu0 %vm414_vm0, %v32444_v40  ;;  %v32672_v40 = vld [vmem:[#allocation2 + $0xeb] sm:$0xff] }
 0xe1f   : > { %27003 = vmatprep.mubr.msk.f32.mxu0 %vm414_vm0, %v32448_v58  ;;  %33184 = vst [vmem:[#allocation4_spill] sm:$0xff] %v32672_v40  ;;  %v32676_v58 = vld [vmem:[#allocation2 + $0xf3] sm:$0xff] }
 0xe20   : > { %33185 = vst [vmem:[#allocation5_spill] sm:$0xff] %v32676_v58 }
 0xe22   : > { %27004 = vmatmul.mubr.msk.f32.gmra.mrb[80].mxu0 %vm414_vm0, %v32452_v31  ;;  %v32680_v31 = vld [vmem:[#allocation2 + $0xfb] sm:$0xff] }
 0xe23   : > { %27006 = vmatprep.mubr.msk.f32.mxu0 %vm414_vm0, %v32456_v61  ;;  %33186 = vst [vmem:[#allocation6_spill] sm:$0xff] %v32680_v31  ;;  %v32684_v61 = vld [vmem:[#allocation2 + $0x103] sm:$0xff] }
 0xe24   : > { %33187 = vst [vmem:[#allocation7_spill] sm:$0xff] %v32684_v61 }
 0xe26   : > { %27007 = vmatmul.mubr.msk.f32.gmra.mrb[82].mxu0 %vm414_vm0, %v32460_v18  ;;  %v32688_v18 = vld [vmem:[#allocation2 + $0x10b] sm:$0xff] }
 0xe27   : > { %27009 = vmatprep.mubr.msk.f32.mxu0 %vm414_vm0, %v32464_v24  ;;  %33188 = vst [vmem:[#allocation8_spill] sm:$0xff] %v32688_v18  ;;  %v32692_v24 = vld [vmem:[#allocation2 + $0x113] sm:$0xff] }
 0xe28   : > { %33189 = vst [vmem:[#allocation9_spill] sm:$0xff] %v32692_v24 }
 0xe2a   : > { %27010 = vmatmul.mubr.msk.f32.gmra.mrb[84].mxu0 %vm414_vm0, %v32468_v19  ;;  %v32696_v19 = vld [vmem:[#allocation2 + $0x11b] sm:$0xff] }
 0xe2b   : > { %27012 = vmatprep.mubr.msk.f32.mxu0 %vm414_vm0, %v18160_v62  ;;  %33190 = vst [vmem:[#allocation10_spill] sm:$0xff] %v32696_v19  ;;  %v32700_v62 = vld [vmem:[#allocation2 + $0x123] sm:$0xff] }
 0xe2c   : > { %33191 = vst [vmem:[#allocation11_spill] sm:$0xff] %v32700_v62 }
 0xe2e   : > { %27013 = vmatmul.mubr.msk.f32.gmra.mrb[86].mxu0 %vm414_vm0, %v18161_v14  ;;  %v32704_v14 = vld [vmem:[#allocation2 + $0x12b] sm:$0xff] }
 0xe2f   : > { %27015 = vmatprep.mubr.msk.f32.mxu0 %vm414_vm0, %v18162_v15  ;;  %33192 = vst [vmem:[#allocation12_spill] sm:$0xff] %v32704_v14  ;;  %v19428_v15 = vld [vmem:[#allocation2 + $0x14] sm:$0xff] }
 0xe32   : > { %27016 = vmatmul.mubr.msk.f32.gmra.mrb[88].mxu0 %vm414_vm0, %v18163_v7  ;;  %v19429_v7 = vld [vmem:[#allocation2 + $0x1c] sm:$0xff] }
 0xe33   : > { %27018 = vmatprep.mubr.msk.f32.mxu0 %vm414_vm0, %v18164_v21  ;;  %v19894_v21 = vld [vmem:[%s33103_s10 + $0xa0] sm:$0xff] }
 0xe36   : > { %27019 = vmatmul.mubr.msk.f32.gmra.mrb[90].mxu0 %vm414_vm0, %v18165_v8  ;;  %v20320_v8 = vld [vmem:[%s33103_s10 + $0xa8] sm:$0xff] }
 0xe37   : > { %27021 = vmatprep.mubr.msk.f32.mxu0 %vm414_vm0, %v18166_v3  ;;  %v20321_v3 = vld [vmem:[%s33103_s10 + $0xb0] sm:$0xff] }
 0xe3a   : > { %27022 = vmatmul.mubr.msk.f32.gmra.mrb[92].mxu0 %vm414_vm0, %v18167_v26  ;;  %v32719_v26 = vld [vmem:[#allocation2 + $0x24] sm:$0xff] }
 0xe3b   : > { %27024 = vmatprep.mubr.msk.f32.mxu0 %vm414_vm0, %v18168_v6  ;;  %v32724_v6 = vpack.c.bf16 %v20321_v3, %v20320_v8  ;;  %v19455_v8 = vld [vmem:[#allocation2 + $0xec] sm:$0xff]  ;;  %v19456_v3 = vld [vmem:[#allocation2 + $0xf4] sm:$0xff] }
 0xe3e   : > { %27025 = vmatmul.mubr.msk.f32.gmra.mrb[94].mxu0 %vm414_vm0, %v18169_v28  ;;  %v32726_v28 = vld [vmem:[#allocation2 + $0x2c] sm:$0xff] }
 0xe3f   : > { %27027 = vmatprep.mubr.msk.f32.mxu0 %vm414_vm0, %v18170_v1  ;;  %v32730_v1 = vld [vmem:[#allocation2 + $0x34] sm:$0xff] }
 0xe42   : > { %27028 = vmatmul.mubr.msk.f32.gmra.mrb[96].mxu0 %vm414_vm0, %v18171_v45  ;;  %v32735_v45 = vld [vmem:[#allocation2 + $0x3c] sm:$0xff] }
 0xe43   : > { %27030 = vmatprep.mubr.msk.f32.mxu0 %vm414_vm0, %v18172_v29  ;;  %v32739_v29 = vld [vmem:[#allocation2 + $0x44] sm:$0xff] }
 0xe46   : > { %27031 = vmatmul.mubr.msk.f32.gmra.mrb[98].mxu0 %vm414_vm0, %v18173_v42  ;;  %v32743_v42 = vld [vmem:[#allocation2 + $0x4c] sm:$0xff] }
 0xe47   : > { %27033 = vmatprep.mubr.msk.f32.mxu0 %vm414_vm0, %v18174_v10  ;;  %v32747_v10 = vld [vmem:[#allocation2 + $0x54] sm:$0xff] }
 0xe4a   : > { %27034 = vmatmul.mubr.msk.f32.gmra.mrb[100].mxu0 %vm414_vm0, %v18175_v52  ;;  %v32751_v52 = vld [vmem:[#allocation2 + $0x5c] sm:$0xff] }
 0xe4b   : > { %27036 = vmatprep.mubr.msk.f32.mxu0 %vm414_vm0, %v18176_v60  ;;  %v32755_v60 = vld [vmem:[#allocation2 + $0x64] sm:$0xff] }
 0xe4e   : > { %27037 = vmatmul.mubr.msk.f32.gmra.mrb[102].mxu0 %vm414_vm0, %v18177_v49  ;;  %v32759_v49 = vld [vmem:[#allocation2 + $0x6c] sm:$0xff] }
 0xe4f   : > { %27039 = vmatprep.mubr.msk.f32.mxu0 %vm414_vm0, %v18178_v55  ;;  %v32763_v55 = vld [vmem:[#allocation2 + $0x74] sm:$0xff] }
 0xe52   : > { %27040 = vmatmul.mubr.msk.f32.gmra.mrb[104].mxu0 %vm414_vm0, %v18179_v0  ;;  %v32767_v0 = vld [vmem:[#allocation2 + $0x7c] sm:$0xff] }
 0xe53   : > { %27042 = vmatprep.mubr.msk.f32.mxu0 %vm414_vm0, %v18606_v27  ;;  %v19446_v27 = vld [vmem:[#allocation2 + $0xa4] sm:$0xff] }
 0xe56   : > { %27043 = vmatmul.mubr.msk.f32.gmra.mrb[106].mxu0 %vm414_vm0, %v18607_v13  ;;  %v19447_v13 = vld [vmem:[#allocation2 + $0xac] sm:$0xff] }
 0xe57   : > { %27051 = vmatprep.mubr.msk.f32.mxu0 %vm414_vm0, %v32552_v16 }
 0xe5a   : > { %27052 = vmatmul.mubr.msk.f32.vlgmr.msra.gmra.mrb[72].mxu0 %vm414_vm0, %v32556_v34 }
 0xe5b   : > { %27494 = vmatpush3.bf16.msra.mxu0 %v27491_v53  ;;  %27054 = vmatprep.mubr.msk.f32.mxu0 %vm414_vm0, %v32569_v33  ;;  %v19445_v53 = vld [vmem:[#allocation2 + $0x9c] sm:$0xff] }
 0xe5c   : > { %27109 = vmatprep.subr.mxu0 %v19466_v22 }
 0xe5e   : > { %27055 = vmatmul.mubr.msk.f32.gmra.mrb[74].mxu0 %vm414_vm0, %v32575_v30 }
 0xe5f   : > { %27057 = vmatprep.mubr.msk.f32.mxu0 %vm414_vm0, %v32579_v36  ;;  %27110 = vmatpush3.msra.mxu0 %v19466_v22  ;;  %v19448_v22 = vld [vmem:[#allocation2 + $0xb4] sm:$0xff] }
 0xe60   : > { %27496 = vmatprep.subr.bf16.mxu0 %v32573_v11 }
 0xe62   : > { %27058 = vmatmul.mubr.msk.f32.gmra.mrb[76].mxu0 %vm414_vm0, %v32584_v2 }
 0xe63   : > { %27060 = vmatprep.mubr.msk.f32.mxu0 %vm414_vm0, %v32588_v37 }
 0xe66   : > { %27061 = vmatmul.mubr.msk.f32.gmra.mrb[78].mxu0 %vm414_vm0, %v32592_v50 }
 0xe67   : > { %27063 = vmatprep.mubr.msk.f32.mxu0 %vm414_vm0, %v32596_v46 }
 0xe6a   : > { %27064 = vmatmul.mubr.msk.f32.gmra.mrb[80].mxu0 %vm414_vm0, %v32600_v43 }
 0xe6b   : > { %27066 = vmatprep.mubr.msk.f32.mxu0 %vm414_vm0, %v32604_v56 }
 0xe6e   : > { %27067 = vmatmul.mubr.msk.f32.gmra.mrb[82].mxu0 %vm414_vm0, %v32608_v41 }
 0xe6f   : > { %27069 = vmatprep.mubr.msk.f32.mxu0 %vm414_vm0, %v32612_v51 }
 0xe72   : > { %27070 = vmatmul.mubr.msk.f32.gmra.mrb[84].mxu0 %vm414_vm0, %v32616_v54 }
 0xe73   : > { %27072 = vmatprep.mubr.msk.f32.mxu0 %vm414_vm0, %v32620_v59 }
 0xe76   : > { %27073 = vmatmul.mubr.msk.f32.gmra.mrb[86].mxu0 %vm414_vm0, %v32624_v9 }
 0xe77   : > { %27075 = vmatprep.mubr.msk.f32.mxu0 %vm414_vm0, %v32628_v39 }
 0xe7a   : > { %27076 = vmatmul.mubr.msk.f32.gmra.mrb[88].mxu0 %vm414_vm0, %v32632_v63 }
 0xe7b   : > { %27078 = vmatprep.mubr.msk.f32.mxu0 %vm414_vm0, %v32636_v47 }
 0xe7e   : > { %27079 = vmatmul.mubr.msk.f32.gmra.mrb[90].mxu0 %vm414_vm0, %v32640_v5 }
 0xe7f   : > { %27081 = vmatprep.mubr.msk.f32.mxu0 %vm414_vm0, %v32644_v20 }
 0xe82   : > { %27082 = vmatmul.mubr.msk.f32.gmra.mrb[92].mxu0 %vm414_vm0, %v32648_v57 }
 0xe83   : > { %27084 = vmatprep.mubr.msk.f32.mxu0 %vm414_vm0, %v32652_v12 }
 0xe86   : > { %27085 = vmatmul.mubr.msk.f32.gmra.mrb[94].mxu0 %vm414_vm0, %v32656_v48 }
 0xe87   : > { %27087 = vmatprep.mubr.msk.f32.mxu0 %vm414_vm0, %v32660_v38 }
 0xe8a   : > { %27088 = vmatmul.mubr.msk.f32.gmra.mrb[96].mxu0 %vm414_vm0, %v32664_v32 }
 0xe8b   : > { %27090 = vmatprep.mubr.msk.f32.mxu0 %vm414_vm0, %v32668_v23  ;;  %v20748_v23 = vld [vmem:[%s33103_s10 + $0xc0] sm:$0xff] }
 0xe8e   : > { %27091 = vmatmul.mubr.msk.f32.gmra.mrb[98].mxu0 %vm414_vm0, %v32672_v40  ;;  %v20749_v40 = vld [vmem:[%s33103_s10 + $0xc8] sm:$0xff] }
 0xe8f   : > { %27093 = vmatprep.mubr.msk.f32.mxu0 %vm414_vm0, %v32676_v58  ;;  %v19463_v58 = vld [vmem:[#allocation2 + $0x12c] sm:$0xff] }
 0xe92   : > { %27094 = vmatmul.mubr.msk.f32.gmra.mrb[100].mxu0 %vm414_vm0, %v32680_v31  ;;  %v20322_v31 = vld [vmem:[%s33103_s10 + $0xb8] sm:$0xff] }
 0xe93   : > { %27096 = vmatprep.mubr.msk.f32.mxu0 %vm414_vm0, %v32684_v61  ;;  %v19461_v61 = vld [vmem:[#allocation2 + $0x11c] sm:$0xff] }
 0xe96   : > { %27097 = vmatmul.mubr.msk.f32.gmra.mrb[102].mxu0 %vm414_vm0, %v32688_v18  ;;  %v19462_v18 = vld [vmem:[#allocation2 + $0x124] sm:$0xff] }
 0xe97   : > { %27099 = vmatprep.mubr.msk.f32.mxu0 %vm414_vm0, %v32692_v24  ;;  %v19459_v24 = vld [vmem:[#allocation2 + $0x10c] sm:$0xff] }
 0xe9a   : > { %27100 = vmatmul.mubr.msk.f32.gmra.mrb[104].mxu0 %vm414_vm0, %v32696_v19  ;;  %v19460_v19 = vld [vmem:[#allocation2 + $0x114] sm:$0xff] }
 0xe9b   : > { %27102 = vmatprep.mubr.msk.f32.mxu0 %vm414_vm0, %v32700_v62  ;;  %v19457_v62 = vld [vmem:[#allocation2 + $0xfc] sm:$0xff] }
 0xe9e   : > { %27103 = vmatmul.mubr.msk.f32.gmra.mrb[106].mxu0 %vm414_vm0, %v32704_v14  ;;  %v19458_v14 = vld [vmem:[#allocation2 + $0x104] sm:$0xff] }
 0xe9f   : > { %27111 = vmatprep.mubr.msk.f32.mxu0 %vm414_vm0, %v19428_v15  ;;  %v19452_v15 = vld [vmem:[#allocation2 + $0xd4] sm:$0xff] }
 0xea2   : > { %27112 = vmatmul.mubr.msk.f32.vlgmr.msra.gmra.mrb[72].mxu0 %vm414_vm0, %v19429_v7  ;;  %v19453_v7 = vld [vmem:[#allocation2 + $0xdc] sm:$0xff] }
 0xea3   : > { %27498 = vmatpush3.bf16.msra.mxu0 %v32573_v11  ;;  %27114 = vmatprep.mubr.msk.f32.mxu0 %vm414_vm0, %v32719_v26  ;;  %v19451_v11 = vld [vmem:[#allocation2 + $0xcc] sm:$0xff] }
 0xea4   : > { %27169 = vmatprep.subr.mxu0 %v19894_v21 }
 0xea6   : > { %27115 = vmatmul.mubr.msk.f32.gmra.mrb[74].mxu0 %vm414_vm0, %v32726_v28 }
 0xea7   : > { %27117 = vmatprep.mubr.msk.f32.mxu0 %vm414_vm0, %v32730_v1  ;;  %27170 = vmatpush3.msra.mxu0 %v19894_v21  ;;  %v19454_v21 = vld [vmem:[#allocation2 + $0xe4] sm:$0xff] }
 0xea8   : > { %27500 = vmatprep.subr.bf16.mxu0 %v32724_v6 }
 0xeaa   : > { %27118 = vmatmul.mubr.msk.f32.gmra.mrb[76].mxu0 %vm414_vm0, %v32735_v45 }
 0xeab   : > { %27120 = vmatprep.mubr.msk.f32.mxu0 %vm414_vm0, %v32739_v29 }
 0xeae   : > { %27121 = vmatmul.mubr.msk.f32.gmra.mrb[78].mxu0 %vm414_vm0, %v32743_v42 }
 0xeaf   : > { %27123 = vmatprep.mubr.msk.f32.mxu0 %vm414_vm0, %v32747_v10 }
 0xeb2   : > { %27124 = vmatmul.mubr.msk.f32.gmra.mrb[80].mxu0 %vm414_vm0, %v32751_v52 }
 0xeb3   : > { %27126 = vmatprep.mubr.msk.f32.mxu0 %vm414_vm0, %v32755_v60 }
 0xeb6   : > { %27127 = vmatmul.mubr.msk.f32.gmra.mrb[82].mxu0 %vm414_vm0, %v32759_v49 }
 0xeb7   : > { %27129 = vmatprep.mubr.msk.f32.mxu0 %vm414_vm0, %v32763_v55 }
 0xeba   : > { %27130 = vmatmul.mubr.msk.f32.gmra.mrb[84].mxu0 %vm414_vm0, %v32767_v0 }
 0xebb   : > { %27132 = vmatprep.mubr.msk.f32.mxu0 %vm414_vm0, %v32771_v17 }
 0xebe   : > { %27133 = vmatmul.mubr.msk.f32.gmra.mrb[86].mxu0 %vm414_vm0, %v32775_v44 }
 0xebf   : > { %27135 = vmatprep.mubr.msk.f32.mxu0 %vm414_vm0, %v19444_v4 }
 0xec2   : > { %27136 = vmatmul.mubr.msk.f32.gmra.mrb[88].mxu0 %vm414_vm0, %v19445_v53 }
 0xec3   : > { %27138 = vmatprep.mubr.msk.f32.mxu0 %vm414_vm0, %v19446_v27 }
 0xec6   : > { %27139 = vmatmul.mubr.msk.f32.gmra.mrb[90].mxu0 %vm414_vm0, %v19447_v13 }
 0xec7   : > { %27141 = vmatprep.mubr.msk.f32.mxu0 %vm414_vm0, %v19448_v22 }
 0xeca   : > { %27142 = vmatmul.mubr.msk.f32.gmra.mrb[92].mxu0 %vm414_vm0, %v19449_v25 }
 0xecb   : > { %27144 = vmatprep.mubr.msk.f32.mxu0 %vm414_vm0, %v19450_v35 }
 0xece   : > { %27145 = vmatmul.mubr.msk.f32.gmra.mrb[94].mxu0 %vm414_vm0, %v19451_v11 }
 0xecf   : > { %27147 = vmatprep.mubr.msk.f32.mxu0 %vm414_vm0, %v19452_v15 }
 0xed2   : > { %27148 = vmatmul.mubr.msk.f32.gmra.mrb[96].mxu0 %vm414_vm0, %v19453_v7 }
 0xed3   : > { %27150 = vmatprep.mubr.msk.f32.mxu0 %vm414_vm0, %v19454_v21 }
 0xed6   : > { %27151 = vmatmul.mubr.msk.f32.gmra.mrb[98].mxu0 %vm414_vm0, %v19455_v8 }
 0xed7   : > { %27153 = vmatprep.mubr.msk.f32.mxu0 %vm414_vm0, %v19456_v3 }
 0xeda   : > { %27154 = vmatmul.mubr.msk.f32.gmra.mrb[100].mxu0 %vm414_vm0, %v19457_v62 }
 0xedb   : > { %27156 = vmatprep.mubr.msk.f32.mxu0 %vm414_vm0, %v19458_v14 }
 0xede   : > { %27157 = vmatmul.mubr.msk.f32.gmra.mrb[102].mxu0 %vm414_vm0, %v19459_v24 }
 0xedf   : > { %27159 = vmatprep.mubr.msk.f32.mxu0 %vm414_vm0, %v19460_v19 }
 0xee2   : > { %27160 = vmatmul.mubr.msk.f32.gmra.mrb[104].mxu0 %vm414_vm0, %v19461_v61 }
 0xee3   : > { %27162 = vmatprep.mubr.msk.f32.mxu0 %vm414_vm0, %v19462_v18 }
 0xee6   : > { %27163 = vmatmul.mubr.msk.f32.gmra.mrb[106].mxu0 %vm414_vm0, %v19463_v58 }
 0xee7   : > { %27171 = vmatprep.mubr.msk.f32.mxu0 %vm414_vm0, %v32719_v26  ;;  %v27503_v26 = vpack.c.bf16 %v20749_v40, %v20748_v23  ;;  %v19890_v23 = vld [vmem:[#allocation2 + $0x134] sm:$0xff]  ;;  %v19891_v40 = vld [vmem:[#allocation2 + $0x13c] sm:$0xff] }
 0xeea   : > { %27172 = vmatmul.mubr.msk.f32.vlgmr.msra.gmra.mrb[72].mxu0 %vm414_vm0, %v32726_v28  ;;  %v20292_v28 = vld [vmem:[#allocation2 + $0x65] sm:$0xff] }
 0xeeb   : > { %27502 = vmatpush3.bf16.msra.mxu0 %v32724_v6  ;;  %27174 = vmatprep.mubr.msk.f32.mxu0 %vm414_vm0, %v32730_v1  ;;  %v20291_v6 = vld [vmem:[#allocation2 + $0x5d] sm:$0xff]  ;;  %v20293_v1 = vld [vmem:[#allocation2 + $0x6d] sm:$0xff] }
 0xeec   : > { %27229 = vmatprep.subr.mxu0 %v20322_v31 }
 0xeee   : > { %27175 = vmatmul.mubr.msk.f32.gmra.mrb[74].mxu0 %vm414_vm0, %v32735_v45  ;;  %v20294_v45 = vld [vmem:[#allocation2 + $0x75] sm:$0xff] }
 0xeef   : > { %27177 = vmatprep.mubr.msk.f32.mxu0 %vm414_vm0, %v32739_v29  ;;  %27230 = vmatpush3.msra.mxu0 %v20322_v31  ;;  %v20284_v31 = vld [vmem:[#allocation2 + $0x25] sm:$0xff]  ;;  %v20295_v29 = vld [vmem:[#allocation2 + $0x7d] sm:$0xff] }
 0xef0   : > { %27504 = vmatprep.subr.bf16.mxu0 %v27503_v26 }
 0xef2   : > { %27178 = vmatmul.mubr.msk.f32.gmra.mrb[76].mxu0 %vm414_vm0, %v32743_v42  ;;  %v20296_v42 = vld [vmem:[#allocation2 + $0x85] sm:$0xff] }
 0xef3   : > { %27180 = vmatprep.mubr.msk.f32.mxu0 %vm414_vm0, %v32747_v10  ;;  %v20297_v10 = vld [vmem:[#allocation2 + $0x8d] sm:$0xff] }
 0xef6   : > { %27181 = vmatmul.mubr.msk.f32.gmra.mrb[78].mxu0 %vm414_vm0, %v32751_v52  ;;  %v20298_v52 = vld [vmem:[#allocation2 + $0x95] sm:$0xff] }
 0xef7   : > { %27183 = vmatprep.mubr.msk.f32.mxu0 %vm414_vm0, %v32755_v60  ;;  %v20299_v60 = vld [vmem:[#allocation2 + $0x9d] sm:$0xff] }
 0xefa   : > { %27184 = vmatmul.mubr.msk.f32.gmra.mrb[80].mxu0 %vm414_vm0, %v32759_v49  ;;  %v20300_v49 = vld [vmem:[#allocation2 + $0xa5] sm:$0xff] }
 0xefb   : > { %27186 = vmatprep.mubr.msk.f32.mxu0 %vm414_vm0, %v32763_v55  ;;  %v20301_v55 = vld [vmem:[#allocation2 + $0xad] sm:$0xff] }
 0xefe   : > { %27187 = vmatmul.mubr.msk.f32.gmra.mrb[82].mxu0 %vm414_vm0, %v32767_v0  ;;  %v20302_v0 = vld [vmem:[#allocation2 + $0xb5] sm:$0xff] }
 0xeff   : > { %27189 = vmatprep.mubr.msk.f32.mxu0 %vm414_vm0, %v32771_v17  ;;  %v20303_v17 = vld [vmem:[#allocation2 + $0xbd] sm:$0xff] }
 0xf02   : > { %27190 = vmatmul.mubr.msk.f32.gmra.mrb[84].mxu0 %vm414_vm0, %v32775_v44  ;;  %v20304_v44 = vld [vmem:[#allocation2 + $0xc5] sm:$0xff] }
 0xf03   : > { %27192 = vmatprep.mubr.msk.f32.mxu0 %vm414_vm0, %v19444_v4  ;;  %v20305_v4 = vld [vmem:[#allocation2 + $0xcd] sm:$0xff] }
 0xf06   : > { %27193 = vmatmul.mubr.msk.f32.gmra.mrb[86].mxu0 %vm414_vm0, %v19445_v53  ;;  %v20306_v53 = vld [vmem:[#allocation2 + $0xd5] sm:$0xff] }
 0xf07   : > { %27195 = vmatprep.mubr.msk.f32.mxu0 %vm414_vm0, %v19446_v27  ;;  %v20307_v27 = vld [vmem:[#allocation2 + $0xdd] sm:$0xff] }
 0xf0a   : > { %27196 = vmatmul.mubr.msk.f32.gmra.mrb[88].mxu0 %vm414_vm0, %v19447_v13  ;;  %v20308_v13 = vld [vmem:[#allocation2 + $0xe5] sm:$0xff] }
 0xf0b   : > { %27198 = vmatprep.mubr.msk.f32.mxu0 %vm414_vm0, %v19448_v22  ;;  %v20309_v22 = vld [vmem:[#allocation2 + $0xed] sm:$0xff] }
 0xf0e   : > { %27199 = vmatmul.mubr.msk.f32.gmra.mrb[90].mxu0 %vm414_vm0, %v19449_v25  ;;  %v20310_v25 = vld [vmem:[#allocation2 + $0xf5] sm:$0xff] }
 0xf0f   : > { %27201 = vmatprep.mubr.msk.f32.mxu0 %vm414_vm0, %v19450_v35  ;;  %v20311_v35 = vld [vmem:[#allocation2 + $0xfd] sm:$0xff] }
 0xf12   : > { %27202 = vmatmul.mubr.msk.f32.gmra.mrb[92].mxu0 %vm414_vm0, %v19451_v11  ;;  %v20312_v11 = vld [vmem:[#allocation2 + $0x105] sm:$0xff] }
 0xf13   : > { %27204 = vmatprep.mubr.msk.f32.mxu0 %vm414_vm0, %v19452_v15  ;;  %v20313_v15 = vld [vmem:[#allocation2 + $0x10d] sm:$0xff] }
 0xf16   : > { %27205 = vmatmul.mubr.msk.f32.gmra.mrb[94].mxu0 %vm414_vm0, %v19453_v7  ;;  %v20314_v7 = vld [vmem:[#allocation2 + $0x115] sm:$0xff] }
 0xf17   : > { %27207 = vmatprep.mubr.msk.f32.mxu0 %vm414_vm0, %v19454_v21  ;;  %v20315_v21 = vld [vmem:[#allocation2 + $0x11d] sm:$0xff] }
 0xf1a   : > { %27208 = vmatmul.mubr.msk.f32.gmra.mrb[96].mxu0 %vm414_vm0, %v19455_v8  ;;  %v20316_v8 = vld [vmem:[#allocation2 + $0x125] sm:$0xff] }
 0xf1b   : > { %27210 = vmatprep.mubr.msk.f32.mxu0 %vm414_vm0, %v19456_v3  ;;  %v20318_v3 = vld [vmem:[#allocation2 + $0x135] sm:$0xff] }
 0xf1e   : > { %27211 = vmatmul.mubr.msk.f32.gmra.mrb[98].mxu0 %vm414_vm0, %v19457_v62  ;;  %v20285_v62 = vld [vmem:[#allocation2 + $0x2d] sm:$0xff] }
 0xf1f   : > { %27213 = vmatprep.mubr.msk.f32.mxu0 %vm414_vm0, %v19458_v14  ;;  %v20290_v14 = vld [vmem:[#allocation2 + $0x55] sm:$0xff] }
 0xf22   : > { %27214 = vmatmul.mubr.msk.f32.gmra.mrb[100].mxu0 %vm414_vm0, %v19459_v24  ;;  %v20750_v24 = vld [vmem:[%s33103_s10 + $0xd0] sm:$0xff] }
 0xf23   : > { %27216 = vmatprep.mubr.msk.f32.mxu0 %vm414_vm0, %v19460_v19  ;;  %v20289_v19 = vld [vmem:[#allocation2 + $0x4d] sm:$0xff] }
 0xf26   : > { %27217 = vmatmul.mubr.msk.f32.gmra.mrb[102].mxu0 %vm414_vm0, %v19461_v61  ;;  %v20286_v61 = vld [vmem:[#allocation2 + $0x35] sm:$0xff] }
 0xf27   : > { %27219 = vmatprep.mubr.msk.f32.mxu0 %vm414_vm0, %v19462_v18  ;;  %v20288_v18 = vld [vmem:[#allocation2 + $0x45] sm:$0xff] }
 0xf2a   : > { %27220 = vmatmul.mubr.msk.f32.gmra.mrb[104].mxu0 %vm414_vm0, %v19463_v58  ;;  %v20287_v58 = vld [vmem:[#allocation2 + $0x3d] sm:$0xff] }
 0xf2b   : > { %27222 = vmatprep.mubr.msk.f32.mxu0 %vm414_vm0, %v19890_v23  ;;  %v20319_v23 = vld [vmem:[#allocation2 + $0x13d] sm:$0xff] }
 0xf2e   : > { %27223 = vmatmul.mubr.msk.f32.gmra.mrb[106].mxu0 %vm414_vm0, %v19891_v40  ;;  %v20712_v40 = vld [vmem:[#allocation2 + $0x26] sm:$0xff] }
 0xf2f   : > { %27231 = vmatprep.mubr.msk.f32.mxu0 %vm414_vm0, %v20284_v31  ;;  %v20713_v31 = vld [vmem:[#allocation2 + $0x2e] sm:$0xff] }
 0xf32   : > { %27232 = vmatmul.mubr.msk.f32.vlgmr.msra.gmra.mrb[72].mxu0 %vm414_vm0, %v20285_v62  ;;  %v20714_v62 = vld [vmem:[#allocation2 + $0x36] sm:$0xff] }
 0xf33   : > { %27506 = vmatpush3.bf16.msra.mxu0 %v27503_v26  ;;  %27234 = vmatprep.mubr.msk.f32.mxu0 %vm414_vm0, %v20286_v61  ;;  %v20317_v26 = vld [vmem:[#allocation2 + $0x12d] sm:$0xff] }
 0xf34   : > { %27289 = vmatprep.subr.mxu0 %v20750_v24  ;;  %v20716_v61 = vld [vmem:[#allocation2 + $0x46] sm:$0xff] }
 0xf36   : > { %27235 = vmatmul.mubr.msk.f32.gmra.mrb[74].mxu0 %vm414_vm0, %v20287_v58  ;;  %v20717_v58 = vld [vmem:[#allocation2 + $0x4e] sm:$0xff] }
 0xf37   : > { %27237 = vmatprep.mubr.msk.f32.mxu0 %vm414_vm0, %v20288_v18  ;;  %27290 = vmatpush3.msra.mxu0 %v20750_v24  ;;  %v20715_v24 = vld [vmem:[#allocation2 + $0x3e] sm:$0xff]  ;;  %v20718_v18 = vld [vmem:[#allocation2 + $0x56] sm:$0xff] }
 0xf3a   : > { %27238 = vmatmul.mubr.msk.f32.gmra.mrb[76].mxu0 %vm414_vm0, %v20289_v19  ;;  %v20719_v19 = vld [vmem:[#allocation2 + $0x5e] sm:$0xff] }
 0xf3b   : > { %27240 = vmatprep.mubr.msk.f32.mxu0 %vm414_vm0, %v20290_v14  ;;  %v20720_v14 = vld [vmem:[#allocation2 + $0x66] sm:$0xff] }
 0xf3e   : > { %27241 = vmatmul.mubr.msk.f32.gmra.mrb[78].mxu0 %vm414_vm0, %v20291_v6  ;;  %v20721_v6 = vld [vmem:[#allocation2 + $0x6e] sm:$0xff] }
 0xf3f   : > { %27243 = vmatprep.mubr.msk.f32.mxu0 %vm414_vm0, %v20292_v28  ;;  %v20722_v28 = vld [vmem:[#allocation2 + $0x76] sm:$0xff] }
 0xf42   : > { %27244 = vmatmul.mubr.msk.f32.gmra.mrb[80].mxu0 %vm414_vm0, %v20293_v1  ;;  %v20723_v1 = vld [vmem:[#allocation2 + $0x7e] sm:$0xff] }
 0xf43   : > { %27246 = vmatprep.mubr.msk.f32.mxu0 %vm414_vm0, %v20294_v45  ;;  %v20724_v45 = vld [vmem:[#allocation2 + $0x86] sm:$0xff] }
 0xf46   : > { %27247 = vmatmul.mubr.msk.f32.gmra.mrb[82].mxu0 %vm414_vm0, %v20295_v29  ;;  %v20725_v29 = vld [vmem:[#allocation2 + $0x8e] sm:$0xff] }
 0xf47   : > { %27249 = vmatprep.mubr.msk.f32.mxu0 %vm414_vm0, %v20296_v42  ;;  %v20726_v42 = vld [vmem:[#allocation2 + $0x96] sm:$0xff] }
 0xf4a   : > { %27250 = vmatmul.mubr.msk.f32.gmra.mrb[84].mxu0 %vm414_vm0, %v20297_v10  ;;  %v20727_v10 = vld [vmem:[#allocation2 + $0x9e] sm:$0xff] }
 0xf4b   : > { %27252 = vmatprep.mubr.msk.f32.mxu0 %vm414_vm0, %v20298_v52  ;;  %v20728_v52 = vld [vmem:[#allocation2 + $0xa6] sm:$0xff] }
 0xf4e   : > { %27253 = vmatmul.mubr.msk.f32.gmra.mrb[86].mxu0 %vm414_vm0, %v20299_v60  ;;  %v20729_v60 = vld [vmem:[#allocation2 + $0xae] sm:$0xff] }
 0xf4f   : > { %27255 = vmatprep.mubr.msk.f32.mxu0 %vm414_vm0, %v20300_v49  ;;  %v20730_v49 = vld [vmem:[#allocation2 + $0xb6] sm:$0xff] }
 0xf52   : > { %27256 = vmatmul.mubr.msk.f32.gmra.mrb[88].mxu0 %vm414_vm0, %v20301_v55  ;;  %v20731_v55 = vld [vmem:[#allocation2 + $0xbe] sm:$0xff] }
 0xf53   : > { %27258 = vmatprep.mubr.msk.f32.mxu0 %vm414_vm0, %v20302_v0  ;;  %v20732_v0 = vld [vmem:[#allocation2 + $0xc6] sm:$0xff] }
 0xf56   : > { %27259 = vmatmul.mubr.msk.f32.gmra.mrb[90].mxu0 %vm414_vm0, %v20303_v17  ;;  %v20733_v17 = vld [vmem:[#allocation2 + $0xce] sm:$0xff] }
 0xf57   : > { %27261 = vmatprep.mubr.msk.f32.mxu0 %vm414_vm0, %v20304_v44  ;;  %v20734_v44 = vld [vmem:[#allocation2 + $0xd6] sm:$0xff] }
 0xf5a   : > { %27262 = vmatmul.mubr.msk.f32.gmra.mrb[92].mxu0 %vm414_vm0, %v20305_v4  ;;  %v20735_v4 = vld [vmem:[#allocation2 + $0xde] sm:$0xff] }
 0xf5b   : > { %27264 = vmatprep.mubr.msk.f32.mxu0 %vm414_vm0, %v20306_v53  ;;  %v20736_v53 = vld [vmem:[#allocation2 + $0xe6] sm:$0xff] }
 0xf5e   : > { %27265 = vmatmul.mubr.msk.f32.gmra.mrb[94].mxu0 %vm414_vm0, %v20307_v27  ;;  %v20737_v27 = vld [vmem:[#allocation2 + $0xee] sm:$0xff] }
 0xf5f   : > { %27267 = vmatprep.mubr.msk.f32.mxu0 %vm414_vm0, %v20308_v13  ;;  %v20738_v13 = vld [vmem:[#allocation2 + $0xf6] sm:$0xff] }
 0xf62   : > { %27268 = vmatmul.mubr.msk.f32.gmra.mrb[96].mxu0 %vm414_vm0, %v20309_v22  ;;  %v20739_v22 = vld [vmem:[#allocation2 + $0xfe] sm:$0xff] }
 0xf63   : > { %27270 = vmatprep.mubr.msk.f32.mxu0 %vm414_vm0, %v20310_v25  ;;  %v20740_v25 = vld [vmem:[#allocation2 + $0x106] sm:$0xff] }
 0xf66   : > { %27271 = vmatmul.mubr.msk.f32.gmra.mrb[98].mxu0 %vm414_vm0, %v20311_v35  ;;  %v20741_v35 = vld [vmem:[#allocation2 + $0x10e] sm:$0xff] }
 0xf67   : > { %27273 = vmatprep.mubr.msk.f32.mxu0 %vm414_vm0, %v20312_v11  ;;  %v20742_v11 = vld [vmem:[#allocation2 + $0x116] sm:$0xff] }
 0xf6a   : > { %27274 = vmatmul.mubr.msk.f32.gmra.mrb[100].mxu0 %vm414_vm0, %v20313_v15  ;;  %v20743_v15 = vld [vmem:[#allocation2 + $0x11e] sm:$0xff] }
 0xf6b   : > { %27276 = vmatprep.mubr.msk.f32.mxu0 %vm414_vm0, %v20314_v7  ;;  %v20744_v7 = vld [vmem:[#allocation2 + $0x126] sm:$0xff] }
 0xf6e   : > { %27277 = vmatmul.mubr.msk.f32.gmra.mrb[102].mxu0 %vm414_vm0, %v20315_v21  ;;  %v20746_v21 = vld [vmem:[#allocation2 + $0x136] sm:$0xff] }
 0xf6f   : > { %27279 = vmatprep.mubr.msk.f32.mxu0 %vm414_vm0, %v20316_v8  ;;  %v20745_v8 = vld [vmem:[#allocation2 + $0x12e] sm:$0xff] }
 0xf72   : > { %27280 = vmatmul.mubr.msk.f32.gmra.mrb[104].mxu0 %vm414_vm0, %v20317_v26  ;;  %v32937_v26 = vld [vmem:[%s33104_s11] ss:$0 sm:$0xff] }
 0xf73   : > { %27282 = vmatprep.mubr.msk.f32.mxu0 %vm414_vm0, %v20318_v3  ;;  %v20747_v3 = vld [vmem:[#allocation2 + $0x13e] sm:$0xff] }
 0xf76   : > { %27283 = vmatmul.mubr.msk.f32.gmra.mrb[106].mxu0 %vm414_vm0, %v20319_v23 }
 0xf77   : > { %27291 = vmatprep.mubr.msk.f32.mxu0 %vm414_vm0, %v20712_v40 }
 0xf7a   : > { %27292 = vmatmul.mubr.msk.f32.vlgmr.msra.gmra.mrb[72].mxu0 %vm414_vm0, %v20713_v31 }
 0xf7b   : > { %27294 = vmatprep.mubr.msk.f32.mxu0 %vm414_vm0, %v20714_v62 }
 0xf7e   : > { %27295 = vmatmul.mubr.msk.f32.gmra.mrb[74].mxu0 %vm414_vm0, %v20715_v24 }
 0xf7f   : > { %27297 = vmatprep.mubr.msk.f32.mxu0 %vm414_vm0, %v20716_v61 }
 0xf82   : > { %27298 = vmatmul.mubr.msk.f32.gmra.mrb[76].mxu0 %vm414_vm0, %v20717_v58 }
 0xf83   : > { %27300 = vmatprep.mubr.msk.f32.mxu0 %vm414_vm0, %v20718_v18 }
 0xf86   : > { %27301 = vmatmul.mubr.msk.f32.gmra.mrb[78].mxu0 %vm414_vm0, %v20719_v19 }
 0xf87   : > { %27303 = vmatprep.mubr.msk.f32.mxu0 %vm414_vm0, %v20720_v14 }
 0xf8a   : > { %27304 = vmatmul.mubr.msk.f32.gmra.mrb[80].mxu0 %vm414_vm0, %v20721_v6 }
 0xf8b   : > { %27306 = vmatprep.mubr.msk.f32.mxu0 %vm414_vm0, %v20722_v28 }
 0xf8e   : > { %27307 = vmatmul.mubr.msk.f32.gmra.mrb[82].mxu0 %vm414_vm0, %v20723_v1 }
 0xf8f   : > { %27309 = vmatprep.mubr.msk.f32.mxu0 %vm414_vm0, %v20724_v45 }
 0xf92   : > { %27310 = vmatmul.mubr.msk.f32.gmra.mrb[84].mxu0 %vm414_vm0, %v20725_v29 }
 0xf93   : > { %27312 = vmatprep.mubr.msk.f32.mxu0 %vm414_vm0, %v20726_v42 }
 0xf96   : > { %27313 = vmatmul.mubr.msk.f32.gmra.mrb[86].mxu0 %vm414_vm0, %v20727_v10 }
 0xf97   : > { %27315 = vmatprep.mubr.msk.f32.mxu0 %vm414_vm0, %v20728_v52 }
 0xf9a   : > { %27316 = vmatmul.mubr.msk.f32.gmra.mrb[88].mxu0 %vm414_vm0, %v20729_v60 }
 0xf9b   : > { %27318 = vmatprep.mubr.msk.f32.mxu0 %vm414_vm0, %v20730_v49 }
 0xf9e   : > { %27319 = vmatmul.mubr.msk.f32.gmra.mrb[90].mxu0 %vm414_vm0, %v20731_v55 }
 0xf9f   : > { %27321 = vmatprep.mubr.msk.f32.mxu0 %vm414_vm0, %v20732_v0 }
 0xfa2   : > { %27322 = vmatmul.mubr.msk.f32.gmra.mrb[92].mxu0 %vm414_vm0, %v20733_v17 }
 0xfa3   : > { %27324 = vmatprep.mubr.msk.f32.mxu0 %vm414_vm0, %v20734_v44 }
 0xfa6   : > { %27325 = vmatmul.mubr.msk.f32.gmra.mrb[94].mxu0 %vm414_vm0, %v20735_v4 }
 0xfa7   : > { %27327 = vmatprep.mubr.msk.f32.mxu0 %vm414_vm0, %v20736_v53 }
 0xfaa   : > { %27328 = vmatmul.mubr.msk.f32.gmra.mrb[96].mxu0 %vm414_vm0, %v20737_v27 }
 0xfab   : > { %27330 = vmatprep.mubr.msk.f32.mxu0 %vm414_vm0, %v20738_v13 }
 0xfae   : > { %27331 = vmatmul.mubr.msk.f32.gmra.mrb[98].mxu0 %vm414_vm0, %v20739_v22 }
 0xfaf   : > { %27333 = vmatprep.mubr.msk.f32.mxu0 %vm414_vm0, %v20740_v25 }
 0xfb2   : > { %27334 = vmatmul.mubr.msk.f32.gmra.mrb[100].mxu0 %vm414_vm0, %v20741_v35 }
 0xfb3   : > { %27336 = vmatprep.mubr.msk.f32.mxu0 %vm414_vm0, %v20742_v11 }
 0xfb6   : > { %27337 = vmatmul.mubr.msk.f32.gmra.mrb[102].mxu0 %vm414_vm0, %v20743_v15 }
 0xfb7   : > { %27339 = vmatprep.mubr.msk.f32.mxu0 %vm414_vm0, %v20744_v7 }
 0xfba   : > { %27340 = vmatmul.mubr.msk.f32.gmra.mrb[104].mxu0 %vm414_vm0, %v20745_v8 }
 0xfbb   : > { %27342 = vmatprep.mubr.msk.f32.mxu0 %vm414_vm0, %v20746_v21 }
 0xfbe   : > { %27343 = vmatmul.mubr.msk.f32.gmra.mrb[106].mxu0 %vm414_vm0, %v20747_v3 }
0x104d   : > { %v27293_v23 = vpop.f32.mrb[72].mxu0 }
0x104e   : > { %v21148_v40 = vadd.f32 %v27293_v23, %v32937_v26  ;;  %v20925_v31 = vpop.f32.mrb[73].mxu0 }
0x104f   : > { %v21147_v62 = vadd.f32 %v32937_v26, %v20925_v31 }
0x1050   : > { %v21184_v24 = vmul.f32 0.2, %v21148_v40 }
0x1051   : > { %v21183_v61 = vmul.f32 0.2, %v21147_v62  ;;  %v27296_v58 = vpop.f32.mrb[74].mxu0 }
0x1052   : > { %v21220_v18 = vadd.f32 %v21184_v24, %v32556_v34  ;;  %v21150_v19 = vadd.f32 %v27296_v58, %v32937_v26  ;;  %v20935_v14 = vpop.f32.mrb[75].mxu0 }
0x1053   : > { %v21219_v6 = vadd.f32 %v21183_v61, %v32552_v16  ;;  %v21149_v28 = vadd.f32 %v32937_v26, %v20935_v14 }
0x1054   : > { %21256 = vst.msk [vmem:[%s32946_s30 + $0x8] sm:$0xff] %vm493_vm1, %v21220_v18  ;;  %v21186_v1 = vmul.f32 0.2, %v21150_v19 }
0x1055   : > { %21255 = vst.msk [vmem:[%s32946_s30] sm:$0xff] %vm493_vm1, %v21219_v6  ;;  %v21185_v45 = vmul.f32 0.2, %v21149_v28  ;;  %v27299_v29 = vpop.f32.mrb[76].mxu0 }
0x1056   : > { %v21222_v42 = vadd.f32 %v21186_v1, %v32575_v30  ;;  %v21152_v34 = vadd.f32 %v27299_v29, %v32937_v26  ;;  %v20945_v10 = vpop.f32.mrb[77].mxu0 }
0x1057   : > { %v21221_v52 = vadd.f32 %v21185_v45, %v32569_v33  ;;  %v21151_v16 = vadd.f32 %v32937_v26, %v20945_v10 }
0x1058   : > { %21258 = vst.msk [vmem:[%s32946_s30 + $0x18] sm:$0xff] %vm493_vm1, %v21222_v42  ;;  %v21188_v60 = vmul.f32 0.2, %v21152_v34 }
0x1059   : > { %21257 = vst.msk [vmem:[%s32946_s30 + $0x10] sm:$0xff] %vm493_vm1, %v21221_v52  ;;  %v21187_v49 = vmul.f32 0.2, %v21151_v16  ;;  %v27302_v55 = vpop.f32.mrb[78].mxu0 }
0x105a   : > { %v21224_v0 = vadd.f32 %v21188_v60, %v32584_v2  ;;  %v21154_v30 = vadd.f32 %v27302_v55, %v32937_v26  ;;  %v20955_v17 = vpop.f32.mrb[79].mxu0 }
0x105b   : > { %v21223_v44 = vadd.f32 %v21187_v49, %v32579_v36  ;;  %v21153_v33 = vadd.f32 %v32937_v26, %v20955_v17 }
0x105c   : > { %21260 = vst.msk [vmem:[%s32946_s30 + $0x28] sm:$0xff] %vm493_vm1, %v21224_v0  ;;  %v21190_v4 = vmul.f32 0.2, %v21154_v30 }
0x105d   : > { %21259 = vst.msk [vmem:[%s32946_s30 + $0x20] sm:$0xff] %vm493_vm1, %v21223_v44  ;;  %v21189_v53 = vmul.f32 0.2, %v21153_v33  ;;  %v27305_v27 = vpop.f32.mrb[80].mxu0 }
0x105e   : > { %v21226_v13 = vadd.f32 %v21190_v4, %v32592_v50  ;;  %v21156_v2 = vadd.f32 %v27305_v27, %v32937_v26  ;;  %v20965_v22 = vpop.f32.mrb[81].mxu0 }
0x105f   : > { %v21225_v25 = vadd.f32 %v21189_v53, %v32588_v37  ;;  %v21155_v36 = vadd.f32 %v32937_v26, %v20965_v22 }
0x1060   : > { %21262 = vst.msk [vmem:[%s32946_s30 + $0x38] sm:$0xff] %vm493_vm1, %v21226_v13  ;;  %v21192_v35 = vmul.f32 0.2, %v21156_v2 }
0x1061   : > { %21261 = vst.msk [vmem:[%s32946_s30 + $0x30] sm:$0xff] %vm493_vm1, %v21225_v25  ;;  %v21191_v11 = vmul.f32 0.2, %v21155_v36  ;;  %v27308_v15 = vpop.f32.mrb[82].mxu0 }
0x1062   : > { %v21228_v7 = vadd.f32 %v21192_v35, %v32600_v43  ;;  %v21158_v50 = vadd.f32 %v27308_v15, %v32937_v26  ;;  %v20975_v21 = vpop.f32.mrb[83].mxu0 }
0x1063   : > { %v21227_v8 = vadd.f32 %v21191_v11, %v32596_v46  ;;  %v21157_v37 = vadd.f32 %v32937_v26, %v20975_v21 }
0x1064   : > { %21264 = vst.msk [vmem:[%s32946_s30 + $0x48] sm:$0xff] %vm493_vm1, %v21228_v7  ;;  %v21194_v3 = vmul.f32 0.2, %v21158_v50 }
0x1065   : > { %21263 = vst.msk [vmem:[%s32946_s30 + $0x40] sm:$0xff] %vm493_vm1, %v21227_v8  ;;  %v21193_v23 = vmul.f32 0.2, %v21157_v37  ;;  %v27311_v40 = vpop.f32.mrb[84].mxu0 }
0x1066   : > { %v21230_v31 = vadd.f32 %v21194_v3, %v32608_v41  ;;  %v21160_v43 = vadd.f32 %v27311_v40, %v32937_v26  ;;  %v20985_v62 = vpop.f32.mrb[85].mxu0 }
0x1067   : > { %v21229_v24 = vadd.f32 %v21193_v23, %v32604_v56  ;;  %v21159_v46 = vadd.f32 %v32937_v26, %v20985_v62 }
0x1068   : > { %21266 = vst.msk [vmem:[%s32946_s30 + $0x58] sm:$0xff] %vm493_vm1, %v21230_v31  ;;  %v21196_v61 = vmul.f32 0.2, %v21160_v43 }
0x1069   : > { %21265 = vst.msk [vmem:[%s32946_s30 + $0x50] sm:$0xff] %vm493_vm1, %v21229_v24  ;;  %v21195_v58 = vmul.f32 0.2, %v21159_v46  ;;  %v27314_v18 = vpop.f32.mrb[86].mxu0  ;;  %v33193_v24 = vld [vmem:[#allocation4_spill] sm:$0xff] }
0x106a   : > { %v21232_v19 = vadd.f32 %v21196_v61, %v32616_v54  ;;  %v21162_v41 = vadd.f32 %v27314_v18, %v32937_v26  ;;  %v20995_v14 = vpop.f32.mrb[87].mxu0 }
0x106b   : > { %v21231_v6 = vadd.f32 %v21195_v58, %v32612_v51  ;;  %v21161_v56 = vadd.f32 %v32937_v26, %v20995_v14  ;;  %v33194_v58 = vld [vmem:[#allocation3_spill] sm:$0xff] }
0x106c   : > { %21268 = vst.msk [vmem:[%s32946_s30 + $0x68] sm:$0xff] %vm493_vm1, %v21232_v19  ;;  %v21198_v28 = vmul.f32 0.2, %v21162_v41 }
0x106d   : > { %21267 = vst.msk [vmem:[%s32946_s30 + $0x60] sm:$0xff] %vm493_vm1, %v21231_v6  ;;  %v21197_v1 = vmul.f32 0.2, %v21161_v56  ;;  %v27317_v45 = vpop.f32.mrb[88].mxu0  ;;  %v33195_v6 = vld [vmem:[#allocation6_spill] sm:$0xff] }
0x106e   : > { %v21234_v29 = vadd.f32 %v21198_v28, %v32624_v9  ;;  %v21164_v54 = vadd.f32 %v27317_v45, %v32937_v26  ;;  %v21005_v42 = vpop.f32.mrb[89].mxu0  ;;  %v33196_v45 = vld [vmem:[#allocation5_spill] sm:$0xff] }
0x106f   : > { %v21233_v34 = vadd.f32 %v21197_v1, %v32620_v59  ;;  %v21163_v51 = vadd.f32 %v32937_v26, %v21005_v42 }
0x1070   : > { %21270 = vst.msk [vmem:[%s32946_s30 + $0x78] sm:$0xff] %vm493_vm1, %v21234_v29  ;;  %v21200_v10 = vmul.f32 0.2, %v21164_v54 }
0x1071   : > { %21269 = vst.msk [vmem:[%s32946_s30 + $0x70] sm:$0xff] %vm493_vm1, %v21233_v34  ;;  %v21199_v52 = vmul.f32 0.2, %v21163_v51  ;;  %v27320_v16 = vpop.f32.mrb[90].mxu0 }
0x1072   : > { %v21236_v60 = vadd.f32 %v21200_v10, %v32632_v63  ;;  %v21166_v9 = vadd.f32 %v27320_v16, %v32937_v26  ;;  %v21015_v49 = vpop.f32.mrb[91].mxu0  ;;  %v33197_v10 = vld [vmem:[#allocation8_spill] sm:$0xff] }
0x1073   : > { %v21235_v55 = vadd.f32 %v21199_v52, %v32628_v39  ;;  %v21165_v59 = vadd.f32 %v32937_v26, %v21015_v49 }
0x1074   : > { %21272 = vst.msk [vmem:[%s32946_s30 + $0x88] sm:$0xff] %vm493_vm1, %v21236_v60  ;;  %v21202_v0 = vmul.f32 0.2, %v21166_v9  ;;  %v33198_v9 = vld [vmem:[#allocation7_spill] sm:$0xff] }
0x1075   : > { %21271 = vst.msk [vmem:[%s32946_s30 + $0x80] sm:$0xff] %vm493_vm1, %v21235_v55  ;;  %v21201_v30 = vmul.f32 0.2, %v21165_v59  ;;  %v27323_v17 = vpop.f32.mrb[92].mxu0 }
0x1076   : > { %v21238_v44 = vadd.f32 %v21202_v0, %v32640_v5  ;;  %v21168_v63 = vadd.f32 %v27323_v17, %v32937_v26  ;;  %v21025_v33 = vpop.f32.mrb[93].mxu0  ;;  %v33199_v17 = vld [vmem:[#allocation10_spill] sm:$0xff] }
0x1077   : > { %v21237_v4 = vadd.f32 %v21201_v30, %v32636_v47  ;;  %v21167_v39 = vadd.f32 %v32937_v26, %v21025_v33 }
0x1078   : > { %21274 = vst.msk [vmem:[%s32946_s30 + $0x98] sm:$0xff] %vm493_vm1, %v21238_v44  ;;  %v21204_v53 = vmul.f32 0.2, %v21168_v63 }
0x1079   : > { %21273 = vst.msk [vmem:[%s32946_s30 + $0x90] sm:$0xff] %vm493_vm1, %v21237_v4  ;;  %v21203_v27 = vmul.f32 0.2, %v21167_v39  ;;  %v27326_v13 = vpop.f32.mrb[94].mxu0  ;;  %v33200_v4 = vld [vmem:[#allocation9_spill] sm:$0xff] }
0x107a   : > { %v21240_v2 = vadd.f32 %v21204_v53, %v32648_v57  ;;  %v21170_v5 = vadd.f32 %v27326_v13, %v32937_v26  ;;  %v21035_v22 = vpop.f32.mrb[95].mxu0 }
0x107b   : > { %v21239_v25 = vadd.f32 %v21203_v27, %v32644_v20  ;;  %v21169_v47 = vadd.f32 %v32937_v26, %v21035_v22  ;;  %v33202_v22 = vld [vmem:[#allocation11_spill] sm:$0xff] }
0x107c   : > { %21276 = vst.msk [vmem:[%s32946_s30 + $0xa8] sm:$0xff] %vm493_vm1, %v21240_v2  ;;  %v21206_v36 = vmul.f32 0.2, %v21170_v5  ;;  %v33201_v2 = vld [vmem:[#allocation12_spill] sm:$0xff] }
0x107d   : > { %21275 = vst.msk [vmem:[%s32946_s30 + $0xa0] sm:$0xff] %vm493_vm1, %v21239_v25  ;;  %v21205_v35 = vmul.f32 0.2, %v21169_v47  ;;  %v27329_v11 = vpop.f32.mrb[96].mxu0 }
0x107e   : > { %v21242_v15 = vadd.f32 %v21206_v36, %v32656_v48  ;;  %v21172_v57 = vadd.f32 %v27329_v11, %v32937_v26  ;;  %v21045_v7 = vpop.f32.mrb[97].mxu0 }
0x107f   : > { %v21241_v50 = vadd.f32 %v21205_v35, %v32652_v12  ;;  %v21171_v20 = vadd.f32 %v32937_v26, %v21045_v7 }
0x1080   : > { %21278 = vst.msk [vmem:[%s32946_s30 + $0xb8] sm:$0xff] %vm493_vm1, %v21242_v15  ;;  %v21208_v21 = vmul.f32 0.2, %v21172_v57 }
0x1081   : > { %21277 = vst.msk [vmem:[%s32946_s30 + $0xb0] sm:$0xff] %vm493_vm1, %v21241_v50  ;;  %v21207_v8 = vmul.f32 0.2, %v21171_v20  ;;  %v27332_v37 = vpop.f32.mrb[98].mxu0 }
0x1082   : > { %v21244_v3 = vadd.f32 %v21208_v21, %v32664_v32  ;;  %v21174_v48 = vadd.f32 %v27332_v37, %v32937_v26  ;;  %v21055_v23 = vpop.f32.mrb[99].mxu0 }
0x1083   : > { %v21243_v40 = vadd.f32 %v21207_v8, %v32660_v38  ;;  %v21173_v12 = vadd.f32 %v32937_v26, %v21055_v23 }
0x1084   : > { %21280 = vst.msk [vmem:[%s32946_s30 + $0xc8] sm:$0xff] %vm493_vm1, %v21244_v3  ;;  %v21210_v31 = vmul.f32 0.2, %v21174_v48 }
0x1085   : > { %21279 = vst.msk [vmem:[%s32946_s30 + $0xc0] sm:$0xff] %vm493_vm1, %v21243_v40  ;;  %v21209_v43 = vmul.f32 0.2, %v21173_v12  ;;  %v27335_v62 = vpop.f32.mrb[100].mxu0 }
0x1086   : > { %v21246_v46 = vadd.f32 %v21210_v31, %v33193_v24  ;;  %v21176_v32 = vadd.f32 %v27335_v62, %v32937_v26  ;;  %v21065_v61 = vpop.f32.mrb[101].mxu0 }
0x1087   : > { %v21245_v18 = vadd.f32 %v21209_v43, %v33194_v58  ;;  %v21175_v38 = vadd.f32 %v32937_v26, %v21065_v61 }
0x1088   : > { %21282 = vst.msk [vmem:[%s32946_s30 + $0xd8] sm:$0xff] %vm493_vm1, %v21246_v46  ;;  %v21212_v19 = vmul.f32 0.2, %v21176_v32 }
0x1089   : > { %21281 = vst.msk [vmem:[%s32946_s30 + $0xd0] sm:$0xff] %vm493_vm1, %v21245_v18  ;;  %v21211_v41 = vmul.f32 0.2, %v21175_v38  ;;  %v27338_v14 = vpop.f32.mrb[102].mxu0 }
0x108a   : > { %v21248_v56 = vadd.f32 %v21212_v19, %v33195_v6  ;;  %v21178_v28 = vadd.f32 %v27338_v14, %v32937_v26  ;;  %v21075_v1 = vpop.f32.mrb[103].mxu0 }
0x108b   : > { %v21247_v29 = vadd.f32 %v21211_v41, %v33196_v45  ;;  %v21177_v54 = vadd.f32 %v32937_v26, %v21075_v1 }
0x108c   : > { %21284 = vst.msk [vmem:[%s32946_s30 + $0xe8] sm:$0xff] %vm493_vm1, %v21248_v56  ;;  %v21214_v42 = vmul.f32 0.2, %v21178_v28 }
0x108d   : > { %21283 = vst.msk [vmem:[%s32946_s30 + $0xe0] sm:$0xff] %vm493_vm1, %v21247_v29  ;;  %v21213_v34 = vmul.f32 0.2, %v21177_v54  ;;  %v27341_v51 = vpop.f32.mrb[104].mxu0 }
0x108e   : > { %v21250_v52 = vadd.f32 %v21214_v42, %v33197_v10  ;;  %v21180_v16 = vadd.f32 %v27341_v51, %v32937_v26  ;;  %v21085_v60 = vpop.f32.mrb[105].mxu0 }
0x108f   : > { %v21249_v49 = vadd.f32 %v21213_v34, %v33198_v9  ;;  %v21179_v55 = vadd.f32 %v32937_v26, %v21085_v60 }
0x1090   : > { %21286 = vst.msk [vmem:[%s32946_s30 + $0xf8] sm:$0xff] %vm493_vm1, %v21250_v52  ;;  %v21216_v59 = vmul.f32 0.2, %v21180_v16 }
0x1091   : > { %21285 = vst.msk [vmem:[%s32946_s30 + $0xf0] sm:$0xff] %vm493_vm1, %v21249_v49  ;;  %v21215_v0 = vmul.f32 0.2, %v21179_v55  ;;  %v27344_v30 = vpop.f32.mrb[106].mxu0 }
0x1092   : > { %v21252_v44 = vadd.f32 %v21216_v59, %v33199_v17  ;;  %v21182_v63 = vadd.f32 %v27344_v30, %v32937_v26  ;;  %v21095_v33 = vpop.f32.mrb[107].mxu0 }
0x1093   : > { %v21251_v39 = vadd.f32 %v21215_v0, %v33200_v4  ;;  %v21181_v53 = vadd.f32 %v32937_v26, %v21095_v33 }
0x1094   : > { %21288 = vst.msk [vmem:[%s32946_s30 + $0x108] sm:$0xff] %vm493_vm1, %v21252_v44  ;;  %v21218_v27 = vmul.f32 0.2, %v21182_v63 }
0x1095   : > { %21287 = vst.msk [vmem:[%s32946_s30 + $0x100] sm:$0xff] %vm493_vm1, %v21251_v39  ;;  %v21217_v13 = vmul.f32 0.2, %v21181_v53 }
0x1096   : > { %v21254_v5 = vadd.f32 %v21218_v27, %v33201_v2 }
0x1097   : > { %v21253_v25 = vadd.f32 %v21217_v13, %v33202_v22 }
0x1098   : > { %21290 = vst.msk [vmem:[%s32946_s30 + $0x118] sm:$0xff] %vm493_vm1, %v21254_v5 }
0x1099   : > { %21289 = vst.msk [vmem:[%s32946_s30 + $0x110] sm:$0xff] %vm493_vm1, %v21253_v25 }
0x109a PF: > { %s22_s21 = sadd.s32 1, %s28974_s21  }
0x109b   : > { %p19_p4 = scmp.ge.s32.totalorder %s22_s21, 4  }
0x109d   :  { %21 = sbr.rel (!%p19_p4) target bundleno = 1 (0x1), region = 98 }

</bundles_post_ra>
